<compile_context>
chip_gen: v5e
topology: v5e:2x2
jax: 0.10.0
libtpu: 0.0.40
codegen_flags: <defaults>
</compile_context>

<pallas_src>
import numpy as np

import jax
import jax.numpy as jnp
from jax.experimental import pallas as pl
from jax.experimental.pallas import tpu as pltpu

TB = 8  # batch tile handled per grid step


# ----------------------------------------------------------------------------
# One-time constant builders (weight folding / selection matrices)
# ----------------------------------------------------------------------------
def _conv_left(w, h_in):
    """w: (Cout, Cin, KH, KW) -> L: (KW, Cout*Hout, Cin*Hin) with
    L[dj, co*Hout + y, ci*Hin + y + di] = w[co, ci, di, dj]."""
    cout, cin, kh, kw = w.shape
    h_out = h_in - kh + 1
    co, y, ci, di = np.meshgrid(np.arange(cout), np.arange(h_out),
                                np.arange(cin), np.arange(kh), indexing="ij")
    rows = (co * h_out + y).ravel()
    cols = (ci * h_in + y + di).ravel()
    vals = w[co.ravel(), ci.ravel(), di.ravel(), :].astype(jnp.float32)  # (idx, KW)
    L = jnp.zeros((cout * h_out, cin * h_in, kw), jnp.float32)
    L = L.at[rows, cols].set(vals)
    return jnp.transpose(L, (2, 0, 1))


def _shift_right(w_in, kw, tb):
    """R[dj, n*Win + x + dj, n*Wout + x] = 1  (block-diagonal column shift)."""
    w_out = w_in - kw + 1
    R = np.zeros((kw, tb * w_in, tb * w_out), np.float32)
    dj, n, x = np.meshgrid(np.arange(kw), np.arange(tb), np.arange(w_out),
                           indexing="ij")
    R[dj.ravel(), (n * w_in + x + dj).ravel(), (n * w_out + x).ravel()] = 1.0
    return jnp.asarray(R)


def _pool_rows(c, h_in):
    """P[p, c*Hout + y, c*Hin + 2y + p] = 1  (even/odd row pick)."""
    h_out = h_in // 2
    P = np.zeros((2, c * h_out, c * h_in), np.float32)
    p, ci, y = np.meshgrid(np.arange(2), np.arange(c), np.arange(h_out),
                           indexing="ij")
    P[p.ravel(), (ci * h_out + y).ravel(), (ci * h_in + 2 * y + p).ravel()] = 1.0
    return jnp.asarray(P)


def _pool_cols(w_in, tb):
    """C[p, n*Win + 2x + p, n*Wout + x] = 1  (even/odd column pick)."""
    w_out = w_in // 2
    C = np.zeros((2, tb * w_in, tb * w_out), np.float32)
    p, n, x = np.meshgrid(np.arange(2), np.arange(tb), np.arange(w_out),
                          indexing="ij")
    C[p.ravel(), (n * w_in + 2 * x + p).ravel(), (n * w_out + x).ravel()] = 1.0
    return jnp.asarray(C)


def _col_select(w_in, tb):
    """S[x, n*Win + x, n] = 1  (pick column x of every sample block)."""
    S = np.zeros((w_in, tb * w_in, tb), np.float32)
    x, n = np.meshgrid(np.arange(w_in), np.arange(tb), indexing="ij")
    S[x.ravel(), (n * w_in + x).ravel(), n.ravel()] = 1.0
    return jnp.asarray(S)


_CONST_ORDER = ("l1", "r1", "b1", "p1r", "p1c",
                "l2", "r2", "b2", "p2r", "p2c",
                "wf1", "sel", "bf1", "w2", "bf2", "w3", "bf3")


def prepare_consts(params, tb=TB):
    """Fold all weights/selections into kernel-ready matrices (done once)."""
    c = {}
    c["l1"] = _conv_left(params["conv1_w"], 32)                        # (5, 168, 96)
    c["r1"] = _shift_right(32, 5, tb)                                  # (5, tb*32, tb*28)
    c["b1"] = jnp.repeat(params["conv1_b"], 28)[:, None].astype(jnp.float32)
    c["p1r"] = _pool_rows(6, 28)                                       # (2, 84, 168)
    c["p1c"] = _pool_cols(28, tb)                                      # (2, tb*28, tb*14)
    c["l2"] = _conv_left(params["conv2_w"], 14)                        # (5, 160, 84)
    c["r2"] = _shift_right(14, 5, tb)                                  # (5, tb*14, tb*10)
    c["b2"] = jnp.repeat(params["conv2_b"], 10)[:, None].astype(jnp.float32)
    c["p2r"] = _pool_rows(16, 10)                                      # (2, 80, 160)
    c["p2c"] = _pool_cols(10, tb)                                      # (2, tb*10, tb*5)
    w4 = params["fc1_w"].reshape(120, 16, 5, 5)                        # torch flatten order
    c["wf1"] = jnp.transpose(w4, (3, 0, 1, 2)).reshape(5, 120, 80).astype(jnp.float32)
    c["sel"] = _col_select(5, tb)                                      # (5, tb*5, tb)
    c["bf1"] = params["fc1_b"][:, None].astype(jnp.float32)
    c["w2"] = params["fc2_w"].astype(jnp.float32)                      # (84, 120)
    c["bf2"] = params["fc2_b"][:, None].astype(jnp.float32)
    c["w3"] = params["fc3_w"].astype(jnp.float32)                      # (10, 84)
    c["bf3"] = params["fc3_b"][:, None].astype(jnp.float32)
    return c


# ----------------------------------------------------------------------------
# The fused Pallas kernel: the whole network for one batch tile
# ----------------------------------------------------------------------------
def _lenet_kernel(x_ref, l1_ref, r1_ref, b1_ref, p1r_ref, p1c_ref,
                  l2_ref, r2_ref, b2_ref, p2r_ref, p2c_ref,
                  wf1_ref, sel_ref, bf1_ref, w2_ref, bf2_ref, w3_ref, bf3_ref,
                  out_ref):
    f32 = jnp.float32

    def mm(a, b):
        return jnp.dot(a, b, preferred_element_type=f32)

    x0 = x_ref[...]                                                   # (96, TB*32)

    # conv1 + bias + ReLU
    acc = mm(mm(l1_ref[0], x0), r1_ref[0])
    for dj in range(1, 5):
        acc += mm(mm(l1_ref[dj], x0), r1_ref[dj])
    a1 = jnp.maximum(acc + b1_ref[...], 0.0)                          # (168, TB*28)

    # maxpool 2x2 (even/odd row then column selection + max)
    rmax = jnp.maximum(mm(p1r_ref[0], a1), mm(p1r_ref[1], a1))        # (84, TB*28)
    x1 = jnp.maximum(mm(rmax, p1c_ref[0]), mm(rmax, p1c_ref[1]))      # (84, TB*14)

    # conv2 + bias + ReLU
    acc = mm(mm(l2_ref[0], x1), r2_ref[0])
    for dj in range(1, 5):
        acc += mm(mm(l2_ref[dj], x1), r2_ref[dj])
    a2 = jnp.maximum(acc + b2_ref[...], 0.0)                          # (160, TB*10)

    # maxpool 2x2
    rmax2 = jnp.maximum(mm(p2r_ref[0], a2), mm(p2r_ref[1], a2))       # (80, TB*10)
    feat = jnp.maximum(mm(rmax2, p2c_ref[0]), mm(rmax2, p2c_ref[1]))  # (80, TB*5)

    # fc1 (torch flatten order folded into wf1 / sel) + ReLU
    acc = mm(wf1_ref[0], mm(feat, sel_ref[0]))
    for xx in range(1, 5):
        acc += mm(wf1_ref[xx], mm(feat, sel_ref[xx]))
    h1 = jnp.maximum(acc + bf1_ref[...], 0.0)                         # (120, TB)

    # fc2 + ReLU, fc3
    h2 = jnp.maximum(mm(w2_ref[...], h1) + bf2_ref[...], 0.0)         # (84, TB)
    out = mm(w3_ref[...], h2) + bf3_ref[...]                          # (10, TB)

    out_ref[...] = out[None, :, :].astype(out_ref.dtype)              # (1, 10, TB)


# ----------------------------------------------------------------------------
# Forward pass wrapper
# ----------------------------------------------------------------------------
@jax.jit
def net_forward(consts, x):
    tb = TB
    n = x.shape[0]
    g = (n + tb - 1) // tb
    npad = g * tb

    xp = jnp.pad(x.astype(jnp.float32), ((0, npad - n), (0, 0), (0, 0), (0, 0)))
    # Pack to (Cin*H, Npad*W):  rows = (ci, h), cols = (n, w)
    x0 = jnp.transpose(xp, (1, 2, 0, 3)).reshape(3 * 32, npad * 32)

    def const_spec(a):
        nd = a.ndim
        return pl.BlockSpec(a.shape, lambda i, _nd=nd: (0,) * _nd)

    in_specs = [pl.BlockSpec((3 * 32, tb * 32), lambda i: (0, i))]
    in_specs += [const_spec(consts[k]) for k in _CONST_ORDER]

    out = pl.pallas_call(
        _lenet_kernel,
        grid=(g,),
        out_shape=jax.ShapeDtypeStruct((g, 10, tb), jnp.float32),
        in_specs=in_specs,
        out_specs=pl.BlockSpec((1, 10, tb), lambda i: (i, 0, 0)),
        compiler_params=pltpu.CompilerParams(
            dimension_semantics=("parallel",),
            vmem_limit_bytes=32 * 1024 * 1024,
        ),
    )(x0, *[consts[k] for k in _CONST_ORDER])

    # (g, 10, tb) -> (Npad, 10) -> (N, 10)   (tiny post-processing glue)
    return jnp.transpose(out, (0, 2, 1)).reshape(npad, 10)[:n]


# ----------------------------------------------------------------------------
# Parameters (deterministic, PyTorch-style uniform init bounds)
# ----------------------------------------------------------------------------
def init_params(key):
    def uconv(k, cout, cin, kh, kw):
        kw_, kb_ = jax.random.split(k)
        bound = 1.0 / jnp.sqrt(cin * kh * kw)
        w = jax.random.uniform(kw_, (cout, cin, kh, kw), jnp.float32, -bound, bound)
        b = jax.random.uniform(kb_, (cout,), jnp.float32, -bound, bound)
        return w, b

    def ulin(k, fout, fin):
        kw_, kb_ = jax.random.split(k)
        bound = 1.0 / jnp.sqrt(fin)
        w = jax.random.uniform(kw_, (fout, fin), jnp.float32, -bound, bound)
        b = jax.random.uniform(kb_, (fout,), jnp.float32, -bound, bound)
        return w, b

    k1, k2, k3, k4, k5 = jax.random.split(key, 5)
    p = {}
    p["conv1_w"], p["conv1_b"] = uconv(k1, 6, 3, 5, 5)
    p["conv2_w"], p["conv2_b"] = uconv(k2, 16, 6, 5, 5)
    p["fc1_w"], p["fc1_b"] = ulin(k3, 120, 16 * 5 * 5)
    p["fc2_w"], p["fc2_b"] = ulin(k4, 84, 120)
    p["fc3_w"], p["fc3_b"] = ulin(k5, 10, 84)
    return p


# ----------------------------------------------------------------------------
# Plain-JAX reference (structural correctness check only)
# ----------------------------------------------------------------------------
def _reference_forward(params, x):
    dn = ("NCHW", "OIHW", "NCHW")
    y = jax.lax.conv_general_dilated(x, params["conv1_w"], (1, 1), "VALID",
                                     dimension_numbers=dn)
    y = jnp.maximum(y + params["conv1_b"][None, :, None, None], 0.0)
    y = jax.lax.reduce_window(y, -jnp.inf, jax.lax.max,
                              (1, 1, 2, 2), (1, 1, 2, 2), "VALID")
    y = jax.lax.conv_general_dilated(y, params["conv2_w"], (1, 1), "VALID",
                                     dimension_numbers=dn)
    y = jnp.maximum(y + params["conv2_b"][None, :, None, None], 0.0)
    y = jax.lax.reduce_window(y, -jnp.inf, jax.lax.max,
                              (1, 1, 2, 2), (1, 1, 2, 2), "VALID")
    y = y.reshape(y.shape[0], -1)
    y = jnp.maximum(y @ params["fc1_w"].T + params["fc1_b"], 0.0)
    y = jnp.maximum(y @ params["fc2_w"].T + params["fc2_b"], 0.0)
    return y @ params["fc3_w"].T + params["fc3_b"]


if __name__ == "__main__":
    key = jax.random.PRNGKey(0)
    kp, kx = jax.random.split(key)
    params = init_params(kp)
    consts = prepare_consts(params, TB)

    # Net requires 32x32 spatial input (16*5*5 after two conv+pool stages).
    x = jax.random.normal(kx, (2, 3, 32, 32), dtype=jnp.float32)

    out = jax.block_until_ready(net_forward(consts, x))
    assert out.shape == (2, 10), out.shape
    assert bool(jnp.all(jnp.isfinite(out)))

    # Structural correctness check against a plain-JAX/XLA reference
    # (loose tolerance covers TPU matmul-precision differences).
    ref = _reference_forward(params, x)
    err = float(jnp.linalg.norm(out - ref) / (jnp.linalg.norm(ref) + 1e-12))
    assert err < 0.1, f"mismatch vs reference: rel-l2={err}"

    print("KERNEL_OK")
</pallas_src>

<mosaic_0001>
module attributes {stable_mosaic.version = 11 : i64} {
  func.func @_lenet_kernel(%arg0: i32, %arg1: memref<96x256xf32, #tpu.memory_space<vmem>>, %arg2: memref<5x168x96xf32, #tpu.memory_space<vmem>>, %arg3: memref<5x256x224xf32, #tpu.memory_space<vmem>>, %arg4: memref<168x1xf32, #tpu.memory_space<vmem>>, %arg5: memref<2x84x168xf32, #tpu.memory_space<vmem>>, %arg6: memref<2x224x112xf32, #tpu.memory_space<vmem>>, %arg7: memref<5x160x84xf32, #tpu.memory_space<vmem>>, %arg8: memref<5x112x80xf32, #tpu.memory_space<vmem>>, %arg9: memref<160x1xf32, #tpu.memory_space<vmem>>, %arg10: memref<2x80x160xf32, #tpu.memory_space<vmem>>, %arg11: memref<2x80x40xf32, #tpu.memory_space<vmem>>, %arg12: memref<5x120x80xf32, #tpu.memory_space<vmem>>, %arg13: memref<5x40x8xf32, #tpu.memory_space<vmem>>, %arg14: memref<120x1xf32, #tpu.memory_space<vmem>>, %arg15: memref<84x120xf32, #tpu.memory_space<vmem>>, %arg16: memref<84x1xf32, #tpu.memory_space<vmem>>, %arg17: memref<10x84xf32, #tpu.memory_space<vmem>>, %arg18: memref<10x1xf32, #tpu.memory_space<vmem>>, %arg19: memref<1x10x8xf32, #tpu.memory_space<vmem>>) attributes {dimension_semantics = [#tpu.dimension_semantics<parallel>], iteration_bounds = array<i64: 1>, scalar_prefetch = 0 : i64, scratch_operands = 0 : i64, tpu.core_type = #tpu.core_type<tc>, window_params = [{transform_indices = @transform_0, window_bounds = array<i64: 96, 256>}, {pipeline_mode = #tpu.pipeline_mode<synchronous>, transform_indices = @transform_1, window_bounds = array<i64: 5, 168, 96>}, {pipeline_mode = #tpu.pipeline_mode<synchronous>, transform_indices = @transform_2, window_bounds = array<i64: 5, 256, 224>}, {pipeline_mode = #tpu.pipeline_mode<synchronous>, transform_indices = @transform_3, window_bounds = array<i64: 168, 1>}, {pipeline_mode = #tpu.pipeline_mode<synchronous>, transform_indices = @transform_4, window_bounds = array<i64: 2, 84, 168>}, {pipeline_mode = #tpu.pipeline_mode<synchronous>, transform_indices = @transform_5, window_bounds = array<i64: 2, 224, 112>}, {pipeline_mode = #tpu.pipeline_mode<synchronous>, transform_indices = @transform_6, window_bounds = array<i64: 5, 160, 84>}, {pipeline_mode = #tpu.pipeline_mode<synchronous>, transform_indices = @transform_7, window_bounds = array<i64: 5, 112, 80>}, {pipeline_mode = #tpu.pipeline_mode<synchronous>, transform_indices = @transform_8, window_bounds = array<i64: 160, 1>}, {pipeline_mode = #tpu.pipeline_mode<synchronous>, transform_indices = @transform_9, window_bounds = array<i64: 2, 80, 160>}, {pipeline_mode = #tpu.pipeline_mode<synchronous>, transform_indices = @transform_10, window_bounds = array<i64: 2, 80, 40>}, {pipeline_mode = #tpu.pipeline_mode<synchronous>, transform_indices = @transform_11, window_bounds = array<i64: 5, 120, 80>}, {pipeline_mode = #tpu.pipeline_mode<synchronous>, transform_indices = @transform_12, window_bounds = array<i64: 5, 40, 8>}, {pipeline_mode = #tpu.pipeline_mode<synchronous>, transform_indices = @transform_13, window_bounds = array<i64: 120, 1>}, {pipeline_mode = #tpu.pipeline_mode<synchronous>, transform_indices = @transform_14, window_bounds = array<i64: 84, 120>}, {pipeline_mode = #tpu.pipeline_mode<synchronous>, transform_indices = @transform_15, window_bounds = array<i64: 84, 1>}, {pipeline_mode = #tpu.pipeline_mode<synchronous>, transform_indices = @transform_16, window_bounds = array<i64: 10, 84>}, {pipeline_mode = #tpu.pipeline_mode<synchronous>, transform_indices = @transform_17, window_bounds = array<i64: 10, 1>}, {transform_indices = @transform_18, window_bounds = array<i64: 1, 10, 8>}]} {
    %c0 = arith.constant 0 : index
    %c0_0 = arith.constant 0 : index
    %0 = vector.load %arg1[%c0, %c0_0] : memref<96x256xf32, #tpu.memory_space<vmem>>, vector<96x256xf32>
    %c0_1 = arith.constant 0 : index
    %c0_2 = arith.constant 0 : index
    %c0_3 = arith.constant 0 : index
    %1 = vector.load %arg2[%c0_1, %c0_2, %c0_3] : memref<5x168x96xf32, #tpu.memory_space<vmem>>, vector<1x168x96xf32>
    %2 = vector.shape_cast %1 : vector<1x168x96xf32> to vector<168x96xf32>
    %cst = arith.constant dense<0.000000e+00> : vector<168x256xf32>
    %3 = tpu.matmul %2, %0, %cst {dimension_numbers = #tpu.dot_dimension_numbers<[1], [0], [0], [1], [0, 0, 1, 1], [], []>} : vector<168x96xf32>, vector<96x256xf32>, vector<168x256xf32> -> vector<168x256xf32>
    %c0_4 = arith.constant 0 : index
    %c0_5 = arith.constant 0 : index
    %c0_6 = arith.constant 0 : index
    %4 = vector.load %arg3[%c0_4, %c0_5, %c0_6] : memref<5x256x224xf32, #tpu.memory_space<vmem>>, vector<1x256x224xf32>
    %5 = vector.shape_cast %4 : vector<1x256x224xf32> to vector<256x224xf32>
    %cst_7 = arith.constant dense<0.000000e+00> : vector<168x224xf32>
    %6 = tpu.matmul %3, %5, %cst_7 {dimension_numbers = #tpu.dot_dimension_numbers<[1], [0], [0], [1], [0, 0, 1, 1], [], []>} : vector<168x256xf32>, vector<256x224xf32>, vector<168x224xf32> -> vector<168x224xf32>
    %c1 = arith.constant 1 : index
    %c0_8 = arith.constant 0 : index
    %c0_9 = arith.constant 0 : index
    %7 = vector.load %arg2[%c1, %c0_8, %c0_9] : memref<5x168x96xf32, #tpu.memory_space<vmem>>, vector<1x168x96xf32>
    %8 = vector.shape_cast %7 : vector<1x168x96xf32> to vector<168x96xf32>
    %cst_10 = arith.constant dense<0.000000e+00> : vector<168x256xf32>
    %9 = tpu.matmul %8, %0, %cst_10 {dimension_numbers = #tpu.dot_dimension_numbers<[1], [0], [0], [1], [0, 0, 1, 1], [], []>} : vector<168x96xf32>, vector<96x256xf32>, vector<168x256xf32> -> vector<168x256xf32>
    %c1_11 = arith.constant 1 : index
    %c0_12 = arith.constant 0 : index
    %c0_13 = arith.constant 0 : index
    %10 = vector.load %arg3[%c1_11, %c0_12, %c0_13] : memref<5x256x224xf32, #tpu.memory_space<vmem>>, vector<1x256x224xf32>
    %11 = vector.shape_cast %10 : vector<1x256x224xf32> to vector<256x224xf32>
    %cst_14 = arith.constant dense<0.000000e+00> : vector<168x224xf32>
    %12 = tpu.matmul %9, %11, %cst_14 {dimension_numbers = #tpu.dot_dimension_numbers<[1], [0], [0], [1], [0, 0, 1, 1], [], []>} : vector<168x256xf32>, vector<256x224xf32>, vector<168x224xf32> -> vector<168x224xf32>
    %13 = arith.addf %6, %12 : vector<168x224xf32>
    %c2 = arith.constant 2 : index
    %c0_15 = arith.constant 0 : index
    %c0_16 = arith.constant 0 : index
    %14 = vector.load %arg2[%c2, %c0_15, %c0_16] : memref<5x168x96xf32, #tpu.memory_space<vmem>>, vector<1x168x96xf32>
    %15 = vector.shape_cast %14 : vector<1x168x96xf32> to vector<168x96xf32>
    %cst_17 = arith.constant dense<0.000000e+00> : vector<168x256xf32>
    %16 = tpu.matmul %15, %0, %cst_17 {dimension_numbers = #tpu.dot_dimension_numbers<[1], [0], [0], [1], [0, 0, 1, 1], [], []>} : vector<168x96xf32>, vector<96x256xf32>, vector<168x256xf32> -> vector<168x256xf32>
    %c2_18 = arith.constant 2 : index
    %c0_19 = arith.constant 0 : index
    %c0_20 = arith.constant 0 : index
    %17 = vector.load %arg3[%c2_18, %c0_19, %c0_20] : memref<5x256x224xf32, #tpu.memory_space<vmem>>, vector<1x256x224xf32>
    %18 = vector.shape_cast %17 : vector<1x256x224xf32> to vector<256x224xf32>
    %cst_21 = arith.constant dense<0.000000e+00> : vector<168x224xf32>
    %19 = tpu.matmul %16, %18, %cst_21 {dimension_numbers = #tpu.dot_dimension_numbers<[1], [0], [0], [1], [0, 0, 1, 1], [], []>} : vector<168x256xf32>, vector<256x224xf32>, vector<168x224xf32> -> vector<168x224xf32>
    %20 = arith.addf %13, %19 : vector<168x224xf32>
    %c3 = arith.constant 3 : index
    %c0_22 = arith.constant 0 : index
    %c0_23 = arith.constant 0 : index
    %21 = vector.load %arg2[%c3, %c0_22, %c0_23] : memref<5x168x96xf32, #tpu.memory_space<vmem>>, vector<1x168x96xf32>
    %22 = vector.shape_cast %21 : vector<1x168x96xf32> to vector<168x96xf32>
    %cst_24 = arith.constant dense<0.000000e+00> : vector<168x256xf32>
    %23 = tpu.matmul %22, %0, %cst_24 {dimension_numbers = #tpu.dot_dimension_numbers<[1], [0], [0], [1], [0, 0, 1, 1], [], []>} : vector<168x96xf32>, vector<96x256xf32>, vector<168x256xf32> -> vector<168x256xf32>
    %c3_25 = arith.constant 3 : index
    %c0_26 = arith.constant 0 : index
    %c0_27 = arith.constant 0 : index
    %24 = vector.load %arg3[%c3_25, %c0_26, %c0_27] : memref<5x256x224xf32, #tpu.memory_space<vmem>>, vector<1x256x224xf32>
    %25 = vector.shape_cast %24 : vector<1x256x224xf32> to vector<256x224xf32>
    %cst_28 = arith.constant dense<0.000000e+00> : vector<168x224xf32>
    %26 = tpu.matmul %23, %25, %cst_28 {dimension_numbers = #tpu.dot_dimension_numbers<[1], [0], [0], [1], [0, 0, 1, 1], [], []>} : vector<168x256xf32>, vector<256x224xf32>, vector<168x224xf32> -> vector<168x224xf32>
    %27 = arith.addf %20, %26 : vector<168x224xf32>
    %c4 = arith.constant 4 : index
    %c0_29 = arith.constant 0 : index
    %c0_30 = arith.constant 0 : index
    %28 = vector.load %arg2[%c4, %c0_29, %c0_30] : memref<5x168x96xf32, #tpu.memory_space<vmem>>, vector<1x168x96xf32>
    %29 = vector.shape_cast %28 : vector<1x168x96xf32> to vector<168x96xf32>
    %cst_31 = arith.constant dense<0.000000e+00> : vector<168x256xf32>
    %30 = tpu.matmul %29, %0, %cst_31 {dimension_numbers = #tpu.dot_dimension_numbers<[1], [0], [0], [1], [0, 0, 1, 1], [], []>} : vector<168x96xf32>, vector<96x256xf32>, vector<168x256xf32> -> vector<168x256xf32>
    %c4_32 = arith.constant 4 : index
    %c0_33 = arith.constant 0 : index
    %c0_34 = arith.constant 0 : index
    %31 = vector.load %arg3[%c4_32, %c0_33, %c0_34] : memref<5x256x224xf32, #tpu.memory_space<vmem>>, vector<1x256x224xf32>
    %32 = vector.shape_cast %31 : vector<1x256x224xf32> to vector<256x224xf32>
    %cst_35 = arith.constant dense<0.000000e+00> : vector<168x224xf32>
    %33 = tpu.matmul %30, %32, %cst_35 {dimension_numbers = #tpu.dot_dimension_numbers<[1], [0], [0], [1], [0, 0, 1, 1], [], []>} : vector<168x256xf32>, vector<256x224xf32>, vector<168x224xf32> -> vector<168x224xf32>
    %34 = arith.addf %27, %33 : vector<168x224xf32>
    %c0_36 = arith.constant 0 : index
    %c0_37 = arith.constant 0 : index
    %35 = vector.load %arg4[%c0_36, %c0_37] : memref<168x1xf32, #tpu.memory_space<vmem>>, vector<168x1xf32>
    %36 = vector.broadcast %35 : vector<168x1xf32> to vector<168x224xf32>
    %37 = arith.addf %34, %36 : vector<168x224xf32>
    %cst_38 = arith.constant 0.000000e+00 : f32
    %38 = vector.broadcast %cst_38 : f32 to vector<168x224xf32>
    %39 = arith.maximumf %37, %38 : vector<168x224xf32>
    %c0_39 = arith.constant 0 : index
    %c0_40 = arith.constant 0 : index
    %c0_41 = arith.constant 0 : index
    %40 = vector.load %arg5[%c0_39, %c0_40, %c0_41] : memref<2x84x168xf32, #tpu.memory_space<vmem>>, vector<1x84x168xf32>
    %41 = vector.shape_cast %40 : vector<1x84x168xf32> to vector<84x168xf32>
    %cst_42 = arith.constant dense<0.000000e+00> : vector<84x224xf32>
    %42 = tpu.matmul %41, %39, %cst_42 {dimension_numbers = #tpu.dot_dimension_numbers<[1], [0], [0], [1], [0, 0, 1, 1], [], []>} : vector<84x168xf32>, vector<168x224xf32>, vector<84x224xf32> -> vector<84x224xf32>
    %c1_43 = arith.constant 1 : index
    %c0_44 = arith.constant 0 : index
    %c0_45 = arith.constant 0 : index
    %43 = vector.load %arg5[%c1_43, %c0_44, %c0_45] : memref<2x84x168xf32, #tpu.memory_space<vmem>>, vector<1x84x168xf32>
    %44 = vector.shape_cast %43 : vector<1x84x168xf32> to vector<84x168xf32>
    %cst_46 = arith.constant dense<0.000000e+00> : vector<84x224xf32>
    %45 = tpu.matmul %44, %39, %cst_46 {dimension_numbers = #tpu.dot_dimension_numbers<[1], [0], [0], [1], [0, 0, 1, 1], [], []>} : vector<84x168xf32>, vector<168x224xf32>, vector<84x224xf32> -> vector<84x224xf32>
    %46 = arith.maximumf %42, %45 : vector<84x224xf32>
    %c0_47 = arith.constant 0 : index
    %c0_48 = arith.constant 0 : index
    %c0_49 = arith.constant 0 : index
    %47 = vector.load %arg6[%c0_47, %c0_48, %c0_49] : memref<2x224x112xf32, #tpu.memory_space<vmem>>, vector<1x224x112xf32>
    %48 = vector.shape_cast %47 : vector<1x224x112xf32> to vector<224x112xf32>
    %cst_50 = arith.constant dense<0.000000e+00> : vector<84x112xf32>
    %49 = tpu.matmul %46, %48, %cst_50 {dimension_numbers = #tpu.dot_dimension_numbers<[1], [0], [0], [1], [0, 0, 1, 1], [], []>} : vector<84x224xf32>, vector<224x112xf32>, vector<84x112xf32> -> vector<84x112xf32>
    %c1_51 = arith.constant 1 : index
    %c0_52 = arith.constant 0 : index
    %c0_53 = arith.constant 0 : index
    %50 = vector.load %arg6[%c1_51, %c0_52, %c0_53] : memref<2x224x112xf32, #tpu.memory_space<vmem>>, vector<1x224x112xf32>
    %51 = vector.shape_cast %50 : vector<1x224x112xf32> to vector<224x112xf32>
    %cst_54 = arith.constant dense<0.000000e+00> : vector<84x112xf32>
    %52 = tpu.matmul %46, %51, %cst_54 {dimension_numbers = #tpu.dot_dimension_numbers<[1], [0], [0], [1], [0, 0, 1, 1], [], []>} : vector<84x224xf32>, vector<224x112xf32>, vector<84x112xf32> -> vector<84x112xf32>
    %53 = arith.maximumf %49, %52 : vector<84x112xf32>
    %c0_55 = arith.constant 0 : index
    %c0_56 = arith.constant 0 : index
    %c0_57 = arith.constant 0 : index
    %54 = vector.load %arg7[%c0_55, %c0_56, %c0_57] : memref<5x160x84xf32, #tpu.memory_space<vmem>>, vector<1x160x84xf32>
    %55 = vector.shape_cast %54 : vector<1x160x84xf32> to vector<160x84xf32>
    %cst_58 = arith.constant dense<0.000000e+00> : vector<160x112xf32>
    %56 = tpu.matmul %55, %53, %cst_58 {dimension_numbers = #tpu.dot_dimension_numbers<[1], [0], [0], [1], [0, 0, 1, 1], [], []>} : vector<160x84xf32>, vector<84x112xf32>, vector<160x112xf32> -> vector<160x112xf32>
    %c0_59 = arith.constant 0 : index
    %c0_60 = arith.constant 0 : index
    %c0_61 = arith.constant 0 : index
    %57 = vector.load %arg8[%c0_59, %c0_60, %c0_61] : memref<5x112x80xf32, #tpu.memory_space<vmem>>, vector<1x112x80xf32>
    %58 = vector.shape_cast %57 : vector<1x112x80xf32> to vector<112x80xf32>
    %cst_62 = arith.constant dense<0.000000e+00> : vector<160x80xf32>
    %59 = tpu.matmul %56, %58, %cst_62 {dimension_numbers = #tpu.dot_dimension_numbers<[1], [0], [0], [1], [0, 0, 1, 1], [], []>} : vector<160x112xf32>, vector<112x80xf32>, vector<160x80xf32> -> vector<160x80xf32>
    %c1_63 = arith.constant 1 : index
    %c0_64 = arith.constant 0 : index
    %c0_65 = arith.constant 0 : index
    %60 = vector.load %arg7[%c1_63, %c0_64, %c0_65] : memref<5x160x84xf32, #tpu.memory_space<vmem>>, vector<1x160x84xf32>
    %61 = vector.shape_cast %60 : vector<1x160x84xf32> to vector<160x84xf32>
    %cst_66 = arith.constant dense<0.000000e+00> : vector<160x112xf32>
    %62 = tpu.matmul %61, %53, %cst_66 {dimension_numbers = #tpu.dot_dimension_numbers<[1], [0], [0], [1], [0, 0, 1, 1], [], []>} : vector<160x84xf32>, vector<84x112xf32>, vector<160x112xf32> -> vector<160x112xf32>
    %c1_67 = arith.constant 1 : index
    %c0_68 = arith.constant 0 : index
    %c0_69 = arith.constant 0 : index
    %63 = vector.load %arg8[%c1_67, %c0_68, %c0_69] : memref<5x112x80xf32, #tpu.memory_space<vmem>>, vector<1x112x80xf32>
    %64 = vector.shape_cast %63 : vector<1x112x80xf32> to vector<112x80xf32>
    %cst_70 = arith.constant dense<0.000000e+00> : vector<160x80xf32>
    %65 = tpu.matmul %62, %64, %cst_70 {dimension_numbers = #tpu.dot_dimension_numbers<[1], [0], [0], [1], [0, 0, 1, 1], [], []>} : vector<160x112xf32>, vector<112x80xf32>, vector<160x80xf32> -> vector<160x80xf32>
    %66 = arith.addf %59, %65 : vector<160x80xf32>
    %c2_71 = arith.constant 2 : index
    %c0_72 = arith.constant 0 : index
    %c0_73 = arith.constant 0 : index
    %67 = vector.load %arg7[%c2_71, %c0_72, %c0_73] : memref<5x160x84xf32, #tpu.memory_space<vmem>>, vector<1x160x84xf32>
    %68 = vector.shape_cast %67 : vector<1x160x84xf32> to vector<160x84xf32>
    %cst_74 = arith.constant dense<0.000000e+00> : vector<160x112xf32>
    %69 = tpu.matmul %68, %53, %cst_74 {dimension_numbers = #tpu.dot_dimension_numbers<[1], [0], [0], [1], [0, 0, 1, 1], [], []>} : vector<160x84xf32>, vector<84x112xf32>, vector<160x112xf32> -> vector<160x112xf32>
    %c2_75 = arith.constant 2 : index
    %c0_76 = arith.constant 0 : index
    %c0_77 = arith.constant 0 : index
    %70 = vector.load %arg8[%c2_75, %c0_76, %c0_77] : memref<5x112x80xf32, #tpu.memory_space<vmem>>, vector<1x112x80xf32>
    %71 = vector.shape_cast %70 : vector<1x112x80xf32> to vector<112x80xf32>
    %cst_78 = arith.constant dense<0.000000e+00> : vector<160x80xf32>
    %72 = tpu.matmul %69, %71, %cst_78 {dimension_numbers = #tpu.dot_dimension_numbers<[1], [0], [0], [1], [0, 0, 1, 1], [], []>} : vector<160x112xf32>, vector<112x80xf32>, vector<160x80xf32> -> vector<160x80xf32>
    %73 = arith.addf %66, %72 : vector<160x80xf32>
    %c3_79 = arith.constant 3 : index
    %c0_80 = arith.constant 0 : index
    %c0_81 = arith.constant 0 : index
    %74 = vector.load %arg7[%c3_79, %c0_80, %c0_81] : memref<5x160x84xf32, #tpu.memory_space<vmem>>, vector<1x160x84xf32>
    %75 = vector.shape_cast %74 : vector<1x160x84xf32> to vector<160x84xf32>
    %cst_82 = arith.constant dense<0.000000e+00> : vector<160x112xf32>
    %76 = tpu.matmul %75, %53, %cst_82 {dimension_numbers = #tpu.dot_dimension_numbers<[1], [0], [0], [1], [0, 0, 1, 1], [], []>} : vector<160x84xf32>, vector<84x112xf32>, vector<160x112xf32> -> vector<160x112xf32>
    %c3_83 = arith.constant 3 : index
    %c0_84 = arith.constant 0 : index
    %c0_85 = arith.constant 0 : index
    %77 = vector.load %arg8[%c3_83, %c0_84, %c0_85] : memref<5x112x80xf32, #tpu.memory_space<vmem>>, vector<1x112x80xf32>
    %78 = vector.shape_cast %77 : vector<1x112x80xf32> to vector<112x80xf32>
    %cst_86 = arith.constant dense<0.000000e+00> : vector<160x80xf32>
    %79 = tpu.matmul %76, %78, %cst_86 {dimension_numbers = #tpu.dot_dimension_numbers<[1], [0], [0], [1], [0, 0, 1, 1], [], []>} : vector<160x112xf32>, vector<112x80xf32>, vector<160x80xf32> -> vector<160x80xf32>
    %80 = arith.addf %73, %79 : vector<160x80xf32>
    %c4_87 = arith.constant 4 : index
    %c0_88 = arith.constant 0 : index
    %c0_89 = arith.constant 0 : index
    %81 = vector.load %arg7[%c4_87, %c0_88, %c0_89] : memref<5x160x84xf32, #tpu.memory_space<vmem>>, vector<1x160x84xf32>
    %82 = vector.shape_cast %81 : vector<1x160x84xf32> to vector<160x84xf32>
    %cst_90 = arith.constant dense<0.000000e+00> : vector<160x112xf32>
    %83 = tpu.matmul %82, %53, %cst_90 {dimension_numbers = #tpu.dot_dimension_numbers<[1], [0], [0], [1], [0, 0, 1, 1], [], []>} : vector<160x84xf32>, vector<84x112xf32>, vector<160x112xf32> -> vector<160x112xf32>
    %c4_91 = arith.constant 4 : index
    %c0_92 = arith.constant 0 : index
    %c0_93 = arith.constant 0 : index
    %84 = vector.load %arg8[%c4_91, %c0_92, %c0_93] : memref<5x112x80xf32, #tpu.memory_space<vmem>>, vector<1x112x80xf32>
    %85 = vector.shape_cast %84 : vector<1x112x80xf32> to vector<112x80xf32>
    %cst_94 = arith.constant dense<0.000000e+00> : vector<160x80xf32>
    %86 = tpu.matmul %83, %85, %cst_94 {dimension_numbers = #tpu.dot_dimension_numbers<[1], [0], [0], [1], [0, 0, 1, 1], [], []>} : vector<160x112xf32>, vector<112x80xf32>, vector<160x80xf32> -> vector<160x80xf32>
    %87 = arith.addf %80, %86 : vector<160x80xf32>
    %c0_95 = arith.constant 0 : index
    %c0_96 = arith.constant 0 : index
    %88 = vector.load %arg9[%c0_95, %c0_96] : memref<160x1xf32, #tpu.memory_space<vmem>>, vector<160x1xf32>
    %89 = vector.broadcast %88 : vector<160x1xf32> to vector<160x80xf32>
    %90 = arith.addf %87, %89 : vector<160x80xf32>
    %cst_97 = arith.constant 0.000000e+00 : f32
    %91 = vector.broadcast %cst_97 : f32 to vector<160x80xf32>
    %92 = arith.maximumf %90, %91 : vector<160x80xf32>
    %c0_98 = arith.constant 0 : index
    %c0_99 = arith.constant 0 : index
    %c0_100 = arith.constant 0 : index
    %93 = vector.load %arg10[%c0_98, %c0_99, %c0_100] : memref<2x80x160xf32, #tpu.memory_space<vmem>>, vector<1x80x160xf32>
    %94 = vector.shape_cast %93 : vector<1x80x160xf32> to vector<80x160xf32>
    %cst_101 = arith.constant dense<0.000000e+00> : vector<80x80xf32>
    %95 = tpu.matmul %94, %92, %cst_101 {dimension_numbers = #tpu.dot_dimension_numbers<[1], [0], [0], [1], [0, 0, 1, 1], [], []>} : vector<80x160xf32>, vector<160x80xf32>, vector<80x80xf32> -> vector<80x80xf32>
    %c1_102 = arith.constant 1 : index
    %c0_103 = arith.constant 0 : index
    %c0_104 = arith.constant 0 : index
    %96 = vector.load %arg10[%c1_102, %c0_103, %c0_104] : memref<2x80x160xf32, #tpu.memory_space<vmem>>, vector<1x80x160xf32>
    %97 = vector.shape_cast %96 : vector<1x80x160xf32> to vector<80x160xf32>
    %cst_105 = arith.constant dense<0.000000e+00> : vector<80x80xf32>
    %98 = tpu.matmul %97, %92, %cst_105 {dimension_numbers = #tpu.dot_dimension_numbers<[1], [0], [0], [1], [0, 0, 1, 1], [], []>} : vector<80x160xf32>, vector<160x80xf32>, vector<80x80xf32> -> vector<80x80xf32>
    %99 = arith.maximumf %95, %98 : vector<80x80xf32>
    %c0_106 = arith.constant 0 : index
    %c0_107 = arith.constant 0 : index
    %c0_108 = arith.constant 0 : index
    %100 = vector.load %arg11[%c0_106, %c0_107, %c0_108] : memref<2x80x40xf32, #tpu.memory_space<vmem>>, vector<1x80x40xf32>
    %101 = vector.shape_cast %100 : vector<1x80x40xf32> to vector<80x40xf32>
    %cst_109 = arith.constant dense<0.000000e+00> : vector<80x40xf32>
    %102 = tpu.matmul %99, %101, %cst_109 {dimension_numbers = #tpu.dot_dimension_numbers<[1], [0], [0], [1], [0, 0, 1, 1], [], []>} : vector<80x80xf32>, vector<80x40xf32>, vector<80x40xf32> -> vector<80x40xf32>
    %c1_110 = arith.constant 1 : index
    %c0_111 = arith.constant 0 : index
    %c0_112 = arith.constant 0 : index
    %103 = vector.load %arg11[%c1_110, %c0_111, %c0_112] : memref<2x80x40xf32, #tpu.memory_space<vmem>>, vector<1x80x40xf32>
    %104 = vector.shape_cast %103 : vector<1x80x40xf32> to vector<80x40xf32>
    %cst_113 = arith.constant dense<0.000000e+00> : vector<80x40xf32>
    %105 = tpu.matmul %99, %104, %cst_113 {dimension_numbers = #tpu.dot_dimension_numbers<[1], [0], [0], [1], [0, 0, 1, 1], [], []>} : vector<80x80xf32>, vector<80x40xf32>, vector<80x40xf32> -> vector<80x40xf32>
    %106 = arith.maximumf %102, %105 : vector<80x40xf32>
    %c0_114 = arith.constant 0 : index
    %c0_115 = arith.constant 0 : index
    %c0_116 = arith.constant 0 : index
    %107 = vector.load %arg12[%c0_114, %c0_115, %c0_116] : memref<5x120x80xf32, #tpu.memory_space<vmem>>, vector<1x120x80xf32>
    %108 = vector.shape_cast %107 : vector<1x120x80xf32> to vector<120x80xf32>
    %c0_117 = arith.constant 0 : index
    %c0_118 = arith.constant 0 : index
    %c0_119 = arith.constant 0 : index
    %109 = vector.load %arg13[%c0_117, %c0_118, %c0_119] : memref<5x40x8xf32, #tpu.memory_space<vmem>>, vector<1x40x8xf32>
    %110 = vector.shape_cast %109 : vector<1x40x8xf32> to vector<40x8xf32>
    %cst_120 = arith.constant dense<0.000000e+00> : vector<80x8xf32>
    %111 = tpu.matmul %106, %110, %cst_120 {dimension_numbers = #tpu.dot_dimension_numbers<[1], [0], [0], [1], [0, 0, 1, 1], [], []>} : vector<80x40xf32>, vector<40x8xf32>, vector<80x8xf32> -> vector<80x8xf32>
    %cst_121 = arith.constant dense<0.000000e+00> : vector<120x8xf32>
    %112 = tpu.matmul %108, %111, %cst_121 {dimension_numbers = #tpu.dot_dimension_numbers<[1], [0], [0], [1], [0, 0, 1, 1], [], []>} : vector<120x80xf32>, vector<80x8xf32>, vector<120x8xf32> -> vector<120x8xf32>
    %c1_122 = arith.constant 1 : index
    %c0_123 = arith.constant 0 : index
    %c0_124 = arith.constant 0 : index
    %113 = vector.load %arg12[%c1_122, %c0_123, %c0_124] : memref<5x120x80xf32, #tpu.memory_space<vmem>>, vector<1x120x80xf32>
    %114 = vector.shape_cast %113 : vector<1x120x80xf32> to vector<120x80xf32>
    %c1_125 = arith.constant 1 : index
    %c0_126 = arith.constant 0 : index
    %c0_127 = arith.constant 0 : index
    %115 = vector.load %arg13[%c1_125, %c0_126, %c0_127] : memref<5x40x8xf32, #tpu.memory_space<vmem>>, vector<1x40x8xf32>
    %116 = vector.shape_cast %115 : vector<1x40x8xf32> to vector<40x8xf32>
    %cst_128 = arith.constant dense<0.000000e+00> : vector<80x8xf32>
    %117 = tpu.matmul %106, %116, %cst_128 {dimension_numbers = #tpu.dot_dimension_numbers<[1], [0], [0], [1], [0, 0, 1, 1], [], []>} : vector<80x40xf32>, vector<40x8xf32>, vector<80x8xf32> -> vector<80x8xf32>
    %cst_129 = arith.constant dense<0.000000e+00> : vector<120x8xf32>
    %118 = tpu.matmul %114, %117, %cst_129 {dimension_numbers = #tpu.dot_dimension_numbers<[1], [0], [0], [1], [0, 0, 1, 1], [], []>} : vector<120x80xf32>, vector<80x8xf32>, vector<120x8xf32> -> vector<120x8xf32>
    %119 = arith.addf %112, %118 : vector<120x8xf32>
    %c2_130 = arith.constant 2 : index
    %c0_131 = arith.constant 0 : index
    %c0_132 = arith.constant 0 : index
    %120 = vector.load %arg12[%c2_130, %c0_131, %c0_132] : memref<5x120x80xf32, #tpu.memory_space<vmem>>, vector<1x120x80xf32>
    %121 = vector.shape_cast %120 : vector<1x120x80xf32> to vector<120x80xf32>
    %c2_133 = arith.constant 2 : index
    %c0_134 = arith.constant 0 : index
    %c0_135 = arith.constant 0 : index
    %122 = vector.load %arg13[%c2_133, %c0_134, %c0_135] : memref<5x40x8xf32, #tpu.memory_space<vmem>>, vector<1x40x8xf32>
    %123 = vector.shape_cast %122 : vector<1x40x8xf32> to vector<40x8xf32>
    %cst_136 = arith.constant dense<0.000000e+00> : vector<80x8xf32>
    %124 = tpu.matmul %106, %123, %cst_136 {dimension_numbers = #tpu.dot_dimension_numbers<[1], [0], [0], [1], [0, 0, 1, 1], [], []>} : vector<80x40xf32>, vector<40x8xf32>, vector<80x8xf32> -> vector<80x8xf32>
    %cst_137 = arith.constant dense<0.000000e+00> : vector<120x8xf32>
    %125 = tpu.matmul %121, %124, %cst_137 {dimension_numbers = #tpu.dot_dimension_numbers<[1], [0], [0], [1], [0, 0, 1, 1], [], []>} : vector<120x80xf32>, vector<80x8xf32>, vector<120x8xf32> -> vector<120x8xf32>
    %126 = arith.addf %119, %125 : vector<120x8xf32>
    %c3_138 = arith.constant 3 : index
    %c0_139 = arith.constant 0 : index
    %c0_140 = arith.constant 0 : index
    %127 = vector.load %arg12[%c3_138, %c0_139, %c0_140] : memref<5x120x80xf32, #tpu.memory_space<vmem>>, vector<1x120x80xf32>
    %128 = vector.shape_cast %127 : vector<1x120x80xf32> to vector<120x80xf32>
    %c3_141 = arith.constant 3 : index
    %c0_142 = arith.constant 0 : index
    %c0_143 = arith.constant 0 : index
    %129 = vector.load %arg13[%c3_141, %c0_142, %c0_143] : memref<5x40x8xf32, #tpu.memory_space<vmem>>, vector<1x40x8xf32>
    %130 = vector.shape_cast %129 : vector<1x40x8xf32> to vector<40x8xf32>
    %cst_144 = arith.constant dense<0.000000e+00> : vector<80x8xf32>
    %131 = tpu.matmul %106, %130, %cst_144 {dimension_numbers = #tpu.dot_dimension_numbers<[1], [0], [0], [1], [0, 0, 1, 1], [], []>} : vector<80x40xf32>, vector<40x8xf32>, vector<80x8xf32> -> vector<80x8xf32>
    %cst_145 = arith.constant dense<0.000000e+00> : vector<120x8xf32>
    %132 = tpu.matmul %128, %131, %cst_145 {dimension_numbers = #tpu.dot_dimension_numbers<[1], [0], [0], [1], [0, 0, 1, 1], [], []>} : vector<120x80xf32>, vector<80x8xf32>, vector<120x8xf32> -> vector<120x8xf32>
    %133 = arith.addf %126, %132 : vector<120x8xf32>
    %c4_146 = arith.constant 4 : index
    %c0_147 = arith.constant 0 : index
    %c0_148 = arith.constant 0 : index
    %134 = vector.load %arg12[%c4_146, %c0_147, %c0_148] : memref<5x120x80xf32, #tpu.memory_space<vmem>>, vector<1x120x80xf32>
    %135 = vector.shape_cast %134 : vector<1x120x80xf32> to vector<120x80xf32>
    %c4_149 = arith.constant 4 : index
    %c0_150 = arith.constant 0 : index
    %c0_151 = arith.constant 0 : index
    %136 = vector.load %arg13[%c4_149, %c0_150, %c0_151] : memref<5x40x8xf32, #tpu.memory_space<vmem>>, vector<1x40x8xf32>
    %137 = vector.shape_cast %136 : vector<1x40x8xf32> to vector<40x8xf32>
    %cst_152 = arith.constant dense<0.000000e+00> : vector<80x8xf32>
    %138 = tpu.matmul %106, %137, %cst_152 {dimension_numbers = #tpu.dot_dimension_numbers<[1], [0], [0], [1], [0, 0, 1, 1], [], []>} : vector<80x40xf32>, vector<40x8xf32>, vector<80x8xf32> -> vector<80x8xf32>
    %cst_153 = arith.constant dense<0.000000e+00> : vector<120x8xf32>
    %139 = tpu.matmul %135, %138, %cst_153 {dimension_numbers = #tpu.dot_dimension_numbers<[1], [0], [0], [1], [0, 0, 1, 1], [], []>} : vector<120x80xf32>, vector<80x8xf32>, vector<120x8xf32> -> vector<120x8xf32>
    %140 = arith.addf %133, %139 : vector<120x8xf32>
    %c0_154 = arith.constant 0 : index
    %c0_155 = arith.constant 0 : index
    %141 = vector.load %arg14[%c0_154, %c0_155] : memref<120x1xf32, #tpu.memory_space<vmem>>, vector<120x1xf32>
    %142 = vector.broadcast %141 : vector<120x1xf32> to vector<120x8xf32>
    %143 = arith.addf %140, %142 : vector<120x8xf32>
    %cst_156 = arith.constant 0.000000e+00 : f32
    %144 = vector.broadcast %cst_156 : f32 to vector<120x8xf32>
    %145 = arith.maximumf %143, %144 : vector<120x8xf32>
    %c0_157 = arith.constant 0 : index
    %c0_158 = arith.constant 0 : index
    %146 = vector.load %arg15[%c0_157, %c0_158] : memref<84x120xf32, #tpu.memory_space<vmem>>, vector<84x120xf32>
    %cst_159 = arith.constant dense<0.000000e+00> : vector<84x8xf32>
    %147 = tpu.matmul %146, %145, %cst_159 {dimension_numbers = #tpu.dot_dimension_numbers<[1], [0], [0], [1], [0, 0, 1, 1], [], []>} : vector<84x120xf32>, vector<120x8xf32>, vector<84x8xf32> -> vector<84x8xf32>
    %c0_160 = arith.constant 0 : index
    %c0_161 = arith.constant 0 : index
    %148 = vector.load %arg16[%c0_160, %c0_161] : memref<84x1xf32, #tpu.memory_space<vmem>>, vector<84x1xf32>
    %149 = vector.broadcast %148 : vector<84x1xf32> to vector<84x8xf32>
    %150 = arith.addf %147, %149 : vector<84x8xf32>
    %cst_162 = arith.constant 0.000000e+00 : f32
    %151 = vector.broadcast %cst_162 : f32 to vector<84x8xf32>
    %152 = arith.maximumf %150, %151 : vector<84x8xf32>
    %c0_163 = arith.constant 0 : index
    %c0_164 = arith.constant 0 : index
    %153 = vector.load %arg17[%c0_163, %c0_164] : memref<10x84xf32, #tpu.memory_space<vmem>>, vector<10x84xf32>
    %cst_165 = arith.constant dense<0.000000e+00> : vector<10x8xf32>
    %154 = tpu.matmul %153, %152, %cst_165 {dimension_numbers = #tpu.dot_dimension_numbers<[1], [0], [0], [1], [0, 0, 1, 1], [], []>} : vector<10x84xf32>, vector<84x8xf32>, vector<10x8xf32> -> vector<10x8xf32>
    %c0_166 = arith.constant 0 : index
    %c0_167 = arith.constant 0 : index
    %155 = vector.load %arg18[%c0_166, %c0_167] : memref<10x1xf32, #tpu.memory_space<vmem>>, vector<10x1xf32>
    %156 = vector.broadcast %155 : vector<10x1xf32> to vector<10x8xf32>
    %157 = arith.addf %154, %156 : vector<10x8xf32>
    %158 = vector.shape_cast %157 : vector<10x8xf32> to vector<1x10x8xf32>
    %c0_168 = arith.constant 0 : index
    %c0_169 = arith.constant 0 : index
    %c0_170 = arith.constant 0 : index
    %159 = vector.load %arg19[%c0_168, %c0_169, %c0_170] : memref<1x10x8xf32, #tpu.memory_space<vmem>>, vector<1x10x8xf32>
    tpu.vector_store %arg19[%c0_168, %c0_169, %c0_170], %158 {strides = array<i32>} : memref<1x10x8xf32, #tpu.memory_space<vmem>>, vector<1x10x8xf32>,
    return
  }
  func.func @transform_0(%arg0: i32) -> (i32, i32) {
    %c0_i32 = arith.constant 0 : i32
    %c0_i32_0 = arith.constant 0 : i32
    return %c0_i32, %arg0 : i32, i32
  }
  func.func @transform_1(%arg0: i32) -> (i32, i32, i32) {
    %c0_i32 = arith.constant 0 : i32
    %c0_i32_0 = arith.constant 0 : i32
    %c0_i32_1 = arith.constant 0 : i32
    %c0_i32_2 = arith.constant 0 : i32
    return %c0_i32, %c0_i32_0, %c0_i32_1 : i32, i32, i32
  }
  func.func @transform_2(%arg0: i32) -> (i32, i32, i32) {
    %c0_i32 = arith.constant 0 : i32
    %c0_i32_0 = arith.constant 0 : i32
    %c0_i32_1 = arith.constant 0 : i32
    %c0_i32_2 = arith.constant 0 : i32
    return %c0_i32, %c0_i32_0, %c0_i32_1 : i32, i32, i32
  }
  func.func @transform_3(%arg0: i32) -> (i32, i32) {
    %c0_i32 = arith.constant 0 : i32
    %c0_i32_0 = arith.constant 0 : i32
    %c0_i32_1 = arith.constant 0 : i32
    return %c0_i32, %c0_i32_0 : i32, i32
  }
  func.func @transform_4(%arg0: i32) -> (i32, i32, i32) {
    %c0_i32 = arith.constant 0 : i32
    %c0_i32_0 = arith.constant 0 : i32
    %c0_i32_1 = arith.constant 0 : i32
    %c0_i32_2 = arith.constant 0 : i32
    return %c0_i32, %c0_i32_0, %c0_i32_1 : i32, i32, i32
  }
  func.func @transform_5(%arg0: i32) -> (i32, i32, i32) {
    %c0_i32 = arith.constant 0 : i32
    %c0_i32_0 = arith.constant 0 : i32
    %c0_i32_1 = arith.constant 0 : i32
    %c0_i32_2 = arith.constant 0 : i32
    return %c0_i32, %c0_i32_0, %c0_i32_1 : i32, i32, i32
  }
  func.func @transform_6(%arg0: i32) -> (i32, i32, i32) {
    %c0_i32 = arith.constant 0 : i32
    %c0_i32_0 = arith.constant 0 : i32
    %c0_i32_1 = arith.constant 0 : i32
    %c0_i32_2 = arith.constant 0 : i32
    return %c0_i32, %c0_i32_0, %c0_i32_1 : i32, i32, i32
  }
  func.func @transform_7(%arg0: i32) -> (i32, i32, i32) {
    %c0_i32 = arith.constant 0 : i32
    %c0_i32_0 = arith.constant 0 : i32
    %c0_i32_1 = arith.constant 0 : i32
    %c0_i32_2 = arith.constant 0 : i32
    return %c0_i32, %c0_i32_0, %c0_i32_1 : i32, i32, i32
  }
  func.func @transform_8(%arg0: i32) -> (i32, i32) {
    %c0_i32 = arith.constant 0 : i32
    %c0_i32_0 = arith.constant 0 : i32
    %c0_i32_1 = arith.constant 0 : i32
    return %c0_i32, %c0_i32_0 : i32, i32
  }
  func.func @transform_9(%arg0: i32) -> (i32, i32, i32) {
    %c0_i32 = arith.constant 0 : i32
    %c0_i32_0 = arith.constant 0 : i32
    %c0_i32_1 = arith.constant 0 : i32
    %c0_i32_2 = arith.constant 0 : i32
    return %c0_i32, %c0_i32_0, %c0_i32_1 : i32, i32, i32
  }
  func.func @transform_10(%arg0: i32) -> (i32, i32, i32) {
    %c0_i32 = arith.constant 0 : i32
    %c0_i32_0 = arith.constant 0 : i32
    %c0_i32_1 = arith.constant 0 : i32
    %c0_i32_2 = arith.constant 0 : i32
    return %c0_i32, %c0_i32_0, %c0_i32_1 : i32, i32, i32
  }
  func.func @transform_11(%arg0: i32) -> (i32, i32, i32) {
    %c0_i32 = arith.constant 0 : i32
    %c0_i32_0 = arith.constant 0 : i32
    %c0_i32_1 = arith.constant 0 : i32
    %c0_i32_2 = arith.constant 0 : i32
    return %c0_i32, %c0_i32_0, %c0_i32_1 : i32, i32, i32
  }
  func.func @transform_12(%arg0: i32) -> (i32, i32, i32) {
    %c0_i32 = arith.constant 0 : i32
    %c0_i32_0 = arith.constant 0 : i32
    %c0_i32_1 = arith.constant 0 : i32
    %c0_i32_2 = arith.constant 0 : i32
    return %c0_i32, %c0_i32_0, %c0_i32_1 : i32, i32, i32
  }
  func.func @transform_13(%arg0: i32) -> (i32, i32) {
    %c0_i32 = arith.constant 0 : i32
    %c0_i32_0 = arith.constant 0 : i32
    %c0_i32_1 = arith.constant 0 : i32
    return %c0_i32, %c0_i32_0 : i32, i32
  }
  func.func @transform_14(%arg0: i32) -> (i32, i32) {
    %c0_i32 = arith.constant 0 : i32
    %c0_i32_0 = arith.constant 0 : i32
    %c0_i32_1 = arith.constant 0 : i32
    return %c0_i32, %c0_i32_0 : i32, i32
  }
  func.func @transform_15(%arg0: i32) -> (i32, i32) {
    %c0_i32 = arith.constant 0 : i32
    %c0_i32_0 = arith.constant 0 : i32
    %c0_i32_1 = arith.constant 0 : i32
    return %c0_i32, %c0_i32_0 : i32, i32
  }
  func.func @transform_16(%arg0: i32) -> (i32, i32) {
    %c0_i32 = arith.constant 0 : i32
    %c0_i32_0 = arith.constant 0 : i32
    %c0_i32_1 = arith.constant 0 : i32
    return %c0_i32, %c0_i32_0 : i32, i32
  }
  func.func @transform_17(%arg0: i32) -> (i32, i32) {
    %c0_i32 = arith.constant 0 : i32
    %c0_i32_0 = arith.constant 0 : i32
    %c0_i32_1 = arith.constant 0 : i32
    return %c0_i32, %c0_i32_0 : i32, i32
  }
  func.func @transform_18(%arg0: i32) -> (i32, i32, i32) {
    %c0_i32 = arith.constant 0 : i32
    %c0_i32_0 = arith.constant 0 : i32
    %c0_i32_1 = arith.constant 0 : i32
    return %arg0, %c0_i32, %c0_i32_0 : i32, i32, i32
  }
}

</mosaic_0001>

<bundles_post_ra>
// kernel: net_forward.1
= control target key start
LH: loop header
LB: loop body
LE: loop exit
PB: predicated region body
PF: predicated region fallthrough
CT: control target
= control target key end

     0   :  { %vm104_vm0 = vcmask 785408   ;;  %vm3590_vm1 = vcmask 326656   ;;  %vm4484_vm2 = vcmask 1043456   ;;  %vm4423_vm3 = vcmask 687104   ;;  %s15994_s0 = inlined_call_operand.vmem [shape: f32[96,256], index: 0, kind: input, shape index: {}]   ;;  %s15995_s1 = inlined_call_operand.vmem [shape: f32[5,168,96], index: 1, kind: input, shape index: {}]   ;;  %s15996_s2 = inlined_call_operand.vmem [shape: f32[5,256,224], index: 2, kind: input, shape index: {}]   ;;  %s15997_s3 = inlined_call_operand.vmem [shape: f32[168,1], index: 3, kind: input, shape index: {}]   ;;  %s15998_s8 = inlined_call_operand.vmem [shape: f32[160,1], index: 8, kind: input, shape index: {}]   ;;  %s15999_s13 = inlined_call_operand.vmem [shape: f32[120,1], index: 13, kind: input, shape index: {}]   ;;  %s16000_s15 = inlined_call_operand.vmem [shape: f32[84,1], index: 15, kind: input, shape index: {}]   ;;  %s16001_s17 = inlined_call_operand.vmem [shape: f32[10,1], index: 17, kind: input, shape index: {}]   ;;  %s16002_s4 = inlined_call_operand.vmem [shape: f32[2,84,168], index: 4, kind: input, shape index: {}]   ;;  %s16003_s5 = inlined_call_operand.vmem [shape: f32[2,224,112], index: 5, kind: input, shape index: {}]   ;;  %s16004_s7 = inlined_call_operand.vmem [shape: f32[5,112,80], index: 7, kind: input, shape index: {}]   ;;  %s16005_s6 = inlined_call_operand.vmem [shape: f32[5,160,84], index: 6, kind: input, shape index: {}]   ;;  %s16006_s9 = inlined_call_operand.vmem [shape: f32[2,80,160], index: 9, kind: input, shape index: {}]   ;;  %s16007_s10 = inlined_call_operand.vmem [shape: f32[2,80,40], index: 10, kind: input, shape index: {}]   ;;  %s16008_s12 = inlined_call_operand.vmem [shape: f32[5,40,8], index: 12, kind: input, shape index: {}]   ;;  %s16009_s11 = inlined_call_operand.vmem [shape: f32[5,120,80], index: 11, kind: input, shape index: {}]   ;;  %s16010_s14 = inlined_call_operand.vmem [shape: f32[84,120], index: 14, kind: input, shape index: {}]   ;;  %s16011_s16 = inlined_call_operand.vmem [shape: f32[10,84], index: 16, kind: input, shape index: {}]   ;;  %s16012_s18 = inlined_call_operand.vmem [shape: f32[1,10,8], index: 18, kind: output, shape index: {}]  }
   0x1   :  { %16058 = sst [smem:[#allocation232_spill]] %s15994_s0  ;;  %vm4752_vm4 = vcmask 916480   ;;  %vm6197_vm5 = vcmask 261120   ;;  %vm6487_vm6 = vcmask 654336   ;;  %vm7783_vm7 = vcmask 982016  }
   0x2   :  { %16059 = sst [smem:[#allocation233_spill]] %s15995_s1  ;;  %vm7924_vm8 = vcmask 64512   ;;  %vm7926_vm9 = vcmask 58368  }
   0x3   :  { %16060 = sst [smem:[#allocation234_spill]] %s15996_s2 }
   0x4   :  { %s16061_s29 = sld [smem:[#allocation232_spill]] }
   0x5   :  { %s16062_s22 = sld [smem:[#allocation233_spill]] }
   0x6   :  { %s16063_s26 = sld [smem:[#allocation234_spill]] }
   0xa   :  { %v81_v0 = vld [vmem:[%s16061_s29 + $0xb0] sm:$0xff]  ;;  %v82_v1 = vld [vmem:[%s16061_s29 + $0xb8] sm:$0xff]  ;;  %v79_v2 = vld [vmem:[%s16061_s29 + $0xa0] sm:$0xff] }
   0xb   :  { %172 = vmatpush.msra.mxu0 %v81_v0  ;;  %252 = vmatpush.msra.mxu1 %v82_v1  ;;  %v80_v3 = vld [vmem:[%s16061_s29 + $0xa8] sm:$0xff]  ;;  %v77_v4 = vld [vmem:[%s16061_s29 + $0x90] sm:$0xff]  ;;  %v78_v5 = vld [vmem:[%s16061_s29 + $0x98] sm:$0xff] }
   0xc   :  { %481 = vmatpush.msra.mxu2 %v81_v0  ;;  %561 = vmatpush.msra.mxu3 %v82_v1  ;;  %v75_v6 = vld [vmem:[%s16061_s29 + $0x80] sm:$0xff]  ;;  %v76_v7 = vld [vmem:[%s16061_s29 + $0x88] sm:$0xff]  ;;  %v73_v8 = vld [vmem:[%s16061_s29 + $0x70] sm:$0xff] }
   0xd   :  { %173 = vmatpush.msra.mxu0 %v79_v2  ;;  %253 = vmatpush.msra.mxu1 %v80_v3  ;;  %v74_v9 = vld [vmem:[%s16061_s29 + $0x78] sm:$0xff]  ;;  %v71_v10 = vld [vmem:[%s16061_s29 + $0x60] sm:$0xff]  ;;  %v72_v11 = vld [vmem:[%s16061_s29 + $0x68] sm:$0xff] }
   0xe   :  { %482 = vmatpush.msra.mxu2 %v79_v2  ;;  %562 = vmatpush.msra.mxu3 %v80_v3  ;;  %v69_v12 = vld [vmem:[%s16061_s29 + $0x50] sm:$0xff]  ;;  %v70_v13 = vld [vmem:[%s16061_s29 + $0x58] sm:$0xff]  ;;  %v67_v14 = vld [vmem:[%s16061_s29 + $0x40] sm:$0xff] }
   0xf   :  { %174 = vmatpush.msra.mxu0 %v77_v4  ;;  %254 = vmatpush.msra.mxu1 %v78_v5  ;;  %v68_v15 = vld [vmem:[%s16061_s29 + $0x48] sm:$0xff]  ;;  %v65_v16 = vld [vmem:[%s16061_s29 + $0x30] sm:$0xff]  ;;  %v66_v17 = vld [vmem:[%s16061_s29 + $0x38] sm:$0xff] }
  0x10   :  { %483 = vmatpush.msra.mxu2 %v77_v4  ;;  %563 = vmatpush.msra.mxu3 %v78_v5  ;;  %v63_v18 = vld [vmem:[%s16061_s29 + $0x20] sm:$0xff]  ;;  %v64_v19 = vld [vmem:[%s16061_s29 + $0x28] sm:$0xff]  ;;  %v61_v20 = vld [vmem:[%s16061_s29 + $0x10] sm:$0xff] }
  0x11   :  { %175 = vmatpush.msra.mxu0 %v75_v6  ;;  %255 = vmatpush.msra.mxu1 %v76_v7  ;;  %v62_v21 = vld [vmem:[%s16061_s29 + $0x18] sm:$0xff]  ;;  %v59_v22 = vld [vmem:[%s16061_s29] sm:$0xff]  ;;  %v60_v23 = vld [vmem:[%s16061_s29 + $0x8] sm:$0xff] }
  0x12   :  { %484 = vmatpush.msra.mxu2 %v75_v6  ;;  %564 = vmatpush.msra.mxu3 %v76_v7  ;;  %v83_v24 = vld [vmem:[%s16062_s22] sm:$0xff]  ;;  %v7974_v25 = vld [vmem:[%s16062_s22 + $0xa8] sm:$0xff]  ;;  %v7975_v27 = vld [vmem:[%s16062_s22 + $0xb0] sm:$0xff] }
  0x13   :  { %176 = vmatpush.msra.mxu0 %v73_v8  ;;  %256 = vmatpush.msra.mxu1 %v74_v9  ;;  %v84_v26 = vld [vmem:[%s16062_s22 + $0x8] sm:$0xff]  ;;  %v85_v28 = vld [vmem:[%s16062_s22 + $0x10] sm:$0xff]  ;;  %v7976_v29 = vld [vmem:[%s16062_s22 + $0xb8] sm:$0xff] }
  0x14   :  { %485 = vmatpush.msra.mxu2 %v73_v8  ;;  %565 = vmatpush.msra.mxu3 %v74_v9  ;;  %v86_v30 = vld [vmem:[%s16062_s22 + $0x18] sm:$0xff]  ;;  %v7977_v31 = vld [vmem:[%s16062_s22 + $0xc0] sm:$0xff]  ;;  %v7978_v33 = vld [vmem:[%s16062_s22 + $0xc8] sm:$0xff] }
  0x15   :  { %177 = vmatpush.msra.mxu0 %v71_v10  ;;  %257 = vmatpush.msra.mxu1 %v72_v11  ;;  %v87_v32 = vld [vmem:[%s16062_s22 + $0x20] sm:$0xff]  ;;  %v88_v34 = vld [vmem:[%s16062_s22 + $0x28] sm:$0xff]  ;;  %v7979_v35 = vld [vmem:[%s16062_s22 + $0xd0] sm:$0xff] }
  0x16   :  { %486 = vmatpush.msra.mxu2 %v71_v10  ;;  %566 = vmatpush.msra.mxu3 %v72_v11  ;;  %v89_v36 = vld [vmem:[%s16062_s22 + $0x30] sm:$0xff]  ;;  %v7980_v37 = vld [vmem:[%s16062_s22 + $0xd8] sm:$0xff]  ;;  %v7981_v39 = vld [vmem:[%s16062_s22 + $0xe0] sm:$0xff] }
  0x17   :  { %178 = vmatpush.msra.mxu0 %v69_v12  ;;  %258 = vmatpush.msra.mxu1 %v70_v13  ;;  %v90_v38 = vld [vmem:[%s16062_s22 + $0x38] sm:$0xff]  ;;  %v91_v40 = vld [vmem:[%s16062_s22 + $0x40] sm:$0xff]  ;;  %v7982_v41 = vld [vmem:[%s16062_s22 + $0xe8] sm:$0xff] }
  0x18   :  { %487 = vmatpush.msra.mxu2 %v69_v12  ;;  %567 = vmatpush.msra.mxu3 %v70_v13  ;;  %v92_v42 = vld [vmem:[%s16062_s22 + $0x48] sm:$0xff]  ;;  %v7983_v43 = vld [vmem:[%s16062_s22 + $0xf0] sm:$0xff]  ;;  %v7984_v45 = vld [vmem:[%s16062_s22 + $0xf8] sm:$0xff] }
  0x19   :  { %179 = vmatpush.msra.mxu0 %v67_v14  ;;  %259 = vmatpush.msra.mxu1 %v68_v15  ;;  %v93_v44 = vld [vmem:[%s16062_s22 + $0x50] sm:$0xff]  ;;  %v94_v46 = vld [vmem:[%s16062_s22 + $0x58] sm:$0xff]  ;;  %v7985_v47 = vld [vmem:[%s16062_s22 + $0x100] sm:$0xff] }
  0x1a   :  { %488 = vmatpush.msra.mxu2 %v67_v14  ;;  %568 = vmatpush.msra.mxu3 %v68_v15  ;;  %v95_v48 = vld [vmem:[%s16062_s22 + $0x60] sm:$0xff]  ;;  %v7986_v49 = vld [vmem:[%s16062_s22 + $0x108] sm:$0xff]  ;;  %v7987_v51 = vld [vmem:[%s16062_s22 + $0x110] sm:$0xff] }
  0x1b   :  { %180 = vmatpush.msra.mxu0 %v65_v16  ;;  %260 = vmatpush.msra.mxu1 %v66_v17  ;;  %v96_v50 = vld [vmem:[%s16062_s22 + $0x68] sm:$0xff]  ;;  %v8067_v52 = vld [vmem:[%s16063_s26 + $0x2f0] sm:$0xff]  ;;  %v8068_v54 = vld [vmem:[%s16063_s26 + $0x2f8] sm:$0xff] }
  0x1c   :  { %489 = vmatpush.msra.mxu2 %v65_v16  ;;  %569 = vmatpush.msra.mxu3 %v66_v17  ;;  %v8099_v53 = vld [vmem:[%s16063_s26 + $0x3f0] sm:$0xff]  ;;  %v8100_v55 = vld [vmem:[%s16063_s26 + $0x3f8] sm:$0xff]  ;;  %v8065_v56 = vld [vmem:[%s16063_s26 + $0x2e0] sm:$0xff] }
  0x1d   :  { %181 = vmatpush.msra.mxu0 %v63_v18  ;;  %261 = vmatpush.msra.mxu1 %v64_v19  ;;  %v8097_v57 = vld [vmem:[%s16063_s26 + $0x3e0] sm:$0xff]  ;;  %v8066_v58 = vld [vmem:[%s16063_s26 + $0x2e8] sm:$0xff]  ;;  %v97_v59 = vld [vmem:[%s16062_s22 + $0x70] sm:$0xff] }
  0x1e   :  { %490 = vmatpush.msra.mxu2 %v63_v18  ;;  %570 = vmatpush.msra.mxu3 %v64_v19  ;;  %v8098_v60 = vld [vmem:[%s16063_s26 + $0x3e8] sm:$0xff]  ;;  %v8063_v61 = vld [vmem:[%s16063_s26 + $0x2d0] sm:$0xff]  ;;  %v8064_v63 = vld [vmem:[%s16063_s26 + $0x2d8] sm:$0xff] }
  0x1f   :  { %182 = vmatpush.msra.mxu0 %v61_v20  ;;  %262 = vmatpush.msra.mxu1 %v62_v21  ;;  %v8095_v62 = vld [vmem:[%s16063_s26 + $0x3d0] sm:$0xff]  ;;  %v7988_v0 = vld [vmem:[%s16062_s22 + $0x118] sm:$0xff]  ;;  %v8061_v2 = vld [vmem:[%s16063_s26 + $0x2c0] sm:$0xff] }
  0x20   :  { %491 = vmatpush.msra.mxu2 %v61_v20  ;;  %571 = vmatpush.msra.mxu3 %v62_v21  ;;  %v8096_v1 = vld [vmem:[%s16063_s26 + $0x3d8] sm:$0xff]  ;;  %v8093_v3 = vld [vmem:[%s16063_s26 + $0x3c0] sm:$0xff]  ;;  %v8062_v4 = vld [vmem:[%s16063_s26 + $0x2c8] sm:$0xff] }
  0x21   :  { %183 = vmatpush.msra.mxu0 %v59_v22  ;;  %263 = vmatpush.msra.mxu1 %v60_v23  ;;  %v8094_v5 = vld [vmem:[%s16063_s26 + $0x3c8] sm:$0xff]  ;;  %v8059_v6 = vld [vmem:[%s16063_s26 + $0x2b0] sm:$0xff]  ;;  %v8060_v8 = vld [vmem:[%s16063_s26 + $0x2b8] sm:$0xff] }
  0x22   :  { %492 = vmatpush.msra.mxu2 %v59_v22  ;;  %572 = vmatpush.msra.mxu3 %v60_v23  ;;  %v8091_v7 = vld [vmem:[%s16063_s26 + $0x3b0] sm:$0xff]  ;;  %v8092_v9 = vld [vmem:[%s16063_s26 + $0x3b8] sm:$0xff]  ;;  %v8057_v10 = vld [vmem:[%s16063_s26 + $0x2a0] sm:$0xff] }
  0x23   :  { %7932 = vmatmul.msk.f32.vlgmr.msra.gmra.mxu0 %vm104_vm0, %v83_v24  ;;  %7953 = vmatmul.msk.f32.vlgmr.msra.gmra.mxu1 %vm104_vm0, %v83_v24  ;;  %v8089_v11 = vld [vmem:[%s16063_s26 + $0x3a0] sm:$0xff]  ;;  %v8058_v12 = vld [vmem:[%s16063_s26 + $0x2a8] sm:$0xff]  ;;  %v98_v14 = vld [vmem:[%s16062_s22 + $0x78] sm:$0xff] }
  0x24   :  { %7995 = vmatmul.msk.f32.vlgmr.msra.gmra.mxu2 %vm104_vm0, %v7974_v25  ;;  %8016 = vmatmul.msk.f32.vlgmr.msra.gmra.mxu3 %vm104_vm0, %v7974_v25  ;;  %v8090_v13 = vld [vmem:[%s16063_s26 + $0x3a8] sm:$0xff]  ;;  %v7989_v15 = vld [vmem:[%s16062_s22 + $0x120] sm:$0xff]  ;;  %v8055_v16 = vld [vmem:[%s16063_s26 + $0x290] sm:$0xff] }
  0x25   :  { %702 = vmatpush.msrb.mxu0 %v8067_v52  ;;  %782 = vmatpush.msrb.mxu1 %v8099_v53  ;;  %v8087_v17 = vld [vmem:[%s16063_s26 + $0x390] sm:$0xff]  ;;  %v8056_v18 = vld [vmem:[%s16063_s26 + $0x298] sm:$0xff]  ;;  %v8053_v20 = vld [vmem:[%s16063_s26 + $0x280] sm:$0xff] }
  0x26   :  { %862 = vmatpush.msrb.mxu2 %v8068_v54  ;;  %942 = vmatpush.msrb.mxu3 %v8100_v55  ;;  %v8088_v19 = vld [vmem:[%s16063_s26 + $0x398] sm:$0xff]  ;;  %v8085_v21 = vld [vmem:[%s16063_s26 + $0x380] sm:$0xff]  ;;  %v8054_v22 = vld [vmem:[%s16063_s26 + $0x288] sm:$0xff] }
  0x27   :  { %703 = vmatpush.msrb.mxu0 %v8065_v56  ;;  %783 = vmatpush.msrb.mxu1 %v8097_v57  ;;  %v8086_v23 = vld [vmem:[%s16063_s26 + $0x388] sm:$0xff]  ;;  %v8051_v24 = vld [vmem:[%s16063_s26 + $0x270] sm:$0xff]  ;;  %v8044_v52 = vld [vmem:[%s16063_s26 + $0x238] sm:$0xff] }
  0x28   :  { %863 = vmatpush.msrb.mxu2 %v8066_v58  ;;  %943 = vmatpush.msrb.mxu3 %v8098_v60  ;;  %v8083_v25 = vld [vmem:[%s16063_s26 + $0x370] sm:$0xff]  ;;  %v8076_v53 = vld [vmem:[%s16063_s26 + $0x338] sm:$0xff]  ;;  %v8041_v54 = vld [vmem:[%s16063_s26 + $0x220] sm:$0xff] }
  0x29   :  { %704 = vmatpush.msrb.mxu0 %v8063_v61  ;;  %784 = vmatpush.msrb.mxu1 %v8095_v62  ;;  %v8073_v55 = vld [vmem:[%s16063_s26 + $0x320] sm:$0xff]  ;;  %v8042_v56 = vld [vmem:[%s16063_s26 + $0x228] sm:$0xff]  ;;  %v8039_v58 = vld [vmem:[%s16063_s26 + $0x210] sm:$0xff] }
  0x2a   :  { %864 = vmatpush.msrb.mxu2 %v8064_v63  ;;  %944 = vmatpush.msrb.mxu3 %v8096_v1  ;;  %v8074_v57 = vld [vmem:[%s16063_s26 + $0x328] sm:$0xff]  ;;  %v8040_v62 = vld [vmem:[%s16063_s26 + $0x218] sm:$0xff] }
  0x2b   :  { %7933 = vmatmul.msk.f32.gmra.mxu0 %vm104_vm0, %v84_v26  ;;  %7954 = vmatmul.msk.f32.gmra.mxu1 %vm104_vm0, %v84_v26  ;;  %v8052_v26 = vld [vmem:[%s16063_s26 + $0x278] sm:$0xff] }
  0x2c   :  { %7996 = vmatmul.msk.f32.gmra.mxu2 %vm104_vm0, %v7975_v27  ;;  %8017 = vmatmul.msk.f32.gmra.mxu3 %vm104_vm0, %v7975_v27  ;;  %v8084_v27 = vld [vmem:[%s16063_s26 + $0x378] sm:$0xff] }
  0x2d   :  { %705 = vmatpush.msrb.mxu0 %v8061_v2  ;;  %785 = vmatpush.msrb.mxu1 %v8093_v3  ;;  %v8072_v63 = vld [vmem:[%s16063_s26 + $0x318] sm:$0xff]  ;;  %v101_v2 = vld [vmem:[%s16062_s22 + $0x90] sm:$0xff] }
  0x2e   :  { %865 = vmatpush.msrb.mxu2 %v8062_v4  ;;  %945 = vmatpush.msrb.mxu3 %v8094_v5  ;;  %v7992_v3 = vld [vmem:[%s16062_s22 + $0x138] sm:$0xff]  ;;  %v8037_v4 = vld [vmem:[%s16063_s26 + $0x200] sm:$0xff] }
  0x2f   :  { %706 = vmatpush.msrb.mxu0 %v8059_v6  ;;  %786 = vmatpush.msrb.mxu1 %v8091_v7  ;;  %v8069_v5 = vld [vmem:[%s16063_s26 + $0x300] sm:$0xff]  ;;  %v8038_v6 = vld [vmem:[%s16063_s26 + $0x208] sm:$0xff] }
  0x30   :  { %866 = vmatpush.msrb.mxu2 %v8060_v8  ;;  %946 = vmatpush.msrb.mxu3 %v8092_v9  ;;  %v8070_v7 = vld [vmem:[%s16063_s26 + $0x308] sm:$0xff] }
  0x31   :  { %707 = vmatpush.msrb.mxu0 %v8057_v10  ;;  %787 = vmatpush.msrb.mxu1 %v8089_v11 }
  0x32   :  { %867 = vmatpush.msrb.mxu2 %v8058_v12  ;;  %947 = vmatpush.msrb.mxu3 %v8090_v13  ;;  %v102_v12 = vld [vmem:[%s16062_s22 + $0x98] sm:$0xff]  ;;  %v7993_v13 = vld [vmem:[%s16062_s22 + $0x140] sm:$0xff] }
  0x33   :  { %7934 = vmatmul.msk.f32.gmra.mxu0 %vm104_vm0, %v85_v28  ;;  %7955 = vmatmul.msk.f32.gmra.mxu1 %vm104_vm0, %v85_v28 }
  0x34   :  { %7997 = vmatmul.msk.f32.gmra.mxu2 %vm104_vm0, %v7976_v29  ;;  %8018 = vmatmul.msk.f32.gmra.mxu3 %vm104_vm0, %v7976_v29 }
  0x35   :  { %708 = vmatpush.msrb.mxu0 %v8055_v16  ;;  %788 = vmatpush.msrb.mxu1 %v8087_v17 }
  0x36   :  { %868 = vmatpush.msrb.mxu2 %v8056_v18  ;;  %948 = vmatpush.msrb.mxu3 %v8088_v19  ;;  %v103_v18 = vld [vmem:[%s16062_s22 + $0xa0] sm:$0xff]  ;;  %v7994_v19 = vld [vmem:[%s16062_s22 + $0x148] sm:$0xff] }
  0x37   :  { %709 = vmatpush.msrb.mxu0 %v8053_v20  ;;  %789 = vmatpush.msrb.mxu1 %v8085_v21 }
  0x38   :  { %869 = vmatpush.msrb.mxu2 %v8054_v22  ;;  %949 = vmatpush.msrb.mxu3 %v8086_v23 }
  0x39   :  { %710 = vmatpush.msrb.mxu0 %v8051_v24  ;;  %790 = vmatpush.msrb.mxu1 %v8083_v25 }
  0x3a   :  { %870 = vmatpush.msrb.mxu2 %v8052_v26  ;;  %950 = vmatpush.msrb.mxu3 %v8084_v27 }
  0x3b   :  { %7935 = vmatmul.msk.f32.gmra.mxu0 %vm104_vm0, %v86_v30  ;;  %7956 = vmatmul.msk.f32.gmra.mxu1 %vm104_vm0, %v86_v30  ;;  %v99_v30 = vld [vmem:[%s16062_s22 + $0x80] sm:$0xff] }
  0x3c   :  { %7998 = vmatmul.msk.f32.gmra.mxu2 %vm104_vm0, %v7977_v31  ;;  %8019 = vmatmul.msk.f32.gmra.mxu3 %vm104_vm0, %v7977_v31  ;;  %v7990_v31 = vld [vmem:[%s16062_s22 + $0x128] sm:$0xff] }
  0x43   :  { %7936 = vmatmul.msk.f32.gmra.mxu0 %vm104_vm0, %v87_v32  ;;  %7957 = vmatmul.msk.f32.gmra.mxu1 %vm104_vm0, %v87_v32  ;;  %v8049_v32 = vld [vmem:[%s16063_s26 + $0x260] sm:$0xff] }
  0x44   :  { %7999 = vmatmul.msk.f32.gmra.mxu2 %vm104_vm0, %v7978_v33  ;;  %8020 = vmatmul.msk.f32.gmra.mxu3 %vm104_vm0, %v7978_v33  ;;  %v8081_v33 = vld [vmem:[%s16063_s26 + $0x360] sm:$0xff] }
  0x45   :  { %711 = vmatpush.msrb.mxu0 %v8049_v32  ;;  %791 = vmatpush.msrb.mxu1 %v8081_v33 }
  0x4b   :  { %7937 = vmatmul.msk.f32.gmra.mxu0 %vm104_vm0, %v88_v34  ;;  %7958 = vmatmul.msk.f32.gmra.mxu1 %vm104_vm0, %v88_v34  ;;  %v8050_v34 = vld [vmem:[%s16063_s26 + $0x268] sm:$0xff] }
  0x4c   :  { %8000 = vmatmul.msk.f32.gmra.mxu2 %vm104_vm0, %v7979_v35  ;;  %8021 = vmatmul.msk.f32.gmra.mxu3 %vm104_vm0, %v7979_v35  ;;  %v8082_v35 = vld [vmem:[%s16063_s26 + $0x368] sm:$0xff] }
  0x4d   :  { %871 = vmatpush.msrb.mxu2 %v8050_v34  ;;  %951 = vmatpush.msrb.mxu3 %v8082_v35 }
  0x53   :  { %7938 = vmatmul.msk.f32.gmra.mxu0 %vm104_vm0, %v89_v36  ;;  %7959 = vmatmul.msk.f32.gmra.mxu1 %vm104_vm0, %v89_v36  ;;  %v8047_v36 = vld [vmem:[%s16063_s26 + $0x250] sm:$0xff] }
  0x54   :  { %8001 = vmatmul.msk.f32.gmra.mxu2 %vm104_vm0, %v7980_v37  ;;  %8022 = vmatmul.msk.f32.gmra.mxu3 %vm104_vm0, %v7980_v37  ;;  %v8079_v37 = vld [vmem:[%s16063_s26 + $0x350] sm:$0xff] }
  0x55   :  { %712 = vmatpush.msrb.mxu0 %v8047_v36  ;;  %792 = vmatpush.msrb.mxu1 %v8079_v37 }
  0x5b   :  { %7939 = vmatmul.msk.f32.gmra.mxu0 %vm104_vm0, %v90_v38  ;;  %7960 = vmatmul.msk.f32.gmra.mxu1 %vm104_vm0, %v90_v38  ;;  %v8048_v38 = vld [vmem:[%s16063_s26 + $0x258] sm:$0xff] }
  0x5c   :  { %8002 = vmatmul.msk.f32.gmra.mxu2 %vm104_vm0, %v7981_v39  ;;  %8023 = vmatmul.msk.f32.gmra.mxu3 %vm104_vm0, %v7981_v39  ;;  %v8080_v39 = vld [vmem:[%s16063_s26 + $0x358] sm:$0xff] }
  0x5d   :  { %872 = vmatpush.msrb.mxu2 %v8048_v38  ;;  %952 = vmatpush.msrb.mxu3 %v8080_v39 }
  0x63   :  { %7940 = vmatmul.msk.f32.gmra.mxu0 %vm104_vm0, %v91_v40  ;;  %7961 = vmatmul.msk.f32.gmra.mxu1 %vm104_vm0, %v91_v40  ;;  %v8045_v40 = vld [vmem:[%s16063_s26 + $0x240] sm:$0xff] }
  0x64   :  { %8003 = vmatmul.msk.f32.gmra.mxu2 %vm104_vm0, %v7982_v41  ;;  %8024 = vmatmul.msk.f32.gmra.mxu3 %vm104_vm0, %v7982_v41  ;;  %v8077_v41 = vld [vmem:[%s16063_s26 + $0x340] sm:$0xff] }
  0x65   :  { %713 = vmatpush.msrb.mxu0 %v8045_v40  ;;  %793 = vmatpush.msrb.mxu1 %v8077_v41 }
  0x6b   :  { %7941 = vmatmul.msk.f32.gmra.mxu0 %vm104_vm0, %v92_v42  ;;  %7962 = vmatmul.msk.f32.gmra.mxu1 %vm104_vm0, %v92_v42 }
  0x6c   :  { %8004 = vmatmul.msk.f32.gmra.mxu2 %vm104_vm0, %v7983_v43  ;;  %8025 = vmatmul.msk.f32.gmra.mxu3 %vm104_vm0, %v7983_v43 }
  0x73   :  { %7942 = vmatmul.msk.f32.gmra.mxu0 %vm104_vm0, %v93_v44  ;;  %7963 = vmatmul.msk.f32.gmra.mxu1 %vm104_vm0, %v93_v44  ;;  %v8046_v44 = vld [vmem:[%s16063_s26 + $0x248] sm:$0xff] }
  0x74   :  { %8005 = vmatmul.msk.f32.gmra.mxu2 %vm104_vm0, %v7984_v45  ;;  %8026 = vmatmul.msk.f32.gmra.mxu3 %vm104_vm0, %v7984_v45  ;;  %v8078_v45 = vld [vmem:[%s16063_s26 + $0x348] sm:$0xff] }
  0x75   :  { %873 = vmatpush.msrb.mxu2 %v8046_v44  ;;  %953 = vmatpush.msrb.mxu3 %v8078_v45 }
  0x77   :  { %874 = vmatpush.msrb.mxu2 %v8044_v52  ;;  %954 = vmatpush.msrb.mxu3 %v8076_v53 }
  0x79   :  { %875 = vmatpush.msrb.mxu2 %v8042_v56  ;;  %955 = vmatpush.msrb.mxu3 %v8074_v57 }
  0x7b   :  { %7943 = vmatmul.msk.f32.gmra.mxu0 %vm104_vm0, %v94_v46  ;;  %7964 = vmatmul.msk.f32.gmra.mxu1 %vm104_vm0, %v94_v46 }
  0x7c   :  { %8006 = vmatmul.msk.f32.gmra.mxu2 %vm104_vm0, %v7985_v47  ;;  %8027 = vmatmul.msk.f32.gmra.mxu3 %vm104_vm0, %v7985_v47 }
  0x7d   :  { %876 = vmatpush.msrb.mxu2 %v8040_v62  ;;  %956 = vmatpush.msrb.mxu3 %v8072_v63 }
  0x7f   :  { %877 = vmatpush.msrb.mxu2 %v8038_v6  ;;  %957 = vmatpush.msrb.mxu3 %v8070_v7 }
  0x83   :  { %7944 = vmatmul.msk.f32.gmra.mxu0 %vm104_vm0, %v95_v48  ;;  %7965 = vmatmul.msk.f32.gmra.mxu1 %vm104_vm0, %v95_v48  ;;  %v100_v48 = vld [vmem:[%s16062_s22 + $0x88] sm:$0xff] }
  0x84   :  { %8007 = vmatmul.msk.f32.gmra.mxu2 %vm104_vm0, %v7986_v49  ;;  %8028 = vmatmul.msk.f32.gmra.mxu3 %vm104_vm0, %v7986_v49  ;;  %v7991_v49 = vld [vmem:[%s16062_s22 + $0x130] sm:$0xff] }
  0x8b   :  { %7945 = vmatmul.msk.f32.gmra.mxu0 %vm104_vm0, %v96_v50  ;;  %7966 = vmatmul.msk.f32.gmra.mxu1 %vm104_vm0, %v96_v50  ;;  %v8043_v50 = vld [vmem:[%s16063_s26 + $0x230] sm:$0xff] }
  0x8c   :  { %8008 = vmatmul.msk.f32.gmra.mxu2 %vm104_vm0, %v7987_v51  ;;  %8029 = vmatmul.msk.f32.gmra.mxu3 %vm104_vm0, %v7987_v51  ;;  %v8075_v51 = vld [vmem:[%s16063_s26 + $0x330] sm:$0xff] }
  0x8d   :  { %714 = vmatpush.msrb.mxu0 %v8043_v50  ;;  %794 = vmatpush.msrb.mxu1 %v8075_v51 }
  0x8f   :  { %715 = vmatpush.msrb.mxu0 %v8041_v54  ;;  %795 = vmatpush.msrb.mxu1 %v8073_v55 }
  0x91   :  { %716 = vmatpush.msrb.mxu0 %v8039_v58 }
  0x93   :  { %7946 = vmatmul.msk.f32.gmra.mxu0 %vm104_vm0, %v97_v59  ;;  %7967 = vmatmul.msk.f32.gmra.mxu1 %vm104_vm0, %v97_v59  ;;  %v8071_v59 = vld [vmem:[%s16063_s26 + $0x310] sm:$0xff] }
  0x94   :  { %8009 = vmatmul.msk.f32.gmra.mxu2 %vm104_vm0, %v7988_v0  ;;  %8030 = vmatmul.msk.f32.gmra.mxu3 %vm104_vm0, %v7988_v0 }
  0x95   :  { %796 = vmatpush.msrb.mxu1 %v8071_v59  ;;  %717 = vmatpush.msrb.mxu0 %v8037_v4 }
  0x97   :  { %797 = vmatpush.msrb.mxu1 %v8069_v5 }
  0x9b   :  { %7947 = vmatmul.msk.f32.gmra.mxu0 %vm104_vm0, %v98_v14  ;;  %7968 = vmatmul.msk.f32.gmra.mxu1 %vm104_vm0, %v98_v14 }
  0x9c   :  { %8010 = vmatmul.msk.f32.gmra.mxu2 %vm104_vm0, %v7989_v15  ;;  %8031 = vmatmul.msk.f32.gmra.mxu3 %vm104_vm0, %v7989_v15 }
  0xa0   :  { %v9732_v28 = vpop.f32.mrf.mxu0  ;;  %v9734_v29 = vpop.f32.mrf.mxu1 }
  0xa3   :  { %7948 = vmatmul.msk.f32.gmra.mxu0 %vm104_vm0, %v99_v30  ;;  %7969 = vmatmul.msk.f32.gmra.mxu1 %vm104_vm0, %v99_v30 }
  0xa4   :  { %8011 = vmatmul.msk.f32.gmra.mxu2 %vm104_vm0, %v7990_v31  ;;  %8032 = vmatmul.msk.f32.gmra.mxu3 %vm104_vm0, %v7990_v31 }
  0xa7   :  { %v9776_v42 = vpop.f32.mrf.mxu2  ;;  %v9778_v43 = vpop.f32.mrf.mxu3 }
  0xa8   :  { %v9786_v46 = vpop.f32.mrf.mxu0  ;;  %v9788_v47 = vpop.f32.mrf.mxu1 }
  0xab   :  { %7949 = vmatmul.msk.f32.gmra.mxu0 %vm104_vm0, %v100_v48  ;;  %7970 = vmatmul.msk.f32.gmra.mxu1 %vm104_vm0, %v100_v48 }
  0xac   :  { %8012 = vmatmul.msk.f32.gmra.mxu2 %vm104_vm0, %v7991_v49  ;;  %8033 = vmatmul.msk.f32.gmra.mxu3 %vm104_vm0, %v7991_v49 }
  0xaf   :  { %v497_v60 = vpop.f32.mrf.mxu2  ;;  %v577_v61 = vpop.f32.mrf.mxu3 }
  0xb0   :  { %v9836_v0 = vpop.f32.mrf.mxu0  ;;  %v9838_v1 = vpop.f32.mrf.mxu1 }
  0xb3   :  { %7950 = vmatmul.msk.f32.gmra.mxu0 %vm104_vm0, %v101_v2  ;;  %7971 = vmatmul.msk.f32.gmra.mxu1 %vm104_vm0, %v101_v2 }
  0xb4   :  { %8013 = vmatmul.msk.f32.gmra.mxu2 %vm104_vm0, %v7992_v3  ;;  %8034 = vmatmul.msk.f32.gmra.mxu3 %vm104_vm0, %v7992_v3 }
  0xb7   :  { %v500_v8 = vpop.f32.mrf.mxu2  ;;  %v580_v9 = vpop.f32.mrf.mxu3 }
  0xb8   :  { %v9862_v10 = vpop.f32.mrf.mxu0  ;;  %v9864_v11 = vpop.f32.mrf.mxu1 }
  0xbb   :  { %7951 = vmatmul.msk.f32.gmra.mxu0 %vm104_vm0, %v102_v12  ;;  %7972 = vmatmul.msk.f32.gmra.mxu1 %vm104_vm0, %v102_v12 }
  0xbc   :  { %8014 = vmatmul.msk.f32.gmra.mxu2 %vm104_vm0, %v7993_v13  ;;  %8035 = vmatmul.msk.f32.gmra.mxu3 %vm104_vm0, %v7993_v13 }
  0xbf   :  { %v503_v14 = vpop.f32.mrf.mxu2  ;;  %v583_v15 = vpop.f32.mrf.mxu3 }
  0xc0   :  { %v9876_v16 = vpop.f32.mrf.mxu0  ;;  %v9878_v17 = vpop.f32.mrf.mxu1 }
  0xc3   :  { %7952 = vmatmul.msk.f32.gmra.mxu0 %vm104_vm0, %v103_v18  ;;  %7973 = vmatmul.msk.f32.gmra.mxu1 %vm104_vm0, %v103_v18 }
  0xc4   :  { %8015 = vmatmul.msk.f32.gmra.mxu2 %vm104_vm0, %v7994_v19  ;;  %8036 = vmatmul.msk.f32.gmra.mxu3 %vm104_vm0, %v7994_v19 }
  0xc7   :  { %v506_v20 = vpop.f32.mrf.mxu2  ;;  %v586_v21 = vpop.f32.mrf.mxu3 }
  0xc8   :  { %v9890_v22 = vpop.f32.mrf.mxu0  ;;  %v9892_v23 = vpop.f32.mrf.mxu1 }
  0xcb   :  { %718 = vmatmul.f32.vlgmr.msrb.gmra.mxu0 %v9776_v42  ;;  %798 = vmatmul.f32.vlgmr.msrb.gmra.mxu1 %v9778_v43 }
  0xcc   :  { %878 = vmatmul.f32.vlgmr.msrb.gmra.mxu2 %v9776_v42  ;;  %958 = vmatmul.f32.vlgmr.msrb.gmra.mxu3 %v9778_v43 }
  0xcf   :  { %v509_v24 = vpop.f32.mrf.mxu2  ;;  %v589_v25 = vpop.f32.mrf.mxu3 }
  0xd0   :  { %v9898_v26 = vpop.f32.mrf.mxu0  ;;  %v9900_v27 = vpop.f32.mrf.mxu1 }
  0xd3   :  { %721 = vmatmul.f32.gmra.mxu0 %v497_v60  ;;  %801 = vmatmul.f32.gmra.mxu1 %v577_v61 }
  0xd4   :  { %881 = vmatmul.f32.gmra.mxu2 %v497_v60  ;;  %961 = vmatmul.f32.gmra.mxu3 %v577_v61 }
  0xd7   :  { %v512_v30 = vpop.f32.mrf.mxu2  ;;  %v592_v31 = vpop.f32.mrf.mxu3 }
  0xd8   :  { %v9902_v32 = vpop.f32.mrf.mxu0  ;;  %v9904_v33 = vpop.f32.mrf.mxu1 }
  0xdb   :  { %724 = vmatmul.f32.gmra.mxu0 %v500_v8  ;;  %804 = vmatmul.f32.gmra.mxu1 %v580_v9 }
  0xdc   :  { %884 = vmatmul.f32.gmra.mxu2 %v500_v8  ;;  %964 = vmatmul.f32.gmra.mxu3 %v580_v9 }
  0xdf   :  { %v515_v34 = vpop.f32.mrf.mxu2  ;;  %v595_v35 = vpop.f32.mrf.mxu3 }
  0xe0   :  { %v9906_v36 = vpop.f32.mrf.mxu0  ;;  %v9908_v37 = vpop.f32.mrf.mxu1 }
  0xe3   :  { %727 = vmatmul.f32.gmra.mxu0 %v503_v14  ;;  %807 = vmatmul.f32.gmra.mxu1 %v583_v15 }
  0xe4   :  { %887 = vmatmul.f32.gmra.mxu2 %v503_v14  ;;  %967 = vmatmul.f32.gmra.mxu3 %v583_v15 }
  0xe7   :  { %v518_v38 = vpop.f32.mrf.mxu2  ;;  %v598_v39 = vpop.f32.mrf.mxu3 }
  0xe8   :  { %v9910_v40 = vpop.f32.mrf.mxu0  ;;  %v9912_v41 = vpop.f32.mrf.mxu1 }
  0xeb   :  { %730 = vmatmul.f32.gmra.mxu0 %v506_v20  ;;  %810 = vmatmul.f32.gmra.mxu1 %v586_v21 }
  0xec   :  { %890 = vmatmul.f32.gmra.mxu2 %v506_v20  ;;  %970 = vmatmul.f32.gmra.mxu3 %v586_v21 }
  0xef   :  { %v521_v42 = vpop.f32.mrf.mxu2  ;;  %v601_v43 = vpop.f32.mrf.mxu3 }
  0xf0   :  { %v9914_v44 = vpop.f32.mrf.mxu0  ;;  %v9916_v45 = vpop.f32.mrf.mxu1 }
  0xf3   :  { %733 = vmatmul.f32.gmra.mxu0 %v509_v24  ;;  %813 = vmatmul.f32.gmra.mxu1 %v589_v25 }
  0xf4   :  { %893 = vmatmul.f32.gmra.mxu2 %v509_v24  ;;  %973 = vmatmul.f32.gmra.mxu3 %v589_v25  ;;  %v358_v24 = vld [vmem:[%s16063_s26 + $0xf0] sm:$0xff] }
  0xf5   :  { %v390_v25 = vld [vmem:[%s16063_s26 + $0x1f0] sm:$0xff]  ;;  %1022 = vmatpush.msra.mxu0 %v358_v24  ;;  %v353_v24 = vld [vmem:[%s16063_s26 + $0xc8] sm:$0xff] }
  0xf6   :  { %1102 = vmatpush.msra.mxu1 %v390_v25  ;;  %v385_v25 = vld [vmem:[%s16063_s26 + $0x1c8] sm:$0xff] }
  0xf7   :  { %v524_v48 = vpop.f32.mrf.mxu2  ;;  %v604_v49 = vpop.f32.mrf.mxu3 }
  0xf8   :  { %v9918_v50 = vpop.f32.mrf.mxu0  ;;  %v9920_v51 = vpop.f32.mrf.mxu1 }
  0xfb   :  { %736 = vmatmul.f32.gmra.mxu0 %v512_v30  ;;  %816 = vmatmul.f32.gmra.mxu1 %v592_v31 }
  0xfc   :  { %896 = vmatmul.f32.gmra.mxu2 %v512_v30  ;;  %976 = vmatmul.f32.gmra.mxu3 %v592_v31  ;;  %v359_v30 = vld [vmem:[%s16063_s26 + $0xf8] sm:$0xff] }
  0xfd   :  { %v391_v31 = vld [vmem:[%s16063_s26 + $0x1f8] sm:$0xff]  ;;  %1182 = vmatpush.msra.mxu2 %v359_v30  ;;  %v350_v30 = vld [vmem:[%s16063_s26 + $0xb0] sm:$0xff] }
  0xfe   :  { %1262 = vmatpush.msra.mxu3 %v391_v31  ;;  %v382_v31 = vld [vmem:[%s16063_s26 + $0x1b0] sm:$0xff] }
  0xff   :  { %v527_v52 = vpop.f32.mrf.mxu2  ;;  %v607_v53 = vpop.f32.mrf.mxu3 }
 0x100   :  { %v9922_v54 = vpop.f32.mrf.mxu0  ;;  %v9924_v55 = vpop.f32.mrf.mxu1 }
 0x103   :  { %739 = vmatmul.f32.gmra.mxu0 %v515_v34  ;;  %819 = vmatmul.f32.gmra.mxu1 %v595_v35 }
 0x104   :  { %899 = vmatmul.f32.gmra.mxu2 %v515_v34  ;;  %979 = vmatmul.f32.gmra.mxu3 %v595_v35  ;;  %v356_v34 = vld [vmem:[%s16063_s26 + $0xe0] sm:$0xff] }
 0x105   :  { %v388_v35 = vld [vmem:[%s16063_s26 + $0x1e0] sm:$0xff]  ;;  %1023 = vmatpush.msra.mxu0 %v356_v34  ;;  %v351_v34 = vld [vmem:[%s16063_s26 + $0xb8] sm:$0xff] }
 0x106   :  { %1103 = vmatpush.msra.mxu1 %v388_v35  ;;  %v380_v35 = vld [vmem:[%s16063_s26 + $0x1a0] sm:$0xff] }
 0x107   :  { %v530_v56 = vpop.f32.mrf.mxu2  ;;  %v610_v57 = vpop.f32.mrf.mxu3 }
 0x108   :  { %v9926_v58 = vpop.f32.mrf.mxu0  ;;  %v9928_v59 = vpop.f32.mrf.mxu1 }
 0x10b   :  { %742 = vmatmul.f32.gmra.mxu0 %v518_v38  ;;  %822 = vmatmul.f32.gmra.mxu1 %v598_v39 }
 0x10c   :  { %902 = vmatmul.f32.gmra.mxu2 %v518_v38  ;;  %982 = vmatmul.f32.gmra.mxu3 %v598_v39  ;;  %v357_v38 = vld [vmem:[%s16063_s26 + $0xe8] sm:$0xff] }
 0x10d   :  { %1183 = vmatpush.msra.mxu2 %v357_v38 }
 0x10f   :  { %v533_v60 = vpop.f32.mrf.mxu2  ;;  %v613_v61 = vpop.f32.mrf.mxu3 }
 0x110   :  { %v9930_v62 = vpop.f32.mrf.mxu0  ;;  %v9932_v63 = vpop.f32.mrf.mxu1 }
 0x113   :  { %745 = vmatmul.f32.gmra.mxu0 %v521_v42  ;;  %825 = vmatmul.f32.gmra.mxu1 %v601_v43 }
 0x114   :  { %905 = vmatmul.f32.gmra.mxu2 %v521_v42  ;;  %985 = vmatmul.f32.gmra.mxu3 %v601_v43  ;;  %v389_v43 = vld [vmem:[%s16063_s26 + $0x1e8] sm:$0xff] }
 0x115   :  { %1263 = vmatpush.msra.mxu3 %v389_v43 }
 0x117   :  { %v9934_v2 = vpop.f32.mrf.mxu2  ;;  %v9936_v3 = vpop.f32.mrf.mxu3 }
 0x118   :  { %v9938_v4 = vpop.f32.mrf.mxu0  ;;  %v9940_v5 = vpop.f32.mrf.mxu1 }
 0x11b   :  { %748 = vmatmul.f32.gmra.mxu0 %v524_v48  ;;  %828 = vmatmul.f32.gmra.mxu1 %v604_v49 }
 0x11c   :  { %908 = vmatmul.f32.gmra.mxu2 %v524_v48  ;;  %988 = vmatmul.f32.gmra.mxu3 %v604_v49 }
 0x11f   :  { %v9942_v6 = vpop.f32.mrf.mxu2  ;;  %v9944_v7 = vpop.f32.mrf.mxu3 }
 0x120   :  { %v9946_v8 = vpop.f32.mrf.mxu0  ;;  %v9948_v9 = vpop.f32.mrf.mxu1 }
 0x123   :  { %751 = vmatmul.f32.gmra.mxu0 %v527_v52  ;;  %831 = vmatmul.f32.gmra.mxu1 %v607_v53 }
 0x124   :  { %911 = vmatmul.f32.gmra.mxu2 %v527_v52  ;;  %991 = vmatmul.f32.gmra.mxu3 %v607_v53  ;;  %v354_v52 = vld [vmem:[%s16063_s26 + $0xd0] sm:$0xff] }
 0x125   :  { %v386_v53 = vld [vmem:[%s16063_s26 + $0x1d0] sm:$0xff]  ;;  %1024 = vmatpush.msra.mxu0 %v354_v52  ;;  %v349_v52 = vld [vmem:[%s16063_s26 + $0xa8] sm:$0xff] }
 0x126   :  { %1104 = vmatpush.msra.mxu1 %v386_v53  ;;  %v381_v53 = vld [vmem:[%s16063_s26 + $0x1a8] sm:$0xff] }
 0x127   :  { %v9950_v12 = vpop.f32.mrf.mxu2  ;;  %v9952_v13 = vpop.f32.mrf.mxu3 }
 0x128   :  { %v9954_v14 = vpop.f32.mrf.mxu0  ;;  %v9956_v15 = vpop.f32.mrf.mxu1 }
 0x12b   :  { %754 = vmatmul.f32.gmra.mxu0 %v530_v56  ;;  %834 = vmatmul.f32.gmra.mxu1 %v610_v57 }
 0x12c   :  { %914 = vmatmul.f32.gmra.mxu2 %v530_v56  ;;  %994 = vmatmul.f32.gmra.mxu3 %v610_v57  ;;  %v355_v56 = vld [vmem:[%s16063_s26 + $0xd8] sm:$0xff] }
 0x12d   :  { %v387_v57 = vld [vmem:[%s16063_s26 + $0x1d8] sm:$0xff]  ;;  %1184 = vmatpush.msra.mxu2 %v355_v56 }
 0x12e   :  { %1264 = vmatpush.msra.mxu3 %v387_v57 }
 0x12f   :  { %v9958_v18 = vpop.f32.mrf.mxu2  ;;  %v9960_v19 = vpop.f32.mrf.mxu3  ;;  %1185 = vmatpush.msra.mxu2 %v353_v24  ;;  %v347_v24 = vld [vmem:[%s16063_s26 + $0x98] sm:$0xff] }
 0x130   :  { %v9962_v20 = vpop.f32.mrf.mxu0  ;;  %v9964_v21 = vpop.f32.mrf.mxu1  ;;  %1265 = vmatpush.msra.mxu3 %v385_v25  ;;  %v379_v25 = vld [vmem:[%s16063_s26 + $0x198] sm:$0xff] }
 0x131   :  { %1186 = vmatpush.msra.mxu2 %v351_v34  ;;  %v345_v34 = vld [vmem:[%s16063_s26 + $0x88] sm:$0xff] }
 0x133   :  { %757 = vmatmul.f32.gmra.mxu0 %v533_v60  ;;  %837 = vmatmul.f32.gmra.mxu1 %v613_v61 }
 0x134   :  { %917 = vmatmul.f32.gmra.mxu2 %v533_v60  ;;  %997 = vmatmul.f32.gmra.mxu3 %v613_v61  ;;  %v352_v60 = vld [vmem:[%s16063_s26 + $0xc0] sm:$0xff] }
 0x135   :  { %v384_v61 = vld [vmem:[%s16063_s26 + $0x1c0] sm:$0xff]  ;;  %1025 = vmatpush.msra.mxu0 %v352_v60  ;;  %1187 = vmatpush.msra.mxu2 %v349_v52  ;;  %v346_v60 = vld [vmem:[%s16063_s26 + $0x90] sm:$0xff]  ;;  %v343_v52 = vld [vmem:[%s16063_s26 + $0x78] sm:$0xff] }
 0x136   :  { %1105 = vmatpush.msra.mxu1 %v384_v61  ;;  %v378_v61 = vld [vmem:[%s16063_s26 + $0x190] sm:$0xff] }
 0x137   :  { %v9987_v39 = vpop.f32.mrf.mxu2  ;;  %v9989_v42 = vpop.f32.mrf.mxu3  ;;  %1026 = vmatpush.msra.mxu0 %v350_v30  ;;  %v344_v30 = vld [vmem:[%s16063_s26 + $0x80] sm:$0xff]  ;;  %1188 = vmatpush.msra.mxu2 %v347_v24 }
 0x138   :  { %v9994_v48 = vpop.f32.mrf.mxu0  ;;  %v9996_v49 = vpop.f32.mrf.mxu1  ;;  %1106 = vmatpush.msra.mxu1 %v382_v31  ;;  %v376_v31 = vld [vmem:[%s16063_s26 + $0x180] sm:$0xff] }
 0x139   :  { %1189 = vmatpush.msra.mxu2 %v345_v34  ;;  %v340_v24 = vld [vmem:[%s16063_s26 + $0x60] sm:$0xff]  ;;  %v338_v34 = vld [vmem:[%s16063_s26 + $0x50] sm:$0xff] }
 0x13a   :  { %1107 = vmatpush.msra.mxu1 %v380_v35 }
 0x13b   :  { %760 = vmatmul.f32.gmra.mxu0 %v9934_v2  ;;  %840 = vmatmul.f32.gmra.mxu1 %v9936_v3 }
 0x13c   :  { %920 = vmatmul.f32.gmra.mxu2 %v9934_v2  ;;  %1000 = vmatmul.f32.gmra.mxu3 %v9936_v3  ;;  %v383_v2 = vld [vmem:[%s16063_s26 + $0x1b8] sm:$0xff]  ;;  %v348_v3 = vld [vmem:[%s16063_s26 + $0xa0] sm:$0xff] }
 0x13d   :  { %1266 = vmatpush.msra.mxu3 %v383_v2  ;;  %1027 = vmatpush.msra.mxu0 %v348_v3  ;;  %v374_v2 = vld [vmem:[%s16063_s26 + $0x170] sm:$0xff] }
 0x13e   :  { %1108 = vmatpush.msra.mxu1 %v378_v61  ;;  %1190 = vmatpush.msra.mxu2 %v343_v52 }
 0x13f   :  { %v10044_v38 = vpop.f32.mrf.mxu2  ;;  %v10046_v43 = vpop.f32.mrf.mxu3  ;;  %1267 = vmatpush.msra.mxu3 %v381_v53  ;;  %1028 = vmatpush.msra.mxu0 %v346_v60  ;;  %v375_v53 = vld [vmem:[%s16063_s26 + $0x178] sm:$0xff] }
 0x140   :  { %v10054_v56 = vpop.f32.mrf.mxu0  ;;  %v10056_v57 = vpop.f32.mrf.mxu1  ;;  %1109 = vmatpush.msra.mxu1 %v376_v31  ;;  %v373_v31 = vld [vmem:[%s16063_s26 + $0x168] sm:$0xff] }
 0x141   :  { %1268 = vmatpush.msra.mxu3 %v379_v25  ;;  %1029 = vmatpush.msra.mxu0 %v344_v30  ;;  %v372_v25 = vld [vmem:[%s16063_s26 + $0x160] sm:$0xff]  ;;  %v341_v30 = vld [vmem:[%s16063_s26 + $0x68] sm:$0xff] }
 0x142   :  { %1110 = vmatpush.msra.mxu1 %v374_v2  ;;  %1191 = vmatpush.msra.mxu2 %v341_v30  ;;  %v368_v2 = vld [vmem:[%s16063_s26 + $0x140] sm:$0xff] }
 0x143   :  { %763 = vmatmul.f32.gmra.mxu0 %v9942_v6  ;;  %843 = vmatmul.f32.gmra.mxu1 %v9944_v7 }
 0x144   :  { %923 = vmatmul.f32.gmra.mxu2 %v9942_v6  ;;  %1003 = vmatmul.f32.gmra.mxu3 %v9944_v7  ;;  %v377_v6 = vld [vmem:[%s16063_s26 + $0x188] sm:$0xff]  ;;  %v342_v7 = vld [vmem:[%s16063_s26 + $0x70] sm:$0xff] }
 0x145   :  { %1269 = vmatpush.msra.mxu3 %v377_v6  ;;  %1030 = vmatpush.msra.mxu0 %v342_v7  ;;  %v370_v6 = vld [vmem:[%s16063_s26 + $0x150] sm:$0xff]  ;;  %v339_v7 = vld [vmem:[%s16063_s26 + $0x58] sm:$0xff] }
 0x146   :  { %1111 = vmatpush.msra.mxu1 %v372_v25  ;;  %v369_v25 = vld [vmem:[%s16063_s26 + $0x148] sm:$0xff]  ;;  %1192 = vmatpush.msra.mxu2 %v339_v7  ;;  %v335_v7 = vld [vmem:[%s16063_s26 + $0x38] sm:$0xff] }
 0x147   :  { %v10092_v3 = vpop.f32.mrf.mxu2  ;;  %v10094_v35 = vpop.f32.mrf.mxu3  ;;  %1270 = vmatpush.msra.mxu3 %v375_v53  ;;  %1031 = vmatpush.msra.mxu0 %v340_v24  ;;  %v337_v24 = vld [vmem:[%s16063_s26 + $0x48] sm:$0xff] }
 0x148   :  { %v10102_v60 = vpop.f32.mrf.mxu0  ;;  %v10104_v61 = vpop.f32.mrf.mxu1  ;;  %1112 = vmatpush.msra.mxu1 %v370_v6  ;;  %1193 = vmatpush.msra.mxu2 %v337_v24  ;;  %v366_v6 = vld [vmem:[%s16063_s26 + $0x130] sm:$0xff] }
 0x149   :  { %16064 = vst [vmem:[#allocation2_spill] sm:$0xff] %v10102_v60  ;;  %1271 = vmatpush.msra.mxu3 %v373_v31  ;;  %1032 = vmatpush.msra.mxu0 %v338_v34  ;;  %v334_v34 = vld [vmem:[%s16063_s26 + $0x30] sm:$0xff] }
 0x14a   :  { %16065 = vst [vmem:[#allocation3_spill] sm:$0xff] %v10104_v61  ;;  %1113 = vmatpush.msra.mxu1 %v368_v2  ;;  %v364_v2 = vld [vmem:[%s16063_s26 + $0x120] sm:$0xff]  ;;  %1194 = vmatpush.msra.mxu2 %v335_v7 }
 0x14b   :  { %766 = vmatmul.f32.gmra.mxu0 %v9950_v12  ;;  %846 = vmatmul.f32.gmra.mxu1 %v9952_v13 }
 0x14c   :  { %926 = vmatmul.f32.gmra.mxu2 %v9950_v12  ;;  %1006 = vmatmul.f32.gmra.mxu3 %v9952_v13  ;;  %v371_v12 = vld [vmem:[%s16063_s26 + $0x158] sm:$0xff]  ;;  %v336_v13 = vld [vmem:[%s16063_s26 + $0x40] sm:$0xff] }
 0x14d   :  { %1272 = vmatpush.msra.mxu3 %v371_v12  ;;  %1033 = vmatpush.msra.mxu0 %v336_v13  ;;  %v367_v12 = vld [vmem:[%s16063_s26 + $0x138] sm:$0xff]  ;;  %v332_v13 = vld [vmem:[%s16063_s26 + $0x20] sm:$0xff] }
 0x14e   :  { %1114 = vmatpush.msra.mxu1 %v366_v6  ;;  %v363_v6 = vld [vmem:[%s16063_s26 + $0x118] sm:$0xff] }
 0x14f   :  { %v879_v52 = vpop.f32.mrf.mxu2  ;;  %v959_v53 = vpop.f32.mrf.mxu3  ;;  %1273 = vmatpush.msra.mxu3 %v369_v25  ;;  %1034 = vmatpush.msra.mxu0 %v334_v34  ;;  %v331_v34 = vld [vmem:[%s16063_s26 + $0x18] sm:$0xff] }
 0x150   :  { %v10146_v30 = vadd.f32 %v959_v53, %v879_v52  ;;  %v10148_v31 = vpop.f32.mrf.mxu0  ;;  %v10150_v61 = vpop.f32.mrf.mxu1  ;;  %v333_v52 = vld [vmem:[%s16063_s26 + $0x28] sm:$0xff]  ;;  %v362_v53 = vld [vmem:[%s16063_s26 + $0x110] sm:$0xff]  ;;  %1115 = vmatpush.msra.mxu1 %v364_v2  ;;  %v360_v2 = vld [vmem:[%s16063_s26 + $0x100] sm:$0xff] }
 0x151   :  { %16067 = vst [vmem:[#allocation5_spill] sm:$0xff] %v10148_v31  ;;  %1274 = vmatpush.msra.mxu3 %v367_v12  ;;  %1035 = vmatpush.msra.mxu0 %v332_v13  ;;  %v328_v13 = vld [vmem:[%s16063_s26] sm:$0xff]  ;;  %v10333_v31 = vld [vmem:[%s16061_s29 + $0x48] sm:$0xff] }
 0x152   :  { %16066 = vst [vmem:[#allocation4_spill] sm:$0xff] %v10146_v30  ;;  %1195 = vmatpush.msra.mxu2 %v333_v52  ;;  %1116 = vmatpush.msra.mxu1 %v362_v53  ;;  %v329_v52 = vld [vmem:[%s16063_s26 + $0x8] sm:$0xff] }
 0x153   :  { %16068 = vst [vmem:[#allocation6_spill] sm:$0xff] %v10150_v61  ;;  %769 = vmatmul.f32.gmra.mxu0 %v9958_v18  ;;  %849 = vmatmul.f32.gmra.mxu1 %v9960_v19  ;;  %v10327_v61 = vld [vmem:[%s16061_s29 + $0x40] sm:$0xff] }
 0x154   :  { %929 = vmatmul.f32.gmra.mxu2 %v9958_v18  ;;  %1009 = vmatmul.f32.gmra.mxu3 %v9960_v19  ;;  %v365_v18 = vld [vmem:[%s16063_s26 + $0x128] sm:$0xff]  ;;  %v330_v19 = vld [vmem:[%s16063_s26 + $0x10] sm:$0xff] }
 0x155   :  { %1275 = vmatpush.msra.mxu3 %v365_v18  ;;  %1036 = vmatpush.msra.mxu0 %v330_v19  ;;  %v361_v18 = vld [vmem:[%s16063_s26 + $0x108] sm:$0xff] }
 0x156   :  { %1196 = vmatpush.msra.mxu2 %v331_v34  ;;  %1117 = vmatpush.msra.mxu1 %v360_v2  ;;  %v10251_v2 = vld [vmem:[%s16061_s29 + $0x90] sm:$0xff] }
 0x157   :  { %v882_v24 = vpop.f32.mrf.mxu2  ;;  %v962_v25 = vpop.f32.mrf.mxu3  ;;  %1276 = vmatpush.msra.mxu3 %v363_v6  ;;  %1037 = vmatpush.msra.mxu0 %v328_v13  ;;  %v10235_v6 = vld [vmem:[%s16061_s29 + $0xa0] sm:$0xff]  ;;  %v10241_v13 = vld [vmem:[%s16061_s29 + $0xa8] sm:$0xff] }
 0x158   :  { %v10192_v7 = vadd.f32 %v962_v25, %v882_v24  ;;  %v10194_v12 = vpop.f32.mrf.mxu0  ;;  %v10196_v30 = vpop.f32.mrf.mxu1  ;;  %1197 = vmatpush.msra.mxu2 %v329_v52  ;;  %v10217_v24 = vld [vmem:[%s16061_s29 + $0xb0] sm:$0xff]  ;;  %v10223_v25 = vld [vmem:[%s16061_s29 + $0xb8] sm:$0xff] }
 0x159   :  { %16070 = vst [vmem:[#allocation8_spill] sm:$0xff] %v10194_v12  ;;  %1277 = vmatpush.msra.mxu3 %v361_v18  ;;  %1431 = vmatpush.msrb.mxu0 %v10217_v24  ;;  %v10257_v52 = vld [vmem:[%s16061_s29 + $0x98] sm:$0xff] }
 0x15a   :  { %16069 = vst [vmem:[#allocation7_spill] sm:$0xff] %v10192_v7  ;;  %1511 = vmatpush.msrb.mxu1 %v10223_v25 }
 0x15b   :  { %16071 = vst [vmem:[#allocation9_spill] sm:$0xff] %v10196_v30  ;;  %772 = vmatmul.f32.gmra.mxu0 %v9987_v39  ;;  %852 = vmatmul.f32.gmra.mxu1 %v9989_v42 }
 0x15c   :  { %932 = vmatmul.f32.gmra.mxu2 %v9987_v39  ;;  %1012 = vmatmul.f32.gmra.mxu3 %v9989_v42 }
 0x15d   :  { %1432 = vmatpush.msrb.mxu0 %v10235_v6  ;;  %1512 = vmatpush.msrb.mxu1 %v10241_v13 }
 0x15f   :  { %v885_v19 = vpop.f32.mrf.mxu2  ;;  %v965_v53 = vpop.f32.mrf.mxu3  ;;  %1433 = vmatpush.msrb.mxu0 %v10251_v2  ;;  %1513 = vmatpush.msrb.mxu1 %v10257_v52 }
 0x160   :  { %v10226_v39 = vadd.f32 %v965_v53, %v885_v19  ;;  %v10228_v42 = vpop.f32.mrf.mxu0  ;;  %v10230_v34 = vpop.f32.mrf.mxu1 }
 0x161   :  { %16073 = vst [vmem:[#allocation11_spill] sm:$0xff] %v10228_v42  ;;  %v10287_v42 = vld [vmem:[%s16061_s29 + $0x78] sm:$0xff] }
 0x162   :  { %16072 = vst [vmem:[#allocation10_spill] sm:$0xff] %v10226_v39 }
 0x163   :  { %16074 = vst [vmem:[#allocation12_spill] sm:$0xff] %v10230_v34  ;;  %775 = vmatmul.f32.gmra.mxu0 %v10044_v38  ;;  %855 = vmatmul.f32.gmra.mxu1 %v10046_v43  ;;  %v10281_v34 = vld [vmem:[%s16061_s29 + $0x70] sm:$0xff] }
 0x164   :  { %935 = vmatmul.f32.gmra.mxu2 %v10044_v38  ;;  %1015 = vmatmul.f32.gmra.mxu3 %v10046_v43  ;;  %v10263_v38 = vld [vmem:[%s16061_s29 + $0x80] sm:$0xff]  ;;  %v10269_v43 = vld [vmem:[%s16061_s29 + $0x88] sm:$0xff] }
 0x165   :  { %1434 = vmatpush.msrb.mxu0 %v10263_v38  ;;  %1514 = vmatpush.msrb.mxu1 %v10269_v43 }
 0x167   :  { %v888_v18 = vpop.f32.mrf.mxu2  ;;  %v968_v19 = vpop.f32.mrf.mxu3  ;;  %1435 = vmatpush.msrb.mxu0 %v10281_v34  ;;  %1515 = vmatpush.msrb.mxu1 %v10287_v42 }
 0x168   :  { %v10272_v53 = vadd.f32 %v968_v19, %v888_v18  ;;  %v10274_v39 = vpop.f32.mrf.mxu0  ;;  %v10276_v7 = vpop.f32.mrf.mxu1  ;;  %v10297_v18 = vld [vmem:[%s16061_s29 + $0x60] sm:$0xff]  ;;  %v10303_v19 = vld [vmem:[%s16061_s29 + $0x68] sm:$0xff] }
 0x169   :  { %16076 = vst [vmem:[#allocation14_spill] sm:$0xff] %v10274_v39  ;;  %1436 = vmatpush.msrb.mxu0 %v10297_v18  ;;  %1516 = vmatpush.msrb.mxu1 %v10303_v19 }
 0x16a   :  { %16075 = vst [vmem:[#allocation13_spill] sm:$0xff] %v10272_v53 }
 0x16b   :  { %16077 = vst [vmem:[#allocation15_spill] sm:$0xff] %v10276_v7  ;;  %778 = vmatmul.f32.gmra.mxu0 %v10092_v3  ;;  %858 = vmatmul.f32.gmra.mxu1 %v10094_v35 }
 0x16c   :  { %938 = vmatmul.f32.gmra.mxu2 %v10092_v3  ;;  %1018 = vmatmul.f32.gmra.mxu3 %v10094_v35  ;;  %v10309_v3 = vld [vmem:[%s16061_s29 + $0x50] sm:$0xff]  ;;  %v10315_v35 = vld [vmem:[%s16061_s29 + $0x58] sm:$0xff] }
 0x16d   :  { %1437 = vmatpush.msrb.mxu0 %v10309_v3  ;;  %1517 = vmatpush.msrb.mxu1 %v10315_v35 }
 0x16f   :  { %v891_v53 = vpop.f32.mrf.mxu2  ;;  %v971_v7 = vpop.f32.mrf.mxu3  ;;  %1438 = vmatpush.msrb.mxu0 %v10327_v61  ;;  %1518 = vmatpush.msrb.mxu1 %v10333_v31 }
 0x170   :  { %v10318_v39 = vadd.f32 %v971_v7, %v891_v53  ;;  %v10320_v30 = vpop.f32.mrf.mxu0  ;;  %v10322_v12 = vpop.f32.mrf.mxu1  ;;  %v10343_v7 = vld [vmem:[%s16061_s29 + $0x30] sm:$0xff]  ;;  %v10349_v53 = vld [vmem:[%s16061_s29 + $0x38] sm:$0xff] }
 0x171   :  { %16079 = vst [vmem:[#allocation17_spill] sm:$0xff] %v10320_v30  ;;  %1439 = vmatpush.msrb.mxu0 %v10343_v7  ;;  %1519 = vmatpush.msrb.mxu1 %v10349_v53 }
 0x172   :  { %16078 = vst [vmem:[#allocation16_spill] sm:$0xff] %v10318_v39 }
 0x173   :  { %16080 = vst [vmem:[#allocation18_spill] sm:$0xff] %v10322_v12  ;;  %1038 = vmatmul.f32.vlgmr.msra.gmra.mxu0 %v9732_v28  ;;  %1118 = vmatmul.f32.vlgmr.msra.gmra.mxu1 %v9734_v29 }
 0x174   :  { %1198 = vmatmul.f32.vlgmr.msra.gmra.mxu2 %v9732_v28  ;;  %1278 = vmatmul.f32.vlgmr.msra.gmra.mxu3 %v9734_v29  ;;  %16081 = vst [vmem:[#allocation19_spill] sm:$0xff] %v10343_v7  ;;  %v10355_v28 = vld [vmem:[%s16061_s29 + $0x20] sm:$0xff]  ;;  %v10361_v29 = vld [vmem:[%s16061_s29 + $0x28] sm:$0xff]  ;;  %v10373_v7 = vld [vmem:[%s16061_s29 + $0x10] sm:$0xff] }
 0x175   :  { %16082 = vst [vmem:[#allocation20_spill] sm:$0xff] %v10349_v53  ;;  %1440 = vmatpush.msrb.mxu0 %v10355_v28  ;;  %1520 = vmatpush.msrb.mxu1 %v10361_v29 }
 0x176   :  { %16083 = vst [vmem:[#allocation21_spill] sm:$0xff] %v10355_v28  ;;  %v10379_v28 = vld [vmem:[%s16061_s29 + $0x18] sm:$0xff] }
 0x177   :  { %v894_v39 = vpop.f32.mrf.mxu2  ;;  %v974_v12 = vpop.f32.mrf.mxu3  ;;  %16087 = vst [vmem:[#allocation25_spill] sm:$0xff] %v10373_v7  ;;  %1441 = vmatpush.msrb.mxu0 %v10373_v7  ;;  %1521 = vmatpush.msrb.mxu1 %v10379_v28 }
 0x178   :  { %v10364_v30 = vadd.f32 %v974_v12, %v894_v39  ;;  %v10366_v60 = vpop.f32.mrf.mxu0  ;;  %v10368_v53 = vpop.f32.mrf.mxu1  ;;  %16088 = vst [vmem:[#allocation26_spill] sm:$0xff] %v10379_v28  ;;  %v10389_v12 = vld [vmem:[%s16061_s29] sm:$0xff]  ;;  %v10395_v39 = vld [vmem:[%s16061_s29 + $0x8] sm:$0xff] }
 0x179   :  { %16085 = vst [vmem:[#allocation23_spill] sm:$0xff] %v10366_v60  ;;  %1442 = vmatpush.msrb.mxu0 %v10389_v12  ;;  %1522 = vmatpush.msrb.mxu1 %v10395_v39 }
 0x17a   :  { %16084 = vst [vmem:[#allocation22_spill] sm:$0xff] %v10364_v30 }
 0x17b   :  { %16086 = vst [vmem:[#allocation24_spill] sm:$0xff] %v10368_v53  ;;  %1041 = vmatmul.f32.gmra.mxu0 %v9786_v46  ;;  %1121 = vmatmul.f32.gmra.mxu1 %v9788_v47 }
 0x17c   :  { %1201 = vmatmul.f32.gmra.mxu2 %v9786_v46  ;;  %1281 = vmatmul.f32.gmra.mxu3 %v9788_v47  ;;  %16089 = vst [vmem:[#allocation27_spill] sm:$0xff] %v10389_v12 }
 0x17d   :  { %16090 = vst [vmem:[#allocation28_spill] sm:$0xff] %v10395_v39 }
 0x17f   :  { %v897_v30 = vpop.f32.mrf.mxu2  ;;  %v977_v53 = vpop.f32.mrf.mxu3 }
 0x180   :  { %v10398_v60 = vadd.f32 %v977_v53, %v897_v30  ;;  %v10400_v46 = vpop.f32.mrf.mxu0  ;;  %v10402_v47 = vpop.f32.mrf.mxu1 }
 0x182   :  { %16091 = vst [vmem:[#allocation29_spill] sm:$0xff] %v10398_v60 }
 0x183   :  { %1044 = vmatmul.f32.gmra.mxu0 %v9836_v0  ;;  %1124 = vmatmul.f32.gmra.mxu1 %v9838_v1 }
 0x184   :  { %1204 = vmatmul.f32.gmra.mxu2 %v9836_v0  ;;  %1284 = vmatmul.f32.gmra.mxu3 %v9838_v1 }
 0x187   :  { %v900_v12 = vpop.f32.mrf.mxu2  ;;  %v980_v28 = vpop.f32.mrf.mxu3 }
 0x188   :  { %v10408_v7 = vadd.f32 %v980_v28, %v900_v12  ;;  %v10410_v39 = vpop.f32.mrf.mxu0  ;;  %v10412_v30 = vpop.f32.mrf.mxu1 }
 0x18a   :  { %16092 = vst [vmem:[#allocation30_spill] sm:$0xff] %v10408_v7 }
 0x18b   :  { %1047 = vmatmul.f32.gmra.mxu0 %v9862_v10  ;;  %1127 = vmatmul.f32.gmra.mxu1 %v9864_v11 }
 0x18c   :  { %1207 = vmatmul.f32.gmra.mxu2 %v9862_v10  ;;  %1287 = vmatmul.f32.gmra.mxu3 %v9864_v11 }
 0x18f   :  { %v903_v53 = vpop.f32.mrf.mxu2  ;;  %v983_v0 = vpop.f32.mrf.mxu3 }
 0x190   :  { %v10418_v60 = vadd.f32 %v983_v0, %v903_v53  ;;  %v10420_v1 = vpop.f32.mrf.mxu0  ;;  %v10422_v28 = vpop.f32.mrf.mxu1 }
 0x192   :  { %16093 = vst [vmem:[#allocation31_spill] sm:$0xff] %v10418_v60 }
 0x193   :  { %1050 = vmatmul.f32.gmra.mxu0 %v9876_v16  ;;  %1130 = vmatmul.f32.gmra.mxu1 %v9878_v17 }
 0x194   :  { %1210 = vmatmul.f32.gmra.mxu2 %v9876_v16  ;;  %1290 = vmatmul.f32.gmra.mxu3 %v9878_v17 }
 0x197   :  { %v906_v12 = vpop.f32.mrf.mxu2  ;;  %v986_v10 = vpop.f32.mrf.mxu3 }
 0x198   :  { %v10428_v7 = vadd.f32 %v986_v10, %v906_v12  ;;  %v10430_v11 = vpop.f32.mrf.mxu0  ;;  %v10432_v53 = vpop.f32.mrf.mxu1 }
 0x19a   :  { %16094 = vst [vmem:[#allocation32_spill] sm:$0xff] %v10428_v7 }
 0x19b   :  { %1053 = vmatmul.f32.gmra.mxu0 %v9890_v22  ;;  %1133 = vmatmul.f32.gmra.mxu1 %v9892_v23 }
 0x19c   :  { %1213 = vmatmul.f32.gmra.mxu2 %v9890_v22  ;;  %1293 = vmatmul.f32.gmra.mxu3 %v9892_v23 }
 0x19f   :  { %v909_v0 = vpop.f32.mrf.mxu2  ;;  %v989_v16 = vpop.f32.mrf.mxu3 }
 0x1a0   :  { %v10438_v60 = vadd.f32 %v989_v16, %v909_v0  ;;  %v10440_v17 = vpop.f32.mrf.mxu0  ;;  %v10442_v12 = vpop.f32.mrf.mxu1 }
 0x1a2   :  { %16095 = vst [vmem:[#allocation33_spill] sm:$0xff] %v10438_v60 }
 0x1a3   :  { %1056 = vmatmul.f32.gmra.mxu0 %v9898_v26  ;;  %1136 = vmatmul.f32.gmra.mxu1 %v9900_v27 }
 0x1a4   :  { %1216 = vmatmul.f32.gmra.mxu2 %v9898_v26  ;;  %1296 = vmatmul.f32.gmra.mxu3 %v9900_v27 }
 0x1a7   :  { %v912_v10 = vpop.f32.mrf.mxu2  ;;  %v992_v22 = vpop.f32.mrf.mxu3 }
 0x1a8   :  { %v10448_v7 = vadd.f32 %v992_v22, %v912_v10  ;;  %v10450_v23 = vpop.f32.mrf.mxu0  ;;  %v10452_v0 = vpop.f32.mrf.mxu1 }
 0x1aa   :  { %16096 = vst [vmem:[#allocation34_spill] sm:$0xff] %v10448_v7 }
 0x1ab   :  { %1059 = vmatmul.f32.gmra.mxu0 %v9902_v32  ;;  %1139 = vmatmul.f32.gmra.mxu1 %v9904_v33 }
 0x1ac   :  { %1219 = vmatmul.f32.gmra.mxu2 %v9902_v32  ;;  %1299 = vmatmul.f32.gmra.mxu3 %v9904_v33 }
 0x1af   :  { %v915_v16 = vpop.f32.mrf.mxu2  ;;  %v995_v26 = vpop.f32.mrf.mxu3 }
 0x1b0   :  { %v10458_v60 = vadd.f32 %v995_v26, %v915_v16  ;;  %v10460_v27 = vpop.f32.mrf.mxu0  ;;  %v10462_v10 = vpop.f32.mrf.mxu1 }
 0x1b1   :  { %16098 = vst [vmem:[#allocation36_spill] sm:$0xff] %v10460_v27 }
 0x1b2   :  { %16097 = vst [vmem:[#allocation35_spill] sm:$0xff] %v10458_v60 }
 0x1b3   :  { %16099 = vst [vmem:[#allocation37_spill] sm:$0xff] %v10462_v10  ;;  %1062 = vmatmul.f32.gmra.mxu0 %v9906_v36  ;;  %1142 = vmatmul.f32.gmra.mxu1 %v9908_v37 }
 0x1b4   :  { %1222 = vmatmul.f32.gmra.mxu2 %v9906_v36  ;;  %1302 = vmatmul.f32.gmra.mxu3 %v9908_v37 }
 0x1b7   :  { %v918_v22 = vpop.f32.mrf.mxu2  ;;  %v998_v32 = vpop.f32.mrf.mxu3 }
 0x1b8   :  { %v10468_v7 = vadd.f32 %v998_v32, %v918_v22  ;;  %v10470_v33 = vpop.f32.mrf.mxu0  ;;  %v10472_v16 = vpop.f32.mrf.mxu1 }
 0x1b9   :  { %16101 = vst [vmem:[#allocation39_spill] sm:$0xff] %v10470_v33  ;;  %v8194_v33 = vld [vmem:[%s16063_s26 + $0x4f0] sm:$0xff] }
 0x1ba   :  { %16100 = vst [vmem:[#allocation38_spill] sm:$0xff] %v10468_v7  ;;  %1652 = vmatpush.msrb.mxu2 %v8194_v33  ;;  %v8110_v33 = vld [vmem:[%s16062_s22 + $0x198] sm:$0xff] }
 0x1bb   :  { %16102 = vst [vmem:[#allocation40_spill] sm:$0xff] %v10472_v16  ;;  %1065 = vmatmul.f32.gmra.mxu0 %v9910_v40  ;;  %1145 = vmatmul.f32.gmra.mxu1 %v9912_v41 }
 0x1bc   :  { %1225 = vmatmul.f32.gmra.mxu2 %v9910_v40  ;;  %1305 = vmatmul.f32.gmra.mxu3 %v9912_v41 }
 0x1bf   :  { %v921_v26 = vpop.f32.mrf.mxu2  ;;  %v1001_v36 = vpop.f32.mrf.mxu3 }
 0x1c0   :  { %v10478_v60 = vadd.f32 %v1001_v36, %v921_v26  ;;  %v10480_v37 = vpop.f32.mrf.mxu0  ;;  %v10482_v22 = vpop.f32.mrf.mxu1 }
 0x1c1   :  { %16104 = vst [vmem:[#allocation42_spill] sm:$0xff] %v10480_v37 }
 0x1c2   :  { %16103 = vst [vmem:[#allocation41_spill] sm:$0xff] %v10478_v60 }
 0x1c3   :  { %16105 = vst [vmem:[#allocation43_spill] sm:$0xff] %v10482_v22  ;;  %1068 = vmatmul.f32.gmra.mxu0 %v9914_v44  ;;  %1148 = vmatmul.f32.gmra.mxu1 %v9916_v45 }
 0x1c4   :  { %1228 = vmatmul.f32.gmra.mxu2 %v9914_v44  ;;  %1308 = vmatmul.f32.gmra.mxu3 %v9916_v45 }
 0x1c7   :  { %v924_v32 = vpop.f32.mrf.mxu2  ;;  %v1004_v40 = vpop.f32.mrf.mxu3 }
 0x1c8   :  { %v10488_v7 = vadd.f32 %v1004_v40, %v924_v32  ;;  %v10490_v41 = vpop.f32.mrf.mxu0  ;;  %v10492_v26 = vpop.f32.mrf.mxu1 }
 0x1c9   :  { %16107 = vst [vmem:[#allocation45_spill] sm:$0xff] %v10490_v41 }
 0x1ca   :  { %16106 = vst [vmem:[#allocation44_spill] sm:$0xff] %v10488_v7 }
 0x1cb   :  { %16108 = vst [vmem:[#allocation46_spill] sm:$0xff] %v10492_v26  ;;  %1071 = vmatmul.f32.gmra.mxu0 %v9918_v50  ;;  %1151 = vmatmul.f32.gmra.mxu1 %v9920_v51 }
 0x1cc   :  { %1231 = vmatmul.f32.gmra.mxu2 %v9918_v50  ;;  %1311 = vmatmul.f32.gmra.mxu3 %v9920_v51 }
 0x1cf   :  { %v927_v36 = vpop.f32.mrf.mxu2  ;;  %v1007_v44 = vpop.f32.mrf.mxu3 }
 0x1d0   :  { %v10498_v60 = vadd.f32 %v1007_v44, %v927_v36  ;;  %v10500_v45 = vpop.f32.mrf.mxu0  ;;  %v10502_v32 = vpop.f32.mrf.mxu1 }
 0x1d1   :  { %16110 = vst [vmem:[#allocation48_spill] sm:$0xff] %v10500_v45 }
 0x1d2   :  { %16109 = vst [vmem:[#allocation47_spill] sm:$0xff] %v10498_v60 }
 0x1d3   :  { %16111 = vst [vmem:[#allocation49_spill] sm:$0xff] %v10502_v32  ;;  %1074 = vmatmul.f32.gmra.mxu0 %v9922_v54  ;;  %1154 = vmatmul.f32.gmra.mxu1 %v9924_v55 }
 0x1d4   :  { %1234 = vmatmul.f32.gmra.mxu2 %v9922_v54  ;;  %1314 = vmatmul.f32.gmra.mxu3 %v9924_v55 }
 0x1d7   :  { %v930_v40 = vpop.f32.mrf.mxu2  ;;  %v1010_v50 = vpop.f32.mrf.mxu3 }
 0x1d8   :  { %v10508_v7 = vadd.f32 %v1010_v50, %v930_v40  ;;  %v10510_v51 = vpop.f32.mrf.mxu0  ;;  %v10512_v36 = vpop.f32.mrf.mxu1 }
 0x1d9   :  { %16113 = vst [vmem:[#allocation51_spill] sm:$0xff] %v10510_v51 }
 0x1da   :  { %16112 = vst [vmem:[#allocation50_spill] sm:$0xff] %v10508_v7 }
 0x1db   :  { %16114 = vst [vmem:[#allocation52_spill] sm:$0xff] %v10512_v36  ;;  %1077 = vmatmul.f32.gmra.mxu0 %v9926_v58  ;;  %1157 = vmatmul.f32.gmra.mxu1 %v9928_v59 }
 0x1dc   :  { %1237 = vmatmul.f32.gmra.mxu2 %v9926_v58  ;;  %1317 = vmatmul.f32.gmra.mxu3 %v9928_v59 }
 0x1df   :  { %v10601_v60 = vpop.f32.mrf.mxu2 }
 0x1e0   :  { %v10518_v44 = vpop.f32.mrf.mxu0  ;;  %v10520_v54 = vpop.f32.mrf.mxu1  ;;  %16119 = vst [vmem:[#allocation57_spill] sm:$0xff] %v10601_v60 }
 0x1e1   :  { %16115 = vst [vmem:[#allocation53_spill] sm:$0xff] %v10518_v44 }
 0x1e2   :  { %16116 = vst [vmem:[#allocation54_spill] sm:$0xff] %v10520_v54 }
 0x1e3   :  { %1080 = vmatmul.f32.gmra.mxu0 %v9930_v62  ;;  %1160 = vmatmul.f32.gmra.mxu1 %v9932_v63 }
 0x1e4   :  { %1240 = vmatmul.f32.gmra.mxu2 %v9930_v62  ;;  %1320 = vmatmul.f32.gmra.mxu3 %v9932_v63 }
 0x1e7   :  { %v10614_v44 = vpop.f32.mrf.mxu2 }
 0x1e8   :  { %v10526_v55 = vpop.f32.mrf.mxu0  ;;  %v10528_v40 = vpop.f32.mrf.mxu1  ;;  %16121 = vst [vmem:[#allocation59_spill] sm:$0xff] %v10614_v44 }
 0x1e9   :  { %16117 = vst [vmem:[#allocation55_spill] sm:$0xff] %v10526_v55 }
 0x1ea   :  { %16118 = vst [vmem:[#allocation56_spill] sm:$0xff] %v10528_v40  ;;  %v10603_v40 = vpop.f32.mrf.mxu3 }
 0x1eb   :  { %1083 = vmatmul.f32.gmra.mxu0 %v9938_v4  ;;  %1163 = vmatmul.f32.gmra.mxu1 %v9940_v5  ;;  %16120 = vst [vmem:[#allocation58_spill] sm:$0xff] %v10603_v40  ;;  %v8105_v40 = vld [vmem:[%s16062_s22 + $0x170] sm:$0xff] }
 0x1ec   :  { %1243 = vmatmul.f32.gmra.mxu2 %v9938_v4  ;;  %1323 = vmatmul.f32.gmra.mxu3 %v9940_v5 }
 0x1f0   :  { %v10534_v58 = vpop.f32.mrf.mxu0  ;;  %v10536_v59 = vpop.f32.mrf.mxu1 }
 0x1f2   :  { %v10616_v36 = vpop.f32.mrf.mxu3 }
 0x1f3   :  { %1086 = vmatmul.f32.gmra.mxu0 %v9946_v8  ;;  %1166 = vmatmul.f32.gmra.mxu1 %v9948_v9  ;;  %16122 = vst [vmem:[#allocation60_spill] sm:$0xff] %v10616_v36  ;;  %v10634_v36 = vpop.f32.mrf.mxu2 }
 0x1f4   :  { %1246 = vmatmul.f32.gmra.mxu2 %v9946_v8  ;;  %1326 = vmatmul.f32.gmra.mxu3 %v9948_v9  ;;  %16123 = vst [vmem:[#allocation61_spill] sm:$0xff] %v10634_v36 }
 0x1f8   :  { %v10542_v62 = vpop.f32.mrf.mxu0  ;;  %v10544_v63 = vpop.f32.mrf.mxu1 }
 0x1fa   :  { %v10636_v44 = vpop.f32.mrf.mxu3 }
 0x1fb   :  { %1089 = vmatmul.f32.gmra.mxu0 %v9954_v14  ;;  %1169 = vmatmul.f32.gmra.mxu1 %v9956_v15  ;;  %16124 = vst [vmem:[#allocation62_spill] sm:$0xff] %v10636_v44  ;;  %v10647_v41 = vpop.f32.mrf.mxu2 }
 0x1fc   :  { %1249 = vmatmul.f32.gmra.mxu2 %v9954_v14  ;;  %1329 = vmatmul.f32.gmra.mxu3 %v9956_v15  ;;  %16125 = vst [vmem:[#allocation63_spill] sm:$0xff] %v10647_v41 }
 0x200   :  { %v10550_v4 = vpop.f32.mrf.mxu0  ;;  %v10552_v5 = vpop.f32.mrf.mxu1 }
 0x202   :  { %v10649_v22 = vpop.f32.mrf.mxu3 }
 0x203   :  { %1092 = vmatmul.f32.gmra.mxu0 %v9962_v20  ;;  %1172 = vmatmul.f32.gmra.mxu1 %v9964_v21  ;;  %16126 = vst [vmem:[#allocation64_spill] sm:$0xff] %v10649_v22  ;;  %v10662_v37 = vpop.f32.mrf.mxu2 }
 0x204   :  { %1252 = vmatmul.f32.gmra.mxu2 %v9962_v20  ;;  %1332 = vmatmul.f32.gmra.mxu3 %v9964_v21  ;;  %16128 = vst [vmem:[#allocation66_spill] sm:$0xff] %v10662_v37  ;;  %v8224_v37 = vld [vmem:[%s16063_s26 + $0x5e0] sm:$0xff] }
 0x208   :  { %v10558_v8 = vpop.f32.mrf.mxu0  ;;  %v10560_v9 = vpop.f32.mrf.mxu1 }
 0x20a   :  { %v10664_v41 = vpop.f32.mrf.mxu3 }
 0x20b   :  { %1095 = vmatmul.f32.gmra.mxu0 %v9994_v48  ;;  %1175 = vmatmul.f32.gmra.mxu1 %v9996_v49  ;;  %16129 = vst [vmem:[#allocation67_spill] sm:$0xff] %v10664_v41  ;;  %v8192_v41 = vld [vmem:[%s16063_s26 + $0x4e0] sm:$0xff] }
 0x20c   :  { %1255 = vmatmul.f32.gmra.mxu2 %v9994_v48  ;;  %1335 = vmatmul.f32.gmra.mxu3 %v9996_v49  ;;  %v8101_v48 = vld [vmem:[%s16062_s22 + $0x150] sm:$0xff] }
 0x20d   :  { %1653 = vmatpush.msrb.mxu2 %v8192_v41  ;;  %v8220_v41 = vld [vmem:[%s16063_s26 + $0x5c0] sm:$0xff] }
 0x210   :  { %v10566_v14 = vpop.f32.mrf.mxu0  ;;  %v10568_v15 = vpop.f32.mrf.mxu1 }
 0x212   :  { %v10695_v10 = vpop.f32.mrf.mxu3 }
 0x213   :  { %1098 = vmatmul.f32.gmra.mxu0 %v10054_v56  ;;  %1178 = vmatmul.f32.gmra.mxu1 %v10056_v57  ;;  %16133 = vst [vmem:[#allocation71_spill] sm:$0xff] %v10695_v10  ;;  %v8218_v10 = vld [vmem:[%s16063_s26 + $0x5b0] sm:$0xff] }
 0x214   :  { %1258 = vmatmul.f32.gmra.mxu2 %v10054_v56  ;;  %1338 = vmatmul.f32.gmra.mxu3 %v10056_v57  ;;  %v8102_v56 = vld [vmem:[%s16062_s22 + $0x158] sm:$0xff] }
 0x218   :  { %v10574_v20 = vpop.f32.mrf.mxu0  ;;  %v10576_v21 = vpop.f32.mrf.mxu1 }
 0x21b   :  { %8122 = vmatmul.msk.f32.vlgmr.msrb.gmra.mxu0 %vm104_vm0, %v8101_v48  ;;  %8143 = vmatmul.msk.f32.vlgmr.msrb.gmra.mxu1 %vm104_vm0, %v8101_v48  ;;  %v8103_v48 = vld [vmem:[%s16062_s22 + $0x160] sm:$0xff] }
 0x220   :  { %v10583_v49 = vpop.f32.mrf.mxu0  ;;  %v10585_v50 = vpop.f32.mrf.mxu1 }
 0x223   :  { %8123 = vmatmul.msk.f32.gmra.mxu0 %vm104_vm0, %v8102_v56  ;;  %8144 = vmatmul.msk.f32.gmra.mxu1 %vm104_vm0, %v8102_v56  ;;  %v8104_v56 = vld [vmem:[%s16062_s22 + $0x168] sm:$0xff] }
 0x228   :  { %v10592_v57 = vpop.f32.mrf.mxu0  ;;  %v10594_v7 = vpop.f32.mrf.mxu1 }
 0x22b   :  { %8124 = vmatmul.msk.f32.gmra.mxu0 %vm104_vm0, %v8103_v48  ;;  %8145 = vmatmul.msk.f32.gmra.mxu1 %vm104_vm0, %v8103_v48 }
 0x230   :  { %v10605_v55 = vpop.f32.mrf.mxu0  ;;  %v10607_v54 = vpop.f32.mrf.mxu1 }
 0x233   :  { %8125 = vmatmul.msk.f32.gmra.mxu0 %vm104_vm0, %v8104_v56  ;;  %8146 = vmatmul.msk.f32.gmra.mxu1 %vm104_vm0, %v8104_v56  ;;  %v8106_v56 = vld [vmem:[%s16062_s22 + $0x178] sm:$0xff] }
 0x238   :  { %v10618_v48 = vpop.f32.mrf.mxu0  ;;  %v10620_v60 = vpop.f32.mrf.mxu1 }
 0x23b   :  { %8126 = vmatmul.msk.f32.gmra.mxu0 %vm104_vm0, %v8105_v40  ;;  %8147 = vmatmul.msk.f32.gmra.mxu1 %vm104_vm0, %v8105_v40  ;;  %v8107_v40 = vld [vmem:[%s16062_s22 + $0x180] sm:$0xff] }
 0x240   :  { %v10627_v51 = vpop.f32.mrf.mxu0  ;;  %v10629_v32 = vpop.f32.mrf.mxu1 }
 0x243   :  { %8127 = vmatmul.msk.f32.gmra.mxu0 %vm104_vm0, %v8106_v56  ;;  %8148 = vmatmul.msk.f32.gmra.mxu1 %vm104_vm0, %v8106_v56  ;;  %v8108_v56 = vld [vmem:[%s16062_s22 + $0x188] sm:$0xff] }
 0x248   :  { %v10640_v45 = vpop.f32.mrf.mxu0  ;;  %v10642_v26 = vpop.f32.mrf.mxu1 }
 0x24b   :  { %8128 = vmatmul.msk.f32.gmra.mxu0 %vm104_vm0, %v8107_v40  ;;  %8149 = vmatmul.msk.f32.gmra.mxu1 %vm104_vm0, %v8107_v40  ;;  %v8109_v40 = vld [vmem:[%s16062_s22 + $0x190] sm:$0xff] }
 0x250   :  { %v10653_v44 = vpop.f32.mrf.mxu0  ;;  %v10655_v36 = vpop.f32.mrf.mxu1 }
 0x251   :  { %16127 = vst [vmem:[#allocation65_spill] sm:$0xff] %v10655_v36 }
 0x253   :  { %8129 = vmatmul.msk.f32.gmra.mxu0 %vm104_vm0, %v8108_v56  ;;  %8150 = vmatmul.msk.f32.gmra.mxu1 %vm104_vm0, %v8108_v56  ;;  %v8226_v56 = vld [vmem:[%s16063_s26 + $0x5f0] sm:$0xff] }
 0x254   :  { %1732 = vmatpush.msrb.mxu3 %v8226_v56  ;;  %v8186_v56 = vld [vmem:[%s16063_s26 + $0x4b0] sm:$0xff] }
 0x256   :  { %1733 = vmatpush.msrb.mxu3 %v8224_v37  ;;  %v8188_v37 = vld [vmem:[%s16063_s26 + $0x4c0] sm:$0xff] }
 0x258   :  { %v10666_v22 = vpop.f32.mrf.mxu0  ;;  %v10668_v16 = vpop.f32.mrf.mxu1 }
 0x259   :  { %16130 = vst [vmem:[#allocation68_spill] sm:$0xff] %v10666_v22  ;;  %v10693_v22 = vpop.f32.mrf.mxu2 }
 0x25a   :  { %16131 = vst [vmem:[#allocation69_spill] sm:$0xff] %v10668_v16  ;;  %v8190_v16 = vld [vmem:[%s16063_s26 + $0x4d0] sm:$0xff] }
 0x25b   :  { %8130 = vmatmul.msk.f32.gmra.mxu0 %vm104_vm0, %v8109_v40  ;;  %8151 = vmatmul.msk.f32.gmra.mxu1 %vm104_vm0, %v8109_v40  ;;  %v8222_v40 = vld [vmem:[%s16063_s26 + $0x5d0] sm:$0xff]  ;;  %16132 = vst [vmem:[#allocation70_spill] sm:$0xff] %v10693_v22 }
 0x25c   :  { %1654 = vmatpush.msrb.mxu2 %v8190_v16  ;;  %1734 = vmatpush.msrb.mxu3 %v8222_v40  ;;  %v8184_v16 = vld [vmem:[%s16063_s26 + $0x4a0] sm:$0xff] }
 0x25d   :  { %v8216_v40 = vld [vmem:[%s16063_s26 + $0x5a0] sm:$0xff] }
 0x25e   :  { %1655 = vmatpush.msrb.mxu2 %v8188_v37  ;;  %1735 = vmatpush.msrb.mxu3 %v8220_v41  ;;  %v8182_v37 = vld [vmem:[%s16063_s26 + $0x490] sm:$0xff] }
 0x260   :  { %v10697_v27 = vpop.f32.mrf.mxu0  ;;  %v10699_v36 = vpop.f32.mrf.mxu1  ;;  %1656 = vmatpush.msrb.mxu2 %v8186_v56  ;;  %1736 = vmatpush.msrb.mxu3 %v8218_v10  ;;  %v8180_v10 = vld [vmem:[%s16063_s26 + $0x480] sm:$0xff] }
 0x261   :  { %16134 = vst [vmem:[#allocation72_spill] sm:$0xff] %v10699_v36  ;;  %v8111_v36 = vld [vmem:[%s16062_s22 + $0x1a0] sm:$0xff] }
 0x262   :  { %1657 = vmatpush.msrb.mxu2 %v8184_v16  ;;  %1737 = vmatpush.msrb.mxu3 %v8216_v40  ;;  %v8212_v56 = vld [vmem:[%s16063_s26 + $0x580] sm:$0xff]  ;;  %v10743_v16 = vpop.f32.mrf.mxu2  ;;  %v10745_v40 = vpop.f32.mrf.mxu3 }
 0x263   :  { %8131 = vmatmul.msk.f32.gmra.mxu0 %vm104_vm0, %v8110_v33  ;;  %8152 = vmatmul.msk.f32.gmra.mxu1 %vm104_vm0, %v8110_v33  ;;  %v8214_v33 = vld [vmem:[%s16063_s26 + $0x590] sm:$0xff]  ;;  %16137 = vst [vmem:[#allocation75_spill] sm:$0xff] %v10743_v16 }
 0x264   :  { %1658 = vmatpush.msrb.mxu2 %v8182_v37  ;;  %1738 = vmatpush.msrb.mxu3 %v8214_v33  ;;  %16138 = vst [vmem:[#allocation76_spill] sm:$0xff] %v10745_v40  ;;  %v8210_v37 = vld [vmem:[%s16063_s26 + $0x570] sm:$0xff]  ;;  %v8176_v33 = vld [vmem:[%s16063_s26 + $0x460] sm:$0xff] }
 0x266   :  { %1659 = vmatpush.msrb.mxu2 %v8180_v10  ;;  %1739 = vmatpush.msrb.mxu3 %v8212_v56  ;;  %v8208_v10 = vld [vmem:[%s16063_s26 + $0x560] sm:$0xff]  ;;  %v8174_v56 = vld [vmem:[%s16063_s26 + $0x450] sm:$0xff] }
 0x268   :  { %v10730_v41 = vpop.f32.mrf.mxu0  ;;  %v10732_v22 = vpop.f32.mrf.mxu1  ;;  %1740 = vmatpush.msrb.mxu3 %v8210_v37  ;;  %v8204_v37 = vld [vmem:[%s16063_s26 + $0x540] sm:$0xff] }
 0x269   :  { %16135 = vst [vmem:[#allocation73_spill] sm:$0xff] %v10730_v41  ;;  %v8112_v41 = vld [vmem:[%s16062_s22 + $0x1a8] sm:$0xff] }
 0x26a   :  { %16136 = vst [vmem:[#allocation74_spill] sm:$0xff] %v10732_v22  ;;  %v8178_v22 = vld [vmem:[%s16063_s26 + $0x470] sm:$0xff]  ;;  %1741 = vmatpush.msrb.mxu3 %v8208_v10 }
 0x26b   :  { %8132 = vmatmul.msk.f32.gmra.mxu0 %vm104_vm0, %v8111_v36  ;;  %8153 = vmatmul.msk.f32.gmra.mxu1 %vm104_vm0, %v8111_v36  ;;  %v8206_v36 = vld [vmem:[%s16063_s26 + $0x550] sm:$0xff] }
 0x26c   :  { %1660 = vmatpush.msrb.mxu2 %v8178_v22  ;;  %1742 = vmatpush.msrb.mxu3 %v8206_v36  ;;  %v8172_v22 = vld [vmem:[%s16063_s26 + $0x440] sm:$0xff]  ;;  %v8202_v10 = vld [vmem:[%s16063_s26 + $0x530] sm:$0xff]  ;;  %v10788_v36 = vpop.f32.mrf.mxu3 }
 0x26d   :  { %16142 = vst [vmem:[#allocation80_spill] sm:$0xff] %v10788_v36  ;;  %v8166_v36 = vld [vmem:[%s16063_s26 + $0x410] sm:$0xff] }
 0x26e   :  { %1661 = vmatpush.msrb.mxu2 %v8176_v33  ;;  %1743 = vmatpush.msrb.mxu3 %v8204_v37  ;;  %v8170_v33 = vld [vmem:[%s16063_s26 + $0x430] sm:$0xff]  ;;  %v8200_v37 = vld [vmem:[%s16063_s26 + $0x520] sm:$0xff] }
 0x270   :  { %v10767_v40 = vpop.f32.mrf.mxu0  ;;  %v10769_v16 = vpop.f32.mrf.mxu1  ;;  %1662 = vmatpush.msrb.mxu2 %v8174_v56  ;;  %1744 = vmatpush.msrb.mxu3 %v8202_v10  ;;  %v8196_v10 = vld [vmem:[%s16063_s26 + $0x500] sm:$0xff] }
 0x271   :  { %16139 = vst [vmem:[#allocation77_spill] sm:$0xff] %v10767_v40  ;;  %v10786_v56 = vpop.f32.mrf.mxu2  ;;  %v8113_v40 = vld [vmem:[%s16062_s22 + $0x1b0] sm:$0xff] }
 0x272   :  { %16140 = vst [vmem:[#allocation78_spill] sm:$0xff] %v10769_v16  ;;  %1663 = vmatpush.msrb.mxu2 %v8172_v22  ;;  %v8168_v22 = vld [vmem:[%s16063_s26 + $0x420] sm:$0xff]  ;;  %1745 = vmatpush.msrb.mxu3 %v8200_v37 }
 0x273   :  { %16141 = vst [vmem:[#allocation79_spill] sm:$0xff] %v10786_v56  ;;  %8133 = vmatmul.msk.f32.gmra.mxu0 %vm104_vm0, %v8112_v41  ;;  %8154 = vmatmul.msk.f32.gmra.mxu1 %vm104_vm0, %v8112_v41  ;;  %v8198_v41 = vld [vmem:[%s16063_s26 + $0x510] sm:$0xff] }
 0x274   :  { %1664 = vmatpush.msrb.mxu2 %v8170_v33  ;;  %1746 = vmatpush.msrb.mxu3 %v8198_v41  ;;  %v8164_v33 = vld [vmem:[%s16063_s26 + $0x400] sm:$0xff] }
 0x276   :  { %1665 = vmatpush.msrb.mxu2 %v8168_v22  ;;  %1747 = vmatpush.msrb.mxu3 %v8196_v10  ;;  %v10823_v22 = vpop.f32.mrf.mxu3  ;;  %v8187_v10 = vld [vmem:[%s16063_s26 + $0x4b8] sm:$0xff] }
 0x277   :  { %16144 = vst [vmem:[#allocation82_spill] sm:$0xff] %v10823_v22  ;;  %v8119_v22 = vld [vmem:[%s16062_s22 + $0x1e0] sm:$0xff] }
 0x278   :  { %v10804_v56 = vpop.f32.mrf.mxu0  ;;  %v10806_v16 = vpop.f32.mrf.mxu1  ;;  %1666 = vmatpush.msrb.mxu2 %v8166_v36  ;;  %2183 = vmatpush.msra.mxu3 %v10223_v25  ;;  %v8227_v25 = vld [vmem:[%s16063_s26 + $0x5f8] sm:$0xff] }
 0x279   :  { %v10821_v36 = vpop.f32.mrf.mxu2  ;;  %1892 = vmatpush.msra.mxu1 %v8227_v25  ;;  %v16152_v25 = vld [vmem:[#allocation20_spill] sm:$0xff] }
 0x27a   :  { %1667 = vmatpush.msrb.mxu2 %v8164_v33  ;;  %16143 = vst [vmem:[#allocation81_spill] sm:$0xff] %v10821_v36  ;;  %2184 = vmatpush.msra.mxu3 %v10241_v13  ;;  %v8225_v13 = vld [vmem:[%s16063_s26 + $0x5e8] sm:$0xff]  ;;  %v8223_v33 = vld [vmem:[%s16063_s26 + $0x5d8] sm:$0xff] }
 0x27b   :  { %8134 = vmatmul.msk.f32.gmra.mxu0 %vm104_vm0, %v8113_v40  ;;  %8155 = vmatmul.msk.f32.gmra.mxu1 %vm104_vm0, %v8113_v40  ;;  %v8114_v40 = vld [vmem:[%s16062_s22 + $0x1b8] sm:$0xff] }
 0x27c   :  { %2103 = vmatpush.msra.mxu2 %v10217_v24  ;;  %2185 = vmatpush.msra.mxu3 %v10257_v52  ;;  %v8195_v24 = vld [vmem:[%s16063_s26 + $0x4f8] sm:$0xff] }
 0x27d   :  { %1812 = vmatpush.msra.mxu0 %v8195_v24  ;;  %1893 = vmatpush.msra.mxu1 %v8225_v13  ;;  %v16151_v24 = vld [vmem:[#allocation19_spill] sm:$0xff] }
 0x27e   :  { %2104 = vmatpush.msra.mxu2 %v10235_v6  ;;  %2186 = vmatpush.msra.mxu3 %v10269_v43  ;;  %v8193_v6 = vld [vmem:[%s16063_s26 + $0x4e8] sm:$0xff]  ;;  %v10856_v52 = vpop.f32.mrf.mxu3 }
 0x27f   :  { %1813 = vmatpush.msra.mxu0 %v8193_v6  ;;  %16148 = vst [vmem:[#allocation86_spill] sm:$0xff] %v10856_v52  ;;  %1894 = vmatpush.msra.mxu1 %v8223_v33 }
 0x280   :  { %v10827_v37 = vpop.f32.mrf.mxu0  ;;  %v10829_v41 = vpop.f32.mrf.mxu1  ;;  %2105 = vmatpush.msra.mxu2 %v10251_v2  ;;  %2187 = vmatpush.msra.mxu3 %v10287_v42  ;;  %v8191_v42 = vld [vmem:[%s16063_s26 + $0x4d8] sm:$0xff] }
 0x281   :  { %16145 = vst [vmem:[#allocation83_spill] sm:$0xff] %v10827_v37  ;;  %v10854_v2 = vpop.f32.mrf.mxu2  ;;  %1814 = vmatpush.msra.mxu0 %v8191_v42 }
 0x282   :  { %16146 = vst [vmem:[#allocation84_spill] sm:$0xff] %v10829_v41  ;;  %2106 = vmatpush.msra.mxu2 %v10263_v38  ;;  %2188 = vmatpush.msra.mxu3 %v10303_v19  ;;  %v8221_v19 = vld [vmem:[%s16063_s26 + $0x5c8] sm:$0xff] }
 0x283   :  { %8135 = vmatmul.msk.f32.gmra.mxu0 %vm104_vm0, %v8114_v40  ;;  %8156 = vmatmul.msk.f32.gmra.mxu1 %vm104_vm0, %v8114_v40  ;;  %16147 = vst [vmem:[#allocation85_spill] sm:$0xff] %v10854_v2  ;;  %v8219_v40 = vld [vmem:[%s16063_s26 + $0x5b8] sm:$0xff] }
 0x284   :  { %2107 = vmatpush.msra.mxu2 %v10281_v34  ;;  %v8115_v34 = vld [vmem:[%s16062_s22 + $0x1c0] sm:$0xff]  ;;  %2189 = vmatpush.msra.mxu3 %v10315_v35  ;;  %v8217_v35 = vld [vmem:[%s16063_s26 + $0x5a8] sm:$0xff] }
 0x285   :  { %1895 = vmatpush.msra.mxu1 %v8221_v19  ;;  %v8213_v19 = vld [vmem:[%s16063_s26 + $0x588] sm:$0xff] }
 0x286   :  { %2108 = vmatpush.msra.mxu2 %v10297_v18  ;;  %v8189_v18 = vld [vmem:[%s16063_s26 + $0x4c8] sm:$0xff]  ;;  %2190 = vmatpush.msra.mxu3 %v10333_v31  ;;  %v8215_v31 = vld [vmem:[%s16063_s26 + $0x598] sm:$0xff]  ;;  %v10914_v33 = vpop.f32.mrf.mxu3 }
 0x287   :  { %1815 = vmatpush.msra.mxu0 %v8189_v18  ;;  %1896 = vmatpush.msra.mxu1 %v8219_v40  ;;  %16156 = vst [vmem:[#allocation90_spill] sm:$0xff] %v10914_v33  ;;  %v8181_v18 = vld [vmem:[%s16063_s26 + $0x488] sm:$0xff]  ;;  %v8179_v40 = vld [vmem:[%s16063_s26 + $0x478] sm:$0xff] }
 0x288   :  { %v10860_v38 = vpop.f32.mrf.mxu0  ;;  %v10862_v43 = vpop.f32.mrf.mxu1  ;;  %2109 = vmatpush.msra.mxu2 %v10309_v3  ;;  %v8185_v3 = vld [vmem:[%s16063_s26 + $0x4a8] sm:$0xff]  ;;  %2191 = vmatpush.msra.mxu3 %v16152_v25  ;;  %v16159_v25 = vld [vmem:[#allocation26_spill] sm:$0xff] }
 0x289   :  { %16149 = vst [vmem:[#allocation87_spill] sm:$0xff] %v10860_v38  ;;  %1816 = vmatpush.msra.mxu0 %v8187_v10  ;;  %1897 = vmatpush.msra.mxu1 %v8217_v35  ;;  %v10912_v42 = vpop.f32.mrf.mxu2  ;;  %v16157_v10 = vld [vmem:[#allocation21_spill] sm:$0xff]  ;;  %v8209_v35 = vld [vmem:[%s16063_s26 + $0x568] sm:$0xff]  ;;  %v16191_v38 = vld [vmem:[#allocation6_spill] sm:$0xff] }
 0x28a   :  { %16150 = vst [vmem:[#allocation88_spill] sm:$0xff] %v10862_v43  ;;  %2110 = vmatpush.msra.mxu2 %v10327_v61  ;;  %v8183_v61 = vld [vmem:[%s16063_s26 + $0x498] sm:$0xff]  ;;  %2192 = vmatpush.msra.mxu3 %v10361_v29  ;;  %v8177_v29 = vld [vmem:[%s16063_s26 + $0x468] sm:$0xff] }
 0x28b   :  { %8136 = vmatmul.msk.f32.gmra.mxu0 %vm104_vm0, %v8115_v34  ;;  %8157 = vmatmul.msk.f32.gmra.mxu1 %vm104_vm0, %v8115_v34  ;;  %v8116_v34 = vld [vmem:[%s16062_s22 + $0x1c8] sm:$0xff]  ;;  %16155 = vst [vmem:[#allocation89_spill] sm:$0xff] %v10912_v42  ;;  %v16190_v43 = vld [vmem:[#allocation5_spill] sm:$0xff] }
 0x28c   :  { %2111 = vmatpush.msra.mxu2 %v16151_v24  ;;  %1817 = vmatpush.msra.mxu0 %v8185_v3  ;;  %v8211_v3 = vld [vmem:[%s16063_s26 + $0x578] sm:$0xff] }
 0x28d   :  { %1898 = vmatpush.msra.mxu1 %v8215_v31  ;;  %v16158_v24 = vld [vmem:[#allocation25_spill] sm:$0xff]  ;;  %2193 = vmatpush.msra.mxu3 %v16159_v25 }
 0x28e   :  { %2112 = vmatpush.msra.mxu2 %v16157_v10  ;;  %1818 = vmatpush.msra.mxu0 %v8183_v61  ;;  %v16161_v61 = vld [vmem:[#allocation28_spill] sm:$0xff]  ;;  %v8175_v10 = vld [vmem:[%s16063_s26 + $0x458] sm:$0xff] }
 0x28f   :  { %1899 = vmatpush.msra.mxu1 %v8213_v19  ;;  %2194 = vmatpush.msra.mxu3 %v16161_v61  ;;  %v8117_v19 = vld [vmem:[%s16062_s22 + $0x1d0] sm:$0xff]  ;;  %v8171_v25 = vld [vmem:[%s16063_s26 + $0x438] sm:$0xff]  ;;  %v8169_v61 = vld [vmem:[%s16063_s26 + $0x428] sm:$0xff] }
 0x290   :  { %v10899_v6 = vpop.f32.mrf.mxu0  ;;  %v10901_v13 = vpop.f32.mrf.mxu1  ;;  %1819 = vmatpush.msra.mxu0 %v8181_v18  ;;  %2113 = vmatpush.msra.mxu2 %v16158_v24 }
 0x291   :  { %16153 = vst [vmem:[#allocation19_spill] sm:$0xff] %v10899_v6  ;;  %1900 = vmatpush.msra.mxu1 %v8211_v3  ;;  %v8173_v3 = vld [vmem:[%s16063_s26 + $0x448] sm:$0xff]  ;;  %v10965_v24 = vpop.f32.mrf.mxu3 }
 0x292   :  { %16154 = vst [vmem:[#allocation20_spill] sm:$0xff] %v10901_v13  ;;  %1820 = vmatpush.msra.mxu0 %v8179_v40  ;;  %v8207_v40 = vld [vmem:[%s16063_s26 + $0x558] sm:$0xff] }
 0x293   :  { %8137 = vmatmul.msk.f32.gmra.mxu0 %vm104_vm0, %v8116_v34  ;;  %8158 = vmatmul.msk.f32.gmra.mxu1 %vm104_vm0, %v8116_v34  ;;  %v16160_v34 = vld [vmem:[#allocation27_spill] sm:$0xff]  ;;  %16163 = vst [vmem:[#allocation25_spill] sm:$0xff] %v10965_v24  ;;  %v8118_v24 = vld [vmem:[%s16062_s22 + $0x1d8] sm:$0xff] }
 0x294   :  { %2114 = vmatpush.msra.mxu2 %v16160_v34  ;;  %1821 = vmatpush.msra.mxu0 %v8177_v29  ;;  %v8205_v29 = vld [vmem:[%s16063_s26 + $0x548] sm:$0xff]  ;;  %v8203_v34 = vld [vmem:[%s16063_s26 + $0x538] sm:$0xff] }
 0x295   :  { %1901 = vmatpush.msra.mxu1 %v8209_v35  ;;  %v10963_v35 = vpop.f32.mrf.mxu2 }
 0x296   :  { %1822 = vmatpush.msra.mxu0 %v8175_v10  ;;  %16162 = vst [vmem:[#allocation21_spill] sm:$0xff] %v10963_v35  ;;  %v8201_v10 = vld [vmem:[%s16063_s26 + $0x528] sm:$0xff] }
 0x297   :  { %1902 = vmatpush.msra.mxu1 %v8207_v40 }
 0x298   :  { %v10942_v31 = vpop.f32.mrf.mxu0  ;;  %v10944_v18 = vpop.f32.mrf.mxu1  ;;  %1823 = vmatpush.msra.mxu0 %v8173_v3  ;;  %v8167_v3 = vld [vmem:[%s16063_s26 + $0x418] sm:$0xff] }
 0x299   :  { %1668 = vmatmul.f32.vlgmr.msrb.gmra.mxu2 %v10942_v31  ;;  %1748 = vmatmul.f32.vlgmr.msrb.gmra.mxu3 %v10944_v18 }
 0x29a   :  { %1903 = vmatpush.msra.mxu1 %v8205_v29  ;;  %1824 = vmatpush.msra.mxu0 %v8171_v25  ;;  %v8199_v29 = vld [vmem:[%s16063_s26 + $0x518] sm:$0xff]  ;;  %v8165_v25 = vld [vmem:[%s16063_s26 + $0x408] sm:$0xff] }
 0x29b   :  { %8138 = vmatmul.msk.f32.gmra.mxu0 %vm104_vm0, %v8117_v19  ;;  %8159 = vmatmul.msk.f32.gmra.mxu1 %vm104_vm0, %v8117_v19 }
 0x29c   :  { %1904 = vmatpush.msra.mxu1 %v8203_v34  ;;  %1825 = vmatpush.msra.mxu0 %v8169_v61  ;;  %v8197_v34 = vld [vmem:[%s16063_s26 + $0x508] sm:$0xff] }
 0x29d   :  { %v10998_v61 = vpop.f32.mrf.mxu2 }
 0x29e   :  { %1905 = vmatpush.msra.mxu1 %v8201_v10  ;;  %1826 = vmatpush.msra.mxu0 %v8167_v3  ;;  %16164 = vst [vmem:[#allocation26_spill] sm:$0xff] %v10998_v61  ;;  %v11000_v10 = vpop.f32.mrf.mxu3 }
 0x29f   :  { %16165 = vst [vmem:[#allocation27_spill] sm:$0xff] %v11000_v10 }
 0x2a0   :  { %v1447_v19 = vpop.f32.mrf.mxu0  ;;  %v1527_v40 = vpop.f32.mrf.mxu1  ;;  %1906 = vmatpush.msra.mxu1 %v8199_v29  ;;  %1827 = vmatpush.msra.mxu0 %v8165_v25 }
 0x2a1   :  { %1671 = vmatmul.f32.gmra.mxu2 %v1447_v19  ;;  %1751 = vmatmul.f32.gmra.mxu3 %v1527_v40 }
 0x2a2   :  { %1907 = vmatpush.msra.mxu1 %v8197_v34  ;;  %v8120_v34 = vld [vmem:[%s16062_s22 + $0x1e8] sm:$0xff] }
 0x2a3   :  { %8139 = vmatmul.msk.f32.gmra.mxu0 %vm104_vm0, %v8118_v24  ;;  %8160 = vmatmul.msk.f32.gmra.mxu1 %vm104_vm0, %v8118_v24 }
 0x2a5   :  { %v11007_v3 = vpop.f32.mrf.mxu2 }
 0x2a6   :  { %16166 = vst [vmem:[#allocation28_spill] sm:$0xff] %v11007_v3  ;;  %v11009_v24 = vpop.f32.mrf.mxu3 }
 0x2a7   :  { %16167 = vst [vmem:[#allocation91_spill] sm:$0xff] %v11009_v24 }
 0x2a8   :  { %v1450_v33 = vpop.f32.mrf.mxu0  ;;  %v1530_v52 = vpop.f32.mrf.mxu1 }
 0x2a9   :  { %1674 = vmatmul.f32.gmra.mxu2 %v1450_v33  ;;  %1754 = vmatmul.f32.gmra.mxu3 %v1530_v52 }
 0x2ab   :  { %8140 = vmatmul.msk.f32.gmra.mxu0 %vm104_vm0, %v8119_v22  ;;  %8161 = vmatmul.msk.f32.gmra.mxu1 %vm104_vm0, %v8119_v22  ;;  %v8121_v22 = vld [vmem:[%s16062_s22 + $0x1f0] sm:$0xff] }
 0x2ad   :  { %v11019_v3 = vpop.f32.mrf.mxu2 }
 0x2ae   :  { %16168 = vst [vmem:[#allocation92_spill] sm:$0xff] %v11019_v3  ;;  %v11021_v24 = vpop.f32.mrf.mxu3 }
 0x2af   :  { %16169 = vst [vmem:[#allocation93_spill] sm:$0xff] %v11021_v24 }
 0x2b0   :  { %v1453_v29 = vpop.f32.mrf.mxu0  ;;  %v1533_v25 = vpop.f32.mrf.mxu1 }
 0x2b1   :  { %1677 = vmatmul.f32.gmra.mxu2 %v1453_v29  ;;  %1757 = vmatmul.f32.gmra.mxu3 %v1533_v25 }
 0x2b3   :  { %8141 = vmatmul.msk.f32.gmra.mxu0 %vm104_vm0, %v8120_v34  ;;  %8162 = vmatmul.msk.f32.gmra.mxu1 %vm104_vm0, %v8120_v34 }
 0x2b5   :  { %v11025_v34 = vpop.f32.mrf.mxu2 }
 0x2b6   :  { %16170 = vst [vmem:[#allocation94_spill] sm:$0xff] %v11025_v34  ;;  %v11027_v2 = vpop.f32.mrf.mxu3 }
 0x2b7   :  { %16171 = vst [vmem:[#allocation95_spill] sm:$0xff] %v11027_v2 }
 0x2b8   :  { %v1456_v10 = vpop.f32.mrf.mxu0  ;;  %v1536_v61 = vpop.f32.mrf.mxu1 }
 0x2b9   :  { %1680 = vmatmul.f32.gmra.mxu2 %v1456_v10  ;;  %1760 = vmatmul.f32.gmra.mxu3 %v1536_v61 }
 0x2bb   :  { %8142 = vmatmul.msk.f32.gmra.mxu0 %vm104_vm0, %v8121_v22  ;;  %8163 = vmatmul.msk.f32.gmra.mxu1 %vm104_vm0, %v8121_v22 }
 0x2bd   :  { %v11031_v36 = vpop.f32.mrf.mxu2 }
 0x2be   :  { %16172 = vst [vmem:[#allocation96_spill] sm:$0xff] %v11031_v36  ;;  %v11033_v22 = vpop.f32.mrf.mxu3 }
 0x2bf   :  { %16173 = vst [vmem:[#allocation97_spill] sm:$0xff] %v11033_v22 }
 0x2c0   :  { %v1459_v35 = vpop.f32.mrf.mxu0  ;;  %v1539_v42 = vpop.f32.mrf.mxu1 }
 0x2c1   :  { %1683 = vmatmul.f32.gmra.mxu2 %v1459_v35  ;;  %1763 = vmatmul.f32.gmra.mxu3 %v1539_v42 }
 0x2c3   :  { %1828 = vmatmul.f32.vlgmr.msra.gmra.mxu0 %v10942_v31  ;;  %1908 = vmatmul.f32.vlgmr.msra.gmra.mxu1 %v10944_v18 }
 0x2c5   :  { %v11035_v2 = vpop.f32.mrf.mxu2 }
 0x2c6   :  { %16174 = vst [vmem:[#allocation98_spill] sm:$0xff] %v11035_v2  ;;  %v11037_v31 = vpop.f32.mrf.mxu3 }
 0x2c7   :  { %16175 = vst [vmem:[#allocation99_spill] sm:$0xff] %v11037_v31 }
 0x2c8   :  { %v1462_v3 = vpop.f32.mrf.mxu0  ;;  %v1542_v24 = vpop.f32.mrf.mxu1 }
 0x2c9   :  { %1686 = vmatmul.f32.gmra.mxu2 %v1462_v3  ;;  %1766 = vmatmul.f32.gmra.mxu3 %v1542_v24 }
 0x2cb   :  { %1831 = vmatmul.f32.gmra.mxu0 %v1447_v19  ;;  %1911 = vmatmul.f32.gmra.mxu1 %v1527_v40 }
 0x2cd   :  { %v11039_v36 = vpop.f32.mrf.mxu2 }
 0x2ce   :  { %16176 = vst [vmem:[#allocation100_spill] sm:$0xff] %v11039_v36  ;;  %v11041_v22 = vpop.f32.mrf.mxu3 }
 0x2cf   :  { %16177 = vst [vmem:[#allocation101_spill] sm:$0xff] %v11041_v22 }
 0x2d0   :  { %v1465_v13 = vpop.f32.mrf.mxu0  ;;  %v1545_v6 = vpop.f32.mrf.mxu1 }
 0x2d1   :  { %1689 = vmatmul.f32.gmra.mxu2 %v1465_v13  ;;  %1769 = vmatmul.f32.gmra.mxu3 %v1545_v6 }
 0x2d3   :  { %1834 = vmatmul.f32.gmra.mxu0 %v1450_v33  ;;  %1914 = vmatmul.f32.gmra.mxu1 %v1530_v52 }
 0x2d5   :  { %v11043_v31 = vpop.f32.mrf.mxu2 }
 0x2d6   :  { %16178 = vst [vmem:[#allocation102_spill] sm:$0xff] %v11043_v31  ;;  %v11045_v2 = vpop.f32.mrf.mxu3 }
 0x2d7   :  { %16179 = vst [vmem:[#allocation103_spill] sm:$0xff] %v11045_v2 }
 0x2d8   :  { %v1468_v18 = vpop.f32.mrf.mxu0  ;;  %v1548_v34 = vpop.f32.mrf.mxu1 }
 0x2d9   :  { %1692 = vmatmul.f32.gmra.mxu2 %v1468_v18  ;;  %1772 = vmatmul.f32.gmra.mxu3 %v1548_v34 }
 0x2db   :  { %1837 = vmatmul.f32.gmra.mxu0 %v1453_v29  ;;  %1917 = vmatmul.f32.gmra.mxu1 %v1533_v25 }
 0x2dd   :  { %v11047_v22 = vpop.f32.mrf.mxu2 }
 0x2de   :  { %16180 = vst [vmem:[#allocation104_spill] sm:$0xff] %v11047_v22 }
 0x2e0   :  { %v1471_v19 = vpop.f32.mrf.mxu0  ;;  %v1551_v40 = vpop.f32.mrf.mxu1 }
 0x2e1   :  { %1695 = vmatmul.f32.gmra.mxu2 %v1471_v19  ;;  %1775 = vmatmul.f32.gmra.mxu3 %v1551_v40 }
 0x2e3   :  { %1840 = vmatmul.f32.gmra.mxu0 %v1456_v10  ;;  %1920 = vmatmul.f32.gmra.mxu1 %v1536_v61  ;;  %v11049_v10 = vpop.f32.mrf.mxu3 }
 0x2e4   :  { %16181 = vst [vmem:[#allocation105_spill] sm:$0xff] %v11049_v10 }
 0x2e5   :  { %v11051_v31 = vpop.f32.mrf.mxu2 }
 0x2e6   :  { %16182 = vst [vmem:[#allocation106_spill] sm:$0xff] %v11051_v31  ;;  %v16189_v31 = vld [vmem:[#allocation3_spill] sm:$0xff] }
 0x2e8   :  { %v1474_v52 = vpop.f32.mrf.mxu0  ;;  %v1554_v33 = vpop.f32.mrf.mxu1 }
 0x2e9   :  { %1698 = vmatmul.f32.gmra.mxu2 %v1474_v52  ;;  %1778 = vmatmul.f32.gmra.mxu3 %v1554_v33 }
 0x2eb   :  { %1843 = vmatmul.f32.gmra.mxu0 %v1459_v35  ;;  %1923 = vmatmul.f32.gmra.mxu1 %v1539_v42  ;;  %v11053_v35 = vpop.f32.mrf.mxu3 }
 0x2ec   :  { %16183 = vst [vmem:[#allocation107_spill] sm:$0xff] %v11053_v35  ;;  %v16188_v35 = vld [vmem:[#allocation2_spill] sm:$0xff] }
 0x2ed   :  { %v11055_v10 = vpop.f32.mrf.mxu2 }
 0x2ee   :  { %16184 = vst [vmem:[#allocation108_spill] sm:$0xff] %v11055_v10  ;;  %v800_v10 = vadd.f32 %v16189_v31, %v16188_v35  ;;  %v803_v31 = vadd.f32 %v16191_v38, %v16190_v43  ;;  %v16193_v38 = vld [vmem:[#allocation8_spill] sm:$0xff]  ;;  %v16194_v43 = vld [vmem:[#allocation9_spill] sm:$0xff] }
 0x2f0   :  { %v1477_v29 = vpop.f32.mrf.mxu0  ;;  %v1557_v25 = vpop.f32.mrf.mxu1 }
 0x2f1   :  { %1701 = vmatmul.f32.gmra.mxu2 %v1477_v29  ;;  %1781 = vmatmul.f32.gmra.mxu3 %v1557_v25 }
 0x2f3   :  { %1846 = vmatmul.f32.gmra.mxu0 %v1462_v3  ;;  %1926 = vmatmul.f32.gmra.mxu1 %v1542_v24  ;;  %v11057_v22 = vpop.f32.mrf.mxu3 }
 0x2f4   :  { %16185 = vst [vmem:[#allocation109_spill] sm:$0xff] %v11057_v22 }
 0x2f8   :  { %v1480_v61 = vpop.f32.mrf.mxu0  ;;  %v1560_v36 = vpop.f32.mrf.mxu1 }
 0x2f9   :  { %1704 = vmatmul.f32.gmra.mxu2 %v1480_v61  ;;  %1784 = vmatmul.f32.gmra.mxu3 %v1560_v36 }
 0x2fb   :  { %1849 = vmatmul.f32.gmra.mxu0 %v1465_v13  ;;  %1929 = vmatmul.f32.gmra.mxu1 %v1545_v6 }
 0x300   :  { %v1483_v42 = vpop.f32.mrf.mxu0  ;;  %v1563_v2 = vpop.f32.mrf.mxu1 }
 0x301   :  { %1707 = vmatmul.f32.gmra.mxu2 %v1483_v42  ;;  %1787 = vmatmul.f32.gmra.mxu3 %v1563_v2 }
 0x303   :  { %1852 = vmatmul.f32.gmra.mxu0 %v1468_v18  ;;  %1932 = vmatmul.f32.gmra.mxu1 %v1548_v34  ;;  %v11065_v34 = vpop.f32.mrf.mxu2  ;;  %v11067_v18 = vpop.f32.mrf.mxu3 }
 0x304   :  { %16186 = vst [vmem:[#allocation110_spill] sm:$0xff] %v11065_v34 }
 0x305   :  { %16187 = vst [vmem:[#allocation111_spill] sm:$0xff] %v11067_v18 }
 0x308   :  { %v1486_v3 = vpop.f32.mrf.mxu0  ;;  %v1566_v24 = vpop.f32.mrf.mxu1 }
 0x309   :  { %1710 = vmatmul.f32.gmra.mxu2 %v1486_v3  ;;  %1790 = vmatmul.f32.gmra.mxu3 %v1566_v24 }
 0x30b   :  { %1855 = vmatmul.f32.gmra.mxu0 %v1471_v19  ;;  %1935 = vmatmul.f32.gmra.mxu1 %v1551_v40  ;;  %v1040_v40 = vadd.f32 %v10534_v58, %v800_v10  ;;  %v1043_v58 = vadd.f32 %v10542_v62, %v803_v31  ;;  %v16196_v31 = vld [vmem:[#allocation11_spill] sm:$0xff] }
 0x30d   :  { %v1120_v34 = vadd.f32 %v10536_v59, %v1040_v40 }
 0x310   :  { %v11059_v6 = vpop.f32.mrf.mxu0  ;;  %v11061_v13 = vpop.f32.mrf.mxu1 }
 0x311   :  { %1713 = vmatmul.f32.gmra.mxu2 %v11059_v6  ;;  %1793 = vmatmul.f32.gmra.mxu3 %v11061_v13 }
 0x313   :  { %1858 = vmatmul.f32.gmra.mxu0 %v1474_v52  ;;  %1938 = vmatmul.f32.gmra.mxu1 %v1554_v33 }
 0x318   :  { %v11071_v22 = vpop.f32.mrf.mxu0  ;;  %v11073_v19 = vpop.f32.mrf.mxu1 }
 0x319   :  { %1716 = vmatmul.f32.gmra.mxu2 %v11071_v22  ;;  %1796 = vmatmul.f32.gmra.mxu3 %v11073_v19 }
 0x31b   :  { %1861 = vmatmul.f32.gmra.mxu0 %v1477_v29  ;;  %1941 = vmatmul.f32.gmra.mxu1 %v1557_v25  ;;  %v1123_v25 = vadd.f32 %v10544_v63, %v1043_v58  ;;  %v16197_v58 = vld [vmem:[#allocation12_spill] sm:$0xff] }
 0x31c   :  { %v1669_v52 = vpop.f32.mrf.mxu2  ;;  %v1749_v33 = vpop.f32.mrf.mxu3 }
 0x31d   :  { %v1750_v18 = vadd.f32 %v1749_v33, %v1669_v52 }
 0x31f   :  { %v11081_v35 = vadd.f32 %v1750_v18, %v1120_v34  ;;  %v806_v34 = vadd.f32 %v16194_v43, %v16193_v38  ;;  %v16199_v43 = vld [vmem:[#allocation14_spill] sm:$0xff] }
 0x320   :  { %v11083_v41 = vpop.f32.mrf.mxu0  ;;  %v11085_v37 = vpop.f32.mrf.mxu1 }
 0x321   :  { %16192 = vst [vmem:[#allocation2_spill] sm:$0xff] %v11081_v35  ;;  %1719 = vmatmul.f32.gmra.mxu2 %v11083_v41  ;;  %1799 = vmatmul.f32.gmra.mxu3 %v11085_v37  ;;  %v1046_v62 = vadd.f32 %v10550_v4, %v806_v34  ;;  %v16200_v34 = vld [vmem:[#allocation15_spill] sm:$0xff] }
 0x323   :  { %1864 = vmatmul.f32.gmra.mxu0 %v1480_v61  ;;  %1944 = vmatmul.f32.gmra.mxu1 %v1560_v36  ;;  %v1126_v61 = vadd.f32 %v10552_v5, %v1046_v62  ;;  %v812_v62 = vadd.f32 %v16200_v34, %v16199_v43  ;;  %v16206_v43 = vld [vmem:[#allocation24_spill] sm:$0xff] }
 0x324   :  { %v1672_v29 = vpop.f32.mrf.mxu2  ;;  %v1752_v59 = vpop.f32.mrf.mxu3 }
 0x325   :  { %v1753_v10 = vadd.f32 %v1752_v59, %v1672_v29  ;;  %v809_v29 = vadd.f32 %v16197_v58, %v16196_v31  ;;  %v8228_v31 = vld [vmem:[%s16062_s22 + $0x1f8] sm:$0xff] }
 0x326   :  { %v16202_v58 = vld [vmem:[#allocation17_spill] sm:$0xff] }
 0x327   :  { %v11093_v18 = vadd.f32 %v1753_v10, %v1123_v25  ;;  %v1049_v4 = vadd.f32 %v10558_v8, %v809_v29  ;;  %v1052_v8 = vadd.f32 %v10566_v14, %v812_v62  ;;  %v16203_v29 = vld [vmem:[#allocation18_spill] sm:$0xff] }
 0x328   :  { %v11095_v40 = vpop.f32.mrf.mxu0  ;;  %v11097_v52 = vpop.f32.mrf.mxu1  ;;  %v815_v14 = vadd.f32 %v16203_v29, %v16202_v58 }
 0x329   :  { %16195 = vst [vmem:[#allocation3_spill] sm:$0xff] %v11093_v18  ;;  %1722 = vmatmul.f32.gmra.mxu2 %v11095_v40  ;;  %1802 = vmatmul.f32.gmra.mxu3 %v11097_v52 }
 0x32b   :  { %1867 = vmatmul.f32.gmra.mxu0 %v1483_v42  ;;  %1947 = vmatmul.f32.gmra.mxu1 %v1563_v2  ;;  %v1129_v42 = vadd.f32 %v10560_v9, %v1049_v4 }
 0x32c   :  { %v1675_v36 = vpop.f32.mrf.mxu2  ;;  %v1755_v63 = vpop.f32.mrf.mxu3 }
 0x32d   :  { %v1756_v33 = vadd.f32 %v1755_v63, %v1675_v36 }
 0x32f   :  { %v11105_v59 = vadd.f32 %v1756_v33, %v1126_v61 }
 0x330   :  { %v11107_v25 = vpop.f32.mrf.mxu0  ;;  %v11109_v10 = vpop.f32.mrf.mxu1 }
 0x331   :  { %16198 = vst [vmem:[#allocation5_spill] sm:$0xff] %v11105_v59  ;;  %1725 = vmatmul.f32.gmra.mxu2 %v11107_v25  ;;  %1805 = vmatmul.f32.gmra.mxu3 %v11109_v10 }
 0x333   :  { %1870 = vmatmul.f32.gmra.mxu0 %v1486_v3  ;;  %1950 = vmatmul.f32.gmra.mxu1 %v1566_v24  ;;  %v1132_v24 = vadd.f32 %v10568_v15, %v1052_v8 }
 0x334   :  { %v1678_v2 = vpop.f32.mrf.mxu2  ;;  %v1758_v5 = vpop.f32.mrf.mxu3 }
 0x335   :  { %v1759_v38 = vadd.f32 %v1758_v5, %v1678_v2  ;;  %v1055_v2 = vadd.f32 %v10574_v20, %v815_v14 }
 0x337   :  { %v11117_v36 = vadd.f32 %v1759_v38, %v1129_v42  ;;  %v8229_v42 = vld [vmem:[%s16062_s22 + $0x200] sm:$0xff]  ;;  %v16205_v38 = vld [vmem:[#allocation23_spill] sm:$0xff] }
 0x338   :  { %v11119_v63 = vpop.f32.mrf.mxu0  ;;  %v11121_v61 = vpop.f32.mrf.mxu1  ;;  %v818_v20 = vadd.f32 %v16206_v43, %v16205_v38 }
 0x339   :  { %16201 = vst [vmem:[#allocation6_spill] sm:$0xff] %v11117_v36  ;;  %1728 = vmatmul.f32.gmra.mxu2 %v11119_v63  ;;  %1808 = vmatmul.f32.gmra.mxu3 %v11121_v61 }
 0x33a   :  { %v1058_v62 = vadd.f32 %v10583_v49, %v818_v20  ;;  %v821_v49 = vadd.f32 %v10402_v47, %v10400_v46  ;;  %v8231_v46 = vld [vmem:[%s16062_s22 + $0x210] sm:$0xff]  ;;  %v824_v47 = vadd.f32 %v10412_v30, %v10410_v39  ;;  %v8232_v39 = vld [vmem:[%s16062_s22 + $0x218] sm:$0xff]  ;;  %v827_v30 = vadd.f32 %v10422_v28, %v10420_v1  ;;  %v8233_v1 = vld [vmem:[%s16062_s22 + $0x220] sm:$0xff] }
 0x33b   :  { %1873 = vmatmul.f32.gmra.mxu0 %v11059_v6  ;;  %1953 = vmatmul.f32.gmra.mxu1 %v11061_v13  ;;  %v1135_v13 = vadd.f32 %v10576_v21, %v1055_v2  ;;  %v830_v28 = vadd.f32 %v10432_v53, %v10430_v11  ;;  %v833_v11 = vadd.f32 %v10442_v12, %v10440_v17  ;;  %v8235_v17 = vld [vmem:[%s16062_s22 + $0x230] sm:$0xff] }
 0x33c   :  { %v1681_v9 = vpop.f32.mrf.mxu2  ;;  %v1761_v3 = vpop.f32.mrf.mxu3  ;;  %v1067_v29 = vadd.f32 %v10618_v48, %v827_v30  ;;  %v836_v12 = vadd.f32 %v10452_v0, %v10450_v23  ;;  %v8236_v23 = vld [vmem:[%s16062_s22 + $0x238] sm:$0xff]  ;;  %v16214_v0 = vld [vmem:[#allocation36_spill] sm:$0xff]  ;;  %v16220_v30 = vld [vmem:[#allocation39_spill] sm:$0xff] }
 0x33d   :  { %v1762_v33 = vadd.f32 %v1761_v3, %v1681_v9  ;;  %v8230_v9 = vld [vmem:[%s16062_s22 + $0x208] sm:$0xff]  ;;  %v1070_v2 = vadd.f32 %v10627_v51, %v830_v28  ;;  %v1073_v51 = vadd.f32 %v10640_v45, %v833_v11  ;;  %v8317_v28 = vld [vmem:[%s16063_s26 + $0x6d0] sm:$0xff] }
 0x33e   :  { %v1076_v20 = vadd.f32 %v10653_v44, %v836_v12 }
 0x33f   :  { %v11134_v4 = vadd.f32 %v1762_v33, %v1132_v24  ;;  %v1061_v24 = vadd.f32 %v10592_v57, %v821_v49  ;;  %v1153_v38 = vadd.f32 %v10642_v26, %v1073_v51  ;;  %v16215_v49 = vld [vmem:[#allocation37_spill] sm:$0xff]  ;;  %v8238_v51 = vld [vmem:[%s16062_s22 + $0x248] sm:$0xff] }
 0x340   :  { %v839_v44 = vadd.f32 %v16215_v49, %v16214_v0  ;;  %v8341_v0 = vld [vmem:[%s16063_s26 + $0x790] sm:$0xff] }
 0x341   :  { %16204 = vst [vmem:[#allocation8_spill] sm:$0xff] %v11134_v4  ;;  %8249 = vmatmul.msk.f32.vlgmr.msra.gmra.mxu2 %vm104_vm0, %v8228_v31  ;;  %8270 = vmatmul.msk.f32.vlgmr.msra.gmra.mxu3 %vm104_vm0, %v8228_v31  ;;  %v1064_v31 = vadd.f32 %v10605_v55, %v824_v47  ;;  %v8364_v4 = vld [vmem:[%s16062_s22 + $0x2e8] sm:$0xff] }
 0x343   :  { %1876 = vmatmul.f32.gmra.mxu0 %v11071_v22  ;;  %1956 = vmatmul.f32.gmra.mxu1 %v11073_v19  ;;  %v1138_v19 = vadd.f32 %v10585_v50, %v1058_v62 }
 0x344   :  { %v1684_v15 = vpop.f32.mrf.mxu2  ;;  %v1764_v6 = vpop.f32.mrf.mxu3 }
 0x345   :  { %v1765_v5 = vadd.f32 %v1764_v6, %v1684_v15  ;;  %v8234_v6 = vld [vmem:[%s16062_s22 + $0x228] sm:$0xff] }
 0x347   :  { %v11147_v34 = vadd.f32 %v1765_v5, %v1135_v13  ;;  %v11213_v13 = vpop.f32.mrf.mxu0  ;;  %v11215_v5 = vpop.f32.mrf.mxu1 }
 0x349   :  { %16207 = vst [vmem:[#allocation9_spill] sm:$0xff] %v11147_v34  ;;  %8250 = vmatmul.msk.f32.gmra.mxu2 %vm104_vm0, %v8229_v42  ;;  %8271 = vmatmul.msk.f32.gmra.mxu3 %vm104_vm0, %v8229_v42  ;;  %v8365_v34 = vld [vmem:[%s16062_s22 + $0x2f0] sm:$0xff] }
 0x34b   :  { %1879 = vmatmul.f32.gmra.mxu0 %v11083_v41  ;;  %1959 = vmatmul.f32.gmra.mxu1 %v11085_v37  ;;  %v1141_v41 = vadd.f32 %v10594_v7, %v1061_v24 }
 0x34c   :  { %v1687_v21 = vpop.f32.mrf.mxu2  ;;  %v1767_v22 = vpop.f32.mrf.mxu3 }
 0x34d   :  { %v1768_v8 = vadd.f32 %v1767_v22, %v1687_v21 }
 0x34f   :  { %v11160_v3 = vadd.f32 %v1768_v8, %v1138_v19  ;;  %v11230_v62 = vpop.f32.mrf.mxu0  ;;  %v11232_v21 = vpop.f32.mrf.mxu1  ;;  %v16213_v19 = vld [vmem:[#allocation65_spill] sm:$0xff] }
 0x350   :  { %v1156_v8 = vadd.f32 %v16213_v19, %v1076_v20  ;;  %v8343_v19 = vld [vmem:[%s16063_s26 + $0x7a0] sm:$0xff] }
 0x351   :  { %16208 = vst [vmem:[#allocation11_spill] sm:$0xff] %v11160_v3  ;;  %8251 = vmatmul.msk.f32.gmra.mxu2 %vm104_vm0, %v8230_v9  ;;  %8272 = vmatmul.msk.f32.gmra.mxu3 %vm104_vm0, %v8230_v9  ;;  %v8445_v3 = vld [vmem:[%s16063_s26 + $0x8d8] sm:$0xff] }
 0x353   :  { %1882 = vmatmul.f32.gmra.mxu0 %v11095_v40  ;;  %1962 = vmatmul.f32.gmra.mxu1 %v11097_v52  ;;  %v1144_v52 = vadd.f32 %v10607_v54, %v1064_v31 }
 0x354   :  { %v1690_v50 = vpop.f32.mrf.mxu2  ;;  %v1770_v37 = vpop.f32.mrf.mxu3 }
 0x355   :  { %v1771_v33 = vadd.f32 %v1770_v37, %v1690_v50  ;;  %v16216_v50 = vld [vmem:[#allocation68_spill] sm:$0xff] }
 0x356   :  { %v1079_v37 = vadd.f32 %v16216_v50, %v839_v44  ;;  %v8307_v50 = vld [vmem:[%s16063_s26 + $0x680] sm:$0xff] }
 0x357   :  { %v11173_v57 = vadd.f32 %v1771_v33, %v1141_v41  ;;  %v11246_v31 = vpop.f32.mrf.mxu0 }
 0x358   :  { %16218 = vst [vmem:[#allocation18_spill] sm:$0xff] %v11246_v31 }
 0x359   :  { %16209 = vst [vmem:[#allocation12_spill] sm:$0xff] %v11173_v57  ;;  %8252 = vmatmul.msk.f32.gmra.mxu2 %vm104_vm0, %v8231_v46  ;;  %8273 = vmatmul.msk.f32.gmra.mxu3 %vm104_vm0, %v8231_v46  ;;  %v16217_v46 = vld [vmem:[#allocation69_spill] sm:$0xff] }
 0x35a   :  { %v1159_v47 = vadd.f32 %v16217_v46, %v1079_v37  ;;  %v8339_v37 = vld [vmem:[%s16063_s26 + $0x780] sm:$0xff]  ;;  %v7720_v57 = vld [vmem:[%s16000_s15 + $0x18] sm:$0xff] }
 0x35b   :  { %1885 = vmatmul.f32.gmra.mxu0 %v11107_v25  ;;  %1965 = vmatmul.f32.gmra.mxu1 %v11109_v10  ;;  %v1147_v10 = vadd.f32 %v10620_v60, %v1067_v29  ;;  %v1150_v60 = vadd.f32 %v10629_v32, %v1070_v2  ;;  %v16221_v29 = vld [vmem:[#allocation40_spill] sm:$0xff] }
 0x35c   :  { %v1693_v7 = vpop.f32.mrf.mxu2  ;;  %v1773_v40 = vpop.f32.mrf.mxu3  ;;  %v8349_v2 = vld [vmem:[%s16063_s26 + $0x7d0] sm:$0xff] }
 0x35d   :  { %v1774_v58 = vadd.f32 %v1773_v40, %v1693_v7  ;;  %v11248_v7 = vpop.f32.mrf.mxu1 }
 0x35e   :  { %16219 = vst [vmem:[#allocation23_spill] sm:$0xff] %v11248_v7 }
 0x35f   :  { %v11186_v55 = vadd.f32 %v1774_v58, %v1144_v52  ;;  %v8237_v52 = vld [vmem:[%s16062_s22 + $0x240] sm:$0xff]  ;;  %v8321_v58 = vld [vmem:[%s16063_s26 + $0x6f0] sm:$0xff]  ;;  %v11296_v12 = vpop.f32.mrf.mxu0 }
 0x360   :  { %2324 = vmatpush.msrb.mxu0 %v8321_v58  ;;  %v16227_v58 = vld [vmem:[#allocation45_spill] sm:$0xff] }
 0x361   :  { %16210 = vst [vmem:[#allocation14_spill] sm:$0xff] %v11186_v55  ;;  %8253 = vmatmul.msk.f32.gmra.mxu2 %vm104_vm0, %v8232_v39  ;;  %8274 = vmatmul.msk.f32.gmra.mxu3 %vm104_vm0, %v8232_v39  ;;  %v8353_v39 = vld [vmem:[%s16063_s26 + $0x7f0] sm:$0xff] }
 0x362   :  { %2404 = vmatpush.msrb.mxu1 %v8353_v39  ;;  %v16228_v39 = vld [vmem:[#allocation46_spill] sm:$0xff] }
 0x363   :  { %1888 = vmatmul.f32.gmra.mxu0 %v11119_v63  ;;  %1968 = vmatmul.f32.gmra.mxu1 %v11121_v61 }
 0x364   :  { %v1696_v54 = vpop.f32.mrf.mxu2  ;;  %v1776_v25 = vpop.f32.mrf.mxu3 }
 0x365   :  { %v1777_v14 = vadd.f32 %v1776_v25, %v1696_v54  ;;  %v842_v54 = vadd.f32 %v16221_v29, %v16220_v30  ;;  %v11298_v20 = vpop.f32.mrf.mxu1  ;;  %v848_v30 = vadd.f32 %v16228_v39, %v16227_v58  ;;  %v16236_v58 = vld [vmem:[#allocation51_spill] sm:$0xff]  ;;  %v16237_v39 = vld [vmem:[#allocation52_spill] sm:$0xff] }
 0x367   :  { %v11199_v48 = vadd.f32 %v1777_v14, %v1147_v10  ;;  %v8319_v10 = vld [vmem:[%s16063_s26 + $0x6e0] sm:$0xff] }
 0x368   :  { %v8351_v14 = vld [vmem:[%s16063_s26 + $0x7e0] sm:$0xff]  ;;  %2325 = vmatpush.msrb.mxu0 %v8319_v10 }
 0x369   :  { %16211 = vst [vmem:[#allocation15_spill] sm:$0xff] %v11199_v48  ;;  %8254 = vmatmul.msk.f32.gmra.mxu2 %vm104_vm0, %v8233_v1  ;;  %8275 = vmatmul.msk.f32.gmra.mxu3 %vm104_vm0, %v8233_v1  ;;  %v1082_v1 = vadd.f32 %v10697_v27, %v842_v54  ;;  %v8315_v27 = vld [vmem:[%s16063_s26 + $0x6c0] sm:$0xff]  ;;  %v16406_v48 = vld [vmem:[#allocation16_spill] sm:$0xff] }
 0x36a   :  { %2405 = vmatpush.msrb.mxu1 %v8351_v14  ;;  %2326 = vmatpush.msrb.mxu0 %v8317_v28  ;;  %v8303_v54 = vld [vmem:[%s16063_s26 + $0x660] sm:$0xff]  ;;  %v16229_v14 = vld [vmem:[#allocation77_spill] sm:$0xff]  ;;  %v11344_v28 = vpop.f32.mrf.mxu0 }
 0x36b   :  { %v8335_v10 = vld [vmem:[%s16063_s26 + $0x760] sm:$0xff]  ;;  %16230 = vst [vmem:[#allocation24_spill] sm:$0xff] %v11344_v28 }
 0x36c   :  { %v1699_v63 = vpop.f32.mrf.mxu2  ;;  %v1779_v61 = vpop.f32.mrf.mxu3  ;;  %2406 = vmatpush.msrb.mxu1 %v8349_v2  ;;  %2327 = vmatpush.msrb.mxu0 %v8315_v27  ;;  %v16402_v28 = vld [vmem:[#allocation10_spill] sm:$0xff] }
 0x36d   :  { %v1780_v15 = vadd.f32 %v1779_v61, %v1699_v63  ;;  %v11346_v2 = vpop.f32.mrf.mxu1 }
 0x36e   :  { %16231 = vst [vmem:[#allocation65_spill] sm:$0xff] %v11346_v2  ;;  %v16401_v2 = vld [vmem:[#allocation66_spill] sm:$0xff] }
 0x36f   :  { %v11210_v53 = vadd.f32 %v1780_v15, %v1150_v60  ;;  %v8347_v60 = vld [vmem:[%s16063_s26 + $0x7c0] sm:$0xff]  ;;  %v16222_v15 = vld [vmem:[#allocation72_spill] sm:$0xff] }
 0x370   :  { %2407 = vmatpush.msrb.mxu1 %v8347_v60 }
 0x371   :  { %16212 = vst [vmem:[#allocation17_spill] sm:$0xff] %v11210_v53  ;;  %8255 = vmatmul.msk.f32.gmra.mxu2 %vm104_vm0, %v8234_v6  ;;  %8276 = vmatmul.msk.f32.gmra.mxu3 %vm104_vm0, %v8234_v6  ;;  %v1162_v6 = vadd.f32 %v16222_v15, %v1082_v1  ;;  %v1088_v1 = vadd.f32 %v16229_v14, %v848_v30  ;;  %v8299_v15 = vld [vmem:[%s16063_s26 + $0x640] sm:$0xff]  ;;  %v16239_v14 = vld [vmem:[#allocation83_spill] sm:$0xff] }
 0x372   :  { %v854_v30 = vadd.f32 %v16237_v39, %v16236_v58  ;;  %v9281_v58 = vld [vmem:[%s16061_s29 + $0x78] sm:$0xff]  ;;  %v16246_v39 = vld [vmem:[#allocation87_spill] sm:$0xff] }
 0x374   :  { %v1702_v32 = vpop.f32.mrf.mxu2  ;;  %v1782_v42 = vpop.f32.mrf.mxu3 }
 0x375   :  { %v1783_v43 = vadd.f32 %v1782_v42, %v1702_v32  ;;  %v8313_v32 = vld [vmem:[%s16063_s26 + $0x6b0] sm:$0xff] }
 0x376   :  { %v8345_v42 = vld [vmem:[%s16063_s26 + $0x7b0] sm:$0xff]  ;;  %2328 = vmatpush.msrb.mxu0 %v8313_v32 }
 0x377   :  { %v11225_v45 = vadd.f32 %v1783_v43, %v1153_v38  ;;  %v16223_v38 = vld [vmem:[#allocation42_spill] sm:$0xff]  ;;  %v16224_v43 = vld [vmem:[#allocation43_spill] sm:$0xff]  ;;  %2408 = vmatpush.msrb.mxu1 %v8345_v42  ;;  %v8240_v42 = vld [vmem:[%s16062_s22 + $0x258] sm:$0xff] }
 0x379   :  { %8256 = vmatmul.msk.f32.gmra.mxu2 %vm104_vm0, %v8235_v17  ;;  %8277 = vmatmul.msk.f32.gmra.mxu3 %vm104_vm0, %v8235_v17  ;;  %v845_v17 = vadd.f32 %v16224_v43, %v16223_v38  ;;  %v8297_v38 = vld [vmem:[%s16063_s26 + $0x630] sm:$0xff] }
 0x37a   :  { %2409 = vmatpush.msrb.mxu1 %v8343_v19  ;;  %v8329_v43 = vld [vmem:[%s16063_s26 + $0x730] sm:$0xff] }
 0x37c   :  { %v1705_v26 = vpop.f32.mrf.mxu2  ;;  %v1785_v22 = vpop.f32.mrf.mxu3  ;;  %2410 = vmatpush.msrb.mxu1 %v8341_v0 }
 0x37d   :  { %v1786_v9 = vadd.f32 %v1785_v22, %v1705_v26  ;;  %v8311_v22 = vld [vmem:[%s16063_s26 + $0x6a0] sm:$0xff] }
 0x37e   :  { %2329 = vmatpush.msrb.mxu0 %v8311_v22  ;;  %2411 = vmatpush.msrb.mxu1 %v8339_v37  ;;  %v16234_v22 = vld [vmem:[#allocation49_spill] sm:$0xff]  ;;  %v11393_v37 = vpop.f32.mrf.mxu1 }
 0x37f   :  { %v11240_v24 = vadd.f32 %v1786_v9, %v1156_v8  ;;  %v16225_v8 = vld [vmem:[#allocation73_spill] sm:$0xff] }
 0x380   :  { %v1085_v9 = vadd.f32 %v16225_v8, %v845_v17  ;;  %v16233_v17 = vld [vmem:[#allocation48_spill] sm:$0xff] }
 0x381   :  { %8257 = vmatmul.msk.f32.gmra.mxu2 %vm104_vm0, %v8236_v23  ;;  %8278 = vmatmul.msk.f32.gmra.mxu3 %vm104_vm0, %v8236_v23  ;;  %v8309_v23 = vld [vmem:[%s16063_s26 + $0x690] sm:$0xff]  ;;  %v851_v19 = vadd.f32 %v16234_v22, %v16233_v17 }
 0x382   :  { %2330 = vmatpush.msrb.mxu0 %v8309_v23  ;;  %v8327_v23 = vld [vmem:[%s16063_s26 + $0x720] sm:$0xff] }
 0x383   :  { %v1091_v0 = vadd.f32 %v10804_v56, %v851_v19 }
 0x384   :  { %v1708_v41 = vpop.f32.mrf.mxu2  ;;  %v1788_v33 = vpop.f32.mrf.mxu3  ;;  %2331 = vmatpush.msrb.mxu0 %v8307_v50 }
 0x385   :  { %v1789_v40 = vadd.f32 %v1788_v33, %v1708_v41  ;;  %v16226_v41 = vld [vmem:[#allocation74_spill] sm:$0xff]  ;;  %v11391_v50 = vpop.f32.mrf.mxu0 }
 0x386   :  { %v1165_v33 = vadd.f32 %v16226_v41, %v1085_v9  ;;  %v8295_v9 = vld [vmem:[%s16063_s26 + $0x620] sm:$0xff]  ;;  %v11445_v22 = vpop.f32.mrf.mxu1 }
 0x387   :  { %v11261_v25 = vadd.f32 %v1789_v40, %v1159_v47  ;;  %v8239_v47 = vld [vmem:[%s16062_s22 + $0x250] sm:$0xff]  ;;  %16242 = vst [vmem:[#allocation69_spill] sm:$0xff] %v11445_v22 }
 0x388   :  { %v8305_v40 = vld [vmem:[%s16063_s26 + $0x670] sm:$0xff] }
 0x389   :  { %8258 = vmatmul.msk.f32.gmra.mxu2 %vm104_vm0, %v8237_v52  ;;  %8279 = vmatmul.msk.f32.gmra.mxu3 %vm104_vm0, %v8237_v52  ;;  %v8337_v52 = vld [vmem:[%s16063_s26 + $0x770] sm:$0xff] }
 0x38a   :  { %2332 = vmatpush.msrb.mxu0 %v8305_v40  ;;  %2412 = vmatpush.msrb.mxu1 %v8337_v52  ;;  %v8241_v52 = vld [vmem:[%s16062_s22 + $0x260] sm:$0xff] }
 0x38c   :  { %v1711_v63 = vpop.f32.mrf.mxu2  ;;  %v1791_v61 = vpop.f32.mrf.mxu3  ;;  %2333 = vmatpush.msrb.mxu0 %v8303_v54  ;;  %2413 = vmatpush.msrb.mxu1 %v8335_v10  ;;  %v9272_v10 = vld [vmem:[%s16061_s29 + $0xb0] sm:$0xff] }
 0x38d   :  { %v1792_v11 = vadd.f32 %v1791_v61, %v1711_v63  ;;  %v8301_v63 = vld [vmem:[%s16063_s26 + $0x650] sm:$0xff]  ;;  %v11443_v17 = vpop.f32.mrf.mxu0 }
 0x38e   :  { %v8333_v61 = vld [vmem:[%s16063_s26 + $0x750] sm:$0xff]  ;;  %2334 = vmatpush.msrb.mxu0 %v8301_v63  ;;  %v8322_v63 = vld [vmem:[%s16063_s26 + $0x6f8] sm:$0xff]  ;;  %16241 = vst [vmem:[#allocation68_spill] sm:$0xff] %v11443_v17 }
 0x38f   :  { %v11300_v26 = vadd.f32 %v1792_v11, %v1162_v6  ;;  %2414 = vmatpush.msrb.mxu1 %v8333_v61  ;;  %v8331_v6 = vld [vmem:[%s16063_s26 + $0x740] sm:$0xff]  ;;  %v8354_v61 = vld [vmem:[%s16063_s26 + $0x7f8] sm:$0xff]  ;;  %2484 = vmatpush.msrb.mxu2 %v8322_v63 }
 0x390   :  { %v16232_v11 = vld [vmem:[#allocation78_spill] sm:$0xff]  ;;  %2335 = vmatpush.msrb.mxu0 %v8299_v15  ;;  %2564 = vmatpush.msrb.mxu3 %v8354_v61 }
 0x391   :  { %8259 = vmatmul.msk.f32.gmra.mxu2 %vm104_vm0, %v8238_v51  ;;  %8280 = vmatmul.msk.f32.gmra.mxu3 %vm104_vm0, %v8238_v51  ;;  %v1168_v51 = vadd.f32 %v16232_v11, %v1088_v1  ;;  %v1094_v1 = vadd.f32 %v16239_v14, %v854_v30  ;;  %v8320_v11 = vld [vmem:[%s16063_s26 + $0x6e8] sm:$0xff]  ;;  %v9282_v14 = vld [vmem:[%s16061_s29 + $0x60] sm:$0xff] }
 0x392   :  { %2415 = vmatpush.msrb.mxu1 %v8331_v6  ;;  %2336 = vmatpush.msrb.mxu0 %v8297_v38  ;;  %v16240_v38 = vld [vmem:[#allocation84_spill] sm:$0xff] }
 0x393   :  { %2485 = vmatpush.msrb.mxu2 %v8320_v11 }
 0x394   :  { %v1714_v49 = vpop.f32.mrf.mxu2  ;;  %v1794_v44 = vpop.f32.mrf.mxu3  ;;  %2416 = vmatpush.msrb.mxu1 %v8329_v43  ;;  %2337 = vmatpush.msrb.mxu0 %v8295_v9  ;;  %v1174_v43 = vadd.f32 %v16240_v38, %v1094_v1  ;;  %v8318_v9 = vld [vmem:[%s16063_s26 + $0x6d8] sm:$0xff]  ;;  %v9283_v1 = vld [vmem:[%s16061_s29 + $0x68] sm:$0xff] }
 0x395   :  { %v1795_v46 = vadd.f32 %v1794_v44, %v1714_v49  ;;  %v8293_v49 = vld [vmem:[%s16063_s26 + $0x610] sm:$0xff]  ;;  %2486 = vmatpush.msrb.mxu2 %v8318_v9  ;;  %v9285_v38 = vld [vmem:[%s16061_s29 + $0x58] sm:$0xff] }
 0x396   :  { %2417 = vmatpush.msrb.mxu1 %v8327_v23  ;;  %v8325_v44 = vld [vmem:[%s16063_s26 + $0x710] sm:$0xff]  ;;  %2338 = vmatpush.msrb.mxu0 %v8293_v49  ;;  %v8350_v23 = vld [vmem:[%s16063_s26 + $0x7d8] sm:$0xff]  ;;  %v9278_v49 = vld [vmem:[%s16061_s29 + $0x80] sm:$0xff] }
 0x397   :  { %v11335_v29 = vadd.f32 %v1795_v46, %v1165_v33  ;;  %v8291_v33 = vld [vmem:[%s16063_s26 + $0x600] sm:$0xff]  ;;  %v16249_v9 = vld [vmem:[#allocation56_spill] sm:$0xff] }
 0x398   :  { %2418 = vmatpush.msrb.mxu1 %v8325_v44  ;;  %v8323_v46 = vld [vmem:[%s16063_s26 + $0x700] sm:$0xff]  ;;  %2339 = vmatpush.msrb.mxu0 %v8291_v33  ;;  %v9279_v44 = vld [vmem:[%s16061_s29 + $0x88] sm:$0xff] }
 0x399   :  { %8260 = vmatmul.msk.f32.gmra.mxu2 %vm104_vm0, %v8239_v47  ;;  %8281 = vmatmul.msk.f32.gmra.mxu3 %vm104_vm0, %v8239_v47  ;;  %v1171_v47 = vadd.f32 %v10806_v16, %v1091_v0  ;;  %v9273_v16 = vld [vmem:[%s16061_s29 + $0xb8] sm:$0xff]  ;;  %v8242_v0 = vld [vmem:[%s16062_s22 + $0x268] sm:$0xff] }
 0x39a   :  { %2419 = vmatpush.msrb.mxu1 %v8323_v46  ;;  %2775 = vmatpush.msra.mxu0 %v9272_v10  ;;  %v8314_v10 = vld [vmem:[%s16063_s26 + $0x6b8] sm:$0xff] }
 0x39c   :  { %v1717_v27 = vpop.f32.mrf.mxu2  ;;  %v1797_v60 = vpop.f32.mrf.mxu3  ;;  %2855 = vmatpush.msra.mxu1 %v9273_v16  ;;  %v8346_v16 = vld [vmem:[%s16063_s26 + $0x7b8] sm:$0xff] }
 0x39d   :  { %v1798_v32 = vadd.f32 %v1797_v60, %v1717_v27  ;;  %v9274_v27 = vld [vmem:[%s16061_s29 + $0xa0] sm:$0xff]  ;;  %v9275_v60 = vld [vmem:[%s16061_s29 + $0xa8] sm:$0xff] }
 0x39e   :  { %2776 = vmatpush.msra.mxu0 %v9274_v27  ;;  %2856 = vmatpush.msra.mxu1 %v9275_v60  ;;  %v8312_v27 = vld [vmem:[%s16063_s26 + $0x6a8] sm:$0xff] }
 0x39f   :  { %v11374_v8 = vadd.f32 %v1798_v32, %v1168_v51  ;;  %v8352_v51 = vld [vmem:[%s16063_s26 + $0x7e8] sm:$0xff]  ;;  %v9276_v32 = vld [vmem:[%s16061_s29 + $0x90] sm:$0xff] }
 0x3a0   :  { %2777 = vmatpush.msra.mxu0 %v9276_v32  ;;  %2565 = vmatpush.msrb.mxu3 %v8352_v51  ;;  %v8344_v60 = vld [vmem:[%s16063_s26 + $0x7a8] sm:$0xff]  ;;  %v8310_v51 = vld [vmem:[%s16063_s26 + $0x698] sm:$0xff] }
 0x3a1   :  { %16235 = vst [vmem:[#allocation36_spill] sm:$0xff] %v11374_v8  ;;  %8261 = vmatmul.msk.f32.gmra.mxu2 %vm104_vm0, %v8240_v42  ;;  %8282 = vmatmul.msk.f32.gmra.mxu3 %vm104_vm0, %v8240_v42  ;;  %v9277_v42 = vld [vmem:[%s16061_s29 + $0x98] sm:$0xff] }
 0x3a2   :  { %2857 = vmatpush.msra.mxu1 %v9277_v42  ;;  %2778 = vmatpush.msra.mxu0 %v9278_v49  ;;  %v8342_v32 = vld [vmem:[%s16063_s26 + $0x798] sm:$0xff]  ;;  %v9284_v42 = vld [vmem:[%s16061_s29 + $0x50] sm:$0xff]  ;;  %v11519_v49 = vpop.f32.mrf.mxu1 }
 0x3a3   :  { %2566 = vmatpush.msrb.mxu3 %v8350_v23  ;;  %16251 = vst [vmem:[#allocation72_spill] sm:$0xff] %v11519_v49 }
 0x3a4   :  { %v1720_v41 = vpop.f32.mrf.mxu2  ;;  %v1800_v56 = vpop.f32.mrf.mxu3  ;;  %2858 = vmatpush.msra.mxu1 %v9279_v44 }
 0x3a5   :  { %v1801_v40 = vadd.f32 %v1800_v56, %v1720_v41  ;;  %v16243_v41 = vld [vmem:[#allocation53_spill] sm:$0xff]  ;;  %v16244_v56 = vld [vmem:[#allocation54_spill] sm:$0xff] }
 0x3a6   :  { %v857_v33 = vadd.f32 %v16244_v56, %v16243_v41  ;;  %2859 = vmatpush.msra.mxu1 %v9281_v58  ;;  %v9286_v41 = vld [vmem:[%s16061_s29 + $0x40] sm:$0xff]  ;;  %v9287_v56 = vld [vmem:[%s16061_s29 + $0x48] sm:$0xff]  ;;  %v8306_v58 = vld [vmem:[%s16063_s26 + $0x678] sm:$0xff] }
 0x3a7   :  { %v11407_v54 = vadd.f32 %v1801_v40, %v1171_v47  ;;  %v8316_v47 = vld [vmem:[%s16063_s26 + $0x6c8] sm:$0xff] }
 0x3a8   :  { %v8348_v40 = vld [vmem:[%s16063_s26 + $0x7c8] sm:$0xff]  ;;  %v1097_v30 = vadd.f32 %v16246_v39, %v857_v33  ;;  %2487 = vmatpush.msrb.mxu2 %v8316_v47  ;;  %2860 = vmatpush.msra.mxu1 %v9283_v1  ;;  %v8338_v39 = vld [vmem:[%s16063_s26 + $0x778] sm:$0xff] }
 0x3a9   :  { %16238 = vst [vmem:[#allocation37_spill] sm:$0xff] %v11407_v54  ;;  %8262 = vmatmul.msk.f32.gmra.mxu2 %vm104_vm0, %v8241_v52  ;;  %8283 = vmatmul.msk.f32.gmra.mxu3 %vm104_vm0, %v8241_v52  ;;  %v9280_v52 = vld [vmem:[%s16061_s29 + $0x70] sm:$0xff]  ;;  %v8308_v33 = vld [vmem:[%s16063_s26 + $0x688] sm:$0xff] }
 0x3aa   :  { %2779 = vmatpush.msra.mxu0 %v9280_v52  ;;  %2567 = vmatpush.msrb.mxu3 %v8348_v40  ;;  %v8340_v47 = vld [vmem:[%s16063_s26 + $0x788] sm:$0xff] }
 0x3ab   :  { %2488 = vmatpush.msrb.mxu2 %v8314_v10  ;;  %2861 = vmatpush.msra.mxu1 %v9285_v38  ;;  %v16253_v40 = vld [vmem:[#allocation19_spill] sm:$0xff]  ;;  %v9289_v10 = vld [vmem:[%s16061_s29 + $0x38] sm:$0xff]  ;;  %v9292_v38 = vld [vmem:[%s16061_s29 + $0x10] sm:$0xff] }
 0x3ac   :  { %v1723_v15 = vpop.f32.mrf.mxu2  ;;  %v1803_v6 = vpop.f32.mrf.mxu3  ;;  %2780 = vmatpush.msra.mxu0 %v9282_v14  ;;  %2568 = vmatpush.msrb.mxu3 %v8346_v16  ;;  %v8304_v1 = vld [vmem:[%s16063_s26 + $0x668] sm:$0xff] }
 0x3ad   :  { %v1804_v19 = vadd.f32 %v1803_v6, %v1723_v15  ;;  %v16247_v15 = vld [vmem:[#allocation88_spill] sm:$0xff]  ;;  %2489 = vmatpush.msrb.mxu2 %v8312_v27  ;;  %2862 = vmatpush.msra.mxu1 %v9287_v56  ;;  %v8298_v56 = vld [vmem:[%s16063_s26 + $0x638] sm:$0xff] }
 0x3ae   :  { %v1177_v6 = vadd.f32 %v16247_v15, %v1097_v30  ;;  %2781 = vmatpush.msra.mxu0 %v9284_v42  ;;  %2569 = vmatpush.msrb.mxu3 %v8344_v60  ;;  %v9288_v30 = vld [vmem:[%s16061_s29 + $0x30] sm:$0xff]  ;;  %v8302_v15 = vld [vmem:[%s16063_s26 + $0x658] sm:$0xff] }
 0x3af   :  { %v11464_v46 = vadd.f32 %v1804_v19, %v1174_v43  ;;  %v8243_v43 = vld [vmem:[%s16062_s22 + $0x270] sm:$0xff]  ;;  %v16248_v19 = vld [vmem:[#allocation55_spill] sm:$0xff]  ;;  %2490 = vmatpush.msrb.mxu2 %v8310_v51  ;;  %2863 = vmatpush.msra.mxu1 %v9289_v10  ;;  %v8294_v10 = vld [vmem:[%s16063_s26 + $0x618] sm:$0xff] }
 0x3b0   :  { %v860_v23 = vadd.f32 %v16249_v9, %v16248_v19  ;;  %2782 = vmatpush.msra.mxu0 %v9286_v41  ;;  %2570 = vmatpush.msrb.mxu3 %v8342_v32  ;;  %v9291_v51 = vld [vmem:[%s16061_s29 + $0x28] sm:$0xff]  ;;  %v8244_v32 = vld [vmem:[%s16062_s22 + $0x278] sm:$0xff]  ;;  %v11588_v41 = vpop.f32.mrf.mxu1 }
 0x3b1   :  { %16245 = vst [vmem:[#allocation39_spill] sm:$0xff] %v11464_v46  ;;  %8263 = vmatmul.msk.f32.gmra.mxu2 %vm104_vm0, %v8242_v0  ;;  %8284 = vmatmul.msk.f32.gmra.mxu3 %vm104_vm0, %v8242_v0  ;;  %v11517_v0 = vpop.f32.mrf.mxu0  ;;  %v8300_v19 = vld [vmem:[%s16063_s26 + $0x648] sm:$0xff] }
 0x3b2   :  { %16250 = vst [vmem:[#allocation40_spill] sm:$0xff] %v11517_v0  ;;  %v1100_v52 = vadd.f32 %v16253_v40, %v860_v23  ;;  %2491 = vmatpush.msrb.mxu2 %v8308_v33  ;;  %2571 = vmatpush.msrb.mxu3 %v8340_v47  ;;  %v8332_v9 = vld [vmem:[%s16063_s26 + $0x748] sm:$0xff]  ;;  %v8330_v33 = vld [vmem:[%s16063_s26 + $0x738] sm:$0xff]  ;;  %v9294_v47 = vld [vmem:[%s16061_s29] sm:$0xff] }
 0x3b3   :  { %2783 = vmatpush.msra.mxu0 %v9288_v30  ;;  %2864 = vmatpush.msra.mxu1 %v9291_v51  ;;  %16257 = vst [vmem:[#allocation74_spill] sm:$0xff] %v11588_v41  ;;  %v9295_v40 = vld [vmem:[%s16061_s29 + $0x8] sm:$0xff] }
 0x3b4   :  { %v1726_v63 = vpop.f32.mrf.mxu2  ;;  %v1806_v61 = vpop.f32.mrf.mxu3  ;;  %2492 = vmatpush.msrb.mxu2 %v8306_v58  ;;  %2572 = vmatpush.msrb.mxu3 %v8338_v39  ;;  %v8296_v39 = vld [vmem:[%s16063_s26 + $0x628] sm:$0xff] }
 0x3b5   :  { %v1807_v11 = vadd.f32 %v1806_v61, %v1726_v63  ;;  %v8336_v63 = vld [vmem:[%s16063_s26 + $0x768] sm:$0xff]  ;;  %v16254_v61 = vld [vmem:[#allocation20_spill] sm:$0xff] }
 0x3b6   :  { %v1180_v27 = vadd.f32 %v16254_v61, %v1100_v52  ;;  %2493 = vmatpush.msrb.mxu2 %v8304_v1  ;;  %2573 = vmatpush.msrb.mxu3 %v8336_v63  ;;  %v8328_v30 = vld [vmem:[%s16063_s26 + $0x728] sm:$0xff] }
 0x3b7   :  { %v11521_v44 = vadd.f32 %v1807_v11, %v1177_v6  ;;  %v8334_v6 = vld [vmem:[%s16063_s26 + $0x758] sm:$0xff]  ;;  %v9290_v11 = vld [vmem:[%s16061_s29 + $0x20] sm:$0xff]  ;;  %v8292_v1 = vld [vmem:[%s16063_s26 + $0x608] sm:$0xff] }
 0x3b8   :  { %2784 = vmatpush.msra.mxu0 %v9290_v11  ;;  %2494 = vmatpush.msrb.mxu2 %v8302_v15  ;;  %v8324_v63 = vld [vmem:[%s16063_s26 + $0x708] sm:$0xff] }
 0x3b9   :  { %16252 = vst [vmem:[#allocation42_spill] sm:$0xff] %v11521_v44  ;;  %8264 = vmatmul.msk.f32.gmra.mxu2 %vm104_vm0, %v8243_v43  ;;  %8285 = vmatmul.msk.f32.gmra.mxu3 %vm104_vm0, %v8243_v43  ;;  %v9293_v43 = vld [vmem:[%s16061_s29 + $0x18] sm:$0xff]  ;;  %v11586_v23 = vpop.f32.mrf.mxu0 }
 0x3ba   :  { %2785 = vmatpush.msra.mxu0 %v9292_v38  ;;  %2865 = vmatpush.msra.mxu1 %v9293_v43  ;;  %16256 = vst [vmem:[#allocation73_spill] sm:$0xff] %v11586_v23  ;;  %v8247_v43 = vld [vmem:[%s16062_s22 + $0x290] sm:$0xff] }
 0x3bb   :  { %2574 = vmatpush.msrb.mxu3 %v8334_v6  ;;  %2495 = vmatpush.msrb.mxu2 %v8300_v19  ;;  %v8246_v6 = vld [vmem:[%s16062_s22 + $0x288] sm:$0xff] }
 0x3bc   :  { %v1729_v16 = vpop.f32.mrf.mxu2  ;;  %v1809_v14 = vpop.f32.mrf.mxu3  ;;  %2786 = vmatpush.msra.mxu0 %v9294_v47  ;;  %2866 = vmatpush.msra.mxu1 %v9295_v40 }
 0x3bd   :  { %v1810_v60 = vadd.f32 %v1809_v14, %v1729_v16  ;;  %2575 = vmatpush.msrb.mxu3 %v8332_v9  ;;  %2496 = vmatpush.msrb.mxu2 %v8298_v56  ;;  %v8326_v16 = vld [vmem:[%s16063_s26 + $0x718] sm:$0xff]  ;;  %v8245_v14 = vld [vmem:[%s16062_s22 + $0x280] sm:$0xff] }
 0x3be   :  { %v8248_v56 = vld [vmem:[%s16062_s22 + $0x298] sm:$0xff] }
 0x3bf   :  { %v11572_v42 = vadd.f32 %v1810_v60, %v1180_v27  ;;  %2576 = vmatpush.msrb.mxu3 %v8330_v33  ;;  %2497 = vmatpush.msrb.mxu2 %v8296_v39  ;;  %v11629_v27 = vpop.f32.mrf.mxu1 }
 0x3c0   :  { %16259 = vst [vmem:[#allocation46_spill] sm:$0xff] %v11629_v27  ;;  %v8373_v27 = vld [vmem:[%s16062_s22 + $0x330] sm:$0xff] }
 0x3c1   :  { %16255 = vst [vmem:[#allocation43_spill] sm:$0xff] %v11572_v42  ;;  %8265 = vmatmul.msk.f32.gmra.mxu2 %vm104_vm0, %v8244_v32  ;;  %8286 = vmatmul.msk.f32.gmra.mxu3 %vm104_vm0, %v8244_v32  ;;  %v11627_v61 = vpop.f32.mrf.mxu0 }
 0x3c2   :  { %2577 = vmatpush.msrb.mxu3 %v8328_v30  ;;  %2498 = vmatpush.msrb.mxu2 %v8294_v10  ;;  %16258 = vst [vmem:[#allocation45_spill] sm:$0xff] %v11627_v61 }
 0x3c4   :  { %v2116_v52 = vpop.f32.mrf.mxu2  ;;  %v2196_v58 = vpop.f32.mrf.mxu3  ;;  %2578 = vmatpush.msrb.mxu3 %v8326_v16  ;;  %2499 = vmatpush.msrb.mxu2 %v8292_v1 }
 0x3c5   :  { %2340 = vmatmul.f32.vlgmr.msrb.gmra.mxu0 %v2116_v52  ;;  %2420 = vmatmul.f32.vlgmr.msrb.gmra.mxu1 %v2196_v58 }
 0x3c6   :  { %2579 = vmatpush.msrb.mxu3 %v8324_v63 }
 0x3c7   :  { %v11638_v38 = vpop.f32.mrf.mxu1 }
 0x3c8   :  { %16261 = vst [vmem:[#allocation78_spill] sm:$0xff] %v11638_v38  ;;  %v8476_v38 = vld [vmem:[%s16063_s26 + $0x9d0] sm:$0xff] }
 0x3c9   :  { %8266 = vmatmul.msk.f32.gmra.mxu2 %vm104_vm0, %v8245_v14  ;;  %8287 = vmatmul.msk.f32.gmra.mxu3 %vm104_vm0, %v8245_v14  ;;  %v11636_v32 = vpop.f32.mrf.mxu0 }
 0x3ca   :  { %16260 = vst [vmem:[#allocation77_spill] sm:$0xff] %v11636_v32 }
 0x3cc   :  { %v2119_v60 = vpop.f32.mrf.mxu2  ;;  %v2199_v15 = vpop.f32.mrf.mxu3 }
 0x3cd   :  { %2343 = vmatmul.f32.gmra.mxu0 %v2119_v60  ;;  %2423 = vmatmul.f32.gmra.mxu1 %v2199_v15 }
 0x3cf   :  { %v11650_v47 = vpop.f32.mrf.mxu1 }
 0x3d0   :  { %16263 = vst [vmem:[#allocation49_spill] sm:$0xff] %v11650_v47  ;;  %v8448_v47 = vld [vmem:[%s16063_s26 + $0x8f0] sm:$0xff] }
 0x3d1   :  { %8267 = vmatmul.msk.f32.gmra.mxu2 %vm104_vm0, %v8246_v6  ;;  %8288 = vmatmul.msk.f32.gmra.mxu3 %vm104_vm0, %v8246_v6  ;;  %v11648_v33 = vpop.f32.mrf.mxu0 }
 0x3d2   :  { %16262 = vst [vmem:[#allocation48_spill] sm:$0xff] %v11648_v33  ;;  %2996 = vmatpush.msra.mxu2 %v8448_v47  ;;  %v8444_v33 = vld [vmem:[%s16063_s26 + $0x8d0] sm:$0xff] }
 0x3d4   :  { %v2122_v11 = vpop.f32.mrf.mxu2  ;;  %v2202_v51 = vpop.f32.mrf.mxu3 }
 0x3d5   :  { %2346 = vmatmul.f32.gmra.mxu0 %v2122_v11  ;;  %2426 = vmatmul.f32.gmra.mxu1 %v2202_v51 }
 0x3d7   :  { %v11656_v10 = vpop.f32.mrf.mxu1 }
 0x3d8   :  { %16265 = vst [vmem:[#allocation52_spill] sm:$0xff] %v11656_v10 }
 0x3d9   :  { %8268 = vmatmul.msk.f32.gmra.mxu2 %vm104_vm0, %v8247_v43  ;;  %8289 = vmatmul.msk.f32.gmra.mxu3 %vm104_vm0, %v8247_v43  ;;  %v11654_v30 = vpop.f32.mrf.mxu0 }
 0x3da   :  { %16264 = vst [vmem:[#allocation51_spill] sm:$0xff] %v11654_v30 }
 0x3dc   :  { %v2125_v19 = vpop.f32.mrf.mxu2  ;;  %v2205_v9 = vpop.f32.mrf.mxu3 }
 0x3dd   :  { %2349 = vmatmul.f32.gmra.mxu0 %v2125_v19  ;;  %2429 = vmatmul.f32.gmra.mxu1 %v2205_v9 }
 0x3df   :  { %v11660_v63 = vpop.f32.mrf.mxu1 }
 0x3e0   :  { %16267 = vst [vmem:[#allocation84_spill] sm:$0xff] %v11660_v63 }
 0x3e1   :  { %8269 = vmatmul.msk.f32.gmra.mxu2 %vm104_vm0, %v8248_v56  ;;  %8290 = vmatmul.msk.f32.gmra.mxu3 %vm104_vm0, %v8248_v56  ;;  %v11658_v1 = vpop.f32.mrf.mxu0 }
 0x3e2   :  { %16266 = vst [vmem:[#allocation83_spill] sm:$0xff] %v11658_v1 }
 0x3e4   :  { %v2128_v40 = vpop.f32.mrf.mxu2  ;;  %v2208_v39 = vpop.f32.mrf.mxu3 }
 0x3e5   :  { %2352 = vmatmul.f32.gmra.mxu0 %v2128_v40  ;;  %2432 = vmatmul.f32.gmra.mxu1 %v2208_v39 }
 0x3e9   :  { %2500 = vmatmul.f32.vlgmr.msrb.gmra.mxu2 %v2116_v52  ;;  %2580 = vmatmul.f32.vlgmr.msrb.gmra.mxu3 %v2196_v58  ;;  %v11662_v52 = vpop.f32.mrf.mxu0  ;;  %v11664_v58 = vpop.f32.mrf.mxu1 }
 0x3ea   :  { %16268 = vst [vmem:[#allocation53_spill] sm:$0xff] %v11662_v52 }
 0x3eb   :  { %16269 = vst [vmem:[#allocation54_spill] sm:$0xff] %v11664_v58 }
 0x3ec   :  { %v2131_v16 = vpop.f32.mrf.mxu2  ;;  %v2211_v14 = vpop.f32.mrf.mxu3 }
 0x3ed   :  { %2355 = vmatmul.f32.gmra.mxu0 %v2131_v16  ;;  %2435 = vmatmul.f32.gmra.mxu1 %v2211_v14 }
 0x3f1   :  { %2503 = vmatmul.f32.gmra.mxu2 %v2119_v60  ;;  %2583 = vmatmul.f32.gmra.mxu3 %v2199_v15  ;;  %v11666_v54 = vpop.f32.mrf.mxu0  ;;  %v11668_v42 = vpop.f32.mrf.mxu1 }
 0x3f2   :  { %16270 = vst [vmem:[#allocation87_spill] sm:$0xff] %v11666_v54 }
 0x3f3   :  { %16271 = vst [vmem:[#allocation88_spill] sm:$0xff] %v11668_v42 }
 0x3f4   :  { %v2134_v6 = vpop.f32.mrf.mxu2  ;;  %v2214_v43 = vpop.f32.mrf.mxu3 }
 0x3f5   :  { %2358 = vmatmul.f32.gmra.mxu0 %v2134_v6  ;;  %2438 = vmatmul.f32.gmra.mxu1 %v2214_v43 }
 0x3f9   :  { %2506 = vmatmul.f32.gmra.mxu2 %v2122_v11  ;;  %2586 = vmatmul.f32.gmra.mxu3 %v2202_v51  ;;  %v11670_v44 = vpop.f32.mrf.mxu0  ;;  %v11672_v46 = vpop.f32.mrf.mxu1 }
 0x3fa   :  { %16272 = vst [vmem:[#allocation55_spill] sm:$0xff] %v11670_v44 }
 0x3fb   :  { %16273 = vst [vmem:[#allocation56_spill] sm:$0xff] %v11672_v46 }
 0x3fc   :  { %v2137_v56 = vpop.f32.mrf.mxu2  ;;  %v2217_v8 = vpop.f32.mrf.mxu3 }
 0x3fd   :  { %2361 = vmatmul.f32.gmra.mxu0 %v2137_v56  ;;  %2441 = vmatmul.f32.gmra.mxu1 %v2217_v8 }
 0x401   :  { %2509 = vmatmul.f32.gmra.mxu2 %v2125_v19  ;;  %2589 = vmatmul.f32.gmra.mxu3 %v2205_v9  ;;  %v11674_v35 = vpop.f32.mrf.mxu0 }
 0x402   :  { %16274 = vst [vmem:[#allocation19_spill] sm:$0xff] %v11674_v35 }
 0x404   :  { %v2140_v60 = vpop.f32.mrf.mxu2  ;;  %v2220_v15 = vpop.f32.mrf.mxu3 }
 0x405   :  { %2364 = vmatmul.f32.gmra.mxu0 %v2140_v60  ;;  %2444 = vmatmul.f32.gmra.mxu1 %v2220_v15 }
 0x409   :  { %2512 = vmatmul.f32.gmra.mxu2 %v2128_v40  ;;  %2592 = vmatmul.f32.gmra.mxu3 %v2208_v39  ;;  %v11676_v40 = vpop.f32.mrf.mxu1 }
 0x40a   :  { %16275 = vst [vmem:[#allocation20_spill] sm:$0xff] %v11676_v40 }
 0x40c   :  { %v2143_v11 = vpop.f32.mrf.mxu2  ;;  %v2223_v51 = vpop.f32.mrf.mxu3 }
 0x40d   :  { %2367 = vmatmul.f32.gmra.mxu0 %v2143_v11  ;;  %2447 = vmatmul.f32.gmra.mxu1 %v2223_v51 }
 0x411   :  { %2515 = vmatmul.f32.gmra.mxu2 %v2131_v16  ;;  %2595 = vmatmul.f32.gmra.mxu3 %v2211_v14  ;;  %v11678_v16 = vpop.f32.mrf.mxu0  ;;  %v11680_v14 = vpop.f32.mrf.mxu1 }
 0x412   :  { %16276 = vst [vmem:[#allocation112_spill] sm:$0xff] %v11678_v16 }
 0x413   :  { %16277 = vst [vmem:[#allocation113_spill] sm:$0xff] %v11680_v14 }
 0x414   :  { %v2146_v19 = vpop.f32.mrf.mxu2  ;;  %v2226_v9 = vpop.f32.mrf.mxu3 }
 0x415   :  { %2370 = vmatmul.f32.gmra.mxu0 %v2146_v19  ;;  %2450 = vmatmul.f32.gmra.mxu1 %v2226_v9 }
 0x419   :  { %2518 = vmatmul.f32.gmra.mxu2 %v2134_v6  ;;  %2598 = vmatmul.f32.gmra.mxu3 %v2214_v43  ;;  %v11682_v40 = vpop.f32.mrf.mxu0  ;;  %v11684_v35 = vpop.f32.mrf.mxu1 }
 0x41a   :  { %16278 = vst [vmem:[#allocation114_spill] sm:$0xff] %v11682_v40 }
 0x41b   :  { %16279 = vst [vmem:[#allocation115_spill] sm:$0xff] %v11684_v35 }
 0x41c   :  { %v2149_v39 = vpop.f32.mrf.mxu2  ;;  %v2229_v18 = vpop.f32.mrf.mxu3 }
 0x41d   :  { %2373 = vmatmul.f32.gmra.mxu0 %v2149_v39  ;;  %2453 = vmatmul.f32.gmra.mxu1 %v2229_v18 }
 0x421   :  { %2521 = vmatmul.f32.gmra.mxu2 %v2137_v56  ;;  %2601 = vmatmul.f32.gmra.mxu3 %v2217_v8  ;;  %v11686_v16 = vpop.f32.mrf.mxu0 }
 0x422   :  { %16280 = vst [vmem:[#allocation116_spill] sm:$0xff] %v11686_v16 }
 0x424   :  { %v2152_v44 = vpop.f32.mrf.mxu2  ;;  %v2232_v46 = vpop.f32.mrf.mxu3 }
 0x425   :  { %2376 = vmatmul.f32.gmra.mxu0 %v2152_v44  ;;  %2456 = vmatmul.f32.gmra.mxu1 %v2232_v46 }
 0x429   :  { %2524 = vmatmul.f32.gmra.mxu2 %v2140_v60  ;;  %2604 = vmatmul.f32.gmra.mxu3 %v2220_v15  ;;  %v11688_v60 = vpop.f32.mrf.mxu1 }
 0x42a   :  { %16281 = vst [vmem:[#allocation117_spill] sm:$0xff] %v11688_v60 }
 0x42c   :  { %v2155_v6 = vpop.f32.mrf.mxu2  ;;  %v2235_v43 = vpop.f32.mrf.mxu3 }
 0x42d   :  { %2379 = vmatmul.f32.gmra.mxu0 %v2155_v6  ;;  %2459 = vmatmul.f32.gmra.mxu1 %v2235_v43 }
 0x431   :  { %2527 = vmatmul.f32.gmra.mxu2 %v2143_v11  ;;  %2607 = vmatmul.f32.gmra.mxu3 %v2223_v51 }
 0x434   :  { %v2158_v8 = vpop.f32.mrf.mxu2  ;;  %v2238_v56 = vpop.f32.mrf.mxu3 }
 0x435   :  { %2382 = vmatmul.f32.gmra.mxu0 %v2158_v8  ;;  %2462 = vmatmul.f32.gmra.mxu1 %v2238_v56 }
 0x439   :  { %2530 = vmatmul.f32.gmra.mxu2 %v2146_v19  ;;  %2610 = vmatmul.f32.gmra.mxu3 %v2226_v9 }
 0x43c   :  { %v2161_v15 = vpop.f32.mrf.mxu2  ;;  %v2241_v14 = vpop.f32.mrf.mxu3 }
 0x43d   :  { %2385 = vmatmul.f32.gmra.mxu0 %v2161_v15  ;;  %2465 = vmatmul.f32.gmra.mxu1 %v2241_v14 }
 0x441   :  { %2533 = vmatmul.f32.gmra.mxu2 %v2149_v39  ;;  %2613 = vmatmul.f32.gmra.mxu3 %v2229_v18 }
 0x442   :  { %v11690_v40 = vpop.f32.mrf.mxu0  ;;  %v11692_v11 = vpop.f32.mrf.mxu1 }
 0x443   :  { %16282 = vst [vmem:[#allocation118_spill] sm:$0xff] %v11690_v40  ;;  %v8355_v40 = vld [vmem:[%s16062_s22 + $0x2a0] sm:$0xff] }
 0x444   :  { %16283 = vst [vmem:[#allocation119_spill] sm:$0xff] %v11692_v11  ;;  %v2164_v51 = vpop.f32.mrf.mxu2  ;;  %v2244_v35 = vpop.f32.mrf.mxu3 }
 0x445   :  { %2388 = vmatmul.f32.gmra.mxu0 %v2164_v51  ;;  %2468 = vmatmul.f32.gmra.mxu1 %v2244_v35 }
 0x449   :  { %2536 = vmatmul.f32.gmra.mxu2 %v2152_v44  ;;  %2616 = vmatmul.f32.gmra.mxu3 %v2232_v46 }
 0x44a   :  { %v11694_v19 = vpop.f32.mrf.mxu0  ;;  %v11696_v9 = vpop.f32.mrf.mxu1 }
 0x44b   :  { %16284 = vst [vmem:[#allocation120_spill] sm:$0xff] %v11694_v19 }
 0x44c   :  { %16285 = vst [vmem:[#allocation121_spill] sm:$0xff] %v11696_v9  ;;  %v2167_v60 = vpop.f32.mrf.mxu2  ;;  %v2247_v16 = vpop.f32.mrf.mxu3 }
 0x44d   :  { %2391 = vmatmul.f32.gmra.mxu0 %v2167_v60  ;;  %2471 = vmatmul.f32.gmra.mxu1 %v2247_v16 }
 0x451   :  { %2539 = vmatmul.f32.gmra.mxu2 %v2155_v6  ;;  %2619 = vmatmul.f32.gmra.mxu3 %v2235_v43 }
 0x452   :  { %v11698_v18 = vpop.f32.mrf.mxu0  ;;  %v11700_v39 = vpop.f32.mrf.mxu1 }
 0x453   :  { %16286 = vst [vmem:[#allocation122_spill] sm:$0xff] %v11698_v18 }
 0x454   :  { %16287 = vst [vmem:[#allocation123_spill] sm:$0xff] %v11700_v39  ;;  %v2170_v42 = vpop.f32.mrf.mxu2  ;;  %v2250_v54 = vpop.f32.mrf.mxu3  ;;  %v8442_v39 = vld [vmem:[%s16063_s26 + $0x8c0] sm:$0xff] }
 0x455   :  { %2394 = vmatmul.f32.gmra.mxu0 %v2170_v42  ;;  %2474 = vmatmul.f32.gmra.mxu1 %v2250_v54 }
 0x459   :  { %2542 = vmatmul.f32.gmra.mxu2 %v2158_v8  ;;  %2622 = vmatmul.f32.gmra.mxu3 %v2238_v56 }
 0x45a   :  { %v11702_v46 = vpop.f32.mrf.mxu0  ;;  %v11704_v44 = vpop.f32.mrf.mxu1 }
 0x45b   :  { %16288 = vst [vmem:[#allocation124_spill] sm:$0xff] %v11702_v46  ;;  %v8426_v46 = vld [vmem:[%s16063_s26 + $0x840] sm:$0xff] }
 0x45c   :  { %16289 = vst [vmem:[#allocation125_spill] sm:$0xff] %v11704_v44  ;;  %v2173_v58 = vpop.f32.mrf.mxu2  ;;  %v2253_v52 = vpop.f32.mrf.mxu3  ;;  %v8434_v44 = vld [vmem:[%s16063_s26 + $0x880] sm:$0xff] }
 0x45d   :  { %2397 = vmatmul.f32.gmra.mxu0 %v2173_v58  ;;  %2477 = vmatmul.f32.gmra.mxu1 %v2253_v52 }
 0x461   :  { %2545 = vmatmul.f32.gmra.mxu2 %v2161_v15  ;;  %2625 = vmatmul.f32.gmra.mxu3 %v2241_v14 }
 0x462   :  { %v11706_v6 = vpop.f32.mrf.mxu0  ;;  %v11708_v43 = vpop.f32.mrf.mxu1 }
 0x463   :  { %16290 = vst [vmem:[#allocation126_spill] sm:$0xff] %v11706_v6  ;;  %v8372_v6 = vld [vmem:[%s16062_s22 + $0x328] sm:$0xff] }
 0x464   :  { %16291 = vst [vmem:[#allocation127_spill] sm:$0xff] %v11708_v43  ;;  %v2176_v59 = vpop.f32.mrf.mxu2  ;;  %v2256_v11 = vpop.f32.mrf.mxu3 }
 0x465   :  { %2400 = vmatmul.f32.gmra.mxu0 %v2176_v59  ;;  %2480 = vmatmul.f32.gmra.mxu1 %v2256_v11 }
 0x469   :  { %2548 = vmatmul.f32.gmra.mxu2 %v2164_v51  ;;  %2628 = vmatmul.f32.gmra.mxu3 %v2244_v35  ;;  %v8356_v35 = vld [vmem:[%s16062_s22 + $0x2a8] sm:$0xff] }
 0x46a   :  { %v11710_v8 = vpop.f32.mrf.mxu0  ;;  %v11712_v56 = vpop.f32.mrf.mxu1 }
 0x46b   :  { %16292 = vst [vmem:[#allocation128_spill] sm:$0xff] %v11710_v8 }
 0x46c   :  { %16293 = vst [vmem:[#allocation129_spill] sm:$0xff] %v11712_v56  ;;  %v11771_v1 = vpop.f32.mrf.mxu2  ;;  %v11773_v10 = vpop.f32.mrf.mxu3 }
 0x46d   :  { %8376 = vmatmul.msk.f32.vlgmr.msra.gmra.mxu0 %vm104_vm0, %v8355_v40  ;;  %8397 = vmatmul.msk.f32.vlgmr.msra.gmra.mxu1 %vm104_vm0, %v8355_v40  ;;  %v8357_v40 = vld [vmem:[%s16062_s22 + $0x2b0] sm:$0xff]  ;;  %16299 = vst [vmem:[#allocation135_spill] sm:$0xff] %v11771_v1 }
 0x46e   :  { %16300 = vst [vmem:[#allocation136_spill] sm:$0xff] %v11773_v10 }
 0x471   :  { %2551 = vmatmul.f32.gmra.mxu2 %v2167_v60  ;;  %2631 = vmatmul.f32.gmra.mxu3 %v2247_v16 }
 0x472   :  { %v11719_v14 = vpop.f32.mrf.mxu0  ;;  %v11721_v15 = vpop.f32.mrf.mxu1 }
 0x473   :  { %16294 = vst [vmem:[#allocation130_spill] sm:$0xff] %v11719_v14  ;;  %v16400_v14 = vld [vmem:[#allocation7_spill] sm:$0xff] }
 0x474   :  { %16295 = vst [vmem:[#allocation131_spill] sm:$0xff] %v11721_v15  ;;  %v11786_v9 = vpop.f32.mrf.mxu2  ;;  %v11788_v1 = vpop.f32.mrf.mxu3 }
 0x475   :  { %8377 = vmatmul.msk.f32.gmra.mxu0 %vm104_vm0, %v8356_v35  ;;  %8398 = vmatmul.msk.f32.gmra.mxu1 %vm104_vm0, %v8356_v35  ;;  %16301 = vst [vmem:[#allocation137_spill] sm:$0xff] %v11786_v9  ;;  %v8478_v9 = vld [vmem:[%s16063_s26 + $0x9e0] sm:$0xff] }
 0x476   :  { %16302 = vst [vmem:[#allocation138_spill] sm:$0xff] %v11788_v1  ;;  %v8446_v1 = vld [vmem:[%s16063_s26 + $0x8e0] sm:$0xff] }
 0x477   :  { %2997 = vmatpush.msra.mxu2 %v8446_v1  ;;  %v8474_v1 = vld [vmem:[%s16063_s26 + $0x9c0] sm:$0xff] }
 0x479   :  { %2554 = vmatmul.f32.gmra.mxu2 %v2170_v42  ;;  %2634 = vmatmul.f32.gmra.mxu3 %v2250_v54  ;;  %v8358_v54 = vld [vmem:[%s16062_s22 + $0x2b8] sm:$0xff] }
 0x47a   :  { %v11728_v51 = vpop.f32.mrf.mxu0  ;;  %v11730_v63 = vpop.f32.mrf.mxu1  ;;  %2998 = vmatpush.msra.mxu2 %v8444_v33  ;;  %v8438_v33 = vld [vmem:[%s16063_s26 + $0x8a0] sm:$0xff] }
 0x47b   :  { %16296 = vst [vmem:[#allocation132_spill] sm:$0xff] %v11728_v51  ;;  %v16409_v51 = vld [vmem:[#allocation81_spill] sm:$0xff] }
 0x47c   :  { %16297 = vst [vmem:[#allocation133_spill] sm:$0xff] %v11730_v63  ;;  %v11817_v47 = vpop.f32.mrf.mxu2  ;;  %2999 = vmatpush.msra.mxu2 %v8442_v39  ;;  %v8470_v39 = vld [vmem:[%s16063_s26 + $0x9a0] sm:$0xff] }
 0x47d   :  { %8378 = vmatmul.msk.f32.gmra.mxu0 %vm104_vm0, %v8357_v40  ;;  %8399 = vmatmul.msk.f32.gmra.mxu1 %vm104_vm0, %v8357_v40  ;;  %16303 = vst [vmem:[#allocation139_spill] sm:$0xff] %v11817_v47  ;;  %v9296_v47 = vmov 0  }
 0x47e   :  { %9246 = vset.pattern.permute.xlu1 %v9296_v47  ;;  %9245 = vset.pattern.permute.xlu0 %v9296_v47 }
 0x47f   :  { %9247 = vset.pattern.permute.xlu2 %v9296_v47  ;;  %v8462_v47 = vld [vmem:[%s16063_s26 + $0x960] sm:$0xff] }
 0x481   :  { %2557 = vmatmul.f32.gmra.mxu2 %v2173_v58  ;;  %2637 = vmatmul.f32.gmra.mxu3 %v2253_v52  ;;  %v8359_v52 = vld [vmem:[%s16062_s22 + $0x2c0] sm:$0xff] }
 0x482   :  { %v11737_v16 = vpop.f32.mrf.mxu0  ;;  %v11739_v60 = vpop.f32.mrf.mxu1 }
 0x483   :  { %16298 = vst [vmem:[#allocation134_spill] sm:$0xff] %v11739_v60 }
 0x485   :  { %8379 = vmatmul.msk.f32.gmra.mxu0 %vm104_vm0, %v8358_v54  ;;  %8400 = vmatmul.msk.f32.gmra.mxu1 %vm104_vm0, %v8358_v54 }
 0x489   :  { %2560 = vmatmul.f32.gmra.mxu2 %v2176_v59  ;;  %2640 = vmatmul.f32.gmra.mxu3 %v2256_v11  ;;  %v8360_v59 = vld [vmem:[%s16062_s22 + $0x2c8] sm:$0xff] }
 0x48a   :  { %v11746_v42 = vpop.f32.mrf.mxu0  ;;  %v11748_v35 = vpop.f32.mrf.mxu1 }
 0x48d   :  { %8380 = vmatmul.msk.f32.gmra.mxu0 %vm104_vm0, %v8359_v52  ;;  %8401 = vmatmul.msk.f32.gmra.mxu1 %vm104_vm0, %v8359_v52  ;;  %v8361_v52 = vld [vmem:[%s16062_s22 + $0x2d0] sm:$0xff] }
 0x492   :  { %v11755_v58 = vpop.f32.mrf.mxu0  ;;  %v11757_v40 = vpop.f32.mrf.mxu1 }
 0x495   :  { %8381 = vmatmul.msk.f32.gmra.mxu0 %vm104_vm0, %v8360_v59  ;;  %8402 = vmatmul.msk.f32.gmra.mxu1 %vm104_vm0, %v8360_v59  ;;  %v8362_v59 = vld [vmem:[%s16062_s22 + $0x2d8] sm:$0xff] }
 0x49a   :  { %v11764_v11 = vpop.f32.mrf.mxu0  ;;  %v11766_v54 = vpop.f32.mrf.mxu1 }
 0x49d   :  { %8382 = vmatmul.msk.f32.gmra.mxu0 %vm104_vm0, %v8361_v52  ;;  %8403 = vmatmul.msk.f32.gmra.mxu1 %vm104_vm0, %v8361_v52  ;;  %v8363_v52 = vld [vmem:[%s16062_s22 + $0x2e0] sm:$0xff] }
 0x4a2   :  { %v11777_v30 = vpop.f32.mrf.mxu0  ;;  %v11779_v36 = vpop.f32.mrf.mxu1 }
 0x4a5   :  { %8383 = vmatmul.msk.f32.gmra.mxu0 %vm104_vm0, %v8362_v59  ;;  %8404 = vmatmul.msk.f32.gmra.mxu1 %vm104_vm0, %v8362_v59  ;;  %v8480_v59 = vld [vmem:[%s16063_s26 + $0x9f0] sm:$0xff] }
 0x4a6   :  { %3076 = vmatpush.msra.mxu3 %v8480_v59 }
 0x4a8   :  { %3077 = vmatpush.msra.mxu3 %v8478_v9  ;;  %v8440_v9 = vld [vmem:[%s16063_s26 + $0x8b0] sm:$0xff] }
 0x4a9   :  { %3000 = vmatpush.msra.mxu2 %v8440_v9 }
 0x4aa   :  { %v11790_v10 = vpop.f32.mrf.mxu0  ;;  %v11792_v19 = vpop.f32.mrf.mxu1  ;;  %3078 = vmatpush.msra.mxu3 %v8476_v38  ;;  %v3373_v38 = vld [vmem:[%s15997_s3 + $0x78] sm:$0xff] }
 0x4ab   :  { %3001 = vmatpush.msra.mxu2 %v8438_v33  ;;  %3456 = vperm.xlu0 %9245, %v3373_v38   ;;  %v8466_v33 = vld [vmem:[%s16063_s26 + $0x980] sm:$0xff] }
 0x4ac   :  { %3079 = vmatpush.msra.mxu3 %v8474_v1  ;;  %v3371_v1 = vld [vmem:[%s15997_s3 + $0x68] sm:$0xff] }
 0x4ad   :  { %8384 = vmatmul.msk.f32.gmra.mxu0 %vm104_vm0, %v8363_v52  ;;  %8405 = vmatmul.msk.f32.gmra.mxu1 %vm104_vm0, %v8363_v52  ;;  %v11819_v52 = vpop.f32.mrf.mxu3 }
 0x4ae   :  { %16304 = vst [vmem:[#allocation140_spill] sm:$0xff] %v11819_v52  ;;  %v8472_v52 = vld [vmem:[%s16063_s26 + $0x9b0] sm:$0xff]  ;;  %3446 = vperm.xlu1 %9246, %v3371_v1  }
 0x4af   :  { %3080 = vmatpush.msra.mxu3 %v8472_v52  ;;  %v8468_v52 = vld [vmem:[%s16063_s26 + $0x990] sm:$0xff] }
 0x4b0   :  { %v8432_v1 = vld [vmem:[%s16063_s26 + $0x870] sm:$0xff] }
 0x4b1   :  { %3081 = vmatpush.msra.mxu3 %v8470_v39  ;;  %v11873_v39 = vpop.f32.mrf.mxu2 }
 0x4b2   :  { %v11821_v59 = vpop.f32.mrf.mxu0  ;;  %v11823_v32 = vpop.f32.mrf.mxu1  ;;  %16305 = vst [vmem:[#allocation141_spill] sm:$0xff] %v11873_v39  ;;  %v8366_v39 = vld [vmem:[%s16062_s22 + $0x2f8] sm:$0xff] }
 0x4b3   :  { %3082 = vmatpush.msra.mxu3 %v8468_v52  ;;  %v3372_v52 = vld [vmem:[%s15997_s3 + $0x70] sm:$0xff] }
 0x4b4   :  { %3451 = vperm.xlu0 %9245, %v3372_v52   ;;  %v8424_v52 = vld [vmem:[%s16063_s26 + $0x830] sm:$0xff] }
 0x4b5   :  { %8385 = vmatmul.msk.f32.gmra.mxu0 %vm104_vm0, %v8364_v4  ;;  %8406 = vmatmul.msk.f32.gmra.mxu1 %vm104_vm0, %v8364_v4  ;;  %v8436_v4 = vld [vmem:[%s16063_s26 + $0x890] sm:$0xff]  ;;  %v11875_v38 = vpop.f32.mrf.mxu3 }
 0x4b6   :  { %3002 = vmatpush.msra.mxu2 %v8436_v4  ;;  %16306 = vst [vmem:[#allocation142_spill] sm:$0xff] %v11875_v38  ;;  %3083 = vmatpush.msra.mxu3 %v8466_v33  ;;  %v8464_v4 = vld [vmem:[%s16063_s26 + $0x970] sm:$0xff]  ;;  %v3370_v33 = vld [vmem:[%s15997_s3 + $0x60] sm:$0xff] }
 0x4b7   :  { %3441 = vperm.xlu1 %9246, %v3370_v33  }
 0x4b8   :  { %3003 = vmatpush.msra.mxu2 %v8434_v44  ;;  %3084 = vmatpush.msra.mxu3 %v8464_v4  ;;  %v8430_v44 = vld [vmem:[%s16063_s26 + $0x860] sm:$0xff] }
 0x4b9   :  { %v11922_v33 = vpop.f32.mrf.mxu2 }
 0x4ba   :  { %v11860_v9 = vpop.f32.mrf.mxu0  ;;  %v11862_v18 = vpop.f32.mrf.mxu1  ;;  %3004 = vmatpush.msra.mxu2 %v8432_v1  ;;  %v8460_v1 = vld [vmem:[%s16063_s26 + $0x950] sm:$0xff]  ;;  %3085 = vmatpush.msra.mxu3 %v8462_v47  ;;  %16309 = vst [vmem:[#allocation145_spill] sm:$0xff] %v11922_v33  ;;  %v8367_v33 = vld [vmem:[%s16062_s22 + $0x300] sm:$0xff] }
 0x4bb   :  { %v8456_v47 = vld [vmem:[%s16063_s26 + $0x930] sm:$0xff] }
 0x4bc   :  { %3005 = vmatpush.msra.mxu2 %v8430_v44  ;;  %3086 = vmatpush.msra.mxu3 %v8460_v1  ;;  %v8458_v44 = vld [vmem:[%s16063_s26 + $0x940] sm:$0xff] }
 0x4bd   :  { %8386 = vmatmul.msk.f32.gmra.mxu0 %vm104_vm0, %v8365_v34  ;;  %8407 = vmatmul.msk.f32.gmra.mxu1 %vm104_vm0, %v8365_v34  ;;  %v8428_v34 = vld [vmem:[%s16063_s26 + $0x850] sm:$0xff]  ;;  %v8454_v1 = vld [vmem:[%s16063_s26 + $0x920] sm:$0xff] }
 0x4be   :  { %3006 = vmatpush.msra.mxu2 %v8428_v34  ;;  %3087 = vmatpush.msra.mxu3 %v8458_v44  ;;  %v11924_v34 = vpop.f32.mrf.mxu3  ;;  %v3368_v44 = vld [vmem:[%s15997_s3 + $0x50] sm:$0xff] }
 0x4bf   :  { %16310 = vst [vmem:[#allocation146_spill] sm:$0xff] %v11924_v34  ;;  %3431 = vperm.xlu1 %9246, %v3368_v44  }
 0x4c0   :  { %3007 = vmatpush.msra.mxu2 %v8426_v46  ;;  %3088 = vmatpush.msra.mxu3 %v8456_v47  ;;  %v8422_v46 = vld [vmem:[%s16063_s26 + $0x820] sm:$0xff]  ;;  %v3377_v47 = vld [vmem:[%s15997_s3 + $0x98] sm:$0xff] }
 0x4c1   :  { %3476 = vperm.xlu0 %9245, %v3377_v47   ;;  %v11967_v44 = vpop.f32.mrf.mxu2  ;;  %v3367_v47 = vld [vmem:[%s15997_s3 + $0x48] sm:$0xff] }
 0x4c2   :  { %v11903_v4 = vpop.f32.mrf.mxu0  ;;  %v11905_v38 = vpop.f32.mrf.mxu1  ;;  %3008 = vmatpush.msra.mxu2 %v8424_v52  ;;  %v8452_v52 = vld [vmem:[%s16063_s26 + $0x910] sm:$0xff]  ;;  %3089 = vmatpush.msra.mxu3 %v8454_v1  ;;  %v8450_v1 = vld [vmem:[%s16063_s26 + $0x900] sm:$0xff]  ;;  %16313 = vst [vmem:[#allocation149_spill] sm:$0xff] %v11967_v44  ;;  %v8479_v44 = vld [vmem:[%s16063_s26 + $0x9e8] sm:$0xff] }
 0x4c3   :  { %16307 = vst [vmem:[#allocation143_spill] sm:$0xff] %v11903_v4 }
 0x4c4   :  { %16308 = vst [vmem:[#allocation144_spill] sm:$0xff] %v11905_v38  ;;  %v3378_v38 = vld [vmem:[%s15997_s3 + $0xa0] sm:$0xff]  ;;  %3009 = vmatpush.msra.mxu2 %v8422_v46  ;;  %3090 = vmatpush.msra.mxu3 %v8452_v52  ;;  %v3369_v52 = vld [vmem:[%s15997_s3 + $0x58] sm:$0xff] }
 0x4c5   :  { %8387 = vmatmul.msk.f32.gmra.mxu0 %vm104_vm0, %v8366_v39  ;;  %8408 = vmatmul.msk.f32.gmra.mxu1 %vm104_vm0, %v8366_v39  ;;  %v8420_v39 = vld [vmem:[%s16063_s26 + $0x810] sm:$0xff]  ;;  %v8418_v46 = vld [vmem:[%s16063_s26 + $0x800] sm:$0xff] }
 0x4c6   :  { %3481 = vperm.xlu2 %9247, %v3378_v38   ;;  %3010 = vmatpush.msra.mxu2 %v8420_v39  ;;  %v3375_v38 = vld [vmem:[%s15997_s3 + $0x88] sm:$0xff]  ;;  %v11969_v39 = vpop.f32.mrf.mxu3 }
 0x4c7   :  { %3091 = vmatpush.msra.mxu3 %v8450_v1  ;;  %16314 = vst [vmem:[#allocation150_spill] sm:$0xff] %v11969_v39  ;;  %3466 = vperm.xlu1 %9246, %v3375_v38   ;;  %v8368_v1 = vld [vmem:[%s16062_s22 + $0x308] sm:$0xff]  ;;  %v8449_v39 = vld [vmem:[%s16063_s26 + $0x8f8] sm:$0xff] }
 0x4c8   :  { %3011 = vmatpush.msra.mxu2 %v8418_v46  ;;  %v8481_v38 = vld [vmem:[%s16063_s26 + $0x9f8] sm:$0xff]  ;;  %3156 = vmatpush.msrb.mxu0 %v8449_v39 }
 0x4c9   :  { %3426 = vperm.xlu0 %9245, %v3367_v47   ;;  %3236 = vmatpush.msrb.mxu1 %v8481_v38  ;;  %v3376_v47 = vld [vmem:[%s15997_s3 + $0x90] sm:$0xff] }
 0x4ca   :  { %v11949_v4 = vpop.f32.mrf.mxu0  ;;  %v11951_v34 = vpop.f32.mrf.mxu1 }
 0x4cb   :  { %16311 = vst [vmem:[#allocation147_spill] sm:$0xff] %v11949_v4  ;;  %v12007_v4 = vpop.f32.mrf.mxu2  ;;  %3237 = vmatpush.msrb.mxu1 %v8479_v44  ;;  %v3362_v44 = vld [vmem:[%s15997_s3 + $0x20] sm:$0xff] }
 0x4cc   :  { %16312 = vst [vmem:[#allocation148_spill] sm:$0xff] %v11951_v34  ;;  %v3374_v34 = vld [vmem:[%s15997_s3 + $0x80] sm:$0xff] }
 0x4cd   :  { %8388 = vmatmul.msk.f32.gmra.mxu0 %vm104_vm0, %v8367_v33  ;;  %8409 = vmatmul.msk.f32.gmra.mxu1 %vm104_vm0, %v8367_v33  ;;  %16317 = vst [vmem:[#allocation153_spill] sm:$0xff] %v12007_v4 }
 0x4ce   :  { %3436 = vperm.xlu2 %9247, %v3369_v52   ;;  %v3365_v52 = vld [vmem:[%s15997_s3 + $0x38] sm:$0xff]  ;;  %v12009_v39 = vpop.f32.mrf.mxu3 }
 0x4cf   :  { %16318 = vst [vmem:[#allocation154_spill] sm:$0xff] %v12009_v39  ;;  %3416 = vperm.xlu1 %9246, %v3365_v52   ;;  %v8477_v39 = vld [vmem:[%s16063_s26 + $0x9d8] sm:$0xff]  ;;  %v8443_v52 = vld [vmem:[%s16063_s26 + $0x8c8] sm:$0xff] }
 0x4d0   :  { %3238 = vmatpush.msrb.mxu1 %v8477_v39  ;;  %v8471_v39 = vld [vmem:[%s16063_s26 + $0x9a8] sm:$0xff] }
 0x4d1   :  { %3461 = vperm.xlu0 %9245, %v3374_v34   ;;  %v8441_v34 = vld [vmem:[%s16063_s26 + $0x8b8] sm:$0xff] }
 0x4d2   :  { %v11977_v46 = vpop.f32.mrf.mxu0  ;;  %v11979_v33 = vpop.f32.mrf.mxu1 }
 0x4d3   :  { %16315 = vst [vmem:[#allocation151_spill] sm:$0xff] %v11977_v46  ;;  %v8369_v46 = vld [vmem:[%s16062_s22 + $0x310] sm:$0xff] }
 0x4d4   :  { %16316 = vst [vmem:[#allocation152_spill] sm:$0xff] %v11979_v33 }
 0x4d5   :  { %8389 = vmatmul.msk.f32.gmra.mxu0 %vm104_vm0, %v8368_v1  ;;  %8410 = vmatmul.msk.f32.gmra.mxu1 %vm104_vm0, %v8368_v1  ;;  %v8447_v1 = vld [vmem:[%s16063_s26 + $0x8e8] sm:$0xff] }
 0x4d6   :  { %3471 = vperm.xlu2 %9247, %v3376_v47   ;;  %3157 = vmatpush.msrb.mxu0 %v8447_v1  ;;  %v8475_v47 = vld [vmem:[%s16063_s26 + $0x9c8] sm:$0xff]  ;;  %v3366_v1 = vld [vmem:[%s15997_s3 + $0x40] sm:$0xff] }
 0x4d7   :  { %3239 = vmatpush.msrb.mxu1 %v8475_v47  ;;  %3401 = vperm.xlu1 %9246, %v3362_v44   ;;  %v12068_v44 = vpop.f32.mrf.mxu3 }
 0x4d8   :  { %3158 = vmatpush.msrb.mxu0 %v8445_v3  ;;  %v8473_v3 = vld [vmem:[%s16063_s26 + $0x9b8] sm:$0xff]  ;;  %16324 = vst [vmem:[#allocation160_spill] sm:$0xff] %v12068_v44 }
 0x4d9   :  { %3240 = vmatpush.msrb.mxu1 %v8473_v3  ;;  %v8469_v3 = vld [vmem:[%s16063_s26 + $0x998] sm:$0xff] }
 0x4da   :  { %v12011_v38 = vpop.f32.mrf.mxu0  ;;  %v12013_v33 = vpop.f32.mrf.mxu1  ;;  %3159 = vmatpush.msrb.mxu0 %v8443_v52  ;;  %v3363_v52 = vld [vmem:[%s15997_s3 + $0x28] sm:$0xff] }
 0x4db   :  { %16319 = vst [vmem:[#allocation155_spill] sm:$0xff] %v12011_v38  ;;  %v8370_v38 = vld [vmem:[%s16062_s22 + $0x318] sm:$0xff]  ;;  %3241 = vmatpush.msrb.mxu1 %v8471_v39  ;;  %3406 = vperm.xlu0 %9245, %v3363_v52   ;;  %v8467_v39 = vld [vmem:[%s16063_s26 + $0x988] sm:$0xff] }
 0x4dc   :  { %16320 = vst [vmem:[#allocation156_spill] sm:$0xff] %v12013_v33  ;;  %3160 = vmatpush.msrb.mxu0 %v8441_v34  ;;  %v8437_v34 = vld [vmem:[%s16063_s26 + $0x898] sm:$0xff] }
 0x4dd   :  { %8390 = vmatmul.msk.f32.gmra.mxu0 %vm104_vm0, %v8369_v46  ;;  %8411 = vmatmul.msk.f32.gmra.mxu1 %vm104_vm0, %v8369_v46  ;;  %v8439_v46 = vld [vmem:[%s16063_s26 + $0x8a8] sm:$0xff]  ;;  %v8433_v52 = vld [vmem:[%s16063_s26 + $0x878] sm:$0xff] }
 0x4de   :  { %3421 = vperm.xlu2 %9247, %v3366_v1   ;;  %3161 = vmatpush.msrb.mxu0 %v8439_v46  ;;  %v12066_v1 = vpop.f32.mrf.mxu2  ;;  %v8435_v46 = vld [vmem:[%s16063_s26 + $0x888] sm:$0xff] }
 0x4df   :  { %16323 = vst [vmem:[#allocation159_spill] sm:$0xff] %v12066_v1  ;;  %3242 = vmatpush.msrb.mxu1 %v8469_v3  ;;  %v3359_v3 = vld [vmem:[%s15997_s3 + $0x8] sm:$0xff]  ;;  %v8371_v1 = vld [vmem:[%s16062_s22 + $0x320] sm:$0xff] }
 0x4e0   :  { %3162 = vmatpush.msrb.mxu0 %v8437_v34  ;;  %v8465_v34 = vld [vmem:[%s16063_s26 + $0x978] sm:$0xff]  ;;  %3386 = vperm.xlu1 %9246, %v3359_v3  }
 0x4e1   :  { %3243 = vmatpush.msrb.mxu1 %v8467_v39  ;;  %v3360_v39 = vld [vmem:[%s15997_s3 + $0x10] sm:$0xff] }
 0x4e2   :  { %v12053_v47 = vpop.f32.mrf.mxu0  ;;  %v12055_v33 = vpop.f32.mrf.mxu1  ;;  %3163 = vmatpush.msrb.mxu0 %v8435_v46  ;;  %v8463_v46 = vld [vmem:[%s16063_s26 + $0x968] sm:$0xff] }
 0x4e3   :  { %16321 = vst [vmem:[#allocation157_spill] sm:$0xff] %v12053_v47  ;;  %3244 = vmatpush.msrb.mxu1 %v8465_v34  ;;  %3391 = vperm.xlu0 %9245, %v3360_v39   ;;  %v8427_v34 = vld [vmem:[%s16063_s26 + $0x848] sm:$0xff]  ;;  %v8425_v39 = vld [vmem:[%s16063_s26 + $0x838] sm:$0xff] }
 0x4e4   :  { %16322 = vst [vmem:[#allocation158_spill] sm:$0xff] %v12055_v33  ;;  %v3364_v33 = vld [vmem:[%s15997_s3 + $0x30] sm:$0xff]  ;;  %3164 = vmatpush.msrb.mxu0 %v8433_v52  ;;  %v8429_v52 = vld [vmem:[%s16063_s26 + $0x858] sm:$0xff] }
 0x4e5   :  { %8391 = vmatmul.msk.f32.gmra.mxu0 %vm104_vm0, %v8370_v38  ;;  %8412 = vmatmul.msk.f32.gmra.mxu1 %vm104_vm0, %v8370_v38  ;;  %v8431_v38 = vld [vmem:[%s16063_s26 + $0x868] sm:$0xff] }
 0x4e6   :  { %3411 = vperm.xlu2 %9247, %v3364_v33   ;;  %3165 = vmatpush.msrb.mxu0 %v8431_v38  ;;  %v8461_v33 = vld [vmem:[%s16063_s26 + $0x958] sm:$0xff]  ;;  %v12117_v3 = vpop.f32.mrf.mxu2  ;;  %v12119_v38 = vpop.f32.mrf.mxu3 }
 0x4e7   :  { %3245 = vmatpush.msrb.mxu1 %v8463_v46  ;;  %16325 = vst [vmem:[#allocation161_spill] sm:$0xff] %v12117_v3  ;;  %v8459_v46 = vld [vmem:[%s16063_s26 + $0x948] sm:$0xff]  ;;  %v6032_v3 = vld [vmem:[%s15998_s8 + $0x78] sm:$0xff] }
 0x4e8   :  { %3166 = vmatpush.msrb.mxu0 %v8429_v52  ;;  %16326 = vst [vmem:[#allocation162_spill] sm:$0xff] %v12119_v38  ;;  %v6031_v52 = vld [vmem:[%s15998_s8 + $0x70] sm:$0xff]  ;;  %v8457_v38 = vld [vmem:[%s16063_s26 + $0x938] sm:$0xff] }
 0x4e9   :  { %3246 = vmatpush.msrb.mxu1 %v8461_v33  ;;  %v8423_v33 = vld [vmem:[%s16063_s26 + $0x828] sm:$0xff]  ;;  %6109 = vperm.xlu1 %9246, %v6031_v52  }
 0x4ea   :  { %v12099_v47 = vpop.f32.mrf.mxu0  ;;  %v12101_v44 = vpop.f32.mrf.mxu1  ;;  %3167 = vmatpush.msrb.mxu0 %v8427_v34  ;;  %v8455_v34 = vld [vmem:[%s16063_s26 + $0x928] sm:$0xff] }
 0x4eb   :  { %3012 = vmatmul.f32.vlgmr.msra.gmra.mxu2 %v12099_v47  ;;  %3092 = vmatmul.f32.vlgmr.msra.gmra.mxu3 %v12101_v44  ;;  %v8451_v52 = vld [vmem:[%s16063_s26 + $0x908] sm:$0xff] }
 0x4ec   :  { %3247 = vmatpush.msrb.mxu1 %v8459_v46  ;;  %3168 = vmatpush.msrb.mxu0 %v8425_v39  ;;  %v8421_v46 = vld [vmem:[%s16063_s26 + $0x818] sm:$0xff] }
 0x4ed   :  { %8392 = vmatmul.msk.f32.gmra.mxu0 %vm104_vm0, %v8371_v1  ;;  %8413 = vmatmul.msk.f32.gmra.mxu1 %vm104_vm0, %v8371_v1  ;;  %v3361_v1 = vld [vmem:[%s15997_s3 + $0x18] sm:$0xff] }
 0x4ee   :  { %3396 = vperm.xlu2 %9247, %v3361_v1   ;;  %3248 = vmatpush.msrb.mxu1 %v8457_v38  ;;  %v8453_v39 = vld [vmem:[%s16063_s26 + $0x918] sm:$0xff]  ;;  %v8419_v38 = vld [vmem:[%s16063_s26 + $0x808] sm:$0xff]  ;;  %v3358_v1 = vld [vmem:[%s15997_s3] sm:$0xff] }
 0x4ef   :  { %3169 = vmatpush.msrb.mxu0 %v8423_v33  ;;  %6114 = vperm.xlu0 %9245, %v6032_v3   ;;  %v6028_v3 = vld [vmem:[%s15998_s8 + $0x58] sm:$0xff]  ;;  %v12176_v33 = vpop.f32.mrf.mxu2 }
 0x4f0   :  { %3249 = vmatpush.msrb.mxu1 %v8455_v34  ;;  %16327 = vst [vmem:[#allocation163_spill] sm:$0xff] %v12176_v33  ;;  %v6029_v34 = vld [vmem:[%s15998_s8 + $0x60] sm:$0xff] }
 0x4f1   :  { %3170 = vmatpush.msrb.mxu0 %v8421_v46  ;;  %6094 = vperm.xlu1 %9246, %v6028_v3   ;;  %v6026_v3 = vld [vmem:[%s15998_s8 + $0x48] sm:$0xff] }
 0x4f2   :  { %v12147_v4 = vpop.f32.mrf.mxu0  ;;  %v12149_v43 = vpop.f32.mrf.mxu1  ;;  %3250 = vmatpush.msrb.mxu1 %v8453_v39 }
 0x4f3   :  { %3015 = vmatmul.f32.gmra.mxu2 %v12147_v4  ;;  %3095 = vmatmul.f32.gmra.mxu3 %v12149_v43 }
 0x4f4   :  { %3171 = vmatpush.msrb.mxu0 %v8419_v38  ;;  %3251 = vmatpush.msrb.mxu1 %v8451_v52  ;;  %v6025_v38 = vld [vmem:[%s15998_s8 + $0x40] sm:$0xff] }
 0x4f5   :  { %8393 = vmatmul.msk.f32.gmra.mxu0 %vm104_vm0, %v8372_v6  ;;  %8414 = vmatmul.msk.f32.gmra.mxu1 %vm104_vm0, %v8372_v6  ;;  %v12178_v6 = vpop.f32.mrf.mxu3 }
 0x4f6   :  { %16328 = vst [vmem:[#allocation164_spill] sm:$0xff] %v12178_v6  ;;  %3381 = vperm.xlu2 %9247, %v3358_v1  }
 0x4f7   :  { %6099 = vperm.xlu0 %9245, %v6029_v34   ;;  %v12197_v52 = vpop.f32.mrf.mxu2 }
 0x4f8   :  { %16329 = vst [vmem:[#allocation165_spill] sm:$0xff] %v12197_v52  ;;  %v6023_v52 = vld [vmem:[%s15998_s8 + $0x30] sm:$0xff] }
 0x4f9   :  { %6079 = vperm.xlu1 %9246, %v6025_v38   ;;  %v6022_v38 = vld [vmem:[%s15998_s8 + $0x28] sm:$0xff] }
 0x4fa   :  { %v12183_v46 = vpop.f32.mrf.mxu0  ;;  %v12185_v39 = vpop.f32.mrf.mxu1 }
 0x4fb   :  { %3018 = vmatmul.f32.gmra.mxu2 %v12183_v46  ;;  %3098 = vmatmul.f32.gmra.mxu3 %v12185_v39 }
 0x4fd   :  { %8394 = vmatmul.msk.f32.gmra.mxu0 %vm104_vm0, %v8373_v27  ;;  %8415 = vmatmul.msk.f32.gmra.mxu1 %vm104_vm0, %v8373_v27  ;;  %v12199_v1 = vpop.f32.mrf.mxu3  ;;  %v8374_v27 = vld [vmem:[%s16062_s22 + $0x338] sm:$0xff] }
 0x4fe   :  { %16330 = vst [vmem:[#allocation166_spill] sm:$0xff] %v12199_v1  ;;  %v6030_v1 = vld [vmem:[%s15998_s8 + $0x68] sm:$0xff] }
 0x4ff   :  { %6084 = vperm.xlu0 %9245, %v6026_v3   ;;  %6104 = vperm.xlu2 %9247, %v6030_v1   ;;  %v12231_v61 = vpop.f32.mrf.mxu2  ;;  %v6036_v1 = vld [vmem:[%s15998_s8 + $0x98] sm:$0xff] }
 0x500   :  { %16331 = vst [vmem:[#allocation167_spill] sm:$0xff] %v12231_v61 }
 0x501   :  { %6064 = vperm.xlu1 %9246, %v6022_v38   ;;  %v6027_v38 = vld [vmem:[%s15998_s8 + $0x50] sm:$0xff] }
 0x502   :  { %v12204_v6 = vpop.f32.mrf.mxu0  ;;  %v12206_v34 = vpop.f32.mrf.mxu1 }
 0x503   :  { %3021 = vmatmul.f32.gmra.mxu2 %v12204_v6  ;;  %3101 = vmatmul.f32.gmra.mxu3 %v12206_v34 }
 0x505   :  { %8395 = vmatmul.msk.f32.gmra.mxu0 %vm104_vm0, %v8374_v27  ;;  %8416 = vmatmul.msk.f32.gmra.mxu1 %vm104_vm0, %v8374_v27  ;;  %v8375_v27 = vld [vmem:[%s16062_s22 + $0x340] sm:$0xff]  ;;  %v12233_v41 = vpop.f32.mrf.mxu3 }
 0x506   :  { %16332 = vst [vmem:[#allocation168_spill] sm:$0xff] %v12233_v41  ;;  %v6020_v41 = vld [vmem:[%s15998_s8 + $0x18] sm:$0xff] }
 0x507   :  { %6069 = vperm.xlu0 %9245, %v6023_v52   ;;  %6089 = vperm.xlu2 %9247, %v6027_v38   ;;  %v6024_v38 = vld [vmem:[%s15998_s8 + $0x38] sm:$0xff] }
 0x509   :  { %6134 = vperm.xlu1 %9246, %v6036_v1   ;;  %v6018_v1 = vld [vmem:[%s15998_s8 + $0x8] sm:$0xff] }
 0x50a   :  { %v12224_v33 = vpop.f32.mrf.mxu0  ;;  %v12226_v3 = vpop.f32.mrf.mxu1 }
 0x50b   :  { %3024 = vmatmul.f32.gmra.mxu2 %v12224_v33  ;;  %3104 = vmatmul.f32.gmra.mxu3 %v12226_v3 }
 0x50d   :  { %8396 = vmatmul.msk.f32.gmra.mxu0 %vm104_vm0, %v8375_v27  ;;  %8417 = vmatmul.msk.f32.gmra.mxu1 %vm104_vm0, %v8375_v27  ;;  %v12254_v27 = vpop.f32.mrf.mxu2  ;;  %v12256_v23 = vpop.f32.mrf.mxu3 }
 0x50e   :  { %16333 = vst [vmem:[#allocation169_spill] sm:$0xff] %v12254_v27 }
 0x50f   :  { %6054 = vperm.xlu0 %9245, %v6020_v41   ;;  %16334 = vst [vmem:[#allocation170_spill] sm:$0xff] %v12256_v23  ;;  %v6035_v41 = vld [vmem:[%s15998_s8 + $0x90] sm:$0xff]  ;;  %6074 = vperm.xlu2 %9247, %v6024_v38   ;;  %v6021_v38 = vld [vmem:[%s15998_s8 + $0x20] sm:$0xff] }
 0x511   :  { %6044 = vperm.xlu1 %9246, %v6018_v1  }
 0x512   :  { %v12248_v61 = vpop.f32.mrf.mxu0  ;;  %v12250_v52 = vpop.f32.mrf.mxu1 }
 0x513   :  { %3027 = vmatmul.f32.gmra.mxu2 %v12248_v61  ;;  %3107 = vmatmul.f32.gmra.mxu3 %v12250_v52 }
 0x515   :  { %3172 = vmatmul.f32.vlgmr.msrb.gmra.mxu0 %v12099_v47  ;;  %3252 = vmatmul.f32.vlgmr.msrb.gmra.mxu1 %v12101_v44  ;;  %v6033_v47 = vld [vmem:[%s15998_s8 + $0x80] sm:$0xff]  ;;  %v12280_v44 = vpop.f32.mrf.mxu2  ;;  %v12282_v1 = vpop.f32.mrf.mxu3 }
 0x516   :  { %16335 = vst [vmem:[#allocation171_spill] sm:$0xff] %v12280_v44 }
 0x517   :  { %6129 = vperm.xlu0 %9245, %v6035_v41   ;;  %16336 = vst [vmem:[#allocation172_spill] sm:$0xff] %v12282_v1  ;;  %v6017_v41 = vld [vmem:[%s15998_s8] sm:$0xff]  ;;  %6059 = vperm.xlu2 %9247, %v6021_v38  }
 0x518   :  { %v7598_v1 = vld [vmem:[%s15999_s13 + $0x60] sm:$0xff] }
 0x519   :  { %6119 = vperm.xlu1 %9246, %v6033_v47   ;;  %v6019_v47 = vld [vmem:[%s15998_s8 + $0x10] sm:$0xff] }
 0x51a   :  { %v12269_v27 = vpop.f32.mrf.mxu0  ;;  %v12271_v23 = vpop.f32.mrf.mxu1 }
 0x51b   :  { %3030 = vmatmul.f32.gmra.mxu2 %v12269_v27  ;;  %3110 = vmatmul.f32.gmra.mxu3 %v12271_v23 }
 0x51d   :  { %3175 = vmatmul.f32.gmra.mxu0 %v12147_v4  ;;  %3255 = vmatmul.f32.gmra.mxu1 %v12149_v43  ;;  %v12304_v38 = vpop.f32.mrf.mxu2  ;;  %v12306_v44 = vpop.f32.mrf.mxu3 }
 0x51e   :  { %16337 = vst [vmem:[#allocation173_spill] sm:$0xff] %v12304_v38 }
 0x51f   :  { %6039 = vperm.xlu0 %9245, %v6017_v41   ;;  %16338 = vst [vmem:[#allocation174_spill] sm:$0xff] %v12306_v44  ;;  %v7599_v41 = vld [vmem:[%s15999_s13 + $0x68] sm:$0xff]  ;;  %6049 = vperm.xlu2 %9247, %v6019_v47   ;;  %v7596_v47 = vld [vmem:[%s15999_s13 + $0x50] sm:$0xff] }
 0x520   :  { %v7595_v44 = vld [vmem:[%s15999_s13 + $0x48] sm:$0xff] }
 0x521   :  { %7663 = vperm.xlu1 %9246, %v7598_v1   ;;  %v6034_v1 = vld [vmem:[%s15998_s8 + $0x88] sm:$0xff] }
 0x522   :  { %v12290_v4 = vpop.f32.mrf.mxu0  ;;  %v12292_v43 = vpop.f32.mrf.mxu1 }
 0x523   :  { %3033 = vmatmul.f32.gmra.mxu2 %v12290_v4  ;;  %3113 = vmatmul.f32.gmra.mxu3 %v12292_v43 }
 0x525   :  { %3178 = vmatmul.f32.gmra.mxu0 %v12183_v46  ;;  %3258 = vmatmul.f32.gmra.mxu1 %v12185_v39 }
 0x527   :  { %7668 = vperm.xlu0 %9245, %v7599_v41   ;;  %6124 = vperm.xlu2 %9247, %v6034_v1   ;;  %v7600_v1 = vld [vmem:[%s15999_s13 + $0x70] sm:$0xff] }
 0x529   :  { %7648 = vperm.xlu1 %9246, %v7595_v44   ;;  %v7592_v44 = vld [vmem:[%s15999_s13 + $0x30] sm:$0xff] }
 0x52a   :  { %v12311_v46 = vpop.f32.mrf.mxu0  ;;  %v12313_v39 = vpop.f32.mrf.mxu1 }
 0x52b   :  { %3036 = vmatmul.f32.gmra.mxu2 %v12311_v46  ;;  %3116 = vmatmul.f32.gmra.mxu3 %v12313_v39 }
 0x52d   :  { %3181 = vmatmul.f32.gmra.mxu0 %v12204_v6  ;;  %3261 = vmatmul.f32.gmra.mxu1 %v12206_v34  ;;  %v12332_v6 = vpop.f32.mrf.mxu2  ;;  %v12334_v34 = vpop.f32.mrf.mxu3 }
 0x52e   :  { %16339 = vst [vmem:[#allocation175_spill] sm:$0xff] %v12332_v6 }
 0x52f   :  { %16340 = vst [vmem:[#allocation176_spill] sm:$0xff] %v12334_v34  ;;  %7653 = vperm.xlu0 %9245, %v7596_v47   ;;  %v7593_v34 = vld [vmem:[%s15999_s13 + $0x38] sm:$0xff]  ;;  %7673 = vperm.xlu2 %9247, %v7600_v1  }
 0x530   :  { %v7597_v1 = vld [vmem:[%s15999_s13 + $0x58] sm:$0xff] }
 0x531   :  { %7633 = vperm.xlu1 %9246, %v7592_v44   ;;  %v7589_v44 = vld [vmem:[%s15999_s13 + $0x18] sm:$0xff] }
 0x532   :  { %v12328_v38 = vpop.f32.mrf.mxu0  ;;  %v12330_v41 = vpop.f32.mrf.mxu1 }
 0x533   :  { %3039 = vmatmul.f32.gmra.mxu2 %v12328_v38  ;;  %3119 = vmatmul.f32.gmra.mxu3 %v12330_v41 }
 0x535   :  { %3184 = vmatmul.f32.gmra.mxu0 %v12224_v33  ;;  %3264 = vmatmul.f32.gmra.mxu1 %v12226_v3  ;;  %v12355_v33 = vpop.f32.mrf.mxu2  ;;  %v12357_v3 = vpop.f32.mrf.mxu3 }
 0x536   :  { %16341 = vst [vmem:[#allocation177_spill] sm:$0xff] %v12355_v33 }
 0x537   :  { %7638 = vperm.xlu0 %9245, %v7593_v34   ;;  %16342 = vst [vmem:[#allocation178_spill] sm:$0xff] %v12357_v3  ;;  %v7590_v34 = vld [vmem:[%s15999_s13 + $0x20] sm:$0xff]  ;;  %7658 = vperm.xlu2 %9247, %v7597_v1  }
 0x538   :  { %v7594_v1 = vld [vmem:[%s15999_s13 + $0x40] sm:$0xff] }
 0x539   :  { %7618 = vperm.xlu1 %9246, %v7589_v44  }
 0x53a   :  { %v12349_v6 = vpop.f32.mrf.mxu0  ;;  %v12351_v47 = vpop.f32.mrf.mxu1 }
 0x53b   :  { %3042 = vmatmul.f32.gmra.mxu2 %v12349_v6  ;;  %3122 = vmatmul.f32.gmra.mxu3 %v12351_v47 }
 0x53d   :  { %3187 = vmatmul.f32.gmra.mxu0 %v12248_v61  ;;  %3267 = vmatmul.f32.gmra.mxu1 %v12250_v52  ;;  %v7586_v61 = vld [vmem:[%s15999_s13] sm:$0xff]  ;;  %v12381_v52 = vpop.f32.mrf.mxu2  ;;  %v12383_v44 = vpop.f32.mrf.mxu3 }
 0x53e   :  { %16343 = vst [vmem:[#allocation179_spill] sm:$0xff] %v12381_v52 }
 0x53f   :  { %7623 = vperm.xlu0 %9245, %v7590_v34   ;;  %16344 = vst [vmem:[#allocation180_spill] sm:$0xff] %v12383_v44  ;;  %v7587_v34 = vld [vmem:[%s15999_s13 + $0x8] sm:$0xff]  ;;  %7643 = vperm.xlu2 %9247, %v7594_v1   ;;  %v7725_v44 = vld [vmem:[%s16000_s15 + $0x40] sm:$0xff] }
 0x541   :  { %7603 = vperm.xlu1 %9246, %v7586_v61   ;;  %v7591_v61 = vld [vmem:[%s15999_s13 + $0x28] sm:$0xff] }
 0x542   :  { %v12370_v33 = vpop.f32.mrf.mxu0  ;;  %v12372_v3 = vpop.f32.mrf.mxu1 }
 0x543   :  { %3045 = vmatmul.f32.gmra.mxu2 %v12370_v33  ;;  %3125 = vmatmul.f32.gmra.mxu3 %v12372_v3 }
 0x545   :  { %3190 = vmatmul.f32.gmra.mxu0 %v12269_v27  ;;  %3270 = vmatmul.f32.gmra.mxu1 %v12271_v23  ;;  %v12405_v1 = vpop.f32.mrf.mxu2  ;;  %v12407_v52 = vpop.f32.mrf.mxu3 }
 0x546   :  { %16345 = vst [vmem:[#allocation181_spill] sm:$0xff] %v12405_v1 }
 0x547   :  { %7608 = vperm.xlu0 %9245, %v7587_v34   ;;  %16346 = vst [vmem:[#allocation182_spill] sm:$0xff] %v12407_v52  ;;  %v7726_v34 = vld [vmem:[%s16000_s15 + $0x48] sm:$0xff]  ;;  %7628 = vperm.xlu2 %9247, %v7591_v61   ;;  %v7723_v61 = vld [vmem:[%s16000_s15 + $0x30] sm:$0xff] }
 0x548   :  { %v7722_v52 = vld [vmem:[%s16000_s15 + $0x28] sm:$0xff] }
 0x549   :  { %7770 = vperm.xlu1 %9246, %v7725_v44   ;;  %v7588_v44 = vld [vmem:[%s15999_s13 + $0x10] sm:$0xff] }
 0x54a   :  { %v12391_v27 = vpop.f32.mrf.mxu0  ;;  %v12393_v23 = vpop.f32.mrf.mxu1 }
 0x54b   :  { %3048 = vmatmul.f32.gmra.mxu2 %v12391_v27  ;;  %3128 = vmatmul.f32.gmra.mxu3 %v12393_v23 }
 0x54d   :  { %3193 = vmatmul.f32.gmra.mxu0 %v12290_v4  ;;  %3273 = vmatmul.f32.gmra.mxu1 %v12292_v43 }
 0x54f   :  { %7775 = vperm.xlu0 %9245, %v7726_v34   ;;  %7613 = vperm.xlu2 %9247, %v7588_v44   ;;  %v7727_v44 = vld [vmem:[%s16000_s15 + $0x50] sm:$0xf] }
 0x551   :  { %7755 = vperm.xlu1 %9246, %v7722_v52   ;;  %v7719_v52 = vld [vmem:[%s16000_s15 + $0x10] sm:$0xff] }
 0x552   :  { %v12412_v4 = vpop.f32.mrf.mxu0  ;;  %v12414_v43 = vpop.f32.mrf.mxu1 }
 0x553   :  { %3051 = vmatmul.f32.gmra.mxu2 %v12412_v4  ;;  %3131 = vmatmul.f32.gmra.mxu3 %v12414_v43 }
 0x555   :  { %3196 = vmatmul.f32.gmra.mxu0 %v12311_v46  ;;  %3276 = vmatmul.f32.gmra.mxu1 %v12313_v39  ;;  %v12435_v46 = vpop.f32.mrf.mxu2  ;;  %v12437_v39 = vpop.f32.mrf.mxu3 }
 0x556   :  { %16347 = vst [vmem:[#allocation183_spill] sm:$0xff] %v12435_v46  ;;  %v7880_v46 = vld [vmem:[%s16001_s17] sm:$0xff] }
 0x557   :  { %16348 = vst [vmem:[#allocation184_spill] sm:$0xff] %v12437_v39  ;;  %7760 = vperm.xlu0 %9245, %v7723_v61   ;;  %7780 = vperm.xlu2 %9247, %v7727_v44  }
 0x559   :  { %7740 = vperm.xlu1 %9246, %v7719_v52   ;;  %v7724_v52 = vld [vmem:[%s16000_s15 + $0x38] sm:$0xff] }
 0x55a   :  { %v12429_v1 = vpop.f32.mrf.mxu0  ;;  %v12431_v34 = vpop.f32.mrf.mxu1 }
 0x55b   :  { %3054 = vmatmul.f32.gmra.mxu2 %v12429_v1  ;;  %3134 = vmatmul.f32.gmra.mxu3 %v12431_v34 }
 0x55d   :  { %3199 = vmatmul.f32.gmra.mxu0 %v12328_v38  ;;  %3279 = vmatmul.f32.gmra.mxu1 %v12330_v41  ;;  %v12452_v38 = vpop.f32.mrf.mxu2  ;;  %v12454_v41 = vpop.f32.mrf.mxu3 }
 0x55e   :  { %16349 = vst [vmem:[#allocation185_spill] sm:$0xff] %v12452_v38  ;;  %v7721_v38 = vld [vmem:[%s16000_s15 + $0x20] sm:$0xff] }
 0x55f   :  { %7745 = vperm.xlu0 %9245, %v7720_v57   ;;  %16350 = vst [vmem:[#allocation186_spill] sm:$0xff] %v12454_v41  ;;  %v7717_v57 = vld [vmem:[%s16000_s15] sm:$0xff]  ;;  %7765 = vperm.xlu2 %9247, %v7724_v52  }
 0x561   :  { %7884 = vperm.xlu1 %9246, %v7880_v46  }
 0x562   :  { %v2833_v39 = vpop.f32.mrf.mxu0  ;;  %v2913_v61 = vpop.f32.mrf.mxu1 }
 0x563   :  { %3057 = vmatmul.f32.gmra.mxu2 %v2833_v39  ;;  %3137 = vmatmul.f32.gmra.mxu3 %v2913_v61 }
 0x565   :  { %3202 = vmatmul.f32.gmra.mxu0 %v12349_v6  ;;  %3282 = vmatmul.f32.gmra.mxu1 %v12351_v47 }
 0x567   :  { %7730 = vperm.xlu0 %9245, %v7717_v57   ;;  %7750 = vperm.xlu2 %9247, %v7721_v38   ;;  %v7718_v57 = vld [vmem:[%s16000_s15 + $0x8] sm:$0xff] }
 0x568   :  { %v7881_v38 = vld [vmem:[%s16001_s17 + $0x8] sm:$0x3] }
 0x56a   :  { %v2836_v6 = vpop.f32.mrf.mxu0  ;;  %v2916_v47 = vpop.f32.mrf.mxu1 }
 0x56b   :  { %3060 = vmatmul.f32.gmra.mxu2 %v2836_v6  ;;  %3140 = vmatmul.f32.gmra.mxu3 %v2916_v47 }
 0x56d   :  { %3205 = vmatmul.f32.gmra.mxu0 %v12370_v33  ;;  %3285 = vmatmul.f32.gmra.mxu1 %v12372_v3 }
 0x56e   :  { %v12467_v44 = vpop.f32.mrf.mxu2  ;;  %v12469_v41 = vpop.f32.mrf.mxu3 }
 0x56f   :  { %16351 = vst [vmem:[#allocation187_spill] sm:$0xff] %v12467_v44  ;;  %7735 = vperm.xlu2 %9247, %v7718_v57  }
 0x570   :  { %16352 = vst [vmem:[#allocation188_spill] sm:$0xff] %v12469_v41 }
 0x572   :  { %v2839_v46 = vpop.f32.mrf.mxu0  ;;  %v2919_v52 = vpop.f32.mrf.mxu1 }
 0x573   :  { %3063 = vmatmul.f32.gmra.mxu2 %v2839_v46  ;;  %3143 = vmatmul.f32.gmra.mxu3 %v2919_v52 }
 0x575   :  { %3208 = vmatmul.f32.gmra.mxu0 %v12391_v27  ;;  %3288 = vmatmul.f32.gmra.mxu1 %v12393_v23 }
 0x576   :  { %v12476_v33 = vpop.f32.mrf.mxu2  ;;  %v12478_v3 = vpop.f32.mrf.mxu3 }
 0x577   :  { %16353 = vst [vmem:[#allocation189_spill] sm:$0xff] %v12476_v33  ;;  %7889 = vperm.xlu2 %9247, %v7881_v38  }
 0x578   :  { %16354 = vst [vmem:[#allocation190_spill] sm:$0xff] %v12478_v3 }
 0x57a   :  { %v2842_v41 = vpop.f32.mrf.mxu0  ;;  %v2922_v44 = vpop.f32.mrf.mxu1 }
 0x57b   :  { %3066 = vmatmul.f32.gmra.mxu2 %v2842_v41  ;;  %3146 = vmatmul.f32.gmra.mxu3 %v2922_v44 }
 0x57d   :  { %3211 = vmatmul.f32.gmra.mxu0 %v12412_v4  ;;  %3291 = vmatmul.f32.gmra.mxu1 %v12414_v43 }
 0x57e   :  { %v12485_v27 = vpop.f32.mrf.mxu2  ;;  %v12487_v23 = vpop.f32.mrf.mxu3 }
 0x57f   :  { %16355 = vst [vmem:[#allocation191_spill] sm:$0xff] %v12485_v27 }
 0x580   :  { %16356 = vst [vmem:[#allocation192_spill] sm:$0xff] %v12487_v23 }
 0x582   :  { %v2845_v3 = vpop.f32.mrf.mxu0  ;;  %v2925_v33 = vpop.f32.mrf.mxu1 }
 0x583   :  { %3069 = vmatmul.f32.gmra.mxu2 %v2845_v3  ;;  %3149 = vmatmul.f32.gmra.mxu3 %v2925_v33 }
 0x585   :  { %3214 = vmatmul.f32.gmra.mxu0 %v12429_v1  ;;  %3294 = vmatmul.f32.gmra.mxu1 %v12431_v34 }
 0x586   :  { %v12494_v4 = vpop.f32.mrf.mxu2  ;;  %v12496_v43 = vpop.f32.mrf.mxu3 }
 0x587   :  { %16357 = vst [vmem:[#allocation193_spill] sm:$0xff] %v12494_v4 }
 0x588   :  { %16358 = vst [vmem:[#allocation194_spill] sm:$0xff] %v12496_v43 }
 0x58a   :  { %v2848_v57 = vpop.f32.mrf.mxu0  ;;  %v2928_v27 = vpop.f32.mrf.mxu1 }
 0x58b   :  { %3072 = vmatmul.f32.gmra.mxu2 %v2848_v57  ;;  %3152 = vmatmul.f32.gmra.mxu3 %v2928_v27 }
 0x58d   :  { %3217 = vmatmul.f32.gmra.mxu0 %v2833_v39  ;;  %3297 = vmatmul.f32.gmra.mxu1 %v2913_v61 }
 0x58e   :  { %v12498_v23 = vpop.f32.mrf.mxu2  ;;  %v12500_v38 = vpop.f32.mrf.mxu3 }
 0x58f   :  { %16359 = vst [vmem:[#allocation195_spill] sm:$0xff] %v12498_v23 }
 0x590   :  { %16360 = vst [vmem:[#allocation196_spill] sm:$0xff] %v12500_v38 }
 0x592   :  { %v12502_v56 = vpop.f32.mrf.mxu0  ;;  %v12504_v8 = vpop.f32.mrf.mxu1 }
 0x593   :  { %16361 = vst [vmem:[#allocation197_spill] sm:$0xff] %v12502_v56 }
 0x594   :  { %16362 = vst [vmem:[#allocation198_spill] sm:$0xff] %v12504_v8 }
 0x595   :  { %3220 = vmatmul.f32.gmra.mxu0 %v2836_v6  ;;  %3300 = vmatmul.f32.gmra.mxu1 %v2916_v47 }
 0x596   :  { %v12506_v1 = vpop.f32.mrf.mxu2  ;;  %v12508_v34 = vpop.f32.mrf.mxu3 }
 0x597   :  { %16363 = vst [vmem:[#allocation199_spill] sm:$0xff] %v12506_v1 }
 0x598   :  { %16364 = vst [vmem:[#allocation200_spill] sm:$0xff] %v12508_v34  ;;  %v12562_v34 = vpop.permute.xlu1 %3446 }
 0x599   :  { %16386 = vst [vmem:[#allocation222_spill] sm:$0xff] %v12562_v34  ;;  %v16412_v34 = vld [vmem:[#allocation64_spill] sm:$0xff] }
 0x59a   :  { %v12510_v43 = vpop.f32.mrf.mxu0  ;;  %v12512_v4 = vpop.f32.mrf.mxu1 }
 0x59b   :  { %16365 = vst [vmem:[#allocation201_spill] sm:$0xff] %v12510_v43 }
 0x59c   :  { %16366 = vst [vmem:[#allocation202_spill] sm:$0xff] %v12512_v4 }
 0x59d   :  { %3223 = vmatmul.f32.gmra.mxu0 %v2839_v46  ;;  %3303 = vmatmul.f32.gmra.mxu1 %v2919_v52 }
 0x59e   :  { %v12514_v39 = vpop.f32.mrf.mxu2  ;;  %v12516_v61 = vpop.f32.mrf.mxu3 }
 0x59f   :  { %16367 = vst [vmem:[#allocation203_spill] sm:$0xff] %v12514_v39 }
 0x5a0   :  { %16368 = vst [vmem:[#allocation204_spill] sm:$0xff] %v12516_v61 }
 0x5a2   :  { %v12518_v38 = vpop.f32.mrf.mxu0  ;;  %v12520_v56 = vpop.f32.mrf.mxu1 }
 0x5a3   :  { %16369 = vst [vmem:[#allocation205_spill] sm:$0xff] %v12518_v38 }
 0x5a4   :  { %16370 = vst [vmem:[#allocation206_spill] sm:$0xff] %v12520_v56 }
 0x5a5   :  { %3226 = vmatmul.f32.gmra.mxu0 %v2842_v41  ;;  %3306 = vmatmul.f32.gmra.mxu1 %v2922_v44 }
 0x5a6   :  { %v12522_v6 = vpop.f32.mrf.mxu2  ;;  %v12524_v47 = vpop.f32.mrf.mxu3 }
 0x5a7   :  { %16371 = vst [vmem:[#allocation207_spill] sm:$0xff] %v12522_v6  ;;  %v16397_v6 = vld [vmem:[#allocation63_spill] sm:$0xff] }
 0x5a8   :  { %16372 = vst [vmem:[#allocation208_spill] sm:$0xff] %v12524_v47 }
 0x5aa   :  { %v12526_v8 = vpop.f32.mrf.mxu0  ;;  %v12528_v43 = vpop.f32.mrf.mxu1 }
 0x5ab   :  { %16373 = vst [vmem:[#allocation209_spill] sm:$0xff] %v12526_v8 }
 0x5ac   :  { %16374 = vst [vmem:[#allocation210_spill] sm:$0xff] %v12528_v43 }
 0x5ad   :  { %3229 = vmatmul.f32.gmra.mxu0 %v2845_v3  ;;  %3309 = vmatmul.f32.gmra.mxu1 %v2925_v33 }
 0x5ae   :  { %v12530_v46 = vpop.f32.mrf.mxu2  ;;  %v12532_v52 = vpop.f32.mrf.mxu3 }
 0x5af   :  { %16375 = vst [vmem:[#allocation211_spill] sm:$0xff] %v12530_v46  ;;  %v16405_v46 = vld [vmem:[#allocation75_spill] sm:$0xff] }
 0x5b0   :  { %16376 = vst [vmem:[#allocation212_spill] sm:$0xff] %v12532_v52  ;;  %v16404_v52 = vld [vmem:[#allocation13_spill] sm:$0xff] }
 0x5b2   :  { %v12534_v4 = vpop.f32.mrf.mxu0  ;;  %v12536_v38 = vpop.f32.mrf.mxu1 }
 0x5b3   :  { %16377 = vst [vmem:[#allocation213_spill] sm:$0xff] %v12534_v4  ;;  %v12554_v4 = vpop.permute.xlu0 %3456 }
 0x5b4   :  { %16378 = vst [vmem:[#allocation214_spill] sm:$0xff] %v12536_v38  ;;  %v12560_v38 = vpop.permute.xlu2 %3481 }
 0x5b5   :  { %3232 = vmatmul.f32.gmra.mxu0 %v2848_v57  ;;  %3312 = vmatmul.f32.gmra.mxu1 %v2928_v27  ;;  %16385 = vst [vmem:[#allocation221_spill] sm:$0xff] %v12560_v38 }
 0x5b6   :  { %v12538_v41 = vpop.f32.mrf.mxu2  ;;  %v12540_v44 = vpop.f32.mrf.mxu3 }
 0x5b7   :  { %16379 = vst [vmem:[#allocation215_spill] sm:$0xff] %v12538_v41  ;;  %v16417_v41 = vld [vmem:[#allocation21_spill] sm:$0xff] }
 0x5b8   :  { %16380 = vst [vmem:[#allocation216_spill] sm:$0xff] %v12540_v44 }
 0x5ba   :  { %v12542_v56 = vpop.f32.mrf.mxu0  ;;  %v12544_v8 = vpop.f32.mrf.mxu1 }
 0x5bb   :  { %16381 = vst [vmem:[#allocation217_spill] sm:$0xff] %v12542_v56  ;;  %v12568_v39 = vpop.permute.xlu0 %3451 }
 0x5bc   :  { %16382 = vst [vmem:[#allocation218_spill] sm:$0xff] %v12544_v8 }
 0x5be   :  { %v12546_v3 = vpop.f32.mrf.mxu2  ;;  %v12548_v33 = vpop.f32.mrf.mxu3 }
 0x5c2   :  { %v12550_v43 = vpop.f32.mrf.mxu0  ;;  %v12552_v23 = vpop.f32.mrf.mxu1 }
 0x5c3   :  { %16383 = vst [vmem:[#allocation219_spill] sm:$0xff] %v12550_v43  ;;  %v12570_v43 = vpop.permute.xlu2 %3436  ;;  %v12578_v17 = vpop.permute.xlu0 %3476 }
 0x5c4   :  { %16384 = vst [vmem:[#allocation220_spill] sm:$0xff] %v12552_v23  ;;  %v12572_v23 = vpop.permute.xlu1 %3441 }
 0x5c5   :  { %16389 = vst [vmem:[#allocation225_spill] sm:$0xff] %v12570_v43 }
 0x5c6   :  { %v12556_v57 = vpop.f32.mrf.mxu2  ;;  %v12558_v27 = vpop.f32.mrf.mxu3  ;;  %16390 = vst [vmem:[#allocation226_spill] sm:$0xff] %v12572_v23 }
 0x5c7   :  { %16393 = vst [vmem:[#allocation229_spill] sm:$0xff] %v12578_v17  ;;  %v1209_v17 = vadd.f32 %v16405_v46, %v16404_v52  ;;  %v16418_v52 = vld [vmem:[#allocation67_spill] sm:$0xff] }
 0x5ca   :  { %v12564_v56 = vpop.f32.mrf.mxu0  ;;  %v12566_v8 = vpop.f32.mrf.mxu1 }
 0x5cb   :  { %16387 = vst [vmem:[#allocation223_spill] sm:$0xff] %v12564_v56  ;;  %v12586_v15 = vpop.permute.xlu2 %3471 }
 0x5cc   :  { %16388 = vst [vmem:[#allocation224_spill] sm:$0xff] %v12566_v8  ;;  %v16396_v8 = vld [vmem:[#allocation4_spill] sm:$0xff]  ;;  %v12588_v43 = vpop.permute.xlu1 %3431 }
 0x5cd   :  { %v1200_v55 = vadd.f32 %v16397_v6, %v16396_v8  ;;  %16398 = vst [vmem:[#allocation4_spill] sm:$0xff] %v12586_v15  ;;  %v16410_v8 = vld [vmem:[#allocation29_spill] sm:$0xff] }
 0x5ce   :  { %v3049_v1 = vpop.f32.mrf.mxu2  ;;  %v3129_v61 = vpop.f32.mrf.mxu3  ;;  %16399 = vst [vmem:[#allocation63_spill] sm:$0xff] %v12588_v43  ;;  %v16411_v6 = vld [vmem:[#allocation85_spill] sm:$0xff] }
 0x5cf   :  { %v1218_v15 = vadd.f32 %v16411_v6, %v16410_v8  ;;  %v12603_v44 = vadd.f32 %v16412_v34, %v1200_v55  ;;  %v16423_v8 = vld [vmem:[#allocation32_spill] sm:$0xff]  ;;  %v16424_v6 = vld [vmem:[#allocation26_spill] sm:$0xff] }
 0x5d0   :  { %v1227_v60 = vadd.f32 %v16424_v6, %v16423_v8  ;;  %v16425_v55 = vld [vmem:[#allocation80_spill] sm:$0xff]  ;;  %v16434_v8 = vld [vmem:[#allocation94_spill] sm:$0xff] }
 0x5d1   :  { %16413 = vst [vmem:[#allocation7_spill] sm:$0xff] %v12603_v44  ;;  %v16427_v44 = vld [vmem:[#allocation82_spill] sm:$0xff] }
 0x5d2   :  { %v12574_v49 = vpop.f32.mrf.mxu0  ;;  %v12576_v0 = vpop.f32.mrf.mxu1 }
 0x5d3   :  { %16391 = vst [vmem:[#allocation227_spill] sm:$0xff] %v12574_v49  ;;  %v1203_v49 = vadd.f32 %v16401_v2, %v16400_v14  ;;  %v16414_v2 = vld [vmem:[#allocation30_spill] sm:$0xff]  ;;  %v16415_v14 = vld [vmem:[#allocation89_spill] sm:$0xff] }
 0x5d4   :  { %16392 = vst [vmem:[#allocation228_spill] sm:$0xff] %v12576_v0  ;;  %v16403_v0 = vld [vmem:[#allocation70_spill] sm:$0xff] }
 0x5d5   :  { %v1206_v23 = vadd.f32 %v16403_v0, %v16402_v28  ;;  %v1221_v28 = vadd.f32 %v16415_v14, %v16414_v2  ;;  %v16416_v0 = vld [vmem:[#allocation31_spill] sm:$0xff]  ;;  %v12610_v53 = vadd.f32 %v16418_v52, %v1203_v49  ;;  %v16428_v14 = vld [vmem:[#allocation33_spill] sm:$0xff]  ;;  %v2464_v49 = vadd.f32 %v11823_v32, %v11821_v59 }
 0x5d6   :  { %v3052_v22 = vpop.f32.mrf.mxu2  ;;  %v3132_v38 = vpop.f32.mrf.mxu3  ;;  %v1224_v46 = vadd.f32 %v16417_v41, %v16416_v0  ;;  %v16429_v41 = vld [vmem:[#allocation28_spill] sm:$0xff]  ;;  %v16437_v32 = vld [vmem:[#allocation25_spill] sm:$0xff] }
 0x5d7   :  { %16419 = vst [vmem:[#allocation66_spill] sm:$0xff] %v12610_v53  ;;  %v1230_v0 = vadd.f32 %v16429_v41, %v16428_v14  ;;  %v16433_v53 = vld [vmem:[#allocation35_spill] sm:$0xff]  ;;  %v12651_v41 = vpop.permute.xlu0 %3426 }
 0x5d8   :  { %v1236_v6 = vadd.f32 %v16434_v8, %v16433_v53  ;;  %v12647_v59 = vadd.f32 %v16437_v32, %v1224_v46  ;;  %16438 = vst [vmem:[#allocation75_spill] sm:$0xff] %v12651_v41  ;;  %v16439_v53 = vld [vmem:[#allocation27_spill] sm:$0xff]  ;;  %v16442_v8 = vld [vmem:[#allocation41_spill] sm:$0xff] }
 0x5d9   :  { %v16446_v46 = vld [vmem:[#allocation91_spill] sm:$0xff] }
 0x5da   :  { %v12580_v47 = vpop.f32.mrf.mxu0  ;;  %v12582_v56 = vpop.f32.mrf.mxu1  ;;  %v12663_v32 = vadd.f32 %v16446_v46, %v1230_v0  ;;  %v2455_v0 = vadd.f32 %v11766_v54, %v11764_v11  ;;  %v16450_v46 = vld [vmem:[#allocation97_spill] sm:$0xff]  ;;  %v2452_v11 = vadd.f32 %v11757_v40, %v11755_v58  ;;  %v3124_v40 = vadd.f32 %v12548_v33, %v12546_v3  ;;  %v16458_v3 = vld [vmem:[#allocation215_spill] sm:$0xff]  ;;  %v16459_v33 = vld [vmem:[#allocation216_spill] sm:$0xff] }
 0x5db   :  { %16394 = vst [vmem:[#allocation230_spill] sm:$0xff] %v12580_v47  ;;  %v16407_v47 = vld [vmem:[#allocation79_spill] sm:$0xff] }
 0x5dc   :  { %16395 = vst [vmem:[#allocation231_spill] sm:$0xff] %v12582_v56  ;;  %v1212_v63 = vadd.f32 %v16407_v47, %v16406_v48  ;;  %v16408_v56 = vld [vmem:[#allocation22_spill] sm:$0xff]  ;;  %v16420_v48 = vld [vmem:[#allocation71_spill] sm:$0xff] }
 0x5dd   :  { %v1215_v7 = vadd.f32 %v16409_v51, %v16408_v56  ;;  %v12613_v47 = vadd.f32 %v16420_v48, %v1206_v23  ;;  %v16422_v56 = vld [vmem:[#allocation76_spill] sm:$0xff]  ;;  %v16430_v23 = vld [vmem:[#allocation86_spill] sm:$0xff] }
 0x5de   :  { %v3055_v31 = vpop.f32.mrf.mxu2  ;;  %v3135_v43 = vpop.f32.mrf.mxu3  ;;  %v12616_v51 = vadd.f32 %v16422_v56, %v1209_v17  ;;  %v12621_v34 = vadd.f32 %v16425_v55, %v1212_v63  ;;  %v12631_v52 = vadd.f32 %v16430_v23, %v1218_v15  ;;  %v16431_v17 = vld [vmem:[#allocation34_spill] sm:$0xff]  ;;  %v16432_v48 = vld [vmem:[#allocation92_spill] sm:$0xff]  ;;  %v2461_v63 = vadd.f32 %v11792_v19, %v11790_v10 }
 0x5df   :  { %16421 = vst [vmem:[#allocation10_spill] sm:$0xff] %v12613_v47  ;;  %v12624_v2 = vadd.f32 %v16427_v44, %v1215_v7  ;;  %v1233_v56 = vadd.f32 %v16432_v48, %v16431_v17  ;;  %v16436_v55 = vld [vmem:[#allocation90_spill] sm:$0xff]  ;;  %v2467_v15 = vadd.f32 %v11862_v18, %v11860_v9  ;;  %v3136_v23 = vadd.f32 %v3135_v43, %v3055_v31  ;;  %v16441_v19 = vld [vmem:[#allocation96_spill] sm:$0xff]  ;;  %v12668_v9 = vpop.permute.xlu2 %3421 }
 0x5e0   :  { %16426 = vst [vmem:[#allocation70_spill] sm:$0xff] %v12621_v34  ;;  %v12644_v14 = vadd.f32 %v16436_v55, %v1221_v28  ;;  %v12654_v17 = vadd.f32 %v16439_v53, %v1227_v60  ;;  %v16440_v10 = vld [vmem:[#allocation38_spill] sm:$0xff]  ;;  %v16444_v28 = vld [vmem:[#allocation44_spill] sm:$0xff]  ;;  %v2458_v18 = vadd.f32 %v11779_v36, %v11777_v30  ;;  %v2672_v31 = vadd.f32 %v2464_v49, %v11300_v26  ;;  %v12670_v60 = vpop.permute.xlu1 %3466  ;;  %v16448_v53 = vld [vmem:[#allocation93_spill] sm:$0xff] }
 0x5e1   :  { %v1239_v48 = vadd.f32 %v16441_v19, %v16440_v10  ;;  %v16443_v47 = vld [vmem:[#allocation98_spill] sm:$0xff]  ;;  %v16445_v55 = vld [vmem:[#allocation100_spill] sm:$0xff]  ;;  %16447 = vst [vmem:[#allocation16_spill] sm:$0xff] %v12668_v9  ;;  %v3133_v43 = vadd.f32 %v3132_v38, %v3052_v22  ;;  %v12673_v10 = vadd.f32 %v16448_v53, %v1233_v56  ;;  %v2674_v26 = vadd.f32 %v2467_v15, %v11335_v29  ;;  %v16451_v38 = vld [vmem:[#allocation99_spill] sm:$0xff]  ;;  %v12722_v15 = vpop.permute.xlu0 %3461 }
 0x5e2   :  { %v12639_v7 = vpop.f32.mrf.mxu0  ;;  %v12641_v44 = vpop.f32.mrf.mxu1  ;;  %v1242_v34 = vadd.f32 %v16443_v47, %v16442_v8  ;;  %v16449_v47 = vld [vmem:[#allocation95_spill] sm:$0xff]  ;;  %v2670_v8 = vadd.f32 %v2461_v63, %v11261_v25  ;;  %v3130_v30 = vadd.f32 %v3129_v61, %v3049_v1  ;;  %v3344_v49 = vadd.f32 %v3136_v23, %v2672_v31  ;;  %16457 = vst [vmem:[#allocation81_spill] sm:$0xff] %v12722_v15  ;;  %v16460_v31 = vld [vmem:[#allocation222_spill] sm:$0xff] }
 0x5e3   :  { %16435 = vst [vmem:[#allocation13_spill] sm:$0xff] %v12641_v44  ;;  %v1245_v44 = vadd.f32 %v16445_v55, %v16444_v28  ;;  %v12676_v19 = vadd.f32 %v16449_v47, %v1236_v6  ;;  %v12683_v22 = vadd.f32 %v16450_v46, %v1239_v48  ;;  %v16452_v6 = vld [vmem:[#allocation101_spill] sm:$0xff]  ;;  %v2668_v25 = vadd.f32 %v2458_v18, %v11240_v24  ;;  %v16461_v47 = vld [vmem:[#allocation18_spill] sm:$0xff]  ;;  %v16471_v46 = vld [vmem:[#allocation212_spill] sm:$0xff] }
 0x5e4   :  { %v12686_v56 = vadd.f32 %v16451_v38, %v1242_v34  ;;  %v3127_v29 = vadd.f32 %v12558_v27, %v12556_v57  ;;  %v3342_v54 = vadd.f32 %v3133_v43, %v2670_v8  ;;  %v12698_v61 = vadd.f32 %v11215_v5, %v11213_v13  ;;  %v16467_v8 = vld [vmem:[#allocation15_spill] sm:$0xff] }
 0x5e5   :  { %v12689_v53 = vadd.f32 %v16452_v6, %v1245_v44  ;;  %v1919_v34 = vadd.f32 %v11298_v20, %v11296_v12  ;;  %v2449_v63 = vadd.f32 %v11748_v35, %v11746_v42  ;;  %v2666_v44 = vadd.f32 %v2455_v0, %v11225_v45  ;;  %v16455_v45 = vld [vmem:[#allocation134_spill] sm:$0xff]  ;;  %v16456_v42 = vld [vmem:[#allocation17_spill] sm:$0xff] }
 0x5e6   :  { %v3058_v28 = vpop.f32.mrf.mxu2  ;;  %v3138_v36 = vpop.f32.mrf.mxu3  ;;  %16453 = vst [vmem:[#allocation79_spill] sm:$0xff] %v12698_v61  ;;  %v3340_v57 = vadd.f32 %v3130_v30, %v2668_v25  ;;  %v3512_v13 = vadd.f32 %v12568_v39, %v3344_v49  ;;  %v12715_v5 = vadd.f32 %v11232_v21, %v11230_v62  ;;  %v1925_v12 = vadd.f32 %v11393_v37, %v11391_v50  ;;  %v16462_v62 = vld [vmem:[#allocation23_spill] sm:$0xff]  ;;  %v16465_v37 = vld [vmem:[#allocation132_spill] sm:$0xff] }
 0x5e7   :  { %v3139_v55 = vadd.f32 %v3138_v36, %v3058_v28  ;;  %v2446_v20 = vadd.f32 %v16455_v45, %v11737_v16  ;;  %v2664_v35 = vadd.f32 %v2452_v11, %v16456_v42  ;;  %v3121_v23 = vadd.f32 %v16459_v33, %v16458_v3  ;;  %v16466_v16 = vld [vmem:[#allocation133_spill] sm:$0xff]  ;;  %v12741_v30 = vpop.permute.xlu2 %3411  ;;  %v16472_v11 = vld [vmem:[#allocation226_spill] sm:$0xff]  ;;  %v16480_v3 = vld [vmem:[#allocation207_spill] sm:$0xff] }
 0x5e8   :  { %16454 = vst [vmem:[#allocation22_spill] sm:$0xff] %v12715_v5  ;;  %v3338_v48 = vadd.f32 %v3127_v29, %v2666_v44  ;;  %v3510_v43 = vadd.f32 %v16460_v31, %v3342_v54  ;;  %v12729_v21 = vadd.f32 %v16462_v62, %v16461_v47  ;;  %v12732_v50 = vadd.f32 %v1919_v34, %v12616_v51  ;;  %v12743_v49 = vpop.permute.xlu1 %3416  ;;  %v16473_v29 = vld [vmem:[#allocation24_spill] sm:$0xff]  ;;  %v16474_v54 = vld [vmem:[#allocation65_spill] sm:$0xff]  ;;  %v16478_v44 = vld [vmem:[#allocation131_spill] sm:$0xff] }
 0x5e9   :  { %v3346_v1 = vadd.f32 %v3139_v55, %v2674_v26  ;;  %v2443_v0 = vadd.f32 %v16466_v16, %v16465_v37  ;;  %v2662_v28 = vadd.f32 %v2449_v63, %v16467_v8  ;;  %16468 = vst [vmem:[#allocation64_spill] sm:$0xff] %v12741_v30  ;;  %v16470_v55 = vld [vmem:[#allocation211_spill] sm:$0xff]  ;;  %v3336_v6 = vadd.f32 %v3124_v40, %v2664_v35  ;;  %v16477_v63 = vld [vmem:[#allocation130_spill] sm:$0xff]  ;;  %v16481_v40 = vld [vmem:[#allocation208_spill] sm:$0xff] }
 0x5ea   :  { %v12705_v58 = vpop.f32.mrf.mxu0  ;;  %v12707_v24 = vpop.f32.mrf.mxu1  ;;  %16463 = vst [vmem:[#allocation29_spill] sm:$0xff] %v12729_v21  ;;  %v3118_v38 = vadd.f32 %v16471_v46, %v16470_v55  ;;  %v3554_v51 = vmax.f32 %v3512_v13, 0.0  ;;  %v3508_v25 = vadd.f32 %v16472_v11, %v3340_v57  ;;  %v12753_v34 = vadd.f32 %v1925_v12, %v12624_v2  ;;  %v16479_v45 = vld [vmem:[#allocation14_spill] sm:$0xff]  ;;  %v16482_v13 = vld [vmem:[#allocation225_spill] sm:$0xff]  ;;  %v16483_v62 = vld [vmem:[#allocation68_spill] sm:$0xff] }
 0x5eb   :  { %v3514_v27 = vadd.f32 %v12554_v4, %v3346_v1  ;;  %16464 = vst [vmem:[#allocation85_spill] sm:$0xff] %v12732_v50  ;;  %v12750_v1 = vadd.f32 %v16474_v54, %v16473_v29  ;;  %v2660_v42 = vadd.f32 %v2446_v20, %v16479_v45  ;;  %v3115_v35 = vadd.f32 %v16481_v40, %v16480_v3  ;;  %v16484_v37 = vld [vmem:[#allocation69_spill] sm:$0xff]  ;;  %v16485_v2 = vld [vmem:[#allocation40_spill] sm:$0xff]  ;;  %v16492_v45 = vld [vmem:[#allocation63_spill] sm:$0xff] }
 0x5ec   :  { %16469 = vst [vmem:[#allocation30_spill] sm:$0xff] %v12743_v49  ;;  %v3334_v33 = vadd.f32 %v3121_v23, %v2662_v28  ;;  %v3552_v57 = vmax.f32 %v3510_v43, 0.0  ;;  %v3506_v47 = vadd.f32 %v16482_v13, %v3338_v48  ;;  %v1928_v16 = vadd.f32 %v16484_v37, %v16483_v62  ;;  %v16486_v12 = vld [vmem:[#allocation72_spill] sm:$0xff]  ;;  %v16488_v46 = vld [vmem:[#allocation129_spill] sm:$0xff]  ;;  %v16490_v28 = vld [vmem:[#allocation203_spill] sm:$0xff] }
 0x5ed   :  { %v3556_v18 = vmax.f32 %v3514_v27, 0.0  ;;  %16475 = vst [vmem:[#allocation89_spill] sm:$0xff] %v12750_v1  ;;  %v2440_v27 = vadd.f32 %v16478_v44, %v16477_v63  ;;  %v1931_v8 = vadd.f32 %v16486_v12, %v16485_v2  ;;  %v16487_v55 = vld [vmem:[#allocation128_spill] sm:$0xff]  ;;  %v3332_v48 = vadd.f32 %v3118_v38, %v2660_v42  ;;  %v16493_v40 = vld [vmem:[#allocation73_spill] sm:$0xff]  ;;  %v16494_v62 = vld [vmem:[#allocation74_spill] sm:$0xff] }
 0x5ee   :  { %v12737_v36 = vpop.f32.mrf.mxu2  ;;  %v12739_v26 = vpop.f32.mrf.mxu3  ;;  %16476 = vst [vmem:[#allocation31_spill] sm:$0xff] %v12753_v34  ;;  %v2437_v29 = vadd.f32 %v16488_v46, %v16487_v55  ;;  %v16489_v20 = vld [vmem:[#allocation12_spill] sm:$0xff]  ;;  %v3550_v44 = vmax.f32 %v3508_v25, 0.0  ;;  %v3504_v3 = vadd.f32 %v16492_v45, %v3336_v6  ;;  %v1934_v37 = vadd.f32 %v16494_v62, %v16493_v40  ;;  %v16495_v2 = vld [vmem:[#allocation45_spill] sm:$0xff]  ;;  %v16496_v12 = vld [vmem:[#allocation46_spill] sm:$0xff] }
 0x5ef   :  { %3624 = vmatpush.msra.mxu1 %v3556_v18  ;;  %9228 = vmatpush.msrb.mxu2 %v3556_v18  ;;  %v16491_v43 = vld [vmem:[#allocation204_spill] sm:$0xff]  ;;  %v16498_v55 = vld [vmem:[#allocation127_spill] sm:$0xff]  ;;  %v3548_v25 = vmax.f32 %v3506_v47, 0.0  ;;  %v3502_v6 = vadd.f32 %v12651_v41, %v3334_v33  ;;  %v12789_v40 = vadd.f32 %v1931_v8, %v12644_v14  ;;  %v16521_v50 = vld [vmem:[#allocation6_spill] sm:$0xff] }
 0x5f0   :  { %3880 = vmatpush.msra.mxu0 %v3556_v18  ;;  %v2658_v18 = vadd.f32 %v2443_v0, %v16489_v20  ;;  %v3112_v63 = vadd.f32 %v16491_v43, %v16490_v28  ;;  %v1937_v0 = vadd.f32 %v16496_v12, %v16495_v2  ;;  %v16499_v20 = vld [vmem:[#allocation11_spill] sm:$0xff]  ;;  %v16501_v28 = vld [vmem:[#allocation200_spill] sm:$0xff]  ;;  %v12786_v43 = vadd.f32 %v1928_v16, %v12631_v52  ;;  %v16503_v2 = vld [vmem:[#allocation125_spill] sm:$0xff] }
 0x5f1   :  { %3625 = vmatpush.msra.mxu1 %v3554_v51  ;;  %9229 = vmatpush.msrb.mxu2 %v3554_v51  ;;  %v2656_v61 = vadd.f32 %v2440_v27, %v16499_v20  ;;  %v16500_v5 = vld [vmem:[#allocation199_spill] sm:$0xff]  ;;  %v16502_v62 = vld [vmem:[#allocation124_spill] sm:$0xff]  ;;  %v16504_v27 = vld [vmem:[#allocation9_spill] sm:$0xff]  ;;  %v3546_v14 = vmax.f32 %v3504_v3, 0.0  ;;  %v3500_v16 = vadd.f32 %v12668_v9, %v3332_v48  ;;  %v12804_v8 = vadd.f32 %v1934_v37, %v12647_v59 }
 0x5f2   :  { %3881 = vmatpush.msra.mxu0 %v3554_v51  ;;  %v12768_v54 = vpop.f32.mrf.mxu0  ;;  %v12770_v23 = vpop.f32.mrf.mxu1  ;;  %v16497_v51 = vld [vmem:[#allocation126_spill] sm:$0xff]  ;;  %v3109_v38 = vadd.f32 %v16501_v28, %v16500_v5  ;;  %v3330_v42 = vadd.f32 %v3115_v35, %v2658_v18  ;;  %v2431_v12 = vadd.f32 %v16503_v2, %v16502_v62  ;;  %v16506_v47 = vld [vmem:[#allocation195_spill] sm:$0xff]  ;;  %v16507_v33 = vld [vmem:[#allocation196_spill] sm:$0xff]  ;;  %v3544_v59 = vmax.f32 %v3502_v6, 0.0 }
 0x5f3   :  { %3626 = vmatpush.msra.mxu1 %v3552_v57  ;;  %9230 = vmatpush.msrb.mxu2 %v3552_v57  ;;  %v2434_v46 = vadd.f32 %v16498_v55, %v16497_v51  ;;  %v12798_v35 = vpop.permute.xlu0 %3406  ;;  %v3106_v18 = vadd.f32 %v16507_v33, %v16506_v47  ;;  %v3328_v52 = vadd.f32 %v3112_v63, %v2656_v61  ;;  %v16509_v55 = vld [vmem:[#allocation123_spill] sm:$0xff]  ;;  %v16510_v28 = vld [vmem:[#allocation8_spill] sm:$0xff]  ;;  %v12812_v2 = vpop.permute.xlu2 %3396  ;;  %v16513_v63 = vld [vmem:[#allocation193_spill] sm:$0xff] }
 0x5f4   :  { %3882 = vmatpush.msra.mxu0 %v3552_v57  ;;  %v2654_v57 = vadd.f32 %v2437_v29, %v16504_v27  ;;  %16505 = vst [vmem:[#allocation21_spill] sm:$0xff] %v12798_v35  ;;  %v12807_v29 = vadd.f32 %v1937_v0, %v12654_v17  ;;  %v12814_v61 = vpop.permute.xlu1 %3401  ;;  %v16514_v3 = vld [vmem:[#allocation194_spill] sm:$0xff]  ;;  %v3498_v17 = vadd.f32 %v12743_v49, %v3330_v42  ;;  %v16515_v37 = vld [vmem:[#allocation77_spill] sm:$0xff]  ;;  %v16517_v33 = vld [vmem:[#allocation48_spill] sm:$0xff] }
 0x5f5   :  { %3627 = vmatpush.msra.mxu1 %v3550_v44  ;;  %9231 = vmatpush.msrb.mxu2 %v3550_v44  ;;  %v2652_v62 = vadd.f32 %v2434_v46, %v16510_v28  ;;  %16511 = vst [vmem:[#allocation67_spill] sm:$0xff] %v12812_v2  ;;  %v3103_v27 = vadd.f32 %v16514_v3, %v16513_v63  ;;  %v16516_v0 = vld [vmem:[#allocation78_spill] sm:$0xff]  ;;  %v16523_v6 = vld [vmem:[#allocation192_spill] sm:$0xff]  ;;  %v3542_v3 = vmax.f32 %v3500_v16, 0.0  ;;  %v16530_v34 = vld [vmem:[#allocation5_spill] sm:$0xff] }
 0x5f6   :  { %3883 = vmatpush.msra.mxu0 %v3550_v44  ;;  %v12794_v51 = vpop.f32.mrf.mxu2  ;;  %v12796_v5 = vpop.f32.mrf.mxu3  ;;  %v16508_v44 = vld [vmem:[#allocation122_spill] sm:$0xff]  ;;  %16512 = vst [vmem:[#allocation71_spill] sm:$0xff] %v12814_v61  ;;  %v3326_v48 = vadd.f32 %v3109_v38, %v2654_v57  ;;  %v1940_v47 = vadd.f32 %v16516_v0, %v16515_v37  ;;  %v2650_v21 = vadd.f32 %v2431_v12, %v16521_v50  ;;  %v16522_v57 = vld [vmem:[#allocation191_spill] sm:$0xff]  ;;  %v16531_v41 = vld [vmem:[#allocation189_spill] sm:$0xff]  ;;  %v3540_v16 = vmax.f32 %v3498_v17, 0.0 }
 0x5f7   :  { %3628 = vmatpush.msra.mxu1 %v3548_v25  ;;  %9232 = vmatpush.msrb.mxu2 %v3548_v25  ;;  %v2428_v20 = vadd.f32 %v16509_v55, %v16508_v44  ;;  %v16518_v44 = vld [vmem:[#allocation49_spill] sm:$0xff]  ;;  %v3100_v63 = vadd.f32 %v16523_v6, %v16522_v57  ;;  %v3324_v42 = vadd.f32 %v3106_v18, %v2652_v62  ;;  %v16524_v0 = vld [vmem:[#allocation51_spill] sm:$0xff]  ;;  %v16528_v12 = vld [vmem:[#allocation118_spill] sm:$0xff] }
 0x5f8   :  { %3884 = vmatpush.msra.mxu0 %v3548_v25  ;;  %v1943_v46 = vadd.f32 %v16518_v44, %v16517_v33  ;;  %v16519_v25 = vld [vmem:[#allocation120_spill] sm:$0xff]  ;;  %v16520_v55 = vld [vmem:[#allocation121_spill] sm:$0xff]  ;;  %v3496_v37 = vadd.f32 %v12741_v30, %v3328_v52  ;;  %v16532_v57 = vld [vmem:[#allocation190_spill] sm:$0xff]  ;;  %v3322_v62 = vadd.f32 %v3103_v27, %v2650_v21  ;;  %v3494_v52 = vadd.f32 %v12798_v35, %v3326_v48 }
 0x5f9   :  { %3629 = vmatpush.msra.mxu1 %v3546_v14  ;;  %9233 = vmatpush.msrb.mxu2 %v3546_v14  ;;  %v2425_v28 = vadd.f32 %v16520_v55, %v16519_v25  ;;  %v16525_v33 = vld [vmem:[#allocation52_spill] sm:$0xff]  ;;  %v16526_v25 = vld [vmem:[#allocation83_spill] sm:$0xff]  ;;  %v2648_v1 = vadd.f32 %v2428_v20, %v16530_v34  ;;  %v3097_v18 = vadd.f32 %v16532_v57, %v16531_v41 }
 0x5fa   :  { %3885 = vmatpush.msra.mxu0 %v3546_v14  ;;  %v12826_v9 = vpop.f32.mrf.mxu0  ;;  %v12828_v38 = vpop.f32.mrf.mxu1  ;;  %v1946_v44 = vadd.f32 %v16525_v33, %v16524_v0  ;;  %v16527_v55 = vld [vmem:[#allocation84_spill] sm:$0xff]  ;;  %v16529_v14 = vld [vmem:[#allocation119_spill] sm:$0xff]  ;;  %v1993_v6 = vadd.f32 %v1940_v47, %v12663_v32  ;;  %v16533_v0 = vld [vmem:[#allocation53_spill] sm:$0xff]  ;;  %v3538_v32 = vmax.f32 %v3496_v37, 0.0  ;;  %v3492_v48 = vadd.f32 %v12814_v61, %v3324_v42 }
 0x5fb   :  { %3630 = vmatpush.msra.mxu1 %v3544_v59  ;;  %9234 = vmatpush.msrb.mxu2 %v3544_v59  ;;  %v1949_v50 = vadd.f32 %v16527_v55, %v16526_v25  ;;  %v2422_v49 = vadd.f32 %v16529_v14, %v16528_v12  ;;  %v16534_v33 = vld [vmem:[#allocation54_spill] sm:$0xff]  ;;  %v16535_v55 = vld [vmem:[#allocation87_spill] sm:$0xff]  ;;  %v16536_v30 = vld [vmem:[#allocation88_spill] sm:$0xff]  ;;  %v3320_v17 = vadd.f32 %v3100_v63, %v2648_v1  ;;  %v3536_v1 = vmax.f32 %v3494_v52, 0.0 }
 0x5fc   :  { %3886 = vmatpush.msra.mxu0 %v3544_v59  ;;  %v1952_v25 = vadd.f32 %v16534_v33, %v16533_v0  ;;  %v1955_v12 = vadd.f32 %v16536_v30, %v16535_v55  ;;  %v16537_v14 = vld [vmem:[#allocation3_spill] sm:$0xff]  ;;  %v16539_v27 = vld [vmem:[#allocation188_spill] sm:$0xff]  ;;  %v1995_v47 = vadd.f32 %v1943_v46, %v12673_v10  ;;  %v1997_v30 = vadd.f32 %v1946_v44, %v12676_v19  ;;  %v16544_v46 = vld [vmem:[#allocation145_spill] sm:$0xff] }
 0x5fd   :  { %3631 = vmatpush.msra.mxu1 %v3542_v3  ;;  %9235 = vmatpush.msrb.mxu2 %v3542_v3  ;;  %v2646_v34 = vadd.f32 %v2425_v28, %v16537_v14  ;;  %v16538_v21 = vld [vmem:[#allocation187_spill] sm:$0xff]  ;;  %v1999_v28 = vadd.f32 %v1949_v50, %v12683_v22  ;;  %v16542_v33 = vld [vmem:[#allocation164_spill] sm:$0xff]  ;;  %v3490_v63 = vadd.f32 %v12812_v2, %v3322_v62  ;;  %v16545_v22 = vld [vmem:[#allocation146_spill] sm:$0xff] }
 0x5fe   :  { %3887 = vmatpush.msra.mxu0 %v3542_v3  ;;  %v12849_v20 = vpop.f32.mrf.mxu2  ;;  %v12851_v41 = vpop.f32.mrf.mxu3  ;;  %v3094_v59 = vadd.f32 %v16539_v27, %v16538_v21  ;;  %v16540_v3 = vld [vmem:[#allocation2_spill] sm:$0xff]  ;;  %v16541_v0 = vld [vmem:[#allocation163_spill] sm:$0xff]  ;;  %v2001_v10 = vadd.f32 %v1952_v25, %v12686_v56  ;;  %v2003_v19 = vadd.f32 %v1955_v12, %v12689_v53  ;;  %v12869_v42 = vadd.f32 %v16545_v22, %v16544_v46  ;;  %v16553_v25 = vld [vmem:[#allocation160_spill] sm:$0xff] }
 0x5ff   :  { %3632 = vmatpush.msra.mxu1 %v3540_v16  ;;  %9236 = vmatpush.msrb.mxu2 %v3540_v16  ;;  %v2644_v57 = vadd.f32 %v2422_v49, %v16540_v3  ;;  %v2609_v55 = vadd.f32 %v16542_v33, %v16541_v0  ;;  %v3318_v14 = vadd.f32 %v3097_v18, %v2646_v34  ;;  %v12862_v21 = vpop.permute.xlu0 %3391  ;;  %v16547_v49 = vld [vmem:[#allocation165_spill] sm:$0xff]  ;;  %v16548_v37 = vld [vmem:[#allocation166_spill] sm:$0xff]  ;;  %v3534_v56 = vmax.f32 %v3492_v48, 0.0  ;;  %v16552_v62 = vld [vmem:[#allocation159_spill] sm:$0xff] }
 0x600   :  { %3888 = vmatpush.msra.mxu0 %v3540_v16  ;;  %16543 = vst [vmem:[#allocation76_spill] sm:$0xff] %v12862_v21  ;;  %v2612_v44 = vadd.f32 %v16548_v37, %v16547_v49  ;;  %v16549_v16 = vld [vmem:[#allocation153_spill] sm:$0xff]  ;;  %v16550_v34 = vld [vmem:[#allocation154_spill] sm:$0xff]  ;;  %v3488_v53 = vadd.f32 %v12862_v21, %v3320_v17  ;;  %v12880_v12 = vadd.f32 %v16553_v25, %v16552_v62  ;;  %v16557_v46 = vld [vmem:[#allocation168_spill] sm:$0xff] }
 0x601   :  { %3633 = vmatpush.msra.mxu1 %v3538_v32  ;;  %9237 = vmatpush.msrb.mxu2 %v3538_v32  ;;  %16546 = vst [vmem:[#allocation32_spill] sm:$0xff] %v12869_v42  ;;  %v12875_v27 = vadd.f32 %v16550_v34, %v16549_v16  ;;  %v3316_v52 = vadd.f32 %v3094_v59, %v2644_v57  ;;  %v16554_v3 = vld [vmem:[#allocation161_spill] sm:$0xff]  ;;  %v16555_v0 = vld [vmem:[#allocation162_spill] sm:$0xff]  ;;  %v12890_v59 = vpop.permute.xlu2 %3381  ;;  %v12892_v57 = vpop.permute.xlu1 %3386  ;;  %v16566_v21 = vld [vmem:[#allocation172_spill] sm:$0xff] }
 0x602   :  { %3889 = vmatpush.msra.mxu0 %v3538_v32  ;;  %v3215_v50 = vpop.f32.mrf.mxu0  ;;  %v3295_v18 = vpop.f32.mrf.mxu1  ;;  %v12884_v33 = vadd.f32 %v16555_v0, %v16554_v3  ;;  %v16556_v32 = vld [vmem:[#allocation167_spill] sm:$0xff]  ;;  %v16558_v49 = vld [vmem:[#allocation173_spill] sm:$0xff]  ;;  %v16559_v37 = vld [vmem:[#allocation174_spill] sm:$0xff]  ;;  %16560 = vst [vmem:[#allocation80_spill] sm:$0xff] %v12892_v57  ;;  %v12895_v17 = vadd.f32 %v2609_v55, %v12807_v29  ;;  %v3486_v25 = vadd.f32 %v12892_v57, %v3318_v14  ;;  %v3532_v3 = vmax.f32 %v3490_v63, 0.0 }
 0x603   :  { %16551 = vst [vmem:[#allocation26_spill] sm:$0xff] %v12875_v27  ;;  %3634 = vmatpush.msra.mxu1 %v3536_v1  ;;  %9238 = vmatpush.msrb.mxu2 %v3536_v1  ;;  %v2615_v22 = vadd.f32 %v16557_v46, %v16556_v32  ;;  %v2624_v16 = vadd.f32 %v16559_v37, %v16558_v49  ;;  %v16561_v48 = vld [vmem:[#allocation169_spill] sm:$0xff]  ;;  %v16562_v34 = vld [vmem:[#allocation170_spill] sm:$0xff]  ;;  %v16563_v32 = vld [vmem:[#allocation151_spill] sm:$0xff]  ;;  %v3530_v63 = vmax.f32 %v3488_v53, 0.0 }
 0x604   :  { %3890 = vmatpush.msra.mxu0 %v3536_v1  ;;  %v2618_v62 = vadd.f32 %v16562_v34, %v16561_v48  ;;  %v12900_v0 = vadd.f32 %v2612_v44, %v1993_v6  ;;  %v16564_v46 = vld [vmem:[#allocation152_spill] sm:$0xff]  ;;  %v16565_v37 = vld [vmem:[#allocation171_spill] sm:$0xff]  ;;  %v3296_v1 = vadd.f32 %v3295_v18, %v3215_v50  ;;  %v3484_v6 = vadd.f32 %v12890_v59, %v3316_v52  ;;  %v16573_v18 = vld [vmem:[#allocation157_spill] sm:$0xff] }
 0x605   :  { %3635 = vmatpush.msra.mxu1 %v3534_v56  ;;  %9239 = vmatpush.msrb.mxu2 %v3534_v56  ;;  %v2476_v49 = vadd.f32 %v16564_v46, %v16563_v32  ;;  %v2621_v2 = vadd.f32 %v16566_v21, %v16565_v37  ;;  %v16567_v61 = vld [vmem:[#allocation143_spill] sm:$0xff]  ;;  %v16568_v35 = vld [vmem:[#allocation144_spill] sm:$0xff]  ;;  %v2667_v44 = vadd.f32 %v2615_v22, %v1995_v47  ;;  %v3528_v27 = vmax.f32 %v3486_v25, 0.0 }
 0x606   :  { %3891 = vmatpush.msra.mxu0 %v3534_v56  ;;  %v3070_v29 = vpop.f32.mrf.mxu2  ;;  %v3150_v55 = vpop.f32.mrf.mxu3  ;;  %v12908_v48 = vadd.f32 %v16568_v35, %v16567_v61  ;;  %v16569_v14 = vld [vmem:[#allocation175_spill] sm:$0xff]  ;;  %v16570_v34 = vld [vmem:[#allocation176_spill] sm:$0xff]  ;;  %v2673_v50 = vadd.f32 %v2624_v16, %v2001_v10  ;;  %v16574_v56 = vld [vmem:[#allocation158_spill] sm:$0xff]  ;;  %v2669_v15 = vadd.f32 %v2618_v62, %v1997_v30  ;;  %v3293_v52 = vadd.f32 %v12828_v38, %v12826_v9 }
 0x607   :  { %v2627_v57 = vadd.f32 %v16570_v34, %v16569_v14  ;;  %3636 = vmatpush.msra.mxu1 %v3532_v3  ;;  %9240 = vmatpush.msrb.mxu2 %v3532_v3  ;;  %v16571_v32 = vld [vmem:[#allocation155_spill] sm:$0xff]  ;;  %v16572_v46 = vld [vmem:[#allocation156_spill] sm:$0xff]  ;;  %v2482_v37 = vadd.f32 %v16574_v56, %v16573_v18  ;;  %v2671_v22 = vadd.f32 %v2621_v2, %v1999_v28  ;;  %v12927_v9 = vld [vmem:[%s16002_s4 + $0x20] sm:$0xff] }
 0x608   :  { %v2479_v21 = vadd.f32 %v16572_v46, %v16571_v32  ;;  %3892 = vmatpush.msra.mxu0 %v3532_v3  ;;  %v16575_v42 = vld [vmem:[#allocation147_spill] sm:$0xff]  ;;  %v16576_v35 = vld [vmem:[#allocation148_spill] sm:$0xff]  ;;  %v3290_v10 = vadd.f32 %v12770_v23, %v12768_v54  ;;  %v3345_v16 = vadd.f32 %v3296_v1, %v2673_v50  ;;  %v3526_v32 = vmax.f32 %v3484_v6, 0.0  ;;  %v16578_v38 = vld [vmem:[#allocation42_spill] sm:$0xff] }
 0x609   :  { %v2473_v61 = vadd.f32 %v16576_v35, %v16575_v42  ;;  %3637 = vmatpush.msra.mxu1 %v3530_v63  ;;  %9241 = vmatpush.msrb.mxu2 %v3530_v63  ;;  %v16577_v53 = vld [vmem:[#allocation39_spill] sm:$0xff]  ;;  %v2675_v34 = vadd.f32 %v2627_v57, %v2003_v19  ;;  %v3151_v42 = vadd.f32 %v3150_v55, %v3070_v29  ;;  %v16580_v54 = vld [vmem:[#allocation13_spill] sm:$0xff]  ;;  %v12938_v57 = vld [vmem:[%s16002_s4] sm:$0xff] }
 0x60a   :  { %v2680_v47 = vadd.f32 %v2476_v49, %v16577_v53  ;;  %3893 = vmatpush.msra.mxu0 %v3530_v63  ;;  %v3218_v14 = vpop.f32.mrf.mxu0  ;;  %v3298_v3 = vpop.f32.mrf.mxu1  ;;  %v2682_v2 = vadd.f32 %v2479_v21, %v16578_v38  ;;  %v16579_v28 = vld [vmem:[#allocation43_spill] sm:$0xff]  ;;  %v3284_v23 = vadd.f32 %v16580_v54, %v12639_v7  ;;  %v3287_v19 = vadd.f32 %v12707_v24, %v12705_v58  ;;  %v12943_v25 = vld [vmem:[%s16002_s4 + $0xb0] sm:$0xff] }
 0x60b   :  { %v3299_v30 = vadd.f32 %v3298_v3, %v3218_v14  ;;  %3638 = vmatpush.msra.mxu1 %v3528_v27  ;;  %9242 = vmatpush.msrb.mxu2 %v3528_v27  ;;  %v2684_v62 = vadd.f32 %v2482_v37, %v16579_v28  ;;  %16581 = vst [vmem:[#allocation82_spill] sm:$0xff] %v12943_v25  ;;  %v16585_v37 = vld [vmem:[#allocation36_spill] sm:$0xff] }
 0x60c   :  { %3894 = vmatpush.msra.mxu0 %v3528_v27  ;;  %v3343_v49 = vadd.f32 %v3293_v52, %v2671_v22  ;;  %v3148_v1 = vadd.f32 %v12851_v41, %v12849_v20  ;;  %v3341_v7 = vadd.f32 %v3290_v10, %v2669_v15  ;;  %v3145_v58 = vadd.f32 %v12796_v5, %v12794_v51  ;;  %v16582_v15 = vld [vmem:[#allocation37_spill] sm:$0xff]  ;;  %v16583_v51 = vld [vmem:[#allocation230_spill] sm:$0xff]  ;;  %v16584_v5 = vld [vmem:[#allocation231_spill] sm:$0xff] }
 0x60d   :  { %v3347_v29 = vadd.f32 %v3299_v30, %v2675_v34  ;;  %3639 = vmatpush.msra.mxu1 %v3526_v32  ;;  %9243 = vmatpush.msrb.mxu2 %v3526_v32  ;;  %v12951_v55 = vadd.f32 %v12568_v39, %v3345_v16  ;;  %v3354_v6 = vadd.f32 %v3151_v42, %v2682_v2  ;;  %v16586_v52 = vld [vmem:[#allocation227_spill] sm:$0xff]  ;;  %v16587_v53 = vld [vmem:[#allocation228_spill] sm:$0xff] }
 0x60e   :  { %3895 = vmatpush.msra.mxu0 %v3526_v32  ;;  %v3073_v24 = vpop.f32.mrf.mxu2  ;;  %v3153_v27 = vpop.f32.mrf.mxu3  ;;  %3646 = vmatmul.f32.vlgmr.msrb.gmra.mxu2 %v12927_v9  ;;  %v2678_v41 = vadd.f32 %v2473_v61, %v16582_v15  ;;  %v3281_v46 = vadd.f32 %v16584_v5, %v16583_v51  ;;  %v3339_v21 = vadd.f32 %v3287_v19, %v2667_v44  ;;  %v16591_v34 = vld [vmem:[#allocation224_spill] sm:$0xff]  ;;  %v16596_v19 = vld [vmem:[#allocation219_spill] sm:$0xff] }
 0x60f   :  { %v12954_v63 = vadd.f32 %v12554_v4, %v3347_v29  ;;  %v3154_v20 = vadd.f32 %v3153_v27, %v3073_v24  ;;  %3640 = vmatmul.f32.vlgmr.msra.gmra.mxu1 %v12938_v57  ;;  %3896 = vmatmul.f32.vlgmr.msra.gmra.mxu0 %v12943_v25  ;;  %v3142_v50 = vadd.f32 %v12739_v26, %v12737_v36 }
 0x610   :  { %v3352_v39 = vadd.f32 %v3148_v1, %v2680_v47  ;;  %v12965_v4 = vadd.f32 %v16460_v31, %v3343_v49  ;;  %v2676_v35 = vadd.f32 %v12908_v48, %v16585_v37  ;;  %v3278_v61 = vadd.f32 %v16587_v53, %v16586_v52  ;;  %v16588_v47 = vld [vmem:[#allocation221_spill] sm:$0xff]  ;;  %v12986_v48 = vld [vmem:[%s16002_s4 + $0x30] sm:$0xff]  ;;  %v16607_v53 = vld [vmem:[#allocation31_spill] sm:$0xff] }
 0x611   :  { %v16052_v18 = vmax.f32 %v12954_v63, 0.0  ;;  %v3356_v56 = vadd.f32 %v3154_v20, %v2684_v62  ;;  %v3337_v22 = vadd.f32 %v3284_v23, %v12900_v0  ;;  %v12977_v36 = vadd.f32 %v16472_v11, %v3341_v7  ;;  %v16589_v0 = vld [vmem:[#allocation229_spill] sm:$0xff]  ;;  %v16590_v11 = vld [vmem:[#allocation223_spill] sm:$0xff]  ;;  %v16592_v62 = vld [vmem:[#allocation4_spill] sm:$0xff] }
 0x612   :  { %v12972_v10 = vpop.f32.mrf.mxu0  ;;  %v12974_v44 = vpop.f32.mrf.mxu1  ;;  %v3350_v26 = vadd.f32 %v3145_v58, %v2678_v41  ;;  %v16051_v31 = vmax.f32 %v12951_v55, 0.0  ;;  %v3522_v14 = vadd.f32 %v16589_v0, %v3354_v6  ;;  %v2661_v3 = vadd.f32 %v12884_v33, %v12804_v8  ;;  %v13004_v8 = vld [vmem:[%s16002_s4 + $0xc0] sm:$0xff]  ;;  %v16594_v33 = vld [vmem:[#allocation149_spill] sm:$0xff]  ;;  %v16597_v49 = vld [vmem:[#allocation220_spill] sm:$0xff] }
 0x613   :  { %v3524_v16 = vadd.f32 %v16588_v47, %v3356_v56  ;;  %3724 = vmatpush.msra.mxu2 %v16052_v18  ;;  %v3275_v32 = vadd.f32 %v16591_v34, %v16590_v11  ;;  %v3335_v42 = vadd.f32 %v3281_v46, %v12895_v17  ;;  %v12995_v30 = vadd.f32 %v16482_v13, %v3339_v21  ;;  %v16595_v23 = vld [vmem:[#allocation150_spill] sm:$0xff]  ;;  %v16599_v6 = vld [vmem:[#allocation217_spill] sm:$0xff]  ;;  %v16602_v21 = vld [vmem:[#allocation75_spill] sm:$0xff] }
 0x614   :  { %v3348_v38 = vadd.f32 %v3142_v50, %v2676_v35  ;;  %v16050_v28 = vmax.f32 %v12965_v4, 0.0  ;;  %v3520_v54 = vadd.f32 %v16592_v62, %v3352_v39  ;;  %16593 = vst [vmem:[#allocation33_spill] sm:$0xff] %v13004_v8  ;;  %v2597_v17 = vadd.f32 %v16595_v23, %v16594_v33  ;;  %v16600_v20 = vld [vmem:[#allocation218_spill] sm:$0xff]  ;;  %v16601_v46 = vld [vmem:[#allocation81_spill] sm:$0xff]  ;;  %v16612_v33 = vld [vmem:[#allocation140_spill] sm:$0xff] }
 0x615   :  { %v3566_v2 = vmax.f32 %v3524_v16, 0.0  ;;  %3725 = vmatpush.msra.mxu2 %v16051_v31  ;;  %v2659_v13 = vadd.f32 %v12880_v12, %v12789_v40  ;;  %v3272_v1 = vadd.f32 %v16597_v49, %v16596_v19  ;;  %v3333_v29 = vadd.f32 %v3278_v61, %v2661_v3  ;;  %v16598_v40 = vld [vmem:[#allocation26_spill] sm:$0xff]  ;;  %v16604_v39 = vld [vmem:[#allocation89_spill] sm:$0xff] }
 0x616   :  { %3649 = vmatmul.f32.gmra.mxu2 %v12986_v48  ;;  %v3564_v7 = vmax.f32 %v3522_v14, 0.0  ;;  %v16048_v58 = vmax.f32 %v12977_v36, 0.0  ;;  %v3518_v24 = vadd.f32 %v12670_v60, %v3350_v26  ;;  %v13018_v27 = vadd.f32 %v16492_v45, %v3337_v22  ;;  %v16605_v37 = vld [vmem:[#allocation141_spill] sm:$0xff]  ;;  %v16606_v35 = vld [vmem:[#allocation142_spill] sm:$0xff] }
 0x617   :  { %3685 = vmatpush.msrb.mxu3 %v3566_v2  ;;  %3726 = vmatpush.msra.mxu2 %v16050_v28  ;;  %v2657_v12 = vadd.f32 %v16598_v40, %v12786_v43  ;;  %v3269_v15 = vadd.f32 %v16600_v20, %v16599_v6  ;;  %v3331_v41 = vadd.f32 %v3275_v32, %v2659_v13  ;;  %v3562_v51 = vmax.f32 %v3520_v54, 0.0  ;;  %v16603_v43 = vld [vmem:[#allocation70_spill] sm:$0xff]  ;;  %v16608_v22 = vld [vmem:[#allocation213_spill] sm:$0xff]  ;;  %v16611_v54 = vld [vmem:[#allocation139_spill] sm:$0xff] }
 0x618   :  { %3941 = vmatpush.msrb.mxu1 %v3566_v2  ;;  %3899 = vmatmul.f32.gmra.mxu0 %v13004_v8  ;;  %v16047_v5 = vmax.f32 %v12995_v30, 0.0  ;;  %v3516_v45 = vadd.f32 %v16601_v46, %v3348_v38  ;;  %v13030_v50 = vadd.f32 %v16602_v21, %v3335_v42  ;;  %v1981_v56 = vadd.f32 %v16604_v39, %v16603_v43  ;;  %v16609_v26 = vld [vmem:[#allocation214_spill] sm:$0xff]  ;;  %v16610_v38 = vld [vmem:[#allocation16_spill] sm:$0xff]  ;;  %v16614_v19 = vld [vmem:[#allocation209_spill] sm:$0xff] }
 0x619   :  { %3686 = vmatpush.msrb.mxu3 %v3564_v7  ;;  %3727 = vmatpush.msra.mxu2 %v16048_v58  ;;  %v2591_v52 = vadd.f32 %v16606_v35, %v16605_v37  ;;  %v2655_v61 = vadd.f32 %v2597_v17, %v16607_v53  ;;  %v3266_v16 = vadd.f32 %v16609_v26, %v16608_v22  ;;  %v3560_v34 = vmax.f32 %v3518_v24, 0.0  ;;  %v13049_v42 = vld [vmem:[%s16002_s4 + $0x40] sm:$0xff]  ;;  %v16613_v17 = vld [vmem:[#allocation32_spill] sm:$0xff]  ;;  %v16618_v21 = vld [vmem:[#allocation29_spill] sm:$0xff] }
 0x61a   :  { %3942 = vmatpush.msrb.mxu1 %v3564_v7  ;;  %v13039_v14 = vpop.f32.mrf.mxu0  ;;  %v13041_v3 = vpop.f32.mrf.mxu1  ;;  %v3329_v11 = vadd.f32 %v3272_v1, %v2657_v12  ;;  %v16045_v32 = vmax.f32 %v13018_v27, 0.0  ;;  %v13052_v2 = vadd.f32 %v16610_v38, %v3333_v29  ;;  %v2588_v23 = vadd.f32 %v16612_v33, %v16611_v54  ;;  %v16615_v49 = vld [vmem:[#allocation210_spill] sm:$0xff]  ;;  %v13065_v29 = vld [vmem:[%s16002_s4 + $0x8] sm:$0xff]  ;;  %v16622_v35 = vld [vmem:[#allocation205_spill] sm:$0xff] }
 0x61b   :  { %3687 = vmatpush.msrb.mxu3 %v3562_v51  ;;  %3728 = vmatpush.msra.mxu2 %v16047_v5  ;;  %v2653_v13 = vadd.f32 %v16613_v17, %v1981_v56  ;;  %v3263_v1 = vadd.f32 %v16615_v49, %v16614_v19  ;;  %v3327_v7 = vadd.f32 %v3269_v15, %v2655_v61  ;;  %v3558_v24 = vmax.f32 %v3516_v45, 0.0  ;;  %v16616_v12 = vld [vmem:[#allocation30_spill] sm:$0xff]  ;;  %v16621_v56 = vld [vmem:[#allocation85_spill] sm:$0xff]  ;;  %v13079_v45 = vld [vmem:[%s16002_s4 + $0x10] sm:$0xff] }
 0x61c   :  { %3943 = vmatpush.msrb.mxu1 %v3562_v51  ;;  %v16044_v40 = vmax.f32 %v13030_v50, 0.0  ;;  %v13068_v6 = vadd.f32 %v16616_v12, %v3331_v41  ;;  %v16617_v20 = vld [vmem:[#allocation10_spill] sm:$0xff]  ;;  %v16619_v51 = vld [vmem:[#allocation137_spill] sm:$0xff]  ;;  %v2651_v37 = vadd.f32 %v2591_v52, %v16621_v56  ;;  %v16043_v22 = vmax.f32 %v13052_v2, 0.0  ;;  %v16624_v26 = vld [vmem:[#allocation64_spill] sm:$0xff] }
 0x61d   :  { %3688 = vmatpush.msrb.mxu3 %v3560_v34  ;;  %3729 = vmatpush.msra.mxu2 %v16045_v32  ;;  %v1977_v15 = vadd.f32 %v16618_v21, %v16617_v20  ;;  %v16620_v43 = vld [vmem:[#allocation138_spill] sm:$0xff]  ;;  %v3325_v61 = vadd.f32 %v3266_v16, %v2653_v13  ;;  %v13087_v52 = vadd.f32 %v16624_v26, %v3329_v11  ;;  %v16628_v17 = vld [vmem:[#allocation135_spill] sm:$0xff]  ;;  %v16629_v19 = vld [vmem:[#allocation136_spill] sm:$0xff] }
 0x61e   :  { %v2585_v39 = vadd.f32 %v16620_v43, %v16619_v51  ;;  %3944 = vmatpush.msrb.mxu1 %v3560_v34  ;;  %3652 = vmatmul.f32.gmra.mxu2 %v13049_v42  ;;  %v16623_v53 = vld [vmem:[#allocation206_spill] sm:$0xff]  ;;  %v13092_v34 = vld [vmem:[%s16002_s4 + $0xd0] sm:$0xff]  ;;  %v2582_v16 = vadd.f32 %v16629_v19, %v16628_v17  ;;  %v16630_v49 = vld [vmem:[#allocation201_spill] sm:$0xff]  ;;  %v3323_v20 = vadd.f32 %v3263_v1, %v2651_v37  ;;  %v16042_v21 = vmax.f32 %v13068_v6, 0.0 }
 0x61f   :  { %v3260_v41 = vadd.f32 %v16623_v53, %v16622_v35  ;;  %3689 = vmatpush.msrb.mxu3 %v3558_v24  ;;  %3730 = vmatpush.msra.mxu2 %v16044_v40  ;;  %16625 = vst [vmem:[#allocation28_spill] sm:$0xff] %v13092_v34  ;;  %v16626_v38 = vld [vmem:[#allocation66_spill] sm:$0xff]  ;;  %v2649_v13 = vadd.f32 %v2588_v23, %v1977_v15  ;;  %v16632_v51 = vld [vmem:[#allocation21_spill] sm:$0xff]  ;;  %v16633_v56 = vld [vmem:[#allocation7_spill] sm:$0xff] }
 0x620   :  { %v16627_v54 = vld [vmem:[#allocation22_spill] sm:$0xff]  ;;  %3945 = vmatpush.msrb.mxu1 %v3558_v24  ;;  %8482 = vmatmul.msk.f32.vlgmr.msrb.gmra.mxu3 %vm3590_vm1, %v13065_v29  ;;  %v13107_v43 = vadd.f32 %v16632_v51, %v3327_v7  ;;  %v16634_v23 = vld [vmem:[#allocation79_spill] sm:$0xff]  ;;  %v16635_v1 = vld [vmem:[#allocation197_spill] sm:$0xff]  ;;  %v16040_v7 = vmax.f32 %v13087_v52, 0.0 }
 0x621   :  { %v1975_v33 = vadd.f32 %v16627_v54, %v16626_v38  ;;  %v16631_v12 = vld [vmem:[#allocation202_spill] sm:$0xff]  ;;  %3731 = vmatpush.msra.mxu2 %v16043_v22  ;;  %3643 = vmatmul.f32.gmra.mxu1 %v13079_v45  ;;  %v1973_v24 = vadd.f32 %v16634_v23, %v16633_v56  ;;  %v3321_v38 = vadd.f32 %v3260_v41, %v2649_v13  ;;  %v13124_v54 = vld [vmem:[%s16002_s4 + $0x50] sm:$0xff]  ;;  %v13135_v13 = vld [vmem:[%s16002_s4 + $0x18] sm:$0xff] }
 0x622   :  { %v3257_v11 = vadd.f32 %v16631_v12, %v16630_v49  ;;  %v13111_v35 = vpop.f32.mrf.mxu0  ;;  %v13113_v53 = vpop.f32.mrf.mxu1  ;;  %3902 = vmatmul.f32.gmra.mxu0 %v13092_v34  ;;  %v16636_v37 = vld [vmem:[#allocation198_spill] sm:$0xff]  ;;  %v16041_v41 = vmax.f32 %v13107_v43, 0.0  ;;  %v16638_v49 = vld [vmem:[#allocation67_spill] sm:$0xff]  ;;  %v16663_v31 = vld [vmem:[#allocation109_spill] sm:$0xff] }
 0x623   :  { %v2647_v15 = vadd.f32 %v2585_v39, %v1975_v33  ;;  %v3254_v26 = vadd.f32 %v16636_v37, %v16635_v1  ;;  %3732 = vmatpush.msra.mxu2 %v16042_v21  ;;  %v16637_v39 = vld [vmem:[#allocation71_spill] sm:$0xff]  ;;  %v2645_v17 = vadd.f32 %v2582_v16, %v1973_v24  ;;  %v13138_v12 = vadd.f32 %v16638_v49, %v3323_v20  ;;  %v16642_v24 = vld [vmem:[#allocation76_spill] sm:$0xff]  ;;  %v13157_v20 = vld [vmem:[%s16002_s4 + $0xe0] sm:$0xff] }
 0x624   :  { %v13127_v33 = vadd.f32 %v16637_v39, %v3325_v61  ;;  %v13144_v61 = vld [vmem:[%s16002_s4 + $0xb8] sm:$0xff]  ;;  %v16640_v16 = vld [vmem:[#allocation59_spill] sm:$0xff]  ;;  %16643 = vst [vmem:[#allocation34_spill] sm:$0xff] %v13157_v20  ;;  %v16645_v37 = vld [vmem:[#allocation58_spill] sm:$0xff] }
 0x625   :  { %v3319_v19 = vadd.f32 %v3257_v11, %v2647_v15  ;;  %3733 = vmatpush.msra.mxu2 %v16040_v7  ;;  %16639 = vst [vmem:[#allocation86_spill] sm:$0xff] %v13144_v61  ;;  %v16641_v11 = vld [vmem:[#allocation60_spill] sm:$0xff]  ;;  %v3317_v56 = vadd.f32 %v3254_v26, %v2645_v17  ;;  %v13152_v15 = vadd.f32 %v16642_v24, %v3321_v38  ;;  %v16644_v1 = vld [vmem:[#allocation57_spill] sm:$0xff]  ;;  %v16647_v7 = vld [vmem:[#allocation62_spill] sm:$0xff]  ;;  %v16049_v24 = vmax.f32 %v13138_v12, 0.0 }
 0x626   :  { %3655 = vmatmul.f32.gmra.mxu2 %v13124_v54  ;;  %v1017_v51 = vadd.f32 %v16641_v11, %v16640_v16  ;;  %v16046_v23 = vmax.f32 %v13127_v33, 0.0  ;;  %v1014_v39 = vadd.f32 %v16645_v37, %v16644_v1  ;;  %v16646_v49 = vld [vmem:[#allocation61_spill] sm:$0xff]  ;;  %v16648_v26 = vld [vmem:[#allocation47_spill] sm:$0xff]  ;;  %v16649_v17 = vld [vmem:[#allocation102_spill] sm:$0xff] }
 0x627   :  { %3734 = vmatpush.msra.mxu2 %v16041_v41  ;;  %v1020_v16 = vadd.f32 %v16647_v7, %v16646_v49  ;;  %v1248_v11 = vadd.f32 %v16649_v17, %v16648_v26  ;;  %v16650_v41 = vld [vmem:[#allocation108_spill] sm:$0xff]  ;;  %v16652_v7 = vld [vmem:[#allocation106_spill] sm:$0xff]  ;;  %v16664_v17 = vld [vmem:[#allocation183_spill] sm:$0xff]  ;;  %v16666_v34 = vmax.f32 %v13152_v15, 0.0 }
 0x628   :  { %8483 = vmatmul.msk.f32.gmra.mxu3 %vm3590_vm1, %v13135_v13  ;;  %v1257_v38 = vadd.f32 %v16650_v41, %v1017_v51  ;;  %v16651_v1 = vld [vmem:[#allocation80_spill] sm:$0xff]  ;;  %v1254_v49 = vadd.f32 %v16652_v7, %v1014_v39  ;;  %v16653_v21 = vld [vmem:[#allocation110_spill] sm:$0xff]  ;;  %v16655_v51 = vld [vmem:[#allocation115_spill] sm:$0xff]  ;;  %v13190_v39 = vadd.f32 %v12890_v59, %v3317_v56 }
 0x629   :  { %3735 = vmatpush.msra.mxu2 %v16046_v23  ;;  %8526 = vmatmul.msk.f32.vlgmr.msrb.gmra.mxu1 %vm3590_vm1, %v13144_v61  ;;  %v13174_v37 = vadd.f32 %v16651_v1, %v3319_v19  ;;  %v1260_v22 = vadd.f32 %v16653_v21, %v1020_v16  ;;  %v16654_v41 = vld [vmem:[#allocation114_spill] sm:$0xff]  ;;  %v16657_v16 = vld [vmem:[#allocation104_spill] sm:$0xff]  ;;  %v16659_v23 = vld [vmem:[#allocation113_spill] sm:$0xff] }
 0x62a   :  { %v3230_v40 = vpop.f32.mrf.mxu0  ;;  %v3310_v32 = vpop.f32.mrf.mxu1  ;;  %3905 = vmatmul.f32.gmra.mxu0 %v13157_v20  ;;  %v1967_v26 = vadd.f32 %v16655_v51, %v16654_v41  ;;  %v13187_v19 = vld [vmem:[%s16002_s4 + $0x60] sm:$0xff]  ;;  %v16658_v7 = vld [vmem:[#allocation112_spill] sm:$0xff]  ;;  %v16661_v51 = vld [vmem:[#allocation117_spill] sm:$0xff]  ;;  %v1337_v18 = vadd.f32 %v16663_v31, %v1257_v38 }
 0x62b   :  { %3736 = vmatpush.msra.mxu2 %v16049_v24  ;;  %v16656_v21 = vld [vmem:[#allocation50_spill] sm:$0xff]  ;;  %v1964_v5 = vadd.f32 %v16659_v23, %v16658_v7  ;;  %v16660_v41 = vld [vmem:[#allocation116_spill] sm:$0xff]  ;;  %v16662_v24 = vld [vmem:[#allocation103_spill] sm:$0xff] }
 0x62c   :  { %v1251_v1 = vadd.f32 %v16657_v16, %v16656_v21  ;;  %v1970_v58 = vadd.f32 %v16661_v51, %v16660_v41  ;;  %v1328_v28 = vadd.f32 %v16662_v24, %v1248_v11  ;;  %v16665_v61 = vld [vmem:[#allocation184_spill] sm:$0xff]  ;;  %v13208_v56 = vld [vmem:[%s16002_s4 + $0x28] sm:$0xff]  ;;  %v16671_v38 = vld [vmem:[#allocation181_spill] sm:$0xff] }
 0x62d   :  { %v2639_v20 = vadd.f32 %v16665_v61, %v16664_v17  ;;  %3737 = vmatpush.msra.mxu2 %v16666_v34  ;;  %v16667_v23 = vld [vmem:[#allocation107_spill] sm:$0xff]  ;;  %v16670_v24 = vld [vmem:[#allocation20_spill] sm:$0xff]  ;;  %v16672_v41 = vld [vmem:[#allocation182_spill] sm:$0xff]  ;;  %v2011_v17 = vadd.f32 %v1967_v26, %v1337_v18 }
 0x62e   :  { %v1334_v21 = vadd.f32 %v16667_v23, %v1254_v49  ;;  %v16668_v16 = vld [vmem:[#allocation111_spill] sm:$0xff]  ;;  %v2636_v61 = vadd.f32 %v16672_v41, %v16671_v38  ;;  %3658 = vmatmul.f32.gmra.mxu2 %v13187_v19  ;;  %v16673_v51 = vld [vmem:[#allocation185_spill] sm:$0xff]  ;;  %v16674_v59 = vld [vmem:[#allocation186_spill] sm:$0xff]  ;;  %v3311_v49 = vadd.f32 %v3310_v32, %v3230_v40  ;;  %v3527_v23 = vmax.f32 %v13190_v39, 0.0 }
 0x62f   :  { %v1340_v7 = vadd.f32 %v16668_v16, %v1260_v22  ;;  %v16669_v11 = vld [vmem:[#allocation19_spill] sm:$0xff]  ;;  %v2642_v8 = vadd.f32 %v16674_v59, %v16673_v51  ;;  %v16675_v22 = vmax.f32 %v13174_v37, 0.0  ;;  %v13230_v16 = vld [vmem:[%s16002_s4 + $0xf0] sm:$0xff]  ;;  %v2683_v51 = vadd.f32 %v2639_v20, %v2011_v17  ;;  %v13407_v39 = vld [vmem:[%s16002_s4 + $0x140] sm:$0xff] }
 0x630   :  { %v1961_v31 = vadd.f32 %v16670_v24, %v16669_v11  ;;  %v13220_v34 = vld [vmem:[%s16002_s4 + $0xc8] sm:$0xff]  ;;  %v16676_v11 = vld [vmem:[#allocation105_spill] sm:$0xff]  ;;  %v16678_v41 = vld [vmem:[#allocation56_spill] sm:$0xff]  ;;  %v2009_v18 = vadd.f32 %v1964_v5, %v1334_v21  ;;  %8484 = vmatmul.msk.f32.gmra.mxu3 %vm3590_vm1, %v13208_v56 }
 0x631   :  { %3738 = vmatpush.msra.mxu2 %v16675_v22  ;;  %v1331_v24 = vadd.f32 %v16676_v11, %v1251_v1  ;;  %v16677_v38 = vld [vmem:[#allocation55_spill] sm:$0xff]  ;;  %v2013_v26 = vadd.f32 %v1970_v58, %v1340_v7  ;;  %v16680_v40 = vld [vmem:[#allocation180_spill] sm:$0xff]  ;;  %v3308_v22 = vadd.f32 %v13113_v53, %v13111_v35  ;;  %8527 = vmatmul.msk.f32.gmra.mxu1 %vm3590_vm1, %v13220_v34  ;;  %v16681_v11 = vld [vmem:[#allocation177_spill] sm:$0xff] }
 0x632   :  { %v1958_v25 = vadd.f32 %v16678_v41, %v16677_v38  ;;  %v16679_v32 = vld [vmem:[#allocation179_spill] sm:$0xff]  ;;  %v16682_v5 = vld [vmem:[#allocation178_spill] sm:$0xff]  ;;  %v2681_v21 = vadd.f32 %v2636_v61, %v2009_v18  ;;  %v3233_v7 = vpop.f32.mrf.mxu0  ;;  %v3313_v38 = vpop.f32.mrf.mxu1  ;;  %v16683_v41 = vmax.f32 %v12954_v63, 0.0  ;;  %3908 = vmatmul.f32.gmra.mxu0 %v13230_v16  ;;  %v3305_v35 = vadd.f32 %v13041_v3, %v13039_v14  ;;  %v13264_v14 = vld [vmem:[%s16002_s4 + $0x38] sm:$0xff] }
 0x633   :  { %v2633_v59 = vadd.f32 %v16680_v40, %v16679_v32  ;;  %3739 = vmatpush.msra.mxu2 %v3527_v23  ;;  %v2007_v1 = vadd.f32 %v1961_v31, %v1331_v24  ;;  %v2630_v58 = vadd.f32 %v16682_v5, %v16681_v11  ;;  %v2685_v20 = vadd.f32 %v2642_v8, %v2013_v26  ;;  %v13255_v31 = vld [vmem:[%s16002_s4 + $0x70] sm:$0xff] }
 0x634   :  { %v3355_v53 = vadd.f32 %v3311_v49, %v2683_v51  ;;  %v3314_v17 = vadd.f32 %v3313_v38, %v3233_v7  ;;  %v2005_v24 = vadd.f32 %v1958_v25, %v1328_v28  ;;  %v16684_v61 = vmax.f32 %v12951_v55, 0.0  ;;  %v13270_v25 = vld [vmem:[%s16002_s4 + $0xd8] sm:$0xff]  ;;  %v13279_v49 = vld [vmem:[%s16002_s4 + $0x100] sm:$0xff] }
 0x635   :  { %3980 = vmatpush.msrb.mxu2 %v16683_v41  ;;  %v2679_v18 = vadd.f32 %v2633_v59, %v2007_v1  ;;  %v3302_v63 = vadd.f32 %v12974_v44, %v12972_v10  ;;  %v3353_v32 = vadd.f32 %v3308_v22, %v2681_v21  ;;  %v16685_v10 = vmax.f32 %v12965_v4, 0.0  ;;  %v13294_v51 = vld [vmem:[%s16002_s4 + $0x80] sm:$0xff]  ;;  %v13330_v21 = vld [vmem:[%s16002_s4 + $0x90] sm:$0xff]  ;;  %v13337_v7 = vld [vmem:[%s16002_s4 + $0x58] sm:$0xff] }
 0x636   :  { %v3357_v8 = vadd.f32 %v3314_v17, %v2685_v20  ;;  %3661 = vmatmul.f32.gmra.mxu2 %v13255_v31  ;;  %v2677_v55 = vadd.f32 %v2630_v58, %v2005_v24  ;;  %v3523_v44 = vadd.f32 %v16589_v0, %v3355_v53  ;;  %v16686_v59 = vmax.f32 %v12977_v36, 0.0  ;;  %v13345_v38 = vld [vmem:[%s16002_s4 + $0xf8] sm:$0xff]  ;;  %v13364_v20 = vld [vmem:[%s16002_s4 + $0xa0] sm:$0xf]  ;;  %v13379_v53 = vld [vmem:[%s16002_s4 + $0x108] sm:$0xff] }
 0x637   :  { %3981 = vmatpush.msrb.mxu2 %v16684_v61  ;;  %v3351_v28 = vadd.f32 %v3305_v35, %v2679_v18  ;;  %v3521_v4 = vadd.f32 %v16592_v62, %v3353_v32  ;;  %v16688_v22 = vmax.f32 %v13018_v27, 0.0  ;;  %v13302_v62 = vld [vmem:[%s16002_s4 + $0x48] sm:$0xff]  ;;  %v16689_v11 = vmax.f32 %v13030_v50, 0.0  ;;  %v13316_v27 = vld [vmem:[%s16002_s4 + $0x110] sm:$0xff]  ;;  %v13402_v17 = vld [vmem:[%s16002_s4 + $0x118] sm:$0xff] }
 0x638   :  { %v3525_v3 = vadd.f32 %v16588_v47, %v3357_v8  ;;  %8485 = vmatmul.msk.f32.gmra.mxu3 %vm3590_vm1, %v13264_v14  ;;  %v3349_v26 = vadd.f32 %v3302_v63, %v2677_v55  ;;  %v16687_v47 = vmax.f32 %v12995_v30, 0.0  ;;  %v3565_v0 = vmax.f32 %v3523_v44, 0.0  ;;  %v13428_v24 = vld [vmem:[%s16002_s4 + $0x150] sm:$0xf]  ;;  %v13444_v61 = vld [vmem:[%s16002_s4 + $0x138] sm:$0xff]  ;;  %v13465_v32 = vld [vmem:[%s16002_s4 + $0x148] sm:$0xff] }
 0x639   :  { %3982 = vmatpush.msrb.mxu2 %v16685_v10  ;;  %8528 = vmatmul.msk.f32.gmra.mxu1 %vm3590_vm1, %v13270_v25  ;;  %v3519_v36 = vadd.f32 %v12670_v60, %v3351_v28  ;;  %v3563_v1 = vmax.f32 %v3521_v4, 0.0  ;;  %v13311_v60 = vld [vmem:[%s16002_s4 + $0xe8] sm:$0xff]  ;;  %v16691_v58 = vmax.f32 %v13068_v6, 0.0  ;;  %v16693_v6 = vmax.f32 %v13107_v43, 0.0  ;;  %v4117_v18 = vld [vmem:[%s16003_s5 + $0x78] sm:$0xff]  ;;  %v4112_v28 = vld [vmem:[%s16003_s5 + $0x50] sm:$0xff] }
 0x63a   :  { %v3567_v40 = vmax.f32 %v3525_v3, 0.0  ;;  %3911 = vmatmul.f32.gmra.mxu0 %v13279_v49  ;;  %v3517_v30 = vadd.f32 %v16601_v46, %v3349_v26  ;;  %v16690_v46 = vmax.f32 %v13052_v2, 0.0  ;;  %v16692_v2 = vmax.f32 %v13087_v52, 0.0  ;;  %v13350_v52 = vld [vmem:[%s16002_s4 + $0x120] sm:$0xff]  ;;  %v13456_v63 = vld [vmem:[%s16002_s4 + $0xa8] sm:$0xf] }
 0x63b   :  { %3983 = vmatpush.msrb.mxu2 %v16686_v59  ;;  %v3561_v5 = vmax.f32 %v3519_v36, 0.0  ;;  %v16694_v41 = vmax.f32 %v13127_v33, 0.0  ;;  %v16695_v43 = vmax.f32 %v13138_v12, 0.0  ;;  %v16696_v35 = vmax.f32 %v13152_v15, 0.0  ;;  %v13371_v33 = vld [vmem:[%s16002_s4 + $0x68] sm:$0xff]  ;;  %v13384_v15 = vld [vmem:[%s16002_s4 + $0x130] sm:$0xff]  ;;  %4163 = vmatpush.msrb.mxu0 %v4117_v18 }
 0x63c   :  { %3785 = vmatpush.msra.mxu3 %v3567_v40  ;;  %v3559_v50 = vmax.f32 %v3517_v30, 0.0  ;;  %v16697_v12 = vmax.f32 %v13174_v37, 0.0  ;;  %v13396_v37 = vld [vmem:[%s16002_s4 + $0x78] sm:$0xff]  ;;  %v4115_v8 = vld [vmem:[%s16003_s5 + $0x68] sm:$0xff]  ;;  %v4102_v4 = vld [vmem:[%s16003_s5] sm:$0xff] }
 0x63d   :  { %3984 = vmatpush.msrb.mxu2 %v16687_v47  ;;  %v4113_v55 = vld [vmem:[%s16003_s5 + $0x58] sm:$0xff]  ;;  %v4111_v10 = vld [vmem:[%s16003_s5 + $0x48] sm:$0xff] }
 0x63e   :  { %3786 = vmatpush.msra.mxu3 %v3565_v0  ;;  %3664 = vmatmul.f32.gmra.mxu2 %v13294_v51  ;;  %v13487_v3 = vld [vmem:[%s16002_s4 + $0x158] sm:$0xf]  ;;  %v4107_v26 = vld [vmem:[%s16003_s5 + $0x28] sm:$0xff] }
 0x63f   :  { %3985 = vmatpush.msrb.mxu2 %v16688_v22  ;;  %v4109_v44 = vld [vmem:[%s16003_s5 + $0x38] sm:$0xff]  ;;  %v4103_v59 = vld [vmem:[%s16003_s5 + $0x8] sm:$0xff] }
 0x640   :  { %3787 = vmatpush.msra.mxu3 %v3563_v1 }
 0x641   :  { %3986 = vmatpush.msrb.mxu2 %v16689_v11  ;;  %8486 = vmatmul.msk.f32.gmra.mxu3 %vm3590_vm1, %v13302_v62 }
 0x642   :  { %3788 = vmatpush.msra.mxu3 %v3561_v5  ;;  %8529 = vmatmul.msk.f32.gmra.mxu1 %vm3590_vm1, %v13311_v60 }
 0x643   :  { %3987 = vmatpush.msrb.mxu2 %v16690_v46  ;;  %3914 = vmatmul.f32.gmra.mxu0 %v13316_v27 }
 0x644   :  { %3789 = vmatpush.msra.mxu3 %v3559_v50 }
 0x645   :  { %3988 = vmatpush.msrb.mxu2 %v16691_v58  ;;  %v16698_v58 = vld [vmem:[#allocation82_spill] sm:$0xff] }
 0x646   :  { %4041 = vmatpush.msrb.mxu3 %v3567_v40  ;;  %3667 = vmatmul.f32.gmra.mxu2 %v13330_v21  ;;  %v4106_v40 = vld [vmem:[%s16003_s5 + $0x20] sm:$0xff] }
 0x647   :  { %3989 = vmatpush.msrb.mxu2 %v16692_v2 }
 0x648   :  { %4042 = vmatpush.msrb.mxu3 %v3565_v0 }
 0x649   :  { %3990 = vmatpush.msrb.mxu2 %v16693_v6  ;;  %8487 = vmatmul.msk.f32.gmra.mxu3 %vm3590_vm1, %v13337_v7 }
 0x64a   :  { %4043 = vmatpush.msrb.mxu3 %v3563_v1  ;;  %8530 = vmatmul.msk.f32.gmra.mxu1 %vm3590_vm1, %v13345_v38 }
 0x64b   :  { %3991 = vmatpush.msrb.mxu2 %v16694_v41  ;;  %3917 = vmatmul.f32.gmra.mxu0 %v13350_v52 }
 0x64c   :  { %4044 = vmatpush.msrb.mxu3 %v3561_v5 }
 0x64d   :  { %3992 = vmatpush.msrb.mxu2 %v16695_v43 }
 0x64e   :  { %4045 = vmatpush.msrb.mxu3 %v3559_v50  ;;  %3670 = vmatmul.f32.gmra.mxu2 %v13364_v20 }
 0x64f   :  { %3993 = vmatpush.msrb.mxu2 %v16696_v35  ;;  %v16699_v35 = vld [vmem:[#allocation33_spill] sm:$0xff] }
 0x651   :  { %3994 = vmatpush.msrb.mxu2 %v16697_v12  ;;  %8488 = vmatmul.msk.f32.gmra.mxu3 %vm3590_vm1, %v13371_v33 }
 0x652   :  { %8531 = vmatmul.msk.f32.gmra.mxu1 %vm3590_vm1, %v13379_v53 }
 0x653   :  { %3995 = vmatpush.msrb.mxu2 %v3527_v23  ;;  %3920 = vmatmul.f32.gmra.mxu0 %v13384_v15  ;;  %v13423_v23 = vld [vmem:[%s16002_s4 + $0x128] sm:$0xff] }
 0x656   :  { %3740 = vmatmul.f32.vlgmr.msra.gmra.mxu2 %v12938_v57  ;;  %v13417_v57 = vld [vmem:[%s16002_s4 + $0x88] sm:$0xff] }
 0x659   :  { %8489 = vmatmul.msk.f32.gmra.mxu3 %vm3590_vm1, %v13396_v37 }
 0x65a   :  { %8532 = vmatmul.msk.f32.gmra.mxu1 %vm3590_vm1, %v13402_v17 }
 0x65b   :  { %3923 = vmatmul.f32.gmra.mxu0 %v13407_v39 }
 0x65e   :  { %3743 = vmatmul.f32.gmra.mxu2 %v13079_v45  ;;  %v13438_v45 = vld [vmem:[%s16002_s4 + $0x98] sm:$0xff] }
 0x661   :  { %8490 = vmatmul.msk.f32.gmra.mxu3 %vm3590_vm1, %v13417_v57 }
 0x662   :  { %8533 = vmatmul.msk.f32.gmra.mxu1 %vm3590_vm1, %v13423_v23 }
 0x663   :  { %3926 = vmatmul.f32.gmra.mxu0 %v13428_v24 }
 0x666   :  { %3746 = vmatmul.f32.gmra.mxu2 %v12927_v9  ;;  %v4116_v9 = vld [vmem:[%s16003_s5 + $0x70] sm:$0xff] }
 0x667   :  { %4164 = vmatpush.msrb.mxu0 %v4116_v9 }
 0x669   :  { %8491 = vmatmul.msk.f32.gmra.mxu3 %vm3590_vm1, %v13438_v45  ;;  %4165 = vmatpush.msrb.mxu0 %v4115_v8 }
 0x66a   :  { %8534 = vmatmul.msk.f32.gmra.mxu1 %vm3590_vm1, %v13444_v61 }
 0x66e   :  { %3749 = vmatmul.f32.gmra.mxu2 %v12986_v48  ;;  %v4114_v48 = vld [vmem:[%s16003_s5 + $0x60] sm:$0xff] }
 0x66f   :  { %4166 = vmatpush.msrb.mxu0 %v4114_v48 }
 0x671   :  { %8492 = vmatmul.msk.f32.gmra.mxu3 %vm3590_vm1, %v13456_v63  ;;  %4167 = vmatpush.msrb.mxu0 %v4113_v55  ;;  %v16700_v55 = vld [vmem:[#allocation28_spill] sm:$0xff] }
 0x672   :  { %8535 = vmatmul.msk.f32.gmra.mxu1 %vm3590_vm1, %v13465_v32 }
 0x673   :  { %4168 = vmatpush.msrb.mxu0 %v4112_v28 }
 0x675   :  { %4169 = vmatpush.msrb.mxu0 %v4111_v10 }
 0x676   :  { %3752 = vmatmul.f32.gmra.mxu2 %v13049_v42  ;;  %v4110_v42 = vld [vmem:[%s16003_s5 + $0x40] sm:$0xff] }
 0x677   :  { %4170 = vmatpush.msrb.mxu0 %v4110_v42 }
 0x679   :  { %8493 = vmatmul.msk.f32.vlgmr.msra.gmra.mxu3 %vm3590_vm1, %v13065_v29  ;;  %4171 = vmatpush.msrb.mxu0 %v4109_v44  ;;  %v4108_v29 = vld [vmem:[%s16003_s5 + $0x30] sm:$0xff] }
 0x67a   :  { %8536 = vmatmul.msk.f32.gmra.mxu1 %vm3590_vm1, %v13487_v3 }
 0x67b   :  { %4172 = vmatpush.msrb.mxu0 %v4108_v29 }
 0x67d   :  { %4173 = vmatpush.msrb.mxu0 %v4107_v26 }
 0x67e   :  { %3755 = vmatmul.f32.gmra.mxu2 %v13124_v54  ;;  %v4105_v54 = vld [vmem:[%s16003_s5 + $0x18] sm:$0xff] }
 0x67f   :  { %4174 = vmatpush.msrb.mxu0 %v4106_v40  ;;  %v16701_v40 = vld [vmem:[#allocation34_spill] sm:$0xff] }
 0x681   :  { %8494 = vmatmul.msk.f32.gmra.mxu3 %vm3590_vm1, %v13135_v13  ;;  %4175 = vmatpush.msrb.mxu0 %v4105_v54  ;;  %v4104_v13 = vld [vmem:[%s16003_s5 + $0x10] sm:$0xff]  ;;  %v8574_v54 = vld [vmem:[%s16003_s5 + $0x158] sm:$0xff] }
 0x682   :  { %4292 = vmatpush.msra.mxu2 %v8574_v54 }
 0x683   :  { %4176 = vmatpush.msrb.mxu0 %v4104_v13 }
 0x685   :  { %4177 = vmatpush.msrb.mxu0 %v4103_v59 }
 0x686   :  { %3758 = vmatmul.f32.gmra.mxu2 %v13187_v19 }
 0x687   :  { %4178 = vmatpush.msrb.mxu0 %v4102_v4 }
 0x689   :  { %8495 = vmatmul.msk.f32.gmra.mxu3 %vm3590_vm1, %v13208_v56 }
 0x68c   :  { %v3897_v47 = vpop.f32.mrf.mxu0  ;;  %v3641_v0 = vpop.f32.mrf.mxu1 }
 0x68e   :  { %3761 = vmatmul.f32.gmra.mxu2 %v13255_v31 }
 0x691   :  { %8496 = vmatmul.msk.f32.gmra.mxu3 %vm3590_vm1, %v13264_v14  ;;  %v3647_v19 = vpop.f32.mrf.mxu2 }
 0x695   :  { %v3900_v36 = vpop.f32.mrf.mxu0 }
 0x696   :  { %3764 = vmatmul.f32.gmra.mxu2 %v13294_v51 }
 0x699   :  { %8497 = vmatmul.msk.f32.gmra.mxu3 %vm3590_vm1, %v13302_v62  ;;  %v3650_v56 = vpop.f32.mrf.mxu2 }
 0x69e   :  { %3767 = vmatmul.f32.gmra.mxu2 %v13330_v21  ;;  %v3644_v22 = vpop.f32.mrf.mxu1 }
 0x69f   :  { %v3903_v14 = vpop.f32.mrf.mxu0 }
 0x6a1   :  { %8498 = vmatmul.msk.f32.gmra.mxu3 %vm3590_vm1, %v13337_v7  ;;  %v3653_v31 = vpop.f32.mrf.mxu2 }
 0x6a3   :  { %v3691_v1 = vpop.f32.mrf.mxu3 }
 0x6a4   :  { %v3692_v30 = vadd.f32 %v3691_v1, %v3641_v0  ;;  %v8572_v0 = vld [vmem:[%s16003_s5 + $0x148] sm:$0xff]  ;;  %v16702_v1 = vld [vmem:[#allocation86_spill] sm:$0xff] }
 0x6a6   :  { %3770 = vmatmul.f32.gmra.mxu2 %v13364_v20  ;;  %v3947_v11 = vpop.f32.mrf.mxu1 }
 0x6a7   :  { %v3948_v5 = vadd.f32 %v3947_v11, %v3897_v47  ;;  %v3906_v7 = vpop.f32.mrf.mxu0 }
 0x6a9   :  { %8499 = vmatmul.msk.f32.gmra.mxu3 %vm3590_vm1, %v13371_v33  ;;  %v3656_v51 = vpop.f32.mrf.mxu2  ;;  %v13541_v62 = vmax.f32 %v3692_v30, %v3948_v5  ;;  %v8569_v5 = vld [vmem:[%s16003_s5 + $0x130] sm:$0xff] }
 0x6ab   :  { %v3694_v46 = vpop.f32.mrf.mxu3  ;;  %4179 = vmatmul.f32.vlgmr.msrb.gmra.mxu0 %v13541_v62 }
 0x6ac   :  { %v3695_v50 = vadd.f32 %v3694_v46, %v3644_v22  ;;  %v8570_v22 = vld [vmem:[%s16003_s5 + $0x138] sm:$0xff]  ;;  %v8567_v46 = vld [vmem:[%s16003_s5 + $0x120] sm:$0xff] }
 0x6ae   :  { %3996 = vmatmul.f32.vlgmr.msrb.gmra.mxu2 %v16698_v58  ;;  %v3950_v21 = vpop.f32.mrf.mxu1  ;;  %v8566_v58 = vld [vmem:[%s16003_s5 + $0x118] sm:$0xff] }
 0x6af   :  { %v3951_v2 = vadd.f32 %v3950_v21, %v3900_v36  ;;  %v3909_v8 = vpop.f32.mrf.mxu0 }
 0x6b1   :  { %8500 = vmatmul.msk.f32.gmra.mxu3 %vm3590_vm1, %v13396_v37  ;;  %v3659_v6 = vpop.f32.mrf.mxu2  ;;  %v13547_v41 = vmax.f32 %v3695_v50, %v3951_v2 }
 0x6b3   :  { %v3697_v43 = vpop.f32.mrf.mxu3  ;;  %4182 = vmatmul.f32.gmra.mxu0 %v13547_v41 }
 0x6b4   :  { %v3698_v20 = vadd.f32 %v3697_v43, %v3647_v19  ;;  %v8573_v19 = vld [vmem:[%s16003_s5 + $0x150] sm:$0xff] }
 0x6b5   :  { %4293 = vmatpush.msra.mxu2 %v8573_v19 }
 0x6b6   :  { %3999 = vmatmul.f32.gmra.mxu2 %v16699_v35  ;;  %v3953_v33 = vpop.f32.mrf.mxu1  ;;  %v8564_v35 = vld [vmem:[%s16003_s5 + $0x108] sm:$0xff] }
 0x6b7   :  { %v3954_v12 = vadd.f32 %v3953_v33, %v3903_v14  ;;  %v3912_v29 = vpop.f32.mrf.mxu0  ;;  %4294 = vmatpush.msra.mxu2 %v8572_v0 }
 0x6b9   :  { %8501 = vmatmul.msk.f32.gmra.mxu3 %vm3590_vm1, %v13417_v57  ;;  %v13553_v18 = vpop.f32.mrf.mxu2  ;;  %v13555_v9 = vmax.f32 %v3698_v20, %v3954_v12  ;;  %v8562_v12 = vld [vmem:[%s16003_s5 + $0xf8] sm:$0xff] }
 0x6bb   :  { %v3700_v37 = vpop.f32.mrf.mxu3  ;;  %4185 = vmatmul.f32.gmra.mxu0 %v13555_v9 }
 0x6bc   :  { %v3701_v48 = vadd.f32 %v3700_v37, %v3650_v56 }
 0x6be   :  { %4002 = vmatmul.f32.gmra.mxu2 %v16700_v55 }
 0x6bf   :  { %v3956_v28 = vpop.f32.mrf.mxu1 }
 0x6c0   :  { %v3957_v10 = vadd.f32 %v3956_v28, %v3906_v7  ;;  %v3915_v56 = vpop.f32.mrf.mxu0 }
 0x6c1   :  { %8502 = vmatmul.msk.f32.gmra.mxu3 %vm3590_vm1, %v13438_v45  ;;  %v13561_v42 = vpop.f32.mrf.mxu2 }
 0x6c2   :  { %v13563_v44 = vmax.f32 %v3701_v48, %v3957_v10  ;;  %v8560_v10 = vld [vmem:[%s16003_s5 + $0xe8] sm:$0xff] }
 0x6c4   :  { %v3703_v57 = vpop.f32.mrf.mxu3  ;;  %4188 = vmatmul.f32.gmra.mxu0 %v13563_v44 }
 0x6c5   :  { %v3704_v26 = vadd.f32 %v3703_v57, %v3653_v31 }
 0x6c6   :  { %4005 = vmatmul.f32.gmra.mxu2 %v16701_v40 }
 0x6c7   :  { %v3959_v13 = vpop.f32.mrf.mxu1 }
 0x6c8   :  { %v3960_v45 = vadd.f32 %v3959_v13, %v3909_v8  ;;  %v3918_v2 = vpop.f32.mrf.mxu0 }
 0x6c9   :  { %8503 = vmatmul.msk.f32.gmra.mxu3 %vm3590_vm1, %v13456_v63  ;;  %v13572_v59 = vpop.f32.mrf.mxu2  ;;  %v8571_v63 = vld [vmem:[%s16003_s5 + $0x140] sm:$0xff] }
 0x6ca   :  { %v13574_v4 = vmax.f32 %v3704_v26, %v3960_v45  ;;  %4295 = vmatpush.msra.mxu2 %v8571_v63 }
 0x6cc   :  { %v3706_v47 = vpop.f32.mrf.mxu3  ;;  %4191 = vmatmul.f32.gmra.mxu0 %v13574_v4  ;;  %4296 = vmatpush.msra.mxu2 %v8570_v22 }
 0x6cd   :  { %v3707_v36 = vadd.f32 %v3706_v47, %v3656_v51  ;;  %v8568_v51 = vld [vmem:[%s16003_s5 + $0x128] sm:$0xff] }
 0x6ce   :  { %4008 = vmatmul.f32.gmra.mxu2 %v13230_v16 }
 0x6cf   :  { %v3962_v31 = vpop.f32.mrf.mxu1  ;;  %4297 = vmatpush.msra.mxu2 %v8569_v5  ;;  %v8583_v5 = vld [vmem:[%s16003_s5 + $0x1a0] sm:$0xff] }
 0x6d0   :  { %v3963_v30 = vadd.f32 %v3962_v31, %v3912_v29  ;;  %v3921_v55 = vpop.f32.mrf.mxu0 }
 0x6d1   :  { %8537 = vmatmul.msk.f32.vlgmr.msrb.gmra.mxu3 %vm3590_vm1, %v16702_v1  ;;  %v13592_v14 = vpop.f32.mrf.mxu2  ;;  %4298 = vmatpush.msra.mxu2 %v8568_v51 }
 0x6d2   :  { %v13594_v11 = vmax.f32 %v3707_v36, %v3963_v30  ;;  %v8584_v30 = vld [vmem:[%s16003_s5 + $0x1a8] sm:$0xff] }
 0x6d3   :  { %4299 = vmatpush.msra.mxu2 %v8567_v46 }
 0x6d4   :  { %v3709_v16 = vpop.f32.mrf.mxu3  ;;  %4194 = vmatmul.f32.gmra.mxu0 %v13594_v11 }
 0x6d5   :  { %v3710_v50 = vadd.f32 %v3709_v16, %v3659_v6  ;;  %4300 = vmatpush.msra.mxu2 %v8566_v58  ;;  %v4125_v16 = vld [vmem:[%s16003_s5 + $0xb8] sm:$0xff]  ;;  %v8581_v58 = vld [vmem:[%s16003_s5 + $0x190] sm:$0xff] }
 0x6d6   :  { %4011 = vmatmul.f32.gmra.mxu2 %v13279_v49  ;;  %v8565_v49 = vld [vmem:[%s16003_s5 + $0x110] sm:$0xff] }
 0x6d7   :  { %v3965_v21 = vpop.f32.mrf.mxu1  ;;  %4301 = vmatpush.msra.mxu2 %v8565_v49  ;;  %v8579_v49 = vld [vmem:[%s16003_s5 + $0x180] sm:$0xff] }
 0x6d8   :  { %v3966_v7 = vadd.f32 %v3965_v21, %v3915_v56  ;;  %v3924_v45 = vpop.f32.mrf.mxu0  ;;  %v4123_v21 = vld [vmem:[%s16003_s5 + $0xa8] sm:$0xff] }
 0x6d9   :  { %8538 = vmatmul.msk.f32.gmra.mxu3 %vm3590_vm1, %v13220_v34  ;;  %v13612_v43 = vpop.f32.mrf.mxu2  ;;  %v8563_v34 = vld [vmem:[%s16003_s5 + $0x100] sm:$0xff]  ;;  %4302 = vmatpush.msra.mxu2 %v8564_v35 }
 0x6da   :  { %v13614_v20 = vmax.f32 %v3710_v50, %v3966_v7  ;;  %v4124_v50 = vld [vmem:[%s16003_s5 + $0xb0] sm:$0xff]  ;;  %v4122_v7 = vld [vmem:[%s16003_s5 + $0xa0] sm:$0xff] }
 0x6db   :  { %4303 = vmatpush.msra.mxu2 %v8563_v34 }
 0x6dc   :  { %v3712_v6 = vpop.f32.mrf.mxu3  ;;  %4197 = vmatmul.f32.gmra.mxu0 %v13614_v20 }
 0x6dd   :  { %v3713_v33 = vadd.f32 %v3712_v6, %v13553_v18  ;;  %4304 = vmatpush.msra.mxu2 %v8562_v12  ;;  %v8561_v18 = vld [vmem:[%s16003_s5 + $0xf0] sm:$0xff]  ;;  %v4121_v6 = vld [vmem:[%s16003_s5 + $0x98] sm:$0xff] }
 0x6de   :  { %4014 = vmatmul.f32.gmra.mxu2 %v13316_v27  ;;  %v8577_v12 = vld [vmem:[%s16003_s5 + $0x170] sm:$0xff] }
 0x6df   :  { %v3968_v8 = vpop.f32.mrf.mxu1  ;;  %4305 = vmatpush.msra.mxu2 %v8561_v18 }
 0x6e0   :  { %v3969_v37 = vadd.f32 %v3968_v8, %v3918_v2  ;;  %v3927_v63 = vpop.f32.mrf.mxu0  ;;  %v8580_v2 = vld [vmem:[%s16003_s5 + $0x188] sm:$0xff] }
 0x6e1   :  { %8539 = vmatmul.msk.f32.gmra.mxu3 %vm3590_vm1, %v13270_v25  ;;  %v13633_v48 = vpop.f32.mrf.mxu2  ;;  %v8559_v25 = vld [vmem:[%s16003_s5 + $0xe0] sm:$0xff]  ;;  %4306 = vmatpush.msra.mxu2 %v8560_v10  ;;  %v4119_v8 = vld [vmem:[%s16003_s5 + $0x88] sm:$0xff] }
 0x6e2   :  { %v13638_v28 = vmax.f32 %v3713_v33, %v3969_v37  ;;  %v4120_v33 = vld [vmem:[%s16003_s5 + $0x90] sm:$0xff]  ;;  %v8576_v37 = vld [vmem:[%s16003_s5 + $0x168] sm:$0xff] }
 0x6e3   :  { %4307 = vmatpush.msra.mxu2 %v8559_v25 }
 0x6e4   :  { %v3715_v27 = vpop.f32.mrf.mxu3  ;;  %4200 = vmatmul.f32.gmra.mxu0 %v13638_v28 }
 0x6e5   :  { %v3716_v57 = vadd.f32 %v3715_v27, %v13561_v42 }
 0x6e6   :  { %4017 = vmatmul.f32.gmra.mxu2 %v13350_v52 }
 0x6e7   :  { %v3971_v29 = vpop.f32.mrf.mxu1 }
 0x6e8   :  { %v3972_v26 = vadd.f32 %v3971_v29, %v3921_v55  ;;  %v8575_v55 = vld [vmem:[%s16003_s5 + $0x160] sm:$0xff] }
 0x6e9   :  { %8540 = vmatmul.msk.f32.gmra.mxu3 %vm3590_vm1, %v13311_v60  ;;  %v13651_v40 = vpop.f32.mrf.mxu2 }
 0x6ea   :  { %v13653_v54 = vmax.f32 %v3716_v57, %v3972_v26 }
 0x6ec   :  { %v3718_v13 = vpop.f32.mrf.mxu3  ;;  %4203 = vmatmul.f32.gmra.mxu0 %v13653_v54 }
 0x6ed   :  { %v3719_v19 = vadd.f32 %v3718_v13, %v13572_v59 }
 0x6ee   :  { %4020 = vmatmul.f32.gmra.mxu2 %v13384_v15 }
 0x6ef   :  { %v3974_v42 = vpop.f32.mrf.mxu1 }
 0x6f0   :  { %v3975_v52 = vadd.f32 %v3974_v42, %v3924_v45 }
 0x6f1   :  { %8541 = vmatmul.msk.f32.gmra.mxu3 %vm3590_vm1, %v13345_v38  ;;  %v13660_v47 = vpop.f32.mrf.mxu2 }
 0x6f2   :  { %v13662_v60 = vmax.f32 %v3719_v19, %v3975_v52 }
 0x6f4   :  { %v3721_v0 = vpop.f32.mrf.mxu3  ;;  %4206 = vmatmul.f32.gmra.mxu0 %v13662_v60 }
 0x6f5   :  { %v3722_v56 = vadd.f32 %v3721_v0, %v13592_v14  ;;  %v4126_v14 = vld [vmem:[%s16003_s5 + $0xc0] sm:$0xff] }
 0x6f6   :  { %4023 = vmatmul.f32.gmra.mxu2 %v13407_v39 }
 0x6f7   :  { %v3977_v59 = vpop.f32.mrf.mxu1 }
 0x6f8   :  { %v3978_v15 = vadd.f32 %v3977_v59, %v3927_v63 }
 0x6f9   :  { %8542 = vmatmul.msk.f32.gmra.mxu3 %vm3590_vm1, %v13379_v53  ;;  %v13669_v36 = vpop.f32.mrf.mxu2 }
 0x6fa   :  { %v13671_v38 = vmax.f32 %v3722_v56, %v3978_v15 }
 0x6fc   :  { %v13673_v22 = vpop.f32.mrf.mxu3  ;;  %4209 = vmatmul.f32.gmra.mxu0 %v13671_v38 }
 0x6fd   :  { %v3792_v13 = vadd.f32 %v13673_v22, %v13612_v43 }
 0x6fe   :  { %4026 = vmatmul.f32.gmra.mxu2 %v13428_v24 }
 0x701   :  { %8543 = vmatmul.msk.f32.gmra.mxu3 %vm3590_vm1, %v13402_v17  ;;  %v13679_v31 = vpop.f32.mrf.mxu2 }
 0x704   :  { %v13681_v39 = vpop.f32.mrf.mxu3 }
 0x706   :  { %4308 = vmatmul.f32.vlgmr.msra.gmra.mxu2 %v13541_v62 }
 0x709   :  { %8544 = vmatmul.msk.f32.gmra.mxu3 %vm3590_vm1, %v13423_v23  ;;  %v13688_v1 = vpop.f32.mrf.mxu2 }
 0x70c   :  { %v13686_v53 = vpop.f32.mrf.mxu3 }
 0x70d   :  { %v3798_v0 = vadd.f32 %v13686_v53, %v13651_v40 }
 0x70e   :  { %4311 = vmatmul.f32.gmra.mxu2 %v13547_v41  ;;  %v8586_v41 = vld [vmem:[%s16003_s5 + $0x1b8] sm:$0xff] }
 0x70f   :  { %4346 = vmatpush.msra.mxu3 %v8586_v41 }
 0x711   :  { %8545 = vmatmul.msk.f32.gmra.mxu3 %vm3590_vm1, %v13444_v61  ;;  %v13696_v17 = vpop.f32.mrf.mxu2  ;;  %v4129_v61 = vld [vmem:[%s16003_s5 + $0xd8] sm:$0xff] }
 0x712   :  { %4217 = vmatpush.msra.mxu1 %v4129_v61 }
 0x714   :  { %v13693_v24 = vpop.f32.mrf.mxu3 }
 0x716   :  { %4314 = vmatmul.f32.gmra.mxu2 %v13555_v9  ;;  %v4128_v9 = vld [vmem:[%s16003_s5 + $0xd0] sm:$0xff] }
 0x717   :  { %4218 = vmatpush.msra.mxu1 %v4128_v9 }
 0x719   :  { %8546 = vmatmul.msk.f32.gmra.mxu3 %vm3590_vm1, %v13465_v32  ;;  %v13705_v23 = vpop.f32.mrf.mxu2 }
 0x71c   :  { %v13700_v62 = vpop.f32.mrf.mxu3 }
 0x71d   :  { %v3804_v40 = vadd.f32 %v13700_v62, %v13669_v36 }
 0x71e   :  { %4317 = vmatmul.f32.gmra.mxu2 %v13563_v44  ;;  %v4127_v44 = vld [vmem:[%s16003_s5 + $0xc8] sm:$0xff] }
 0x71f   :  { %4219 = vmatpush.msra.mxu1 %v4127_v44 }
 0x721   :  { %8547 = vmatmul.msk.f32.gmra.mxu3 %vm3590_vm1, %v13487_v3  ;;  %v8585_v3 = vld [vmem:[%s16003_s5 + $0x1b0] sm:$0xff]  ;;  %4220 = vmatpush.msra.mxu1 %v4126_v14  ;;  %v13740_v51 = vpop.f32.mrf.mxu2 }
 0x722   :  { %4347 = vmatpush.msra.mxu3 %v8585_v3 }
 0x723   :  { %4221 = vmatpush.msra.mxu1 %v4125_v16 }
 0x724   :  { %v13713_v32 = vpop.f32.mrf.mxu3  ;;  %4348 = vmatpush.msra.mxu3 %v8584_v30 }
 0x725   :  { %4222 = vmatpush.msra.mxu1 %v4124_v50 }
 0x726   :  { %4320 = vmatmul.f32.gmra.mxu2 %v13574_v4  ;;  %4349 = vmatpush.msra.mxu3 %v8583_v5  ;;  %v8582_v4 = vld [vmem:[%s16003_s5 + $0x198] sm:$0xff] }
 0x727   :  { %4223 = vmatpush.msra.mxu1 %v4123_v21 }
 0x728   :  { %4350 = vmatpush.msra.mxu3 %v8582_v4 }
 0x729   :  { %4224 = vmatpush.msra.mxu1 %v4122_v7  ;;  %v13771_v34 = vpop.f32.mrf.mxu2 }
 0x72a   :  { %4351 = vmatpush.msra.mxu3 %v8581_v58 }
 0x72b   :  { %4225 = vmatpush.msra.mxu1 %v4121_v6 }
 0x72c   :  { %v13742_v46 = vpop.f32.mrf.mxu3  ;;  %4352 = vmatpush.msra.mxu3 %v8580_v2 }
 0x72d   :  { %4226 = vmatpush.msra.mxu1 %v4120_v33  ;;  %v3810_v36 = vadd.f32 %v13742_v46, %v13688_v1 }
 0x72e   :  { %4323 = vmatmul.f32.gmra.mxu2 %v13594_v11  ;;  %4353 = vmatpush.msra.mxu3 %v8579_v49  ;;  %v8578_v11 = vld [vmem:[%s16003_s5 + $0x178] sm:$0xff] }
 0x72f   :  { %4227 = vmatpush.msra.mxu1 %v4119_v8  ;;  %v13846_v8 = vpop.f32.mrf.mxu0 }
 0x730   :  { %4354 = vmatpush.msra.mxu3 %v8578_v11 }
 0x731   :  { %v3997_v27 = vpop.f32.mrf.mxu2 }
 0x732   :  { %4355 = vmatpush.msra.mxu3 %v8577_v12 }
 0x734   :  { %v13769_v35 = vpop.f32.mrf.mxu3  ;;  %4356 = vmatpush.msra.mxu3 %v8576_v37 }
 0x736   :  { %4326 = vmatmul.f32.gmra.mxu2 %v13614_v20  ;;  %v4118_v20 = vld [vmem:[%s16003_s5 + $0x80] sm:$0xff]  ;;  %4357 = vmatpush.msra.mxu3 %v8575_v55 }
 0x737   :  { %4228 = vmatpush.msra.mxu1 %v4118_v20  ;;  %v13850_v37 = vpop.f32.mrf.mxu0 }
 0x739   :  { %v4000_v25 = vpop.f32.mrf.mxu2 }
 0x73c   :  { %v13792_v18 = vpop.f32.mrf.mxu3 }
 0x73d   :  { %v3816_v1 = vadd.f32 %v13792_v18, %v13705_v23 }
 0x73e   :  { %4329 = vmatmul.f32.gmra.mxu2 %v13638_v28 }
 0x73f   :  { %v13856_v18 = vpop.f32.mrf.mxu0 }
 0x741   :  { %v4003_v29 = vpop.f32.mrf.mxu2 }
 0x744   :  { %v13795_v10 = vpop.f32.mrf.mxu3 }
 0x746   :  { %4332 = vmatmul.f32.gmra.mxu2 %v13653_v54  ;;  %v3795_v54 = vadd.f32 %v13681_v39, %v13633_v48  ;;  %v3801_v48 = vadd.f32 %v13693_v24, %v13660_v47  ;;  %v3807_v47 = vadd.f32 %v13713_v32, %v13679_v31  ;;  %v3813_v31 = vadd.f32 %v13769_v35, %v13696_v17 }
 0x747   :  { %v3819_v17 = vadd.f32 %v13795_v10, %v13740_v51 }
 0x749   :  { %v4006_v52 = vpop.f32.mrf.mxu2 }
 0x74c   :  { %v13798_v57 = vpop.f32.mrf.mxu3 }
 0x74d   :  { %v3822_v23 = vadd.f32 %v13798_v57, %v13771_v34  ;;  %v13866_v57 = vpop.f32.mrf.mxu0 }
 0x74e   :  { %4335 = vmatmul.f32.gmra.mxu2 %v13662_v60 }
 0x751   :  { %v4009_v59 = vpop.f32.mrf.mxu2 }
 0x754   :  { %v4047_v26 = vpop.f32.mrf.mxu3 }
 0x755   :  { %v4048_v45 = vadd.f32 %v4047_v26, %v3997_v27 }
 0x756   :  { %4338 = vmatmul.f32.gmra.mxu2 %v13671_v38 }
 0x757   :  { %v4081_v19 = vmax.f32 %v3792_v13, %v4048_v45 }
 0x759   :  { %8548 = vmatmul.msk.f32.vlgmr.msra.gmra.mxu1 %vm104_vm0, %v4081_v19  ;;  %8587 = vmatmul.msk.f32.vlgmr.msra.gmra.mxu3 %vm104_vm0, %v4081_v19  ;;  %v4012_v39 = vpop.f32.mrf.mxu2  ;;  %v13876_v19 = vpop.f32.mrf.mxu0 }
 0x75c   :  { %v4050_v28 = vpop.f32.mrf.mxu3 }
 0x75d   :  { %v4051_v42 = vadd.f32 %v4050_v28, %v4000_v25 }
 0x75f   :  { %v4083_v60 = vmax.f32 %v3795_v54, %v4051_v42 }
 0x761   :  { %8549 = vmatmul.msk.f32.gmra.mxu1 %vm104_vm0, %v4083_v60  ;;  %8588 = vmatmul.msk.f32.gmra.mxu3 %vm104_vm0, %v4083_v60  ;;  %v4015_v9 = vpop.f32.mrf.mxu2  ;;  %v8672_v60 = vld [vmem:[%s16004_s7 + $0xd0] sm:$0xff] }
 0x764   :  { %v4053_v43 = vpop.f32.mrf.mxu3 }
 0x765   :  { %v4054_v63 = vadd.f32 %v4053_v43, %v4003_v29  ;;  %v13890_v43 = vpop.f32.mrf.mxu0 }
 0x767   :  { %v4085_v56 = vmax.f32 %v3798_v0, %v4054_v63  ;;  %v8671_v0 = vld [vmem:[%s16004_s7 + $0xc8] sm:$0xff] }
 0x769   :  { %8550 = vmatmul.msk.f32.gmra.mxu1 %vm104_vm0, %v4085_v56  ;;  %8589 = vmatmul.msk.f32.gmra.mxu3 %vm104_vm0, %v4085_v56  ;;  %v4018_v14 = vpop.f32.mrf.mxu2 }
 0x76c   :  { %v4056_v15 = vpop.f32.mrf.mxu3 }
 0x76d   :  { %v4057_v38 = vadd.f32 %v4056_v15, %v4006_v52  ;;  %v8673_v52 = vld [vmem:[%s16004_s7 + $0xd8] sm:$0xff]  ;;  %v8670_v15 = vld [vmem:[%s16004_s7 + $0xc0] sm:$0xff] }
 0x76e   :  { %4815 = vmatpush.msrb.mxu2 %v8673_v52 }
 0x76f   :  { %v4087_v22 = vmax.f32 %v3801_v48, %v4057_v38  ;;  %v8669_v48 = vld [vmem:[%s16004_s7 + $0xb8] sm:$0xff]  ;;  %v8668_v38 = vld [vmem:[%s16004_s7 + $0xb0] sm:$0xff] }
 0x770   :  { %4816 = vmatpush.msrb.mxu2 %v8672_v60 }
 0x771   :  { %8551 = vmatmul.msk.f32.gmra.mxu1 %vm104_vm0, %v4087_v22  ;;  %8590 = vmatmul.msk.f32.gmra.mxu3 %vm104_vm0, %v4087_v22  ;;  %v4021_v50 = vpop.f32.mrf.mxu2  ;;  %v4198_v22 = vpop.f32.mrf.mxu0 }
 0x772   :  { %4817 = vmatpush.msrb.mxu2 %v8671_v0 }
 0x774   :  { %v4059_v61 = vpop.f32.mrf.mxu3  ;;  %4818 = vmatpush.msrb.mxu2 %v8670_v15 }
 0x775   :  { %v4060_v53 = vadd.f32 %v4059_v61, %v4009_v59 }
 0x776   :  { %4819 = vmatpush.msrb.mxu2 %v8669_v48 }
 0x777   :  { %v4089_v41 = vmax.f32 %v3804_v40, %v4060_v53 }
 0x778   :  { %4820 = vmatpush.msrb.mxu2 %v8668_v38 }
 0x779   :  { %8552 = vmatmul.msk.f32.gmra.mxu1 %vm104_vm0, %v4089_v41  ;;  %8591 = vmatmul.msk.f32.gmra.mxu3 %vm104_vm0, %v4089_v41  ;;  %v4024_v2 = vpop.f32.mrf.mxu2  ;;  %v8666_v41 = vld [vmem:[%s16004_s7 + $0xa0] sm:$0xff] }
 0x77c   :  { %v4062_v3 = vpop.f32.mrf.mxu3 }
 0x77d   :  { %v4063_v24 = vadd.f32 %v4062_v3, %v4012_v39  ;;  %v8667_v39 = vld [vmem:[%s16004_s7 + $0xa8] sm:$0xff]  ;;  %v8664_v3 = vld [vmem:[%s16004_s7 + $0x90] sm:$0xff] }
 0x77e   :  { %4821 = vmatpush.msrb.mxu2 %v8667_v39 }
 0x77f   :  { %v4091_v44 = vmax.f32 %v3807_v47, %v4063_v24  ;;  %v8663_v47 = vld [vmem:[%s16004_s7 + $0x88] sm:$0xff] }
 0x780   :  { %4822 = vmatpush.msrb.mxu2 %v8666_v41 }
 0x781   :  { %8553 = vmatmul.msk.f32.gmra.mxu1 %vm104_vm0, %v4091_v44  ;;  %8592 = vmatmul.msk.f32.gmra.mxu3 %vm104_vm0, %v4091_v44  ;;  %v4027_v11 = vpop.f32.mrf.mxu2  ;;  %v4201_v44 = vpop.f32.mrf.mxu0 }
 0x784   :  { %v4065_v30 = vpop.f32.mrf.mxu3 }
 0x785   :  { %v4066_v62 = vadd.f32 %v4065_v30, %v4015_v9  ;;  %v8665_v9 = vld [vmem:[%s16004_s7 + $0x98] sm:$0xff] }
 0x786   :  { %4823 = vmatpush.msrb.mxu2 %v8665_v9 }
 0x787   :  { %v4093_v5 = vmax.f32 %v3810_v36, %v4066_v62  ;;  %v8662_v62 = vld [vmem:[%s16004_s7 + $0x80] sm:$0xff] }
 0x788   :  { %4824 = vmatpush.msrb.mxu2 %v8664_v3 }
 0x789   :  { %8554 = vmatmul.msk.f32.gmra.mxu1 %vm104_vm0, %v4093_v5  ;;  %8593 = vmatmul.msk.f32.gmra.mxu3 %vm104_vm0, %v4093_v5  ;;  %v13848_v51 = vpop.f32.mrf.mxu2  ;;  %v8660_v5 = vld [vmem:[%s16004_s7 + $0x70] sm:$0xff] }
 0x78a   :  { %4825 = vmatpush.msrb.mxu2 %v8663_v47 }
 0x78c   :  { %v4068_v16 = vpop.f32.mrf.mxu3  ;;  %4826 = vmatpush.msrb.mxu2 %v8662_v62  ;;  %v8626_v62 = vld [vmem:[%s16005_s6 + $0xd8] sm:$0xff] }
 0x78d   :  { %v4069_v32 = vadd.f32 %v4068_v16, %v4018_v14  ;;  %v8661_v14 = vld [vmem:[%s16004_s7 + $0x78] sm:$0xff] }
 0x78e   :  { %4827 = vmatpush.msrb.mxu2 %v8661_v14  ;;  %v4411_v14 = vld [vmem:[%s16005_s6 + $0x40] sm:$0xff] }
 0x78f   :  { %v4095_v4 = vmax.f32 %v3813_v31, %v4069_v32  ;;  %v4204_v32 = vpop.f32.mrf.mxu0 }
 0x790   :  { %4828 = vmatpush.msrb.mxu2 %v8660_v5  ;;  %v8627_v5 = vld [vmem:[%s16005_s6 + $0xe0] sm:$0xff] }
 0x791   :  { %8555 = vmatmul.msk.f32.gmra.mxu1 %vm104_vm0, %v4095_v4  ;;  %8594 = vmatmul.msk.f32.gmra.mxu3 %vm104_vm0, %v4095_v4  ;;  %v13852_v20 = vpop.f32.mrf.mxu2 }
 0x794   :  { %v4071_v58 = vpop.f32.mrf.mxu3 }
 0x795   :  { %v4072_v46 = vadd.f32 %v4071_v58, %v4021_v50 }
 0x797   :  { %v4097_v21 = vmax.f32 %v3816_v1, %v4072_v46  ;;  %v4207_v1 = vpop.f32.mrf.mxu0 }
 0x799   :  { %8556 = vmatmul.msk.f32.gmra.mxu1 %vm104_vm0, %v4097_v21  ;;  %8595 = vmatmul.msk.f32.gmra.mxu3 %vm104_vm0, %v4097_v21  ;;  %v13858_v27 = vpop.f32.mrf.mxu2 }
 0x79c   :  { %v4074_v7 = vpop.f32.mrf.mxu3 }
 0x79d   :  { %v4075_v49 = vadd.f32 %v4074_v7, %v4024_v2 }
 0x79f   :  { %v4099_v6 = vmax.f32 %v3819_v17, %v4075_v49  ;;  %v4210_v7 = vpop.f32.mrf.mxu0 }
 0x7a1   :  { %8557 = vmatmul.msk.f32.gmra.mxu1 %vm104_vm0, %v4099_v6  ;;  %8596 = vmatmul.msk.f32.gmra.mxu3 %vm104_vm0, %v4099_v6  ;;  %v13868_v29 = vpop.f32.mrf.mxu2 }
 0x7a4   :  { %v4077_v35 = vpop.f32.mrf.mxu3 }
 0x7a5   :  { %v4078_v33 = vadd.f32 %v4077_v35, %v4027_v11 }
 0x7a7   :  { %v4101_v12 = vmax.f32 %v3822_v23, %v4078_v33 }
 0x7a9   :  { %8558 = vmatmul.msk.f32.gmra.mxu1 %vm104_vm0, %v4101_v12  ;;  %8597 = vmatmul.msk.f32.gmra.mxu3 %vm104_vm0, %v4101_v12  ;;  %v13878_v28 = vpop.f32.mrf.mxu2 }
 0x7b1   :  { %v13895_v63 = vpop.f32.mrf.mxu2 }
 0x7b9   :  { %v4327_v61 = vpop.f32.mrf.mxu2 }
 0x7c1   :  { %v4330_v30 = vpop.f32.mrf.mxu2 }
 0x7c9   :  { %v4333_v4 = vpop.f32.mrf.mxu2 }
 0x7d1   :  { %v4336_v46 = vpop.f32.mrf.mxu2 }
 0x7d6   :  { %v13854_v55 = vpop.f32.mrf.mxu1 }
 0x7d9   :  { %v4339_v17 = vpop.f32.mrf.mxu2 }
 0x7dc   :  { %v13860_v34 = vpop.f32.mrf.mxu3 }
 0x7de   :  { %v13862_v10 = vpop.f32.mrf.mxu1 }
 0x7e4   :  { %v13864_v25 = vpop.f32.mrf.mxu3 }
 0x7e6   :  { %v13870_v26 = vpop.f32.mrf.mxu1 }
 0x7ec   :  { %v13872_v13 = vpop.f32.mrf.mxu3 }
 0x7ee   :  { %v13874_v45 = vpop.f32.mrf.mxu1 }
 0x7f4   :  { %v13880_v54 = vpop.f32.mrf.mxu3 }
 0x7f6   :  { %v13882_v42 = vpop.f32.mrf.mxu1 }
 0x7fc   :  { %v13897_v56 = vpop.f32.mrf.mxu3 }
 0x7fe   :  { %v13899_v59 = vpop.f32.mrf.mxu1 }
 0x7ff   :  { %v4246_v3 = vadd.f32 %v13899_v59, %v13890_v43  ;;  %v4240_v43 = vadd.f32 %v13874_v45, %v13866_v57  ;;  %v4234_v57 = vadd.f32 %v13862_v10, %v13850_v37  ;;  %v8619_v37 = vld [vmem:[%s16005_s6 + $0xa0] sm:$0xff]  ;;  %v8621_v10 = vld [vmem:[%s16005_s6 + $0xb0] sm:$0xff]  ;;  %v8622_v45 = vld [vmem:[%s16005_s6 + $0xb8] sm:$0xff] }
 0x800   :  { %v8623_v59 = vld [vmem:[%s16005_s6 + $0xc0] sm:$0xff] }
 0x804   :  { %v4374_v40 = vpop.f32.mrf.mxu3 }
 0x805   :  { %v4375_v39 = vadd.f32 %v4374_v40, %v13895_v63  ;;  %v4369_v63 = vadd.f32 %v13880_v54, %v13868_v29  ;;  %v4363_v29 = vadd.f32 %v13864_v25, %v13852_v20  ;;  %v4231_v20 = vadd.f32 %v13854_v55, %v13846_v8  ;;  %v4404_v8 = vld [vmem:[%s16005_s6 + $0x8] sm:$0xff] }
 0x806   :  { %v4248_v53 = vpop.f32.mrf.mxu1  ;;  %v8620_v55 = vld [vmem:[%s16005_s6 + $0xa8] sm:$0xff] }
 0x807   :  { %v4249_v41 = vadd.f32 %v4248_v53, %v4198_v22  ;;  %v4243_v22 = vadd.f32 %v13882_v42, %v13876_v19  ;;  %v13968_v40 = vmax.f32 %v4246_v3, %v4375_v39  ;;  %v4237_v19 = vadd.f32 %v13870_v26, %v13856_v18  ;;  %v4406_v26 = vld [vmem:[%s16005_s6 + $0x18] sm:$0xff]  ;;  %v4407_v42 = vld [vmem:[%s16005_s6 + $0x20] sm:$0xff]  ;;  %v4408_v53 = vld [vmem:[%s16005_s6 + $0x28] sm:$0xff] }
 0x808   :  { %v4395_v54 = vmax.f32 %v4240_v43, %v4369_v63  ;;  %v4393_v18 = vmax.f32 %v4234_v57, %v4363_v29  ;;  %v8633_v39 = vld [vmem:[%s16005_s6 + $0x110] sm:$0xff]  ;;  %v8635_v63 = vld [vmem:[%s16005_s6 + $0x120] sm:$0xff]  ;;  %v8636_v43 = vld [vmem:[%s16005_s6 + $0x128] sm:$0xff] }
 0x80c   :  { %v4377_v24 = vpop.f32.mrf.mxu3 }
 0x80d   :  { %v4378_v15 = vadd.f32 %v4377_v24, %v4327_v61  ;;  %v4372_v61 = vadd.f32 %v13897_v56, %v13878_v28  ;;  %v4366_v28 = vadd.f32 %v13872_v13, %v13858_v27  ;;  %v4360_v27 = vadd.f32 %v13860_v34, %v13848_v51  ;;  %v4403_v51 = vld [vmem:[%s16005_s6] sm:$0xff]  ;;  %v4405_v34 = vld [vmem:[%s16005_s6 + $0x10] sm:$0xff]  ;;  %v8624_v24 = vld [vmem:[%s16005_s6 + $0xc8] sm:$0xff] }
 0x80e   :  { %v4251_v36 = vpop.f32.mrf.mxu1 }
 0x80f   :  { %v4252_v48 = vadd.f32 %v4251_v36, %v4201_v44  ;;  %v13959_v47 = vmax.f32 %v4249_v41, %v4378_v15  ;;  %v13977_v56 = vmax.f32 %v4243_v22, %v4372_v61  ;;  %v4394_v13 = vmax.f32 %v4237_v19, %v4366_v28  ;;  %v4409_v44 = vld [vmem:[%s16005_s6 + $0x30] sm:$0xff]  ;;  %v4410_v36 = vld [vmem:[%s16005_s6 + $0x38] sm:$0xff]  ;;  %v4416_v15 = vld [vmem:[%s16005_s6 + $0x68] sm:$0xff] }
 0x810   :  { %v4392_v25 = vmax.f32 %v4231_v20, %v4360_v27  ;;  %v4418_v41 = vld [vmem:[%s16005_s6 + $0x78] sm:$0xff]  ;;  %v4420_v28 = vld [vmem:[%s16005_s6 + $0x88] sm:$0xff]  ;;  %v4421_v19 = vld [vmem:[%s16005_s6 + $0x90] sm:$0xff] }
 0x811   :  { %v8638_v20 = vld [vmem:[%s16005_s6 + $0x138] sm:$0xff] }
 0x814   :  { %v4380_v16 = vpop.f32.mrf.mxu3 }
 0x815   :  { %v4381_v52 = vadd.f32 %v4380_v16, %v4330_v30  ;;  %v8625_v30 = vld [vmem:[%s16005_s6 + $0xd0] sm:$0xff]  ;;  %v4412_v16 = vld [vmem:[%s16005_s6 + $0x48] sm:$0xff] }
 0x816   :  { %v4254_v31 = vpop.f32.mrf.mxu1 }
 0x817   :  { %v4255_v60 = vadd.f32 %v4254_v31, %v4204_v32  ;;  %v13950_v9 = vmax.f32 %v4252_v48, %v4381_v52  ;;  %v8628_v31 = vld [vmem:[%s16005_s6 + $0xe8] sm:$0xff]  ;;  %v8631_v52 = vld [vmem:[%s16005_s6 + $0x100] sm:$0xff] }
 0x818   :  { %v4578_v32 = vld [vmem:[%s16004_s7 + $0x68] sm:$0xff] }
 0x819   :  { %4952 = vmatpush.msrb.mxu3 %v4578_v32  ;;  %v8632_v48 = vld [vmem:[%s16005_s6 + $0x108] sm:$0xff] }
 0x81c   :  { %v4383_v50 = vpop.f32.mrf.mxu3 }
 0x81d   :  { %v4384_v23 = vadd.f32 %v4383_v50, %v4333_v4  ;;  %v4577_v4 = vld [vmem:[%s16004_s7 + $0x60] sm:$0xff]  ;;  %v4576_v50 = vld [vmem:[%s16004_s7 + $0x58] sm:$0xff] }
 0x81e   :  { %v4257_v58 = vpop.f32.mrf.mxu1  ;;  %4953 = vmatpush.msrb.mxu3 %v4577_v4  ;;  %v8721_v4 = vld [vmem:[%s16005_s6 + $0x178] sm:$0xff] }
 0x81f   :  { %v4258_v33 = vadd.f32 %v4257_v58, %v4207_v1  ;;  %v13944_v38 = vmax.f32 %v4255_v60, %v4384_v23  ;;  %v4575_v58 = vld [vmem:[%s16004_s7 + $0x50] sm:$0xff]  ;;  %v4568_v23 = vld [vmem:[%s16004_s7 + $0x18] sm:$0xff]  ;;  %v4566_v60 = vld [vmem:[%s16004_s7 + $0x8] sm:$0xff] }
 0x820   :  { %4954 = vmatpush.msrb.mxu3 %v4576_v50  ;;  %v4413_v1 = vld [vmem:[%s16005_s6 + $0x50] sm:$0xff] }
 0x822   :  { %4955 = vmatpush.msrb.mxu3 %v4575_v58 }
 0x824   :  { %v4386_v21 = vpop.f32.mrf.mxu3 }
 0x825   :  { %v4387_v6 = vadd.f32 %v4386_v21, %v4336_v46  ;;  %v8629_v46 = vld [vmem:[%s16005_s6 + $0xf0] sm:$0xff]  ;;  %v4574_v21 = vld [vmem:[%s16004_s7 + $0x48] sm:$0xff] }
 0x826   :  { %v4260_v2 = vpop.f32.mrf.mxu1  ;;  %4956 = vmatpush.msrb.mxu3 %v4574_v21 }
 0x827   :  { %v4261_v11 = vadd.f32 %v4260_v2, %v4210_v7  ;;  %v13936_v0 = vmax.f32 %v4258_v33, %v4387_v6  ;;  %v4573_v2 = vld [vmem:[%s16004_s7 + $0x40] sm:$0xff]  ;;  %v4572_v7 = vld [vmem:[%s16004_s7 + $0x38] sm:$0xff]  ;;  %v4567_v33 = vld [vmem:[%s16004_s7 + $0x10] sm:$0xff] }
 0x828   :  { %4957 = vmatpush.msrb.mxu3 %v4573_v2  ;;  %v8630_v6 = vld [vmem:[%s16005_s6 + $0xf8] sm:$0xff] }
 0x82a   :  { %4958 = vmatpush.msrb.mxu3 %v4572_v7  ;;  %v8723_v7 = vld [vmem:[%s16005_s6 + $0x188] sm:$0xff] }
 0x82c   :  { %v4389_v49 = vpop.f32.mrf.mxu3 }
 0x82d   :  { %v4390_v35 = vadd.f32 %v4389_v49, %v4339_v17  ;;  %v4571_v17 = vld [vmem:[%s16004_s7 + $0x30] sm:$0xff]  ;;  %v4414_v49 = vld [vmem:[%s16005_s6 + $0x58] sm:$0xff] }
 0x82e   :  { %4959 = vmatpush.msrb.mxu3 %v4571_v17  ;;  %v8767_v17 = vld [vmem:[%s16004_s7 + $0x140] sm:$0xff] }
 0x82f   :  { %v13934_v12 = vmax.f32 %v4261_v11, %v4390_v35  ;;  %v4570_v11 = vld [vmem:[%s16004_s7 + $0x28] sm:$0xff]  ;;  %v4569_v35 = vld [vmem:[%s16004_s7 + $0x20] sm:$0xff] }
 0x830   :  { %4960 = vmatpush.msrb.mxu3 %v4570_v11  ;;  %v8764_v11 = vld [vmem:[%s16004_s7 + $0x128] sm:$0xff] }
 0x831   :  { %8598 = vmatpush.msk.msra.mxu0 %vm4484_vm2, %v13934_v12  ;;  %8639 = vmatpush.msk.msrb.mxu1 %vm4484_vm2, %v13934_v12 }
 0x832   :  { %8809 = vmatpush.msk.msra.mxu2 %vm4484_vm2, %v13934_v12  ;;  %4961 = vmatpush.msrb.mxu3 %v4569_v35 }
 0x833   :  { %4494 = vmatpush.msra.mxu0 %v13936_v0  ;;  %4666 = vmatpush.msrb.mxu1 %v13936_v0 }
 0x834   :  { %5444 = vmatpush.msra.mxu2 %v13936_v0  ;;  %4962 = vmatpush.msrb.mxu3 %v4568_v23 }
 0x835   :  { %4495 = vmatpush.msra.mxu0 %v13944_v38  ;;  %4667 = vmatpush.msrb.mxu1 %v13944_v38 }
 0x836   :  { %5445 = vmatpush.msra.mxu2 %v13944_v38  ;;  %4963 = vmatpush.msrb.mxu3 %v4567_v33  ;;  %v8724_v33 = vld [vmem:[%s16005_s6 + $0x190] sm:$0xff] }
 0x837   :  { %4496 = vmatpush.msra.mxu0 %v13950_v9  ;;  %4668 = vmatpush.msrb.mxu1 %v13950_v9 }
 0x838   :  { %5446 = vmatpush.msra.mxu2 %v13950_v9  ;;  %4964 = vmatpush.msrb.mxu3 %v4566_v60  ;;  %v8761_v60 = vld [vmem:[%s16004_s7 + $0x110] sm:$0xff] }
 0x839   :  { %4497 = vmatpush.msra.mxu0 %v13959_v47  ;;  %4669 = vmatpush.msrb.mxu1 %v13959_v47 }
 0x83a   :  { %5447 = vmatpush.msra.mxu2 %v13959_v47 }
 0x83b   :  { %4498 = vmatpush.msra.mxu0 %v13968_v40  ;;  %4670 = vmatpush.msrb.mxu1 %v13968_v40 }
 0x83c   :  { %5448 = vmatpush.msra.mxu2 %v13968_v40 }
 0x83d   :  { %4499 = vmatpush.msra.mxu0 %v13977_v56  ;;  %4671 = vmatpush.msrb.mxu1 %v13977_v56 }
 0x83e   :  { %5449 = vmatpush.msra.mxu2 %v13977_v56 }
 0x83f   :  { %4500 = vmatpush.msra.mxu0 %v4395_v54  ;;  %4672 = vmatpush.msrb.mxu1 %v4395_v54 }
 0x840   :  { %5450 = vmatpush.msra.mxu2 %v4395_v54 }
 0x841   :  { %4501 = vmatpush.msra.mxu0 %v4394_v13  ;;  %4673 = vmatpush.msrb.mxu1 %v4394_v13 }
 0x842   :  { %5451 = vmatpush.msra.mxu2 %v4394_v13 }
 0x843   :  { %4502 = vmatpush.msra.mxu0 %v4393_v18  ;;  %4674 = vmatpush.msrb.mxu1 %v4393_v18 }
 0x844   :  { %5452 = vmatpush.msra.mxu2 %v4393_v18 }
 0x845   :  { %4503 = vmatpush.msra.mxu0 %v4392_v25  ;;  %4675 = vmatpush.msrb.mxu1 %v4392_v25 }
 0x846   :  { %5453 = vmatpush.msra.mxu2 %v4392_v25  ;;  %8599 = vmatmul.msk.f32.vlgmr.msra.gmra.mxu0 %vm4423_vm3, %v4403_v51  ;;  %v8714_v51 = vld [vmem:[%s16005_s6 + $0x140] sm:$0xff] }
 0x847   :  { %8640 = vmatmul.msk.f32.vlgmr.msrb.gmra.mxu1 %vm4423_vm3, %v8619_v37  ;;  %8734 = vmatpush.msk.msrb.mxu0 %vm4484_vm2, %v13934_v12 }
 0x849   :  { %5114 = vmatpush.msrb.mxu0 %v13936_v0 }
 0x84b   :  { %5115 = vmatpush.msrb.mxu0 %v13944_v38 }
 0x84d   :  { %5116 = vmatpush.msrb.mxu0 %v13950_v9 }
 0x84e   :  { %8600 = vmatmul.msk.f32.gmra.mxu0 %vm4423_vm3, %v4404_v8 }
 0x84f   :  { %8641 = vmatmul.msk.f32.gmra.mxu1 %vm4423_vm3, %v8620_v55  ;;  %5117 = vmatpush.msrb.mxu0 %v13959_v47  ;;  %v8715_v55 = vld [vmem:[%s16005_s6 + $0x148] sm:$0xff] }
 0x851   :  { %5118 = vmatpush.msrb.mxu0 %v13968_v40 }
 0x853   :  { %5119 = vmatpush.msrb.mxu0 %v13977_v56 }
 0x855   :  { %5120 = vmatpush.msrb.mxu0 %v4395_v54 }
 0x856   :  { %8601 = vmatmul.msk.f32.gmra.mxu0 %vm4423_vm3, %v4405_v34 }
 0x857   :  { %8642 = vmatmul.msk.f32.gmra.mxu1 %vm4423_vm3, %v8621_v10  ;;  %5121 = vmatpush.msrb.mxu0 %v4394_v13 }
 0x859   :  { %5122 = vmatpush.msrb.mxu0 %v4393_v18 }
 0x85b   :  { %5123 = vmatpush.msrb.mxu0 %v4392_v25 }
 0x85d   :  { %8884 = vmatpush.msk.msra.mxu0 %vm4484_vm2, %v13934_v12  ;;  %v4415_v12 = vld [vmem:[%s16005_s6 + $0x60] sm:$0xff] }
 0x85e   :  { %8602 = vmatmul.msk.f32.gmra.mxu0 %vm4423_vm3, %v4406_v26  ;;  %v8716_v26 = vld [vmem:[%s16005_s6 + $0x150] sm:$0xff] }
 0x85f   :  { %5774 = vmatpush.msra.mxu0 %v13936_v0  ;;  %8643 = vmatmul.msk.f32.gmra.mxu1 %vm4423_vm3, %v8622_v45  ;;  %v4565_v0 = vld [vmem:[%s16004_s7] sm:$0xff] }
 0x860   :  { %4965 = vmatpush.msrb.mxu3 %v4565_v0  ;;  %v8760_v0 = vld [vmem:[%s16004_s7 + $0x108] sm:$0xff] }
 0x861   :  { %5775 = vmatpush.msra.mxu0 %v13944_v38  ;;  %v4417_v38 = vld [vmem:[%s16005_s6 + $0x70] sm:$0xff] }
 0x863   :  { %5776 = vmatpush.msra.mxu0 %v13950_v9  ;;  %v8634_v9 = vld [vmem:[%s16005_s6 + $0x118] sm:$0xff] }
 0x865   :  { %5777 = vmatpush.msra.mxu0 %v13959_v47  ;;  %v4419_v47 = vld [vmem:[%s16005_s6 + $0x80] sm:$0xff] }
 0x866   :  { %8603 = vmatmul.msk.f32.gmra.mxu0 %vm4423_vm3, %v4407_v42 }
 0x867   :  { %5778 = vmatpush.msra.mxu0 %v13968_v40  ;;  %8644 = vmatmul.msk.f32.gmra.mxu1 %vm4423_vm3, %v8623_v59  ;;  %v8717_v59 = vld [vmem:[%s16005_s6 + $0x158] sm:$0xff] }
 0x869   :  { %5779 = vmatpush.msra.mxu0 %v13977_v56 }
 0x86b   :  { %5780 = vmatpush.msra.mxu0 %v4395_v54  ;;  %v8637_v54 = vld [vmem:[%s16005_s6 + $0x130] sm:$0xff] }
 0x86d   :  { %5781 = vmatpush.msra.mxu0 %v4394_v13  ;;  %v4422_v13 = vld [vmem:[%s16005_s6 + $0x98] sm:$0xff] }
 0x86e   :  { %8604 = vmatmul.msk.f32.gmra.mxu0 %vm4423_vm3, %v4408_v53 }
 0x86f   :  { %5782 = vmatpush.msra.mxu0 %v4393_v18  ;;  %8645 = vmatmul.msk.f32.gmra.mxu1 %vm4423_vm3, %v8624_v24 }
 0x871   :  { %5783 = vmatpush.msra.mxu0 %v4392_v25 }
 0x876   :  { %8605 = vmatmul.msk.f32.gmra.mxu0 %vm4423_vm3, %v4409_v44  ;;  %v8718_v44 = vld [vmem:[%s16005_s6 + $0x160] sm:$0xff] }
 0x877   :  { %8646 = vmatmul.msk.f32.gmra.mxu1 %vm4423_vm3, %v8625_v30 }
 0x87e   :  { %8606 = vmatmul.msk.f32.gmra.mxu0 %vm4423_vm3, %v4410_v36 }
 0x87f   :  { %8647 = vmatmul.msk.f32.gmra.mxu1 %vm4423_vm3, %v8626_v62  ;;  %v8719_v62 = vld [vmem:[%s16005_s6 + $0x168] sm:$0xff] }
 0x886   :  { %8607 = vmatmul.msk.f32.gmra.mxu0 %vm4423_vm3, %v4411_v14 }
 0x887   :  { %8648 = vmatmul.msk.f32.gmra.mxu1 %vm4423_vm3, %v8627_v5 }
 0x88e   :  { %8608 = vmatmul.msk.f32.gmra.mxu0 %vm4423_vm3, %v4412_v16  ;;  %v8720_v16 = vld [vmem:[%s16005_s6 + $0x170] sm:$0xff] }
 0x88f   :  { %8649 = vmatmul.msk.f32.gmra.mxu1 %vm4423_vm3, %v8628_v31 }
 0x896   :  { %8609 = vmatmul.msk.f32.gmra.mxu0 %vm4423_vm3, %v4413_v1  ;;  %v8722_v1 = vld [vmem:[%s16005_s6 + $0x180] sm:$0xff] }
 0x897   :  { %8650 = vmatmul.msk.f32.gmra.mxu1 %vm4423_vm3, %v8629_v46  ;;  %v8768_v46 = vld [vmem:[%s16004_s7 + $0x148] sm:$0xff] }
 0x898   :  { %5262 = vmatpush.msra.mxu1 %v8768_v46 }
 0x89a   :  { %5263 = vmatpush.msra.mxu1 %v8767_v17 }
 0x89e   :  { %8610 = vmatmul.msk.f32.gmra.mxu0 %vm4423_vm3, %v4414_v49  ;;  %v8766_v49 = vld [vmem:[%s16004_s7 + $0x138] sm:$0xff] }
 0x89f   :  { %8651 = vmatmul.msk.f32.gmra.mxu1 %vm4423_vm3, %v8630_v6  ;;  %v8765_v6 = vld [vmem:[%s16004_s7 + $0x130] sm:$0xff] }
 0x8a0   :  { %5264 = vmatpush.msra.mxu1 %v8766_v49  ;;  %v8867_v49 = vld [vmem:[%s16005_s6 + $0x298] sm:$0xff] }
 0x8a2   :  { %5265 = vmatpush.msra.mxu1 %v8765_v6 }
 0x8a4   :  { %5266 = vmatpush.msra.mxu1 %v8764_v11  ;;  %v8797_v11 = vld [vmem:[%s16005_s6 + $0x220] sm:$0xff] }
 0x8a6   :  { %8611 = vmatmul.msk.f32.gmra.mxu0 %vm4423_vm3, %v4415_v12  ;;  %v8763_v12 = vld [vmem:[%s16004_s7 + $0x120] sm:$0xff] }
 0x8a7   :  { %8652 = vmatmul.msk.f32.gmra.mxu1 %vm4423_vm3, %v8631_v52  ;;  %v8762_v52 = vld [vmem:[%s16004_s7 + $0x118] sm:$0xff] }
 0x8a8   :  { %5267 = vmatpush.msra.mxu1 %v8763_v12 }
 0x8aa   :  { %5268 = vmatpush.msra.mxu1 %v8762_v52  ;;  %v8798_v52 = vld [vmem:[%s16005_s6 + $0x228] sm:$0xff] }
 0x8ac   :  { %5269 = vmatpush.msra.mxu1 %v8761_v60 }
 0x8ae   :  { %8612 = vmatmul.msk.f32.gmra.mxu0 %vm4423_vm3, %v4416_v15  ;;  %5270 = vmatpush.msra.mxu1 %v8760_v0  ;;  %v8869_v0 = vld [vmem:[%s16005_s6 + $0x2a8] sm:$0xff] }
 0x8af   :  { %8653 = vmatmul.msk.f32.gmra.mxu1 %vm4423_vm3, %v8632_v48 }
 0x8b6   :  { %8613 = vmatmul.msk.f32.gmra.mxu0 %vm4423_vm3, %v4417_v38  ;;  %v8725_v38 = vld [vmem:[%s16005_s6 + $0x198] sm:$0xff] }
 0x8b7   :  { %8654 = vmatmul.msk.f32.gmra.mxu1 %vm4423_vm3, %v8633_v39  ;;  %v8759_v39 = vld [vmem:[%s16004_s7 + $0x100] sm:$0xff] }
 0x8b8   :  { %5271 = vmatpush.msra.mxu1 %v8759_v39  ;;  %v8842_v39 = vld [vmem:[%s16004_s7 + $0x1b0] sm:$0xff] }
 0x8be   :  { %8614 = vmatmul.msk.f32.gmra.mxu0 %vm4423_vm3, %v4418_v41  ;;  %v8758_v41 = vld [vmem:[%s16004_s7 + $0xf8] sm:$0xff] }
 0x8bf   :  { %8655 = vmatmul.msk.f32.gmra.mxu1 %vm4423_vm3, %v8634_v9  ;;  %v8757_v9 = vld [vmem:[%s16004_s7 + $0xf0] sm:$0xff] }
 0x8c0   :  { %5272 = vmatpush.msra.mxu1 %v8758_v41  ;;  %v8841_v41 = vld [vmem:[%s16004_s7 + $0x1a8] sm:$0xff] }
 0x8c2   :  { %5273 = vmatpush.msra.mxu1 %v8757_v9  ;;  %v8799_v9 = vld [vmem:[%s16005_s6 + $0x230] sm:$0xff] }
 0x8c3   :  { %v4505_v61 = vpop.f32.mrf.mxu0 }
 0x8c4   :  { %v4677_v3 = vpop.f32.mrf.mxu1  ;;  %8694 = vmatmul.msk.f32.vlgmr.msrb.gmra.mxu3 %vm4752_vm4, %v4505_v61  ;;  %v8756_v61 = vld [vmem:[%s16004_s7 + $0xe8] sm:$0xff] }
 0x8c5   :  { %8674 = vmatmul.msk.f32.vlgmr.msrb.gmra.mxu2 %vm4752_vm4, %v4677_v3  ;;  %5274 = vmatpush.msra.mxu1 %v8756_v61 }
 0x8c6   :  { %8615 = vmatmul.msk.f32.gmra.mxu0 %vm4423_vm3, %v4419_v47 }
 0x8c7   :  { %8656 = vmatmul.msk.f32.gmra.mxu1 %vm4423_vm3, %v8635_v63  ;;  %v8726_v63 = vld [vmem:[%s16005_s6 + $0x1a0] sm:$0xff] }
 0x8cb   :  { %v4508_v22 = vpop.f32.mrf.mxu0 }
 0x8cc   :  { %v4680_v40 = vpop.f32.mrf.mxu1  ;;  %8695 = vmatmul.msk.f32.gmra.mxu3 %vm4752_vm4, %v4508_v22  ;;  %v8755_v22 = vld [vmem:[%s16004_s7 + $0xe0] sm:$0xff] }
 0x8cd   :  { %8675 = vmatmul.msk.f32.gmra.mxu2 %vm4752_vm4, %v4680_v40  ;;  %5275 = vmatpush.msra.mxu1 %v8755_v22 }
 0x8ce   :  { %8616 = vmatmul.msk.f32.gmra.mxu0 %vm4423_vm3, %v4420_v28 }
 0x8cf   :  { %8657 = vmatmul.msk.f32.gmra.mxu1 %vm4423_vm3, %v8636_v43 }
 0x8d3   :  { %v4511_v56 = vpop.f32.mrf.mxu0 }
 0x8d4   :  { %v4683_v29 = vpop.f32.mrf.mxu1  ;;  %8696 = vmatmul.msk.f32.gmra.mxu3 %vm4752_vm4, %v4511_v56  ;;  %v8727_v56 = vld [vmem:[%s16005_s6 + $0x1a8] sm:$0xff] }
 0x8d5   :  { %8676 = vmatmul.msk.f32.gmra.mxu2 %vm4752_vm4, %v4683_v29 }
 0x8d6   :  { %8617 = vmatmul.msk.f32.gmra.mxu0 %vm4423_vm3, %v4421_v19 }
 0x8d7   :  { %8658 = vmatmul.msk.f32.gmra.mxu1 %vm4423_vm3, %v8637_v54 }
 0x8db   :  { %v4514_v27 = vpop.f32.mrf.mxu0 }
 0x8dc   :  { %v4686_v57 = vpop.f32.mrf.mxu1  ;;  %8697 = vmatmul.msk.f32.gmra.mxu3 %vm4752_vm4, %v4514_v27  ;;  %v8728_v27 = vld [vmem:[%s16005_s6 + $0x1b0] sm:$0xff] }
 0x8dd   :  { %8677 = vmatmul.msk.f32.gmra.mxu2 %vm4752_vm4, %v4686_v57 }
 0x8de   :  { %8618 = vmatmul.msk.f32.gmra.mxu0 %vm4423_vm3, %v4422_v13 }
 0x8df   :  { %8659 = vmatmul.msk.f32.gmra.mxu1 %vm4423_vm3, %v8638_v20 }
 0x8e3   :  { %v4517_v18 = vpop.f32.mrf.mxu0 }
 0x8e4   :  { %v4689_v25 = vpop.f32.mrf.mxu1  ;;  %8698 = vmatmul.msk.f32.gmra.mxu3 %vm4752_vm4, %v4517_v18  ;;  %v8729_v18 = vld [vmem:[%s16005_s6 + $0x1b8] sm:$0xff] }
 0x8e5   :  { %8678 = vmatmul.msk.f32.gmra.mxu2 %vm4752_vm4, %v4689_v25 }
 0x8e6   :  { %8735 = vmatmul.msk.f32.vlgmr.msrb.gmra.mxu0 %vm4423_vm3, %v8714_v51  ;;  %v8789_v51 = vld [vmem:[%s16005_s6 + $0x1e0] sm:$0xff] }
 0x8eb   :  { %v4520_v37 = vpop.f32.mrf.mxu0 }
 0x8ec   :  { %v4692_v8 = vpop.f32.mrf.mxu1  ;;  %8699 = vmatmul.msk.f32.gmra.mxu3 %vm4752_vm4, %v4520_v37 }
 0x8ed   :  { %8679 = vmatmul.msk.f32.gmra.mxu2 %vm4752_vm4, %v4692_v8  ;;  %v8730_v8 = vld [vmem:[%s16005_s6 + $0x1c0] sm:$0xff] }
 0x8ee   :  { %8736 = vmatmul.msk.f32.gmra.mxu0 %vm4423_vm3, %v8715_v55 }
 0x8f3   :  { %v4523_v34 = vpop.f32.mrf.mxu0 }
 0x8f4   :  { %v4695_v10 = vpop.f32.mrf.mxu1  ;;  %8700 = vmatmul.msk.f32.gmra.mxu3 %vm4752_vm4, %v4523_v34  ;;  %v8790_v34 = vld [vmem:[%s16005_s6 + $0x1e8] sm:$0xff] }
 0x8f5   :  { %8680 = vmatmul.msk.f32.gmra.mxu2 %vm4752_vm4, %v4695_v10 }
 0x8f6   :  { %8737 = vmatmul.msk.f32.gmra.mxu0 %vm4423_vm3, %v8716_v26  ;;  %v8731_v26 = vld [vmem:[%s16005_s6 + $0x1c8] sm:$0xff] }
 0x8fb   :  { %v4526_v45 = vpop.f32.mrf.mxu0 }
 0x8fc   :  { %v4698_v42 = vpop.f32.mrf.mxu1  ;;  %8701 = vmatmul.msk.f32.gmra.mxu3 %vm4752_vm4, %v4526_v45 }
 0x8fd   :  { %8681 = vmatmul.msk.f32.gmra.mxu2 %vm4752_vm4, %v4698_v42  ;;  %v8791_v42 = vld [vmem:[%s16005_s6 + $0x1f0] sm:$0xff] }
 0x8fe   :  { %8738 = vmatmul.msk.f32.gmra.mxu0 %vm4423_vm3, %v8717_v59 }
 0x903   :  { %v4529_v53 = vpop.f32.mrf.mxu0 }
 0x904   :  { %v4701_v24 = vpop.f32.mrf.mxu1  ;;  %8702 = vmatmul.msk.f32.gmra.mxu3 %vm4752_vm4, %v4529_v53  ;;  %v8732_v53 = vld [vmem:[%s16005_s6 + $0x1d0] sm:$0xff] }
 0x905   :  { %8682 = vmatmul.msk.f32.gmra.mxu2 %vm4752_vm4, %v4701_v24 }
 0x906   :  { %8739 = vmatmul.msk.f32.gmra.mxu0 %vm4423_vm3, %v8718_v44  ;;  %v8792_v44 = vld [vmem:[%s16005_s6 + $0x1f8] sm:$0xff] }
 0x90b   :  { %v4532_v30 = vpop.f32.mrf.mxu0 }
 0x90c   :  { %v4704_v36 = vpop.f32.mrf.mxu1  ;;  %8703 = vmatmul.msk.f32.gmra.mxu3 %vm4752_vm4, %v4532_v30 }
 0x90d   :  { %8683 = vmatmul.msk.f32.gmra.mxu2 %vm4752_vm4, %v4704_v36  ;;  %v8733_v36 = vld [vmem:[%s16005_s6 + $0x1d8] sm:$0xff] }
 0x90e   :  { %8740 = vmatmul.msk.f32.gmra.mxu0 %vm4423_vm3, %v8719_v62 }
 0x913   :  { %v4535_v14 = vpop.f32.mrf.mxu0 }
 0x914   :  { %v4707_v5 = vpop.f32.mrf.mxu1  ;;  %8704 = vmatmul.msk.f32.gmra.mxu3 %vm4752_vm4, %v4535_v14  ;;  %v8793_v14 = vld [vmem:[%s16005_s6 + $0x200] sm:$0xff] }
 0x915   :  { %8684 = vmatmul.msk.f32.gmra.mxu2 %vm4752_vm4, %v4707_v5 }
 0x916   :  { %8741 = vmatmul.msk.f32.gmra.mxu0 %vm4423_vm3, %v8720_v16  ;;  %v8864_v16 = vld [vmem:[%s16005_s6 + $0x280] sm:$0xff] }
 0x91b   :  { %v4538_v31 = vpop.f32.mrf.mxu0 }
 0x91c   :  { %v4710_v32 = vpop.f32.mrf.mxu1  ;;  %8705 = vmatmul.msk.f32.gmra.mxu3 %vm4752_vm4, %v4538_v31 }
 0x91d   :  { %8685 = vmatmul.msk.f32.gmra.mxu2 %vm4752_vm4, %v4710_v32  ;;  %v8794_v32 = vld [vmem:[%s16005_s6 + $0x208] sm:$0xff] }
 0x91e   :  { %8742 = vmatmul.msk.f32.gmra.mxu0 %vm4423_vm3, %v8721_v4 }
 0x923   :  { %v4541_v50 = vpop.f32.mrf.mxu0 }
 0x924   :  { %v4713_v58 = vpop.f32.mrf.mxu1  ;;  %8706 = vmatmul.msk.f32.gmra.mxu3 %vm4752_vm4, %v4541_v50  ;;  %v8865_v50 = vld [vmem:[%s16005_s6 + $0x288] sm:$0xff] }
 0x925   :  { %8686 = vmatmul.msk.f32.gmra.mxu2 %vm4752_vm4, %v4713_v58 }
 0x926   :  { %8743 = vmatmul.msk.f32.gmra.mxu0 %vm4423_vm3, %v8722_v1  ;;  %v8795_v1 = vld [vmem:[%s16005_s6 + $0x210] sm:$0xff] }
 0x92b   :  { %v4544_v21 = vpop.f32.mrf.mxu0 }
 0x92c   :  { %v4716_v2 = vpop.f32.mrf.mxu1  ;;  %8707 = vmatmul.msk.f32.gmra.mxu3 %vm4752_vm4, %v4544_v21  ;;  %v8866_v21 = vld [vmem:[%s16005_s6 + $0x290] sm:$0xff] }
 0x92d   :  { %8687 = vmatmul.msk.f32.gmra.mxu2 %vm4752_vm4, %v4716_v2 }
 0x92e   :  { %8744 = vmatmul.msk.f32.gmra.mxu0 %vm4423_vm3, %v8723_v7  ;;  %v8796_v7 = vld [vmem:[%s16005_s6 + $0x218] sm:$0xff] }
 0x933   :  { %v4547_v35 = vpop.f32.mrf.mxu0 }
 0x934   :  { %v4719_v23 = vpop.f32.mrf.mxu1  ;;  %8708 = vmatmul.msk.f32.gmra.mxu3 %vm4752_vm4, %v4547_v35 }
 0x935   :  { %8688 = vmatmul.msk.f32.gmra.mxu2 %vm4752_vm4, %v4719_v23  ;;  %v8868_v23 = vld [vmem:[%s16005_s6 + $0x2a0] sm:$0xff] }
 0x936   :  { %8745 = vmatmul.msk.f32.gmra.mxu0 %vm4423_vm3, %v8724_v33 }
 0x93b   :  { %v4550_v15 = vpop.f32.mrf.mxu0 }
 0x93c   :  { %v4722_v48 = vpop.f32.mrf.mxu1  ;;  %8709 = vmatmul.msk.f32.gmra.mxu3 %vm4752_vm4, %v4550_v15  ;;  %v8843_v15 = vld [vmem:[%s16004_s7 + $0x1b8] sm:$0xff] }
 0x93d   :  { %8689 = vmatmul.msk.f32.gmra.mxu2 %vm4752_vm4, %v4722_v48  ;;  %5592 = vmatpush.msra.mxu3 %v8843_v15 }
 0x93e   :  { %8746 = vmatmul.msk.f32.gmra.mxu0 %vm4423_vm3, %v8725_v38 }
 0x93f   :  { %5593 = vmatpush.msra.mxu3 %v8842_v39  ;;  %v8875_v39 = vld [vmem:[%s16005_s6 + $0x2d8] sm:$0xff] }
 0x941   :  { %5594 = vmatpush.msra.mxu3 %v8841_v41  ;;  %v8909_v41 = vld [vmem:[%s16004_s7 + $0x1e0] sm:$0xff] }
 0x943   :  { %v4553_v3 = vpop.f32.mrf.mxu0 }
 0x944   :  { %v4725_v47 = vpop.f32.mrf.mxu1  ;;  %8710 = vmatmul.msk.f32.gmra.mxu3 %vm4752_vm4, %v4553_v3  ;;  %v8870_v3 = vld [vmem:[%s16005_s6 + $0x2b0] sm:$0xff] }
 0x945   :  { %8690 = vmatmul.msk.f32.gmra.mxu2 %vm4752_vm4, %v4725_v47  ;;  %v8840_v47 = vld [vmem:[%s16004_s7 + $0x1a0] sm:$0xff] }
 0x946   :  { %8747 = vmatmul.msk.f32.gmra.mxu0 %vm4423_vm3, %v8726_v63  ;;  %v8839_v63 = vld [vmem:[%s16004_s7 + $0x198] sm:$0xff]  ;;  %5595 = vmatpush.msra.mxu3 %v8840_v47 }
 0x947   :  { %v14463_v33 = vpop.f32.mrf.mxu3 }
 0x948   :  { %v14341_v40 = vpop.f32.mrf.mxu2  ;;  %16707 = vst [vmem:[#allocation25_spill] sm:$0xff] %v14463_v33  ;;  %5596 = vmatpush.msra.mxu3 %v8839_v63 }
 0x949   :  { %16703 = vst [vmem:[#allocation92_spill] sm:$0xff] %v14341_v40  ;;  %v6115_v40 = vpop.permute.xlu0 %6114 }
 0x94b   :  { %v4556_v28 = vpop.f32.mrf.mxu0 }
 0x94c   :  { %v4728_v43 = vpop.f32.mrf.mxu1  ;;  %8711 = vmatmul.msk.f32.gmra.mxu3 %vm4752_vm4, %v4556_v28  ;;  %v8838_v28 = vld [vmem:[%s16004_s7 + $0x190] sm:$0xff] }
 0x94d   :  { %8691 = vmatmul.msk.f32.gmra.mxu2 %vm4752_vm4, %v4728_v43  ;;  %v8837_v43 = vld [vmem:[%s16004_s7 + $0x188] sm:$0xff]  ;;  %5597 = vmatpush.msra.mxu3 %v8838_v28  ;;  %v8805_v28 = vld [vmem:[%s16005_s6 + $0x260] sm:$0xff] }
 0x94e   :  { %8748 = vmatmul.msk.f32.gmra.mxu0 %vm4423_vm3, %v8727_v56 }
 0x94f   :  { %v14480_v48 = vpop.f32.mrf.mxu3  ;;  %5598 = vmatpush.msra.mxu3 %v8837_v43  ;;  %v8906_v43 = vld [vmem:[%s16004_s7 + $0x1c8] sm:$0xff] }
 0x950   :  { %v14349_v29 = vpop.f32.mrf.mxu2  ;;  %16708 = vst [vmem:[#allocation27_spill] sm:$0xff] %v14480_v48 }
 0x951   :  { %16704 = vst [vmem:[#allocation35_spill] sm:$0xff] %v14349_v29  ;;  %v6100_v48 = vpop.permute.xlu0 %6099 }
 0x953   :  { %v4559_v19 = vpop.f32.mrf.mxu0 }
 0x954   :  { %v4731_v54 = vpop.f32.mrf.mxu1  ;;  %8712 = vmatmul.msk.f32.gmra.mxu3 %vm4752_vm4, %v4559_v19  ;;  %v8800_v19 = vld [vmem:[%s16005_s6 + $0x238] sm:$0xff] }
 0x955   :  { %8692 = vmatmul.msk.f32.gmra.mxu2 %vm4752_vm4, %v4731_v54 }
 0x956   :  { %8749 = vmatmul.msk.f32.gmra.mxu0 %vm4423_vm3, %v8728_v27  ;;  %v8871_v27 = vld [vmem:[%s16005_s6 + $0x2b8] sm:$0xff] }
 0x957   :  { %v14513_v56 = vpop.f32.mrf.mxu3 }
 0x958   :  { %v14357_v57 = vpop.f32.mrf.mxu2  ;;  %16709 = vst [vmem:[#allocation38_spill] sm:$0xff] %v14513_v56 }
 0x959   :  { %16705 = vst [vmem:[#allocation94_spill] sm:$0xff] %v14357_v57  ;;  %v14837_v56 = vpop.permute.xlu0 %6084 }
 0x95a   :  { %16745 = vst [vmem:[#allocation72_spill] sm:$0xff] %v14837_v56 }
 0x95b   :  { %v4562_v13 = vpop.f32.mrf.mxu0 }
 0x95c   :  { %v4734_v20 = vpop.f32.mrf.mxu1  ;;  %8713 = vmatmul.msk.f32.gmra.mxu3 %vm4752_vm4, %v4562_v13  ;;  %v8836_v13 = vld [vmem:[%s16004_s7 + $0x180] sm:$0xff] }
 0x95d   :  { %8693 = vmatmul.msk.f32.gmra.mxu2 %vm4752_vm4, %v4734_v20  ;;  %v8835_v20 = vld [vmem:[%s16004_s7 + $0x178] sm:$0xff]  ;;  %5599 = vmatpush.msra.mxu3 %v8836_v13 }
 0x95e   :  { %8750 = vmatmul.msk.f32.gmra.mxu0 %vm4423_vm3, %v8729_v18 }
 0x95f   :  { %5600 = vmatpush.msra.mxu3 %v8835_v20 }
 0x960   :  { %v14365_v25 = vpop.f32.mrf.mxu2 }
 0x961   :  { %16706 = vst [vmem:[#allocation90_spill] sm:$0xff] %v14365_v25 }
 0x963   :  { %v5125_v37 = vpop.f32.mrf.mxu0 }
 0x964   :  { %8769 = vmatmul.msk.f32.vlgmr.msra.gmra.mxu1 %vm4752_vm4, %v5125_v37  ;;  %v8801_v37 = vld [vmem:[%s16005_s6 + $0x240] sm:$0xff] }
 0x965   :  { %8810 = vmatmul.msk.f32.vlgmr.msra.gmra.mxu2 %vm4423_vm3, %v8789_v51  ;;  %v8834_v51 = vld [vmem:[%s16004_s7 + $0x170] sm:$0xff] }
 0x966   :  { %8751 = vmatmul.msk.f32.gmra.mxu0 %vm4423_vm3, %v8730_v8  ;;  %5601 = vmatpush.msra.mxu3 %v8834_v51  ;;  %v8833_v8 = vld [vmem:[%s16004_s7 + $0x168] sm:$0xff] }
 0x967   :  { %v8806_v51 = vld [vmem:[%s16005_s6 + $0x268] sm:$0xff] }
 0x968   :  { %v14376_v55 = vpop.f32.mrf.mxu2  ;;  %5602 = vmatpush.msra.mxu3 %v8833_v8 }
 0x96b   :  { %v5128_v10 = vpop.f32.mrf.mxu0 }
 0x96c   :  { %8770 = vmatmul.msk.f32.gmra.mxu1 %vm4752_vm4, %v5128_v10 }
 0x96d   :  { %8811 = vmatmul.msk.f32.gmra.mxu2 %vm4423_vm3, %v8790_v34  ;;  %v14541_v34 = vpop.f32.mrf.mxu3 }
 0x96e   :  { %8752 = vmatmul.msk.f32.gmra.mxu0 %vm4423_vm3, %v8731_v26  ;;  %16710 = vst [vmem:[#allocation96_spill] sm:$0xff] %v14541_v34  ;;  %v8872_v26 = vld [vmem:[%s16005_s6 + $0x2c0] sm:$0xff] }
 0x970   :  { %v14387_v45 = vpop.f32.mrf.mxu2 }
 0x973   :  { %v5131_v59 = vpop.f32.mrf.mxu0 }
 0x974   :  { %8771 = vmatmul.msk.f32.gmra.mxu1 %vm4752_vm4, %v5131_v59  ;;  %v8831_v59 = vld [vmem:[%s16004_s7 + $0x158] sm:$0xff] }
 0x975   :  { %8812 = vmatmul.msk.f32.gmra.mxu2 %vm4423_vm3, %v8791_v42  ;;  %v8832_v42 = vld [vmem:[%s16004_s7 + $0x160] sm:$0xff] }
 0x976   :  { %8753 = vmatmul.msk.f32.gmra.mxu0 %vm4423_vm3, %v8732_v53  ;;  %5603 = vmatpush.msra.mxu3 %v8832_v42 }
 0x978   :  { %v14398_v24 = vpop.f32.mrf.mxu2  ;;  %5604 = vmatpush.msra.mxu3 %v8831_v59  ;;  %v8807_v59 = vld [vmem:[%s16005_s6 + $0x270] sm:$0xff] }
 0x97b   :  { %v5134_v30 = vpop.f32.mrf.mxu0 }
 0x97c   :  { %8772 = vmatmul.msk.f32.gmra.mxu1 %vm4752_vm4, %v5134_v30  ;;  %v8802_v30 = vld [vmem:[%s16005_s6 + $0x248] sm:$0xff] }
 0x97d   :  { %8813 = vmatmul.msk.f32.gmra.mxu2 %vm4423_vm3, %v8792_v44  ;;  %v8830_v44 = vld [vmem:[%s16004_s7 + $0x150] sm:$0xff] }
 0x97e   :  { %8754 = vmatmul.msk.f32.gmra.mxu0 %vm4423_vm3, %v8733_v36  ;;  %5605 = vmatpush.msra.mxu3 %v8830_v44  ;;  %v8918_v36 = vld [vmem:[%s16004_s7 + $0x228] sm:$0xff] }
 0x97f   :  { %5922 = vmatpush.msrb.mxu1 %v8918_v36 }
 0x980   :  { %v14409_v62 = vpop.f32.mrf.mxu2 }
 0x983   :  { %v5137_v5 = vpop.f32.mrf.mxu0 }
 0x984   :  { %8773 = vmatmul.msk.f32.gmra.mxu1 %vm4752_vm4, %v5137_v5  ;;  %v8873_v5 = vld [vmem:[%s16005_s6 + $0x2c8] sm:$0xff] }
 0x985   :  { %8814 = vmatmul.msk.f32.gmra.mxu2 %vm4423_vm3, %v8793_v14 }
 0x986   :  { %8885 = vmatmul.msk.f32.vlgmr.msra.gmra.mxu0 %vm4423_vm3, %v8864_v16  ;;  %v8917_v16 = vld [vmem:[%s16004_s7 + $0x220] sm:$0xff] }
 0x987   :  { %5923 = vmatpush.msrb.mxu1 %v8917_v16  ;;  %v8808_v16 = vld [vmem:[%s16005_s6 + $0x278] sm:$0xff] }
 0x988   :  { %v14420_v31 = vpop.f32.mrf.mxu2 }
 0x98b   :  { %v5140_v4 = vpop.f32.mrf.mxu0 }
 0x98c   :  { %8774 = vmatmul.msk.f32.gmra.mxu1 %vm4752_vm4, %v5140_v4  ;;  %v14577_v4 = vpop.f32.mrf.mxu3 }
 0x98d   :  { %8815 = vmatmul.msk.f32.gmra.mxu2 %vm4423_vm3, %v8794_v32  ;;  %v8916_v32 = vld [vmem:[%s16004_s7 + $0x218] sm:$0xff]  ;;  %16712 = vst [vmem:[#allocation98_spill] sm:$0xff] %v14577_v4 }
 0x98e   :  { %8886 = vmatmul.msk.f32.gmra.mxu0 %vm4423_vm3, %v8865_v50  ;;  %5924 = vmatpush.msrb.mxu1 %v8916_v32 }
 0x990   :  { %v14431_v58 = vpop.f32.mrf.mxu2 }
 0x993   :  { %v5143_v46 = vpop.f32.mrf.mxu0 }
 0x994   :  { %8775 = vmatmul.msk.f32.gmra.mxu1 %vm4752_vm4, %v5143_v46  ;;  %v8803_v46 = vld [vmem:[%s16005_s6 + $0x250] sm:$0xff] }
 0x995   :  { %8816 = vmatmul.msk.f32.gmra.mxu2 %vm4423_vm3, %v8795_v1  ;;  %v8915_v1 = vld [vmem:[%s16004_s7 + $0x210] sm:$0xff] }
 0x996   :  { %8887 = vmatmul.msk.f32.gmra.mxu0 %vm4423_vm3, %v8866_v21  ;;  %5925 = vmatpush.msrb.mxu1 %v8915_v1  ;;  %v8914_v21 = vld [vmem:[%s16004_s7 + $0x208] sm:$0xff]  ;;  %v8879_v1 = vld [vmem:[%s16005_s6 + $0x2f8] sm:$0xff] }
 0x998   :  { %v14442_v2 = vpop.f32.mrf.mxu2  ;;  %5926 = vmatpush.msrb.mxu1 %v8914_v21 }
 0x99b   :  { %v5146_v17 = vpop.f32.mrf.mxu0 }
 0x99c   :  { %8776 = vmatmul.msk.f32.gmra.mxu1 %vm4752_vm4, %v5146_v17  ;;  %v8874_v17 = vld [vmem:[%s16005_s6 + $0x2d0] sm:$0xff] }
 0x99d   :  { %8817 = vmatmul.msk.f32.gmra.mxu2 %vm4423_vm3, %v8796_v7 }
 0x99e   :  { %8888 = vmatmul.msk.f32.gmra.mxu0 %vm4423_vm3, %v8867_v49  ;;  %v8913_v49 = vld [vmem:[%s16004_s7 + $0x200] sm:$0xff] }
 0x99f   :  { %5927 = vmatpush.msrb.mxu1 %v8913_v49  ;;  %v8880_v49 = vld [vmem:[%s16005_s6 + $0x300] sm:$0xff] }
 0x9a0   :  { %v14453_v6 = vpop.f32.mrf.mxu2 }
 0x9a3   :  { %v5149_v35 = vpop.f32.mrf.mxu0 }
 0x9a4   :  { %8777 = vmatmul.msk.f32.gmra.mxu1 %vm4752_vm4, %v5149_v35  ;;  %v14603_v35 = vpop.f32.mrf.mxu3 }
 0x9a5   :  { %8818 = vmatmul.msk.f32.gmra.mxu2 %vm4423_vm3, %v8797_v11  ;;  %v8912_v11 = vld [vmem:[%s16004_s7 + $0x1f8] sm:$0xff] }
 0x9a6   :  { %8889 = vmatmul.msk.f32.gmra.mxu0 %vm4423_vm3, %v8868_v23  ;;  %5928 = vmatpush.msrb.mxu1 %v8912_v11 }
 0x9a8   :  { %v14466_v12 = vpop.f32.mrf.mxu2 }
 0x9ab   :  { %v5152_v60 = vpop.f32.mrf.mxu0 }
 0x9ac   :  { %8778 = vmatmul.msk.f32.gmra.mxu1 %vm4752_vm4, %v5152_v60  ;;  %v8804_v60 = vld [vmem:[%s16005_s6 + $0x258] sm:$0xff]  ;;  %v14633_v47 = vpop.f32.mrf.mxu3 }
 0x9ad   :  { %8819 = vmatmul.msk.f32.gmra.mxu2 %vm4423_vm3, %v8798_v52  ;;  %v8911_v52 = vld [vmem:[%s16004_s7 + $0x1f0] sm:$0xff] }
 0x9ae   :  { %8890 = vmatmul.msk.f32.gmra.mxu0 %vm4423_vm3, %v8869_v0  ;;  %5929 = vmatpush.msrb.mxu1 %v8911_v52  ;;  %v8910_v0 = vld [vmem:[%s16004_s7 + $0x1e8] sm:$0xff] }
 0x9b0   :  { %v14482_v38 = vpop.f32.mrf.mxu2  ;;  %5930 = vmatpush.msrb.mxu1 %v8910_v0 }
 0x9b2   :  { %5931 = vmatpush.msrb.mxu1 %v8909_v41 }
 0x9b3   :  { %v5155_v61 = vpop.f32.mrf.mxu0 }
 0x9b4   :  { %8779 = vmatmul.msk.f32.gmra.mxu1 %vm4752_vm4, %v5155_v61 }
 0x9b5   :  { %8820 = vmatmul.msk.f32.gmra.mxu2 %vm4423_vm3, %v8799_v9  ;;  %v8908_v9 = vld [vmem:[%s16004_s7 + $0x1d8] sm:$0xff] }
 0x9b6   :  { %8891 = vmatmul.msk.f32.gmra.mxu0 %vm4423_vm3, %v8870_v3  ;;  %5932 = vmatpush.msrb.mxu1 %v8908_v9  ;;  %v8907_v3 = vld [vmem:[%s16004_s7 + $0x1d0] sm:$0xff] }
 0x9b8   :  { %v14505_v22 = vpop.f32.mrf.mxu2  ;;  %5933 = vmatpush.msrb.mxu1 %v8907_v3 }
 0x9ba   :  { %5934 = vmatpush.msrb.mxu1 %v8906_v43 }
 0x9bb   :  { %v5158_v54 = vpop.f32.mrf.mxu0 }
 0x9bc   :  { %8780 = vmatmul.msk.f32.gmra.mxu1 %vm4752_vm4, %v5158_v54  ;;  %v8876_v54 = vld [vmem:[%s16005_s6 + $0x2e0] sm:$0xff] }
 0x9bd   :  { %8821 = vmatmul.msk.f32.gmra.mxu2 %vm4423_vm3, %v8800_v19 }
 0x9be   :  { %8892 = vmatmul.msk.f32.gmra.mxu0 %vm4423_vm3, %v8871_v27  ;;  %v8905_v27 = vld [vmem:[%s16004_s7 + $0x1c0] sm:$0xff] }
 0x9bf   :  { %5935 = vmatpush.msrb.mxu1 %v8905_v27  ;;  %v8883_v27 = vld [vmem:[%s16005_s6 + $0x318] sm:$0xff] }
 0x9c0   :  { %v14530_v18 = vpop.f32.mrf.mxu2 }
 0x9c3   :  { %v5161_v10 = vpop.f32.mrf.mxu0 }
 0x9c4   :  { %8781 = vmatmul.msk.f32.gmra.mxu1 %vm4752_vm4, %v5161_v10  ;;  %v8877_v10 = vld [vmem:[%s16005_s6 + $0x2e8] sm:$0xff] }
 0x9c5   :  { %8822 = vmatmul.msk.f32.gmra.mxu2 %vm4423_vm3, %v8801_v37  ;;  %v14658_v37 = vpop.f32.mrf.mxu3 }
 0x9c6   :  { %8893 = vmatmul.msk.f32.gmra.mxu0 %vm4423_vm3, %v8872_v26 }
 0x9c8   :  { %v14555_v53 = vpop.f32.mrf.mxu2 }
 0x9c9   :  { %16711 = vst [vmem:[#allocation41_spill] sm:$0xff] %v14555_v53 }
 0x9cb   :  { %v5164_v14 = vpop.f32.mrf.mxu0 }
 0x9cc   :  { %8782 = vmatmul.msk.f32.gmra.mxu1 %vm4752_vm4, %v5164_v14 }
 0x9cd   :  { %8823 = vmatmul.msk.f32.gmra.mxu2 %vm4423_vm3, %v8802_v30  ;;  %v8878_v30 = vld [vmem:[%s16005_s6 + $0x2f0] sm:$0xff]  ;;  %v14677_v36 = vpop.f32.mrf.mxu3 }
 0x9ce   :  { %8894 = vmatmul.msk.f32.gmra.mxu0 %vm4423_vm3, %v8873_v5 }
 0x9d0   :  { %v14580_v50 = vpop.f32.mrf.mxu2 }
 0x9d1   :  { %16713 = vst [vmem:[#allocation44_spill] sm:$0xff] %v14580_v50 }
 0x9d3   :  { %v5167_v7 = vpop.f32.mrf.mxu0 }
 0x9d4   :  { %8783 = vmatmul.msk.f32.gmra.mxu1 %vm4752_vm4, %v5167_v7 }
 0x9d5   :  { %8824 = vmatmul.msk.f32.gmra.mxu2 %vm4423_vm3, %v8803_v46  ;;  %v14692_v46 = vpop.f32.mrf.mxu3 }
 0x9d6   :  { %8895 = vmatmul.msk.f32.gmra.mxu0 %vm4423_vm3, %v8874_v17 }
 0x9d8   :  { %v14605_v23 = vpop.f32.mrf.mxu2 }
 0x9d9   :  { %16714 = vst [vmem:[#allocation100_spill] sm:$0xff] %v14605_v23 }
 0x9db   :  { %v5170_v15 = vpop.f32.mrf.mxu0 }
 0x9dc   :  { %8784 = vmatmul.msk.f32.gmra.mxu1 %vm4752_vm4, %v5170_v15  ;;  %v8881_v15 = vld [vmem:[%s16005_s6 + $0x308] sm:$0xff] }
 0x9dd   :  { %8825 = vmatmul.msk.f32.gmra.mxu2 %vm4423_vm3, %v8804_v60  ;;  %v14703_v52 = vpop.f32.mrf.mxu3 }
 0x9de   :  { %8896 = vmatmul.msk.f32.gmra.mxu0 %vm4423_vm3, %v8875_v39 }
 0x9e0   :  { %v14628_v61 = vpop.f32.mrf.mxu2 }
 0x9e1   :  { %16715 = vst [vmem:[#allocation91_spill] sm:$0xff] %v14628_v61  ;;  %v14635_v63 = vpop.f32.mrf.mxu1 }
 0x9e2   :  { %16716 = vst [vmem:[#allocation93_spill] sm:$0xff] %v14635_v63 }
 0x9e3   :  { %v5173_v19 = vpop.f32.mrf.mxu0 }
 0x9e4   :  { %8785 = vmatmul.msk.f32.gmra.mxu1 %vm4752_vm4, %v5173_v19 }
 0x9e5   :  { %8826 = vmatmul.msk.f32.gmra.mxu2 %vm4423_vm3, %v8805_v28  ;;  %v14715_v9 = vpop.f32.mrf.mxu3  ;;  %v8882_v28 = vld [vmem:[%s16005_s6 + $0x310] sm:$0xff] }
 0x9e6   :  { %8897 = vmatmul.msk.f32.gmra.mxu0 %vm4423_vm3, %v8876_v54 }
 0x9e8   :  { %v5455_v13 = vpop.f32.mrf.mxu2 }
 0x9e9   :  { %8844 = vmatmul.msk.f32.vlgmr.msra.gmra.mxu3 %vm4752_vm4, %v5455_v13  ;;  %v14653_v20 = vpop.f32.mrf.mxu1 }
 0x9ea   :  { %16717 = vst [vmem:[#allocation95_spill] sm:$0xff] %v14653_v20 }
 0x9eb   :  { %v5176_v8 = vpop.f32.mrf.mxu0 }
 0x9ec   :  { %8786 = vmatmul.msk.f32.gmra.mxu1 %vm4752_vm4, %v5176_v8 }
 0x9ed   :  { %8827 = vmatmul.msk.f32.gmra.mxu2 %vm4423_vm3, %v8806_v51  ;;  %v14729_v13 = vpop.f32.mrf.mxu3 }
 0x9ee   :  { %8898 = vmatmul.msk.f32.gmra.mxu0 %vm4423_vm3, %v8877_v10 }
 0x9f0   :  { %v5458_v26 = vpop.f32.mrf.mxu2 }
 0x9f1   :  { %8845 = vmatmul.msk.f32.gmra.mxu3 %vm4752_vm4, %v5458_v26  ;;  %v14667_v42 = vpop.f32.mrf.mxu1 }
 0x9f2   :  { %16718 = vst [vmem:[#allocation97_spill] sm:$0xff] %v14667_v42 }
 0x9f3   :  { %v5179_v44 = vpop.f32.mrf.mxu0 }
 0x9f4   :  { %8787 = vmatmul.msk.f32.gmra.mxu1 %vm4752_vm4, %v5179_v44 }
 0x9f5   :  { %8828 = vmatmul.msk.f32.gmra.mxu2 %vm4423_vm3, %v8807_v59  ;;  %v14736_v26 = vpop.f32.mrf.mxu3 }
 0x9f6   :  { %8899 = vmatmul.msk.f32.gmra.mxu0 %vm4423_vm3, %v8878_v30 }
 0x9f8   :  { %v5461_v14 = vpop.f32.mrf.mxu2 }
 0x9f9   :  { %8846 = vmatmul.msk.f32.gmra.mxu3 %vm4752_vm4, %v5461_v14  ;;  %v14681_v5 = vpop.f32.mrf.mxu1 }
 0x9fa   :  { %16719 = vst [vmem:[#allocation99_spill] sm:$0xff] %v14681_v5 }
 0x9fb   :  { %v5182_v32 = vpop.f32.mrf.mxu0 }
 0x9fc   :  { %8788 = vmatmul.msk.f32.gmra.mxu1 %vm4752_vm4, %v5182_v32 }
 0x9fd   :  { %8829 = vmatmul.msk.f32.gmra.mxu2 %vm4423_vm3, %v8808_v16  ;;  %v14743_v16 = vpop.f32.mrf.mxu3 }
 0x9fe   :  { %8900 = vmatmul.msk.f32.gmra.mxu0 %vm4423_vm3, %v8879_v1 }
 0xa00   :  { %v5464_v21 = vpop.f32.mrf.mxu2 }
 0xa01   :  { %8847 = vmatmul.msk.f32.gmra.mxu3 %vm4752_vm4, %v5464_v21  ;;  %v14695_v7 = vpop.f32.mrf.mxu1 }
 0xa02   :  { %16720 = vst [vmem:[#allocation101_spill] sm:$0xff] %v14695_v7 }
 0xa03   :  { %v5785_v17 = vpop.f32.mrf.mxu0 }
 0xa04   :  { %8919 = vmatmul.msk.f32.vlgmr.msrb.gmra.mxu1 %vm4752_vm4, %v5785_v17 }
 0xa06   :  { %8901 = vmatmul.msk.f32.gmra.mxu0 %vm4423_vm3, %v8880_v49  ;;  %v14751_v49 = vpop.f32.mrf.mxu3 }
 0xa07   :  { %v5013_v7 = vadd.f32 %v14751_v49, %v14530_v18 }
 0xa08   :  { %v5467_v11 = vpop.f32.mrf.mxu2 }
 0xa09   :  { %8848 = vmatmul.msk.f32.gmra.mxu3 %vm4752_vm4, %v5467_v11  ;;  %v14705_v60 = vpop.f32.mrf.mxu1 }
 0xa0a   :  { %16721 = vst [vmem:[#allocation134_spill] sm:$0xff] %v14705_v60 }
 0xa0b   :  { %v5788_v0 = vpop.f32.mrf.mxu0 }
 0xa0c   :  { %8920 = vmatmul.msk.f32.gmra.mxu1 %vm4752_vm4, %v5788_v0 }
 0xa0e   :  { %8902 = vmatmul.msk.f32.gmra.mxu0 %vm4423_vm3, %v8881_v15 }
 0xa10   :  { %v5470_v39 = vpop.f32.mrf.mxu2 }
 0xa11   :  { %8849 = vmatmul.msk.f32.gmra.mxu3 %vm4752_vm4, %v5470_v39  ;;  %v14713_v41 = vpop.f32.mrf.mxu1 }
 0xa13   :  { %v5791_v3 = vpop.f32.mrf.mxu0 }
 0xa14   :  { %8921 = vmatmul.msk.f32.gmra.mxu1 %vm4752_vm4, %v5791_v3  ;;  %v14758_v3 = vpop.f32.mrf.mxu3 }
 0xa15   :  { %16722 = vst [vmem:[#allocation17_spill] sm:$0xff] %v14758_v3 }
 0xa16   :  { %8903 = vmatmul.msk.f32.gmra.mxu0 %vm4423_vm3, %v8882_v28 }
 0xa18   :  { %v5473_v43 = vpop.f32.mrf.mxu2 }
 0xa19   :  { %8850 = vmatmul.msk.f32.gmra.mxu3 %vm4752_vm4, %v5473_v43  ;;  %v14723_v19 = vpop.f32.mrf.mxu1 }
 0xa1b   :  { %v5794_v54 = vpop.f32.mrf.mxu0 }
 0xa1c   :  { %8922 = vmatmul.msk.f32.gmra.mxu1 %vm4752_vm4, %v5794_v54 }
 0xa1e   :  { %8904 = vmatmul.msk.f32.gmra.mxu0 %vm4423_vm3, %v8883_v27  ;;  %v14764_v27 = vpop.f32.mrf.mxu3 }
 0xa1f   :  { %16723 = vst [vmem:[#allocation215_spill] sm:$0xff] %v14764_v27 }
 0xa20   :  { %v5476_v51 = vpop.f32.mrf.mxu2 }
 0xa21   :  { %8851 = vmatmul.msk.f32.gmra.mxu3 %vm4752_vm4, %v5476_v51  ;;  %v14733_v8 = vpop.f32.mrf.mxu1 }
 0xa23   :  { %v5797_v10 = vpop.f32.mrf.mxu0 }
 0xa24   :  { %8923 = vmatmul.msk.f32.gmra.mxu1 %vm4752_vm4, %v5797_v10 }
 0xa28   :  { %v5479_v59 = vpop.f32.mrf.mxu2 }
 0xa29   :  { %8852 = vmatmul.msk.f32.gmra.mxu3 %vm4752_vm4, %v5479_v59  ;;  %v14739_v44 = vpop.f32.mrf.mxu1 }
 0xa2b   :  { %v5800_v30 = vpop.f32.mrf.mxu0 }
 0xa2c   :  { %8924 = vmatmul.msk.f32.gmra.mxu1 %vm4752_vm4, %v5800_v30 }
 0xa30   :  { %v5482_v14 = vpop.f32.mrf.mxu2 }
 0xa31   :  { %8853 = vmatmul.msk.f32.gmra.mxu3 %vm4752_vm4, %v5482_v14  ;;  %v14745_v32 = vpop.f32.mrf.mxu1  ;;  %v14771_v14 = vpop.f32.mrf.mxu3 }
 0xa32   :  { %16724 = vst [vmem:[#allocation216_spill] sm:$0xff] %v14771_v14 }
 0xa33   :  { %v5803_v1 = vpop.f32.mrf.mxu0 }
 0xa34   :  { %8925 = vmatmul.msk.f32.gmra.mxu1 %vm4752_vm4, %v5803_v1 }
 0xa38   :  { %v5485_v21 = vpop.f32.mrf.mxu2 }
 0xa39   :  { %8854 = vmatmul.msk.f32.gmra.mxu3 %vm4752_vm4, %v5485_v21  ;;  %v14749_v17 = vpop.f32.mrf.mxu1 }
 0xa3b   :  { %v5806_v11 = vpop.f32.mrf.mxu0 }
 0xa3c   :  { %8926 = vmatmul.msk.f32.gmra.mxu1 %vm4752_vm4, %v5806_v11 }
 0xa40   :  { %v5488_v0 = vpop.f32.mrf.mxu2 }
 0xa41   :  { %8855 = vmatmul.msk.f32.gmra.mxu3 %vm4752_vm4, %v5488_v0  ;;  %v14755_v15 = vpop.f32.mrf.mxu1 }
 0xa43   :  { %v5809_v39 = vpop.f32.mrf.mxu0 }
 0xa44   :  { %8927 = vmatmul.msk.f32.gmra.mxu1 %vm4752_vm4, %v5809_v39  ;;  %v14779_v39 = vpop.f32.mrf.mxu3 }
 0xa45   :  { %16726 = vst [vmem:[#allocation18_spill] sm:$0xff] %v14779_v39 }
 0xa48   :  { %v5491_v28 = vpop.f32.mrf.mxu2 }
 0xa49   :  { %8856 = vmatmul.msk.f32.gmra.mxu3 %vm4752_vm4, %v5491_v28  ;;  %v14761_v43 = vpop.f32.mrf.mxu1 }
 0xa4b   :  { %v5812_v54 = vpop.f32.mrf.mxu0 }
 0xa4c   :  { %8928 = vmatmul.msk.f32.gmra.mxu1 %vm4752_vm4, %v5812_v54 }
 0xa50   :  { %v5494_v51 = vpop.f32.mrf.mxu2 }
 0xa51   :  { %8857 = vmatmul.msk.f32.gmra.mxu3 %vm4752_vm4, %v5494_v51  ;;  %v14767_v10 = vpop.f32.mrf.mxu1 }
 0xa53   :  { %v5815_v59 = vpop.f32.mrf.mxu0 }
 0xa54   :  { %8929 = vmatmul.msk.f32.gmra.mxu1 %vm4752_vm4, %v5815_v59 }
 0xa58   :  { %v5497_v30 = vpop.f32.mrf.mxu2 }
 0xa59   :  { %8858 = vmatmul.msk.f32.gmra.mxu3 %vm4752_vm4, %v5497_v30  ;;  %v14773_v1 = vpop.f32.mrf.mxu1 }
 0xa5a   :  { %v5352_v60 = vadd.f32 %v14773_v1, %v5013_v7 }
 0xa5b   :  { %v5818_v21 = vpop.f32.mrf.mxu0 }
 0xa5c   :  { %8930 = vmatmul.msk.f32.gmra.mxu1 %vm4752_vm4, %v5818_v21 }
 0xa60   :  { %v5500_v11 = vpop.f32.mrf.mxu2 }
 0xa61   :  { %8859 = vmatmul.msk.f32.gmra.mxu3 %vm4752_vm4, %v5500_v11  ;;  %v14777_v0 = vpop.f32.mrf.mxu1 }
 0xa62   :  { %16725 = vst [vmem:[#allocation222_spill] sm:$0xff] %v14777_v0 }
 0xa63   :  { %v5821_v28 = vpop.f32.mrf.mxu0 }
 0xa64   :  { %8931 = vmatmul.msk.f32.gmra.mxu1 %vm4752_vm4, %v5821_v28 }
 0xa68   :  { %v5503_v54 = vpop.f32.mrf.mxu2 }
 0xa69   :  { %8860 = vmatmul.msk.f32.gmra.mxu3 %vm4752_vm4, %v5503_v54  ;;  %v14783_v51 = vpop.f32.mrf.mxu1 }
 0xa6a   :  { %16727 = vst [vmem:[#allocation23_spill] sm:$0xff] %v14783_v51 }
 0xa6b   :  { %v5824_v30 = vpop.f32.mrf.mxu0 }
 0xa6c   :  { %v14785_v59 = vpop.f32.mrf.mxu3  ;;  %8932 = vmatmul.msk.f32.gmra.mxu1 %vm4752_vm4, %v5824_v30 }
 0xa6d   :  { %16728 = vst [vmem:[#allocation132_spill] sm:$0xff] %v14785_v59 }
 0xa70   :  { %v5506_v21 = vpop.f32.mrf.mxu2 }
 0xa71   :  { %8861 = vmatmul.msk.f32.gmra.mxu3 %vm4752_vm4, %v5506_v21  ;;  %v14789_v11 = vpop.f32.mrf.mxu1 }
 0xa72   :  { %16729 = vst [vmem:[#allocation133_spill] sm:$0xff] %v14789_v11 }
 0xa73   :  { %v5827_v3 = vpop.f32.mrf.mxu0 }
 0xa74   :  { %v14791_v0 = vpop.f32.mrf.mxu3  ;;  %8933 = vmatmul.msk.f32.gmra.mxu1 %vm4752_vm4, %v5827_v3 }
 0xa75   :  { %16730 = vst [vmem:[#allocation15_spill] sm:$0xff] %v14791_v0 }
 0xa78   :  { %v5509_v28 = vpop.f32.mrf.mxu2 }
 0xa79   :  { %8862 = vmatmul.msk.f32.gmra.mxu3 %vm4752_vm4, %v5509_v28  ;;  %v14795_v54 = vpop.f32.mrf.mxu1 }
 0xa7a   :  { %16731 = vst [vmem:[#allocation211_spill] sm:$0xff] %v14795_v54 }
 0xa7b   :  { %v5830_v53 = vpop.f32.mrf.mxu0 }
 0xa7c   :  { %v14797_v51 = vpop.f32.mrf.mxu3  ;;  %8934 = vmatmul.msk.f32.gmra.mxu1 %vm4752_vm4, %v5830_v53 }
 0xa7d   :  { %16732 = vst [vmem:[#allocation212_spill] sm:$0xff] %v14797_v51 }
 0xa80   :  { %v5512_v30 = vpop.f32.mrf.mxu2 }
 0xa81   :  { %8863 = vmatmul.msk.f32.gmra.mxu3 %vm4752_vm4, %v5512_v30  ;;  %v14801_v21 = vpop.f32.mrf.mxu1 }
 0xa82   :  { %16733 = vst [vmem:[#allocation226_spill] sm:$0xff] %v14801_v21 }
 0xa83   :  { %v5833_v39 = vpop.f32.mrf.mxu0 }
 0xa84   :  { %v14803_v11 = vpop.f32.mrf.mxu3  ;;  %8935 = vmatmul.msk.f32.gmra.mxu1 %vm4752_vm4, %v5833_v39 }
 0xa85   :  { %16734 = vst [vmem:[#allocation24_spill] sm:$0xff] %v14803_v11  ;;  %v6110_v11 = vpop.permute.xlu1 %6109 }
 0xa89   :  { %v14806_v3 = vpop.f32.mrf.mxu1 }
 0xa8a   :  { %16735 = vst [vmem:[#allocation65_spill] sm:$0xff] %v14806_v3 }
 0xa8b   :  { %v5836_v54 = vpop.f32.mrf.mxu0 }
 0xa8c   :  { %v14808_v28 = vpop.f32.mrf.mxu3  ;;  %8936 = vmatmul.msk.f32.gmra.mxu1 %vm4752_vm4, %v5836_v54 }
 0xa8d   :  { %16736 = vst [vmem:[#allocation130_spill] sm:$0xff] %v14808_v28  ;;  %v6095_v28 = vpop.permute.xlu1 %6094 }
 0xa91   :  { %v14811_v61 = vpop.f32.mrf.mxu1 }
 0xa92   :  { %16737 = vst [vmem:[#allocation131_spill] sm:$0xff] %v14811_v61 }
 0xa93   :  { %v5839_v27 = vpop.f32.mrf.mxu0 }
 0xa94   :  { %v14813_v53 = vpop.f32.mrf.mxu3  ;;  %8937 = vmatmul.msk.f32.gmra.mxu1 %vm4752_vm4, %v5839_v27 }
 0xa95   :  { %16738 = vst [vmem:[#allocation14_spill] sm:$0xff] %v14813_v53  ;;  %v5007_v53 = vadd.f32 %v14736_v26, %v14482_v38  ;;  %v14856_v26 = vpop.permute.xlu0 %6069 }
 0xa97   :  { %v5350_v56 = vadd.f32 %v14761_v43, %v5007_v53  ;;  %v16747_v53 = vld [vmem:[#allocation134_spill] sm:$0xff] }
 0xa99   :  { %v14816_v30 = vpop.f32.mrf.mxu1 }
 0xa9a   :  { %16739 = vst [vmem:[#allocation207_spill] sm:$0xff] %v14816_v30 }
 0xa9b   :  { %v5842_v50 = vpop.f32.mrf.mxu0 }
 0xa9c   :  { %v14818_v21 = vpop.f32.mrf.mxu3  ;;  %8938 = vmatmul.msk.f32.gmra.mxu1 %vm4752_vm4, %v5842_v50 }
 0xa9d   :  { %16740 = vst [vmem:[#allocation208_spill] sm:$0xff] %v14818_v21  ;;  %v5004_v21 = vadd.f32 %v14729_v13, %v14466_v12  ;;  %v4998_v12 = vadd.f32 %v14703_v52, %v14442_v2 }
 0xa9f   :  { %v5349_v18 = vadd.f32 %v14755_v15, %v5004_v21  ;;  %v16746_v21 = vld [vmem:[#allocation98_spill] sm:$0xff] }
 0xaa1   :  { %v14821_v39 = vpop.f32.mrf.mxu1 }
 0xaa2   :  { %16741 = vst [vmem:[#allocation225_spill] sm:$0xff] %v14821_v39 }
 0xaa4   :  { %v14823_v3 = vpop.f32.mrf.mxu3 }
 0xaa9   :  { %v14825_v14 = vpop.f32.mrf.mxu1 }
 0xaaa   :  { %16742 = vst [vmem:[#allocation68_spill] sm:$0xff] %v14825_v14  ;;  %v6105_v14 = vpop.permute.xlu2 %6104 }
 0xaac   :  { %v14827_v54 = vpop.f32.mrf.mxu3 }
 0xab1   :  { %v14829_v23 = vpop.f32.mrf.mxu1 }
 0xab2   :  { %16743 = vst [vmem:[#allocation69_spill] sm:$0xff] %v14829_v23  ;;  %v5010_v23 = vadd.f32 %v14743_v16, %v14505_v22  ;;  %v6090_v25 = vpop.permute.xlu2 %6089  ;;  %v5001_v22 = vadd.f32 %v14715_v9, %v14453_v6  ;;  %v4995_v6 = vadd.f32 %v14692_v46, %v14431_v58  ;;  %v5347_v9 = vadd.f32 %v14745_v32, %v4998_v12 }
 0xab4   :  { %v5634_v59 = vpop.f32.mrf.mxu3  ;;  %v5351_v34 = vadd.f32 %v14767_v10, %v5010_v23  ;;  %v5348_v43 = vadd.f32 %v14749_v17, %v5001_v22  ;;  %v5346_v2 = vadd.f32 %v14739_v44, %v4995_v6  ;;  %v16753_v22 = vld [vmem:[#allocation101_spill] sm:$0xff]  ;;  %v16758_v6 = vld [vmem:[#allocation99_spill] sm:$0xff] }
 0xab9   :  { %v14831_v61 = vpop.f32.mrf.mxu1 }
 0xaba   :  { %16744 = vst [vmem:[#allocation40_spill] sm:$0xff] %v14831_v61  ;;  %v14846_v61 = vpop.permute.xlu1 %6079  ;;  %v6075_v58 = vpop.permute.xlu2 %6074 }
 0xabc   :  { %v5637_v27 = vpop.f32.mrf.mxu3 }
 0xac1   :  { %v14833_v0 = vpop.f32.mrf.mxu1 }
 0xac2   :  { %v6065_v52 = vpop.permute.xlu1 %6064 }
 0xac4   :  { %v5640_v63 = vpop.f32.mrf.mxu3 }
 0xac5   :  { %v5678_v10 = vadd.f32 %v5640_v63, %v5348_v43  ;;  %v4989_v63 = vadd.f32 %v14658_v37, %v14409_v62  ;;  %v14890_v37 = vpop.permute.xlu0 %6054  ;;  %v6060_v43 = vpop.permute.xlu2 %6059 }
 0xac9   :  { %v14835_v30 = vpop.f32.mrf.mxu1 }
 0xacc   :  { %v5643_v50 = vpop.f32.mrf.mxu3 }
 0xacd   :  { %v5679_v7 = vadd.f32 %v5643_v50, %v5349_v18 }
 0xad1   :  { %v5967_v51 = vpop.f32.mrf.mxu1 }
 0xad4   :  { %v5646_v20 = vpop.f32.mrf.mxu3 }
 0xad5   :  { %v5680_v23 = vadd.f32 %v5646_v20, %v5350_v56 }
 0xad9   :  { %v5970_v33 = vpop.f32.mrf.mxu1 }
 0xada   :  { %v6008_v20 = vadd.f32 %v5970_v33, %v5678_v10  ;;  %v4986_v33 = vadd.f32 %v14633_v47, %v14398_v24  ;;  %v4983_v24 = vadd.f32 %v14603_v35, %v14387_v45  ;;  %v16749_v35 = vld [vmem:[#allocation40_spill] sm:$0xff] }
 0xadc   :  { %v5649_v42 = vpop.f32.mrf.mxu3  ;;  %v14894_v17 = vadd.f32 %v6095_v28, %v6008_v20  ;;  %v5343_v47 = vadd.f32 %v14713_v41, %v4986_v33  ;;  %v4980_v28 = vadd.f32 %v16746_v21, %v14376_v55  ;;  %v16754_v55 = vld [vmem:[#allocation14_spill] sm:$0xff]  ;;  %v16763_v33 = vld [vmem:[#allocation97_spill] sm:$0xff] }
 0xadd   :  { %v5681_v4 = vadd.f32 %v5649_v42, %v5351_v34 }
 0xade   :  { %v5341_v18 = vadd.f32 %v16753_v22, %v4980_v28  ;;  %v16766_v28 = vld [vmem:[#allocation92_spill] sm:$0xff] }
 0xae1   :  { %v5973_v39 = vpop.f32.mrf.mxu1 }
 0xae2   :  { %v6009_v1 = vadd.f32 %v5973_v39, %v5679_v7  ;;  %v16748_v39 = vld [vmem:[#allocation208_spill] sm:$0xff]  ;;  %v16756_v7 = vld [vmem:[#allocation94_spill] sm:$0xff] }
 0xae3   :  { %v5673_v45 = vadd.f32 %v16748_v39, %v5343_v47  ;;  %v16768_v39 = vld [vmem:[#allocation95_spill] sm:$0xff] }
 0xae4   :  { %v5652_v5 = vpop.f32.mrf.mxu3  ;;  %v14878_v32 = vadd.f32 %v6100_v48, %v6009_v1  ;;  %v16759_v1 = vld [vmem:[#allocation130_spill] sm:$0xff] }
 0xae5   :  { %v5682_v16 = vadd.f32 %v5652_v5, %v5352_v60 }
 0xae9   :  { %v5976_v29 = vpop.f32.mrf.mxu1 }
 0xaea   :  { %v6010_v34 = vadd.f32 %v5976_v29, %v5680_v23 }
 0xaec   :  { %v14854_v38 = vpop.f32.mrf.mxu3  ;;  %v14872_v29 = vadd.f32 %v6105_v14, %v6010_v34  ;;  %v16757_v34 = vld [vmem:[#allocation38_spill] sm:$0xff] }
 0xaee   :  { %v6170_v14 = vmax.f32 %v14872_v29, 0.0  ;;  %v6181_v29 = vld [vmem:[%s16006_s9 + $0x20] sm:$0xff] }
 0xaf1   :  { %v5979_v57 = vpop.f32.mrf.mxu1 }
 0xaf2   :  { %v6011_v49 = vadd.f32 %v5979_v57, %v5681_v4  ;;  %v4992_v57 = vadd.f32 %v14677_v36, %v14420_v31  ;;  %v5677_v4 = vadd.f32 %v5637_v27, %v5347_v9  ;;  %v5344_v36 = vadd.f32 %v14723_v19, %v4989_v63  ;;  %v16752_v27 = vld [vmem:[#allocation96_spill] sm:$0xff]  ;;  %v14943_v63 = vpop.permute.xlu1 %6134 }
 0xaf4   :  { %v14865_v15 = vadd.f32 %v6110_v11, %v6011_v49  ;;  %v5345_v46 = vadd.f32 %v14733_v8, %v4992_v57  ;;  %v6007_v60 = vadd.f32 %v5967_v51, %v5677_v4  ;;  %v14886_v44 = vpop.f32.mrf.mxu3  ;;  %v5674_v19 = vadd.f32 %v14823_v3, %v5344_v36 }
 0xaf5   :  { %v6169_v11 = vmax.f32 %v14878_v32, 0.0  ;;  %v5671_v57 = vadd.f32 %v16759_v1, %v5341_v18  ;;  %v16772_v18 = vld [vmem:[#allocation15_spill] sm:$0xff]  ;;  %v6183_v32 = vld [vmem:[%s16006_s9 + $0x30] sm:$0xff] }
 0xaf6   :  { %v6171_v31 = vmax.f32 %v14865_v15, 0.0  ;;  %v5675_v8 = vadd.f32 %v14827_v54, %v5345_v46  ;;  %v6004_v41 = vadd.f32 %v16749_v35, %v5674_v19  ;;  %v16750_v54 = vld [vmem:[#allocation72_spill] sm:$0xff]  ;;  %v16761_v46 = vld [vmem:[#allocation35_spill] sm:$0xff]  ;;  %v16765_v19 = vld [vmem:[#allocation225_spill] sm:$0xff] }
 0xaf7   :  { %v16769_v35 = vld [vmem:[#allocation212_spill] sm:$0xff] }
 0xaf8   :  { %v6005_v51 = vadd.f32 %v14833_v0, %v5675_v8  ;;  %v16751_v0 = vld [vmem:[#allocation90_spill] sm:$0xff]  ;;  %v14938_v20 = vadd.f32 %v6075_v58, %v6004_v41  ;;  %v6179_v15 = vld [vmem:[%s16006_s9 + $0x10] sm:$0xff] }
 0xaf9   :  { %v5982_v13 = vpop.f32.mrf.mxu1  ;;  %v4977_v50 = vadd.f32 %v16752_v27, %v16751_v0 }
 0xafa   :  { %v6012_v42 = vadd.f32 %v5982_v13, %v5682_v16  ;;  %v16755_v16 = vld [vmem:[#allocation69_spill] sm:$0xff]  ;;  %v14926_v12 = vadd.f32 %v14846_v61, %v6005_v51  ;;  %v6001_v51 = vadd.f32 %v16765_v19, %v5671_v57  ;;  %v16782_v19 = vld [vmem:[#allocation18_spill] sm:$0xff] }
 0xafb   :  { %v6003_v49 = vadd.f32 %v16755_v16, %v5673_v45  ;;  %v5340_v9 = vadd.f32 %v16758_v6, %v4977_v50  ;;  %v16771_v50 = vld [vmem:[#allocation93_spill] sm:$0xff]  ;;  %v16775_v6 = vld [vmem:[#allocation100_spill] sm:$0xff] }
 0xafc   :  { %v14867_v56 = vadd.f32 %v6115_v40, %v6012_v42  ;;  %v5676_v40 = vadd.f32 %v5634_v59, %v5346_v2  ;;  %v14904_v59 = vadd.f32 %v6090_v25, %v6007_v60  ;;  %v6168_v25 = vmax.f32 %v14894_v17, 0.0  ;;  %v16760_v2 = vld [vmem:[#allocation68_spill] sm:$0xff]  ;;  %v5661_v8 = vpop.f32.mrf.mxu3  ;;  %v16777_v57 = vld [vmem:[#allocation65_spill] sm:$0xff]  ;;  %v6185_v17 = vld [vmem:[%s16006_s9 + $0x40] sm:$0xff] }
 0xafd   :  { %v4974_v42 = vadd.f32 %v16757_v34, %v16756_v7  ;;  %v14951_v58 = vadd.f32 %v14856_v26, %v6003_v49  ;;  %v6165_v21 = vmax.f32 %v14926_v12, 0.0  ;;  %v6164_v26 = vmax.f32 %v14938_v20, 0.0  ;;  %v6191_v12 = vld [vmem:[%s16006_s9 + $0x70] sm:$0xff]  ;;  %v6193_v20 = vld [vmem:[%s16006_s9 + $0x80] sm:$0xff] }
 0xafe   :  { %v6172_v5 = vmax.f32 %v14867_v56, 0.0  ;;  %v6006_v48 = vadd.f32 %v14835_v30, %v5676_v40  ;;  %v5342_v30 = vadd.f32 %v16747_v53, %v4983_v24  ;;  %v6167_v13 = vmax.f32 %v14904_v59, 0.0  ;;  %v16762_v40 = vld [vmem:[#allocation27_spill] sm:$0xff]  ;;  %v16764_v24 = vld [vmem:[#allocation24_spill] sm:$0xff]  ;;  %v16767_v53 = vld [vmem:[#allocation25_spill] sm:$0xff] }
 0xaff   :  { %v4971_v60 = vadd.f32 %v16762_v40, %v16761_v46  ;;  %v5339_v36 = vadd.f32 %v16763_v33, %v4974_v42  ;;  %v5670_v47 = vadd.f32 %v16764_v24, %v5340_v9  ;;  %v14969_v49 = vadd.f32 %v6060_v43, %v6001_v51  ;;  %v16776_v9 = vld [vmem:[#allocation216_spill] sm:$0xff]  ;;  %v6050_v46 = vpop.permute.xlu2 %6049  ;;  %v6180_v56 = vld [vmem:[%s16006_s9 + $0x18] sm:$0xff] }
 0xb00   :  { %6228 = vmatpush.msrb.mxu2 %v6172_v5  ;;  %v14915_v3 = vadd.f32 %v16750_v54, %v6006_v48  ;;  %v5672_v23 = vadd.f32 %v16754_v55, %v5342_v30  ;;  %v6130_v48 = vpop.permute.xlu0 %6129  ;;  %v4968_v30 = vadd.f32 %v16767_v53, %v16766_v28  ;;  %v16770_v54 = vld [vmem:[#allocation207_spill] sm:$0xff]  ;;  %v6163_v7 = vmax.f32 %v14951_v58, 0.0  ;;  %v16778_v40 = vld [vmem:[#allocation44_spill] sm:$0xff]  ;;  %v16783_v28 = vld [vmem:[#allocation133_spill] sm:$0xff] }
 0xb01   :  { %v14888_v62 = vpop.f32.mrf.mxu1  ;;  %v5338_v45 = vadd.f32 %v16768_v39, %v4971_v60  ;;  %v5669_v41 = vadd.f32 %v16769_v35, %v5339_v36  ;;  %v6000_v0 = vadd.f32 %v16770_v54, %v5670_v47  ;;  %v5022_v1 = vadd.f32 %v16776_v9, %v16775_v6  ;;  %v16779_v60 = vld [vmem:[#allocation215_spill] sm:$0xff]  ;;  %v16780_v36 = vld [vmem:[#allocation226_spill] sm:$0xff]  ;;  %v6045_v39 = vpop.permute.xlu1 %6044  ;;  %v16785_v35 = vld [vmem:[#allocation17_spill] sm:$0xff] }
 0xb02   :  { %6229 = vmatpush.msrb.mxu2 %v6171_v31  ;;  %v6002_v4 = vadd.f32 %v16760_v2, %v5672_v23  ;;  %v6166_v61 = vmax.f32 %v14915_v3, 0.0  ;;  %v5337_v22 = vadd.f32 %v16771_v50, %v4968_v30  ;;  %v16773_v23 = vld [vmem:[#allocation131_spill] sm:$0xff]  ;;  %v5019_v33 = vadd.f32 %v16779_v60, %v16778_v40  ;;  %v6187_v59 = vld [vmem:[%s16006_s9 + $0x50] sm:$0xff]  ;;  %v6189_v3 = vld [vmem:[%s16006_s9 + $0x60] sm:$0xff] }
 0xb03   :  { %v5668_v55 = vadd.f32 %v16772_v18, %v5338_v45  ;;  %v5999_v16 = vadd.f32 %v16773_v23, %v5669_v41  ;;  %v16781_v47 = vld [vmem:[#allocation91_spill] sm:$0xff]  ;;  %v5355_v53 = vadd.f32 %v16783_v28, %v5022_v1  ;;  %v16784_v45 = vld [vmem:[#allocation41_spill] sm:$0xff]  ;;  %v6195_v58 = vld [vmem:[%s16006_s9 + $0x90] sm:$0xff] }
 0xb04   :  { %6230 = vmatpush.msrb.mxu2 %v6170_v14  ;;  %v14961_v27 = vadd.f32 %v6065_v52, %v6002_v4  ;;  %v16774_v52 = vld [vmem:[#allocation132_spill] sm:$0xff]  ;;  %v14979_v4 = vadd.f32 %v14890_v37, %v6000_v0  ;;  %v5025_v51 = vadd.f32 %v16782_v19, %v16781_v47  ;;  %v6161_v37 = vmax.f32 %v14969_v49, 0.0  ;;  %v16786_v54 = vld [vmem:[#allocation23_spill] sm:$0xff]  ;;  %v5664_v50 = vpop.f32.mrf.mxu3 }
 0xb05   :  { %v5667_v34 = vadd.f32 %v16774_v52, %v5337_v22  ;;  %v5998_v2 = vadd.f32 %v16777_v57, %v5668_v55  ;;  %v14990_v30 = vadd.f32 %v6050_v46, %v5999_v16  ;;  %v5016_v41 = vadd.f32 %v16785_v35, %v16784_v45  ;;  %v16787_v18 = vld [vmem:[#allocation211_spill] sm:$0xff]  ;;  %v8951_v49 = vld [vmem:[%s16006_s9 + $0xb0] sm:$0xff]  ;;  %v8957_v45 = vld [vmem:[%s16006_s9 + $0xe0] sm:$0xff] }
 0xb06   :  { %6231 = vmatpush.msrb.mxu2 %v6169_v11  ;;  %v6162_v43 = vmax.f32 %v14961_v27, 0.0  ;;  %v5354_v0 = vadd.f32 %v16786_v54, %v5019_v33  ;;  %v5356_v55 = vadd.f32 %v16787_v18, %v5025_v51  ;;  %v5685_v52 = vadd.f32 %v5661_v8, %v5355_v53  ;;  %v6177_v51 = vld [vmem:[%s16006_s9] sm:$0xff]  ;;  %v8958_v35 = vld [vmem:[%s16006_s9 + $0xe8] sm:$0xff]  ;;  %v8960_v54 = vld [vmem:[%s16006_s9 + $0xf8] sm:$0xff] }
 0xb07   :  { %v5997_v24 = vadd.f32 %v16780_v36, %v5667_v34  ;;  %v14999_v23 = vadd.f32 %v6045_v39, %v5998_v2  ;;  %v6160_v16 = vmax.f32 %v14979_v4, 0.0  ;;  %v16788_v34 = vld [vmem:[#allocation222_spill] sm:$0xff]  ;;  %v6159_v2 = vmax.f32 %v14990_v30, 0.0  ;;  %v6125_v19 = vpop.permute.xlu2 %6124  ;;  %v6178_v30 = vld [vmem:[%s16006_s9 + $0x8] sm:$0xff]  ;;  %v8956_v39 = vld [vmem:[%s16006_s9 + $0xd8] sm:$0xff] }
 0xb08   :  { %6232 = vmatpush.msrb.mxu2 %v6168_v25  ;;  %v6040_v22 = vpop.permute.xlu0 %6039  ;;  %v5353_v6 = vadd.f32 %v16788_v34, %v5016_v41  ;;  %v5684_v1 = vadd.f32 %v14886_v44, %v5354_v0  ;;  %v5686_v57 = vadd.f32 %v5664_v50, %v5356_v55  ;;  %v8949_v27 = vld [vmem:[%s16006_s9 + $0xa0] sm:$0xff]  ;;  %v8959_v41 = vld [vmem:[%s16006_s9 + $0xf0] sm:$0xff] }
 0xb09   :  { %v14934_v10 = vpop.f32.mrf.mxu1  ;;  %v15005_v9 = vadd.f32 %v6040_v22, %v5997_v24  ;;  %v6158_v36 = vmax.f32 %v14999_v23, 0.0  ;;  %v8953_v4 = vld [vmem:[%s16006_s9 + $0xc0] sm:$0xff]  ;;  %v8962_v22 = vld [vmem:[%s16006_s9 + $0x108] sm:$0xff]  ;;  %v8963_v18 = vld [vmem:[%s16006_s9 + $0x110] sm:$0xff] }
 0xb0a   :  { %6233 = vmatpush.msrb.mxu2 %v6167_v13  ;;  %v5683_v8 = vadd.f32 %v14854_v38, %v5353_v6  ;;  %v6014_v60 = vadd.f32 %v14934_v10, %v5684_v1  ;;  %v6120_v10 = vpop.permute.xlu1 %6119  ;;  %v8961_v0 = vld [vmem:[%s16006_s9 + $0x100] sm:$0xff]  ;;  %v8967_v1 = vld [vmem:[%s16006_s9 + $0x130] sm:$0xff] }
 0xb0c   :  { %6234 = vmatpush.msrb.mxu2 %v6166_v61  ;;  %v6013_v24 = vadd.f32 %v14888_v62, %v5683_v8  ;;  %v6154_v38 = vadd.f32 %v6125_v19, %v6014_v60  ;;  %v8996_v19 = vld [vmem:[%s16007_s10 + $0x88] sm:$0xff] }
 0xb0e   :  { %6235 = vmatpush.msrb.mxu2 %v6165_v21  ;;  %v6153_v53 = vadd.f32 %v6120_v10, %v6013_v24  ;;  %v8998_v24 = vld [vmem:[%s16007_s10 + $0x98] sm:$0xff]  ;;  %v8995_v10 = vld [vmem:[%s16007_s10 + $0x80] sm:$0xff] }
 0xb0f   :  { %6582 = vmatpush.msra.mxu1 %v8998_v24  ;;  %v9036_v24 = vld [vmem:[%s16008_s12 + $0x38] sm:$0xff] }
 0xb10   :  { %6236 = vmatpush.msrb.mxu2 %v6164_v26 }
 0xb11   :  { %v5991_v42 = vpop.f32.mrf.mxu1 }
 0xb12   :  { %6237 = vmatpush.msrb.mxu2 %v6163_v7  ;;  %v6015_v46 = vadd.f32 %v5991_v42, %v5685_v52  ;;  %v6157_v42 = vmax.f32 %v15005_v9, 0.0  ;;  %v8964_v52 = vld [vmem:[%s16006_s9 + $0x118] sm:$0xff]  ;;  %v8966_v9 = vld [vmem:[%s16006_s9 + $0x128] sm:$0xff] }
 0xb14   :  { %6238 = vmatpush.msrb.mxu2 %v6162_v43  ;;  %v6155_v47 = vadd.f32 %v6130_v48, %v6015_v46  ;;  %v6173_v48 = vmax.f32 %v6153_v53, 0.0  ;;  %v6482_v53 = vld [vmem:[%s16007_s10 + $0x28] sm:$0xff] }
 0xb16   :  { %6239 = vmatpush.msrb.mxu2 %v6161_v37  ;;  %v6175_v62 = vmax.f32 %v6155_v47, 0.0  ;;  %v6485_v47 = vld [vmem:[%s16007_s10 + $0x40] sm:$0xff] }
 0xb18   :  { %6240 = vmatpush.msrb.mxu2 %v6160_v16 }
 0xb19   :  { %v5994_v40 = vpop.f32.mrf.mxu1 }
 0xb1a   :  { %v6016_v33 = vadd.f32 %v5994_v40, %v5686_v57  ;;  %6241 = vmatpush.msrb.mxu2 %v6159_v2 }
 0xb1c   :  { %v6156_v44 = vadd.f32 %v14943_v63, %v6016_v33  ;;  %6242 = vmatpush.msrb.mxu2 %v6158_v36  ;;  %v6174_v63 = vmax.f32 %v6154_v38, 0.0 }
 0xb1e   :  { %v6176_v28 = vmax.f32 %v6156_v44, 0.0  ;;  %6243 = vmatpush.msrb.mxu2 %v6157_v42  ;;  %v8997_v44 = vld [vmem:[%s16007_s10 + $0x90] sm:$0xff] }
 0xb1f   :  { %6244 = vmatmul.f32.vlgmr.msrb.gmra.mxu2 %v6177_v51  ;;  %6583 = vmatpush.msra.mxu1 %v8997_v44 }
 0xb20   :  { %6373 = vmatpush.msra.mxu2 %v6172_v5  ;;  %6287 = vmatpush.msrb.mxu3 %v6176_v28  ;;  %v6182_v5 = vld [vmem:[%s16006_s9 + $0x28] sm:$0xff] }
 0xb21   :  { %6584 = vmatpush.msra.mxu1 %v8996_v19 }
 0xb22   :  { %6374 = vmatpush.msra.mxu2 %v6171_v31  ;;  %6288 = vmatpush.msrb.mxu3 %v6175_v62  ;;  %v6184_v31 = vld [vmem:[%s16006_s9 + $0x38] sm:$0xff] }
 0xb23   :  { %6585 = vmatpush.msra.mxu1 %v8995_v10 }
 0xb24   :  { %6375 = vmatpush.msra.mxu2 %v6170_v14  ;;  %6289 = vmatpush.msrb.mxu3 %v6174_v63  ;;  %v6186_v14 = vld [vmem:[%s16006_s9 + $0x48] sm:$0xff] }
 0xb26   :  { %6376 = vmatpush.msra.mxu2 %v6169_v11  ;;  %6290 = vmatpush.msrb.mxu3 %v6173_v48  ;;  %v6188_v11 = vld [vmem:[%s16006_s9 + $0x58] sm:$0xff] }
 0xb27   :  { %8939 = vmatmul.msk.f32.vlgmr.msrb.gmra.mxu3 %vm6197_vm5, %v6178_v30  ;;  %6247 = vmatmul.f32.gmra.mxu2 %v6179_v15  ;;  %v6480_v30 = vld [vmem:[%s16007_s10 + $0x18] sm:$0xff]  ;;  %v8992_v15 = vld [vmem:[%s16007_s10 + $0x68] sm:$0xff] }
 0xb28   :  { %6377 = vmatpush.msra.mxu2 %v6168_v25  ;;  %6432 = vmatpush.msra.mxu3 %v6176_v28  ;;  %v6190_v25 = vld [vmem:[%s16006_s9 + $0x68] sm:$0xff]  ;;  %v6483_v28 = vld [vmem:[%s16007_s10 + $0x30] sm:$0xff] }
 0xb2a   :  { %6378 = vmatpush.msra.mxu2 %v6167_v13  ;;  %6433 = vmatpush.msra.mxu3 %v6175_v62  ;;  %v6192_v13 = vld [vmem:[%s16006_s9 + $0x78] sm:$0xff] }
 0xb2b   :  { %v8994_v62 = vld [vmem:[%s16007_s10 + $0x78] sm:$0xff] }
 0xb2c   :  { %6379 = vmatpush.msra.mxu2 %v6166_v61  ;;  %6434 = vmatpush.msra.mxu3 %v6174_v63  ;;  %v6194_v61 = vld [vmem:[%s16006_s9 + $0x88] sm:$0xff]  ;;  %v6481_v63 = vld [vmem:[%s16007_s10 + $0x20] sm:$0xff] }
 0xb2d   :  { %6586 = vmatpush.msra.mxu1 %v8994_v62 }
 0xb2e   :  { %6380 = vmatpush.msra.mxu2 %v6165_v21  ;;  %6435 = vmatpush.msra.mxu3 %v6173_v48  ;;  %v6196_v21 = vld [vmem:[%s16006_s9 + $0x98] sm:$0xff]  ;;  %v8993_v48 = vld [vmem:[%s16007_s10 + $0x70] sm:$0xff] }
 0xb2f   :  { %8940 = vmatmul.msk.f32.gmra.mxu3 %vm6197_vm5, %v6180_v56  ;;  %6250 = vmatmul.f32.gmra.mxu2 %v6181_v29 }
 0xb30   :  { %6381 = vmatpush.msra.mxu2 %v6164_v26  ;;  %v8950_v26 = vld [vmem:[%s16006_s9 + $0xa8] sm:$0xff]  ;;  %6587 = vmatpush.msra.mxu1 %v8993_v48 }
 0xb32   :  { %6382 = vmatpush.msra.mxu2 %v6163_v7  ;;  %v8952_v7 = vld [vmem:[%s16006_s9 + $0xb8] sm:$0xff]  ;;  %6588 = vmatpush.msra.mxu1 %v8992_v15 }
 0xb34   :  { %6383 = vmatpush.msra.mxu2 %v6162_v43  ;;  %v8954_v43 = vld [vmem:[%s16006_s9 + $0xc8] sm:$0xff] }
 0xb36   :  { %6384 = vmatpush.msra.mxu2 %v6161_v37  ;;  %v8955_v37 = vld [vmem:[%s16006_s9 + $0xd0] sm:$0xff] }
 0xb37   :  { %8941 = vmatmul.msk.f32.gmra.mxu3 %vm6197_vm5, %v6182_v5  ;;  %6253 = vmatmul.f32.gmra.mxu2 %v6183_v32  ;;  %v6479_v5 = vld [vmem:[%s16007_s10 + $0x10] sm:$0xff]  ;;  %v8991_v32 = vld [vmem:[%s16007_s10 + $0x60] sm:$0xff] }
 0xb38   :  { %6385 = vmatpush.msra.mxu2 %v6160_v16  ;;  %v8965_v16 = vld [vmem:[%s16006_s9 + $0x120] sm:$0xff]  ;;  %6589 = vmatpush.msra.mxu1 %v8991_v32 }
 0xb3a   :  { %6386 = vmatpush.msra.mxu2 %v6159_v2  ;;  %v8968_v2 = vld [vmem:[%s16006_s9 + $0x138] sm:$0xff] }
 0xb3c   :  { %6387 = vmatpush.msra.mxu2 %v6158_v36  ;;  %v6486_v36 = vld [vmem:[%s16007_s10 + $0x48] sm:$0xff] }
 0xb3d   :  { %6524 = vmatpush.msrb.mxu0 %v6486_v36  ;;  %v6650_v36 = vld [vmem:[%s16008_s12 + $0x10] sm:$0xff] }
 0xb3e   :  { %6388 = vmatpush.msra.mxu2 %v6157_v42  ;;  %v6484_v42 = vld [vmem:[%s16007_s10 + $0x38] sm:$0xff] }
 0xb3f   :  { %8942 = vmatmul.msk.f32.gmra.mxu3 %vm6197_vm5, %v6184_v31  ;;  %6256 = vmatmul.f32.gmra.mxu2 %v6185_v17  ;;  %v6478_v31 = vld [vmem:[%s16007_s10 + $0x8] sm:$0xff]  ;;  %v8990_v17 = vld [vmem:[%s16007_s10 + $0x58] sm:$0xff] }
 0xb40   :  { %6525 = vmatpush.msrb.mxu0 %v6485_v47  ;;  %6590 = vmatpush.msra.mxu1 %v8990_v17  ;;  %v6649_v17 = vld [vmem:[%s16008_s12 + $0x8] sm:$0xff] }
 0xb42   :  { %6526 = vmatpush.msrb.mxu0 %v6484_v42 }
 0xb44   :  { %6527 = vmatpush.msrb.mxu0 %v6483_v28 }
 0xb46   :  { %6528 = vmatpush.msrb.mxu0 %v6482_v53 }
 0xb47   :  { %8943 = vmatmul.msk.f32.gmra.mxu3 %vm6197_vm5, %v6186_v14  ;;  %6259 = vmatmul.f32.gmra.mxu2 %v6187_v59  ;;  %v6477_v14 = vld [vmem:[%s16007_s10] sm:$0xff]  ;;  %v8989_v59 = vld [vmem:[%s16007_s10 + $0x50] sm:$0xff] }
 0xb48   :  { %6529 = vmatpush.msrb.mxu0 %v6481_v63  ;;  %6591 = vmatpush.msra.mxu1 %v8989_v59  ;;  %v6648_v59 = vld [vmem:[%s16008_s12] sm:$0xff] }
 0xb4a   :  { %6530 = vmatpush.msrb.mxu0 %v6480_v30 }
 0xb4c   :  { %6531 = vmatpush.msrb.mxu0 %v6479_v5 }
 0xb4e   :  { %6532 = vmatpush.msrb.mxu0 %v6478_v31 }
 0xb4f   :  { %8944 = vmatmul.msk.f32.gmra.mxu3 %vm6197_vm5, %v6188_v11  ;;  %6262 = vmatmul.f32.gmra.mxu2 %v6189_v3 }
 0xb50   :  { %6533 = vmatpush.msrb.mxu0 %v6477_v14  ;;  %v9035_v14 = vld [vmem:[%s16008_s12 + $0x30] sm:$0xff] }
 0xb57   :  { %8945 = vmatmul.msk.f32.gmra.mxu3 %vm6197_vm5, %v6190_v25  ;;  %6265 = vmatmul.f32.gmra.mxu2 %v6191_v12 }
 0xb5f   :  { %8946 = vmatmul.msk.f32.gmra.mxu3 %vm6197_vm5, %v6192_v13  ;;  %6268 = vmatmul.f32.gmra.mxu2 %v6193_v20 }
 0xb67   :  { %8947 = vmatmul.msk.f32.gmra.mxu3 %vm6197_vm5, %v6194_v61  ;;  %6271 = vmatmul.f32.gmra.mxu2 %v6195_v58 }
 0xb6f   :  { %8948 = vmatmul.msk.f32.gmra.mxu3 %vm6197_vm5, %v6196_v21  ;;  %6389 = vmatmul.f32.vlgmr.msra.gmra.mxu2 %v8949_v27 }
 0xb77   :  { %8969 = vmatmul.msk.f32.vlgmr.msra.gmra.mxu3 %vm6197_vm5, %v8950_v26  ;;  %6392 = vmatmul.f32.gmra.mxu2 %v8951_v49 }
 0xb7f   :  { %8970 = vmatmul.msk.f32.gmra.mxu3 %vm6197_vm5, %v8952_v7  ;;  %6395 = vmatmul.f32.gmra.mxu2 %v8953_v4 }
 0xb87   :  { %8971 = vmatmul.msk.f32.gmra.mxu3 %vm6197_vm5, %v8954_v43  ;;  %6398 = vmatmul.f32.gmra.mxu2 %v8955_v37 }
 0xb8f   :  { %8972 = vmatmul.msk.f32.gmra.mxu3 %vm6197_vm5, %v8956_v39  ;;  %6401 = vmatmul.f32.gmra.mxu2 %v8957_v45 }
 0xb97   :  { %8973 = vmatmul.msk.f32.gmra.mxu3 %vm6197_vm5, %v8958_v35  ;;  %6404 = vmatmul.f32.gmra.mxu2 %v8959_v41 }
 0xb9f   :  { %8974 = vmatmul.msk.f32.gmra.mxu3 %vm6197_vm5, %v8960_v54  ;;  %6407 = vmatmul.f32.gmra.mxu2 %v8961_v0 }
 0xba2   :  { %v15158_v50 = vpop.f32.mrf.mxu2 }
 0xba7   :  { %8975 = vmatmul.msk.f32.gmra.mxu3 %vm6197_vm5, %v8962_v22  ;;  %6410 = vmatmul.f32.gmra.mxu2 %v8963_v18 }
 0xbaa   :  { %v15167_v55 = vpop.f32.mrf.mxu3  ;;  %v15169_v23 = vpop.f32.mrf.mxu2 }
 0xbab   :  { %v6293_v58 = vadd.f32 %v15167_v55, %v15158_v50 }
 0xbaf   :  { %8976 = vmatmul.msk.f32.gmra.mxu3 %vm6197_vm5, %v8964_v52  ;;  %6413 = vmatmul.f32.gmra.mxu2 %v8965_v16 }
 0xbb2   :  { %v15178_v34 = vpop.f32.mrf.mxu3  ;;  %v15180_v6 = vpop.f32.mrf.mxu2 }
 0xbb3   :  { %v6296_v7 = vadd.f32 %v15178_v34, %v15169_v23 }
 0xbb7   :  { %8977 = vmatmul.msk.f32.gmra.mxu3 %vm6197_vm5, %v8966_v9  ;;  %6416 = vmatmul.f32.gmra.mxu2 %v8967_v1 }
 0xbba   :  { %v15189_v57 = vpop.f32.mrf.mxu3  ;;  %v15191_v46 = vpop.f32.mrf.mxu2 }
 0xbbb   :  { %v6299_v45 = vadd.f32 %v15189_v57, %v15180_v6 }
 0xbbf   :  { %8978 = vmatmul.msk.f32.gmra.mxu3 %vm6197_vm5, %v8968_v2 }
 0xbc2   :  { %v15197_v40 = vpop.f32.mrf.mxu3  ;;  %v15199_v8 = vpop.f32.mrf.mxu2 }
 0xbc3   :  { %v6302_v50 = vadd.f32 %v15197_v40, %v15191_v46  ;;  %v6652_v40 = vld [vmem:[%s16008_s12 + $0x20] sm:$0xff] }
 0xbc4   :  { %6694 = vmatpush.msrb.mxu2 %v6652_v40  ;;  %v9143_v40 = vld [vmem:[%s16008_s12 + $0x98] sm:$0xff] }
 0xbca   :  { %v15201_v60 = vpop.f32.mrf.mxu3  ;;  %v15203_v33 = vpop.f32.mrf.mxu2 }
 0xbcb   :  { %v6305_v52 = vadd.f32 %v15201_v60, %v15199_v8  ;;  %v9038_v8 = vld [vmem:[%s16008_s12 + $0x48] sm:$0xff]  ;;  %v6651_v60 = vld [vmem:[%s16008_s12 + $0x18] sm:$0xff] }
 0xbcc   :  { %6763 = vmatpush.msrb.mxu3 %v9038_v8  ;;  %6695 = vmatpush.msrb.mxu2 %v6651_v60  ;;  %v9142_v8 = vld [vmem:[%s16008_s12 + $0x90] sm:$0xff]  ;;  %v9141_v60 = vld [vmem:[%s16008_s12 + $0x88] sm:$0xff] }
 0xbce   :  { %6696 = vmatpush.msrb.mxu2 %v6650_v36  ;;  %v9139_v36 = vld [vmem:[%s16008_s12 + $0x78] sm:$0xff] }
 0xbd0   :  { %6697 = vmatpush.msrb.mxu2 %v6649_v17 }
 0xbd2   :  { %v15223_v51 = vpop.f32.mrf.mxu3  ;;  %v15225_v38 = vpop.f32.mrf.mxu2  ;;  %6698 = vmatpush.msrb.mxu2 %v6648_v59  ;;  %v6633_v59 = vld [vmem:[%s16009_s11] sm:$0xff] }
 0xbd3   :  { %v6308_v1 = vadd.f32 %v15223_v51, %v15203_v33  ;;  %v9037_v33 = vld [vmem:[%s16008_s12 + $0x40] sm:$0xff] }
 0xbd4   :  { %6764 = vmatpush.msrb.mxu3 %v9037_v33  ;;  %v9140_v33 = vld [vmem:[%s16008_s12 + $0x80] sm:$0xff] }
 0xbd6   :  { %6765 = vmatpush.msrb.mxu3 %v9036_v24 }
 0xbd8   :  { %6766 = vmatpush.msrb.mxu3 %v9035_v14 }
 0xbda   :  { %v15251_v56 = vpop.f32.mrf.mxu3  ;;  %v15253_v29 = vpop.f32.mrf.mxu2 }
 0xbdb   :  { %v6311_v44 = vadd.f32 %v15251_v56, %v15225_v38 }
 0xbe2   :  { %v15273_v11 = vpop.f32.mrf.mxu3  ;;  %v15275_v3 = vpop.f32.mrf.mxu2 }
 0xbe3   :  { %v6314_v10 = vadd.f32 %v15273_v11, %v15253_v29  ;;  %v9034_v11 = vld [vmem:[%s16008_s12 + $0x28] sm:$0xff] }
 0xbe4   :  { %6767 = vmatpush.msrb.mxu3 %v9034_v11  ;;  %v9019_v11 = vld [vmem:[%s16009_s11 + $0x78] sm:$0xff] }
 0xbea   :  { %v15277_v25 = vpop.f32.mrf.mxu3  ;;  %v15279_v12 = vpop.f32.mrf.mxu2 }
 0xbeb   :  { %v6317_v48 = vadd.f32 %v15277_v25, %v15275_v3 }
 0xbf2   :  { %v15281_v13 = vpop.f32.mrf.mxu3  ;;  %v6390_v20 = vpop.f32.mrf.mxu2 }
 0xbf3   :  { %v6320_v29 = vadd.f32 %v15281_v13, %v15279_v12 }
 0xbfa   :  { %v6437_v61 = vpop.f32.mrf.mxu3  ;;  %v6393_v27 = vpop.f32.mrf.mxu2 }
 0xbfb   :  { %v6438_v21 = vadd.f32 %v6437_v61, %v6390_v20 }
 0xbfd   :  { %v6467_v26 = vmax.f32 %v6293_v58, %v6438_v21 }
 0xbff   :  { %8979 = vmatmul.msk.f32.vlgmr.msrb.gmra.mxu0 %vm6487_vm6, %v6467_v26  ;;  %8999 = vmatmul.msk.f32.vlgmr.msra.gmra.mxu1 %vm6487_vm6, %v6467_v26 }
 0xc02   :  { %v6440_v49 = vpop.f32.mrf.mxu3  ;;  %v6396_v43 = vpop.f32.mrf.mxu2 }
 0xc03   :  { %v6441_v4 = vadd.f32 %v6440_v49, %v6393_v27 }
 0xc05   :  { %v6468_v37 = vmax.f32 %v6296_v7, %v6441_v4 }
 0xc07   :  { %8980 = vmatmul.msk.f32.gmra.mxu0 %vm6487_vm6, %v6468_v37  ;;  %9000 = vmatmul.msk.f32.gmra.mxu1 %vm6487_vm6, %v6468_v37 }
 0xc0a   :  { %v6443_v39 = vpop.f32.mrf.mxu3  ;;  %v6399_v41 = vpop.f32.mrf.mxu2 }
 0xc0b   :  { %v6444_v35 = vadd.f32 %v6443_v39, %v6396_v43 }
 0xc0d   :  { %v6469_v54 = vmax.f32 %v6299_v45, %v6444_v35 }
 0xc0f   :  { %8981 = vmatmul.msk.f32.gmra.mxu0 %vm6487_vm6, %v6469_v54  ;;  %9001 = vmatmul.msk.f32.gmra.mxu1 %vm6487_vm6, %v6469_v54  ;;  %v9097_v54 = vld [vmem:[%s16008_s12 + $0x68] sm:$0xff] }
 0xc12   :  { %v6446_v0 = vpop.f32.mrf.mxu3  ;;  %v6402_v18 = vpop.f32.mrf.mxu2 }
 0xc13   :  { %v6447_v22 = vadd.f32 %v6446_v0, %v6399_v41  ;;  %v9098_v41 = vld [vmem:[%s16008_s12 + $0x70] sm:$0xff]  ;;  %v9096_v0 = vld [vmem:[%s16008_s12 + $0x60] sm:$0xff] }
 0xc14   :  { %7046 = vmatpush.msra.mxu2 %v9098_v41 }
 0xc15   :  { %v6470_v55 = vmax.f32 %v6302_v50, %v6447_v22  ;;  %v9095_v50 = vld [vmem:[%s16008_s12 + $0x58] sm:$0xff]  ;;  %v9094_v22 = vld [vmem:[%s16008_s12 + $0x50] sm:$0xff] }
 0xc16   :  { %7047 = vmatpush.msra.mxu2 %v9097_v54  ;;  %v6638_v54 = vld [vmem:[%s16009_s11 + $0x28] sm:$0xff] }
 0xc17   :  { %8982 = vmatmul.msk.f32.gmra.mxu0 %vm6487_vm6, %v6470_v55  ;;  %9002 = vmatmul.msk.f32.gmra.mxu1 %vm6487_vm6, %v6470_v55 }
 0xc18   :  { %7048 = vmatpush.msra.mxu2 %v9096_v0  ;;  %v9024_v0 = vld [vmem:[%s16009_s11 + $0xa0] sm:$0xff] }
 0xc1a   :  { %v6449_v23 = vpop.f32.mrf.mxu3  ;;  %v6405_v34 = vpop.f32.mrf.mxu2  ;;  %7049 = vmatpush.msra.mxu2 %v9095_v50 }
 0xc1b   :  { %v6450_v16 = vadd.f32 %v6449_v23, %v6402_v18 }
 0xc1c   :  { %7050 = vmatpush.msra.mxu2 %v9094_v22  ;;  %v6639_v22 = vld [vmem:[%s16009_s11 + $0x30] sm:$0xff] }
 0xc1d   :  { %v6471_v6 = vmax.f32 %v6305_v52, %v6450_v16 }
 0xc1f   :  { %8983 = vmatmul.msk.f32.gmra.mxu0 %vm6487_vm6, %v6471_v6  ;;  %9003 = vmatmul.msk.f32.gmra.mxu1 %vm6487_vm6, %v6471_v6 }
 0xc22   :  { %v6452_v9 = vpop.f32.mrf.mxu3  ;;  %v6408_v46 = vpop.f32.mrf.mxu2 }
 0xc23   :  { %v6453_v57 = vadd.f32 %v6452_v9, %v6405_v34 }
 0xc25   :  { %v6472_v2 = vmax.f32 %v6308_v1, %v6453_v57 }
 0xc27   :  { %8984 = vmatmul.msk.f32.gmra.mxu0 %vm6487_vm6, %v6472_v2  ;;  %9004 = vmatmul.msk.f32.gmra.mxu1 %vm6487_vm6, %v6472_v2 }
 0xc2a   :  { %v6455_v47 = vpop.f32.mrf.mxu3  ;;  %v6411_v19 = vpop.f32.mrf.mxu2 }
 0xc2b   :  { %v6456_v42 = vadd.f32 %v6455_v47, %v6408_v46 }
 0xc2d   :  { %v6473_v51 = vmax.f32 %v6311_v44, %v6456_v42 }
 0xc2f   :  { %8985 = vmatmul.msk.f32.gmra.mxu0 %vm6487_vm6, %v6473_v51  ;;  %9005 = vmatmul.msk.f32.gmra.mxu1 %vm6487_vm6, %v6473_v51 }
 0xc32   :  { %v6458_v28 = vpop.f32.mrf.mxu3  ;;  %v6414_v63 = vpop.f32.mrf.mxu2 }
 0xc33   :  { %v6459_v53 = vadd.f32 %v6458_v28, %v6411_v19 }
 0xc35   :  { %v6474_v62 = vmax.f32 %v6314_v10, %v6459_v53 }
 0xc37   :  { %8986 = vmatmul.msk.f32.gmra.mxu0 %vm6487_vm6, %v6474_v62  ;;  %9006 = vmatmul.msk.f32.gmra.mxu1 %vm6487_vm6, %v6474_v62 }
 0xc3a   :  { %v6461_v38 = vpop.f32.mrf.mxu3  ;;  %v6417_v56 = vpop.f32.mrf.mxu2 }
 0xc3b   :  { %v6462_v30 = vadd.f32 %v6461_v38, %v6414_v63 }
 0xc3d   :  { %v6475_v15 = vmax.f32 %v6317_v48, %v6462_v30 }
 0xc3f   :  { %8987 = vmatmul.msk.f32.gmra.mxu0 %vm6487_vm6, %v6475_v15  ;;  %9007 = vmatmul.msk.f32.gmra.mxu1 %vm6487_vm6, %v6475_v15 }
 0xc42   :  { %v6464_v5 = vpop.f32.mrf.mxu3 }
 0xc43   :  { %v6465_v32 = vadd.f32 %v6464_v5, %v6417_v56 }
 0xc45   :  { %v6476_v31 = vmax.f32 %v6320_v29, %v6465_v32 }
 0xc47   :  { %8988 = vmatmul.msk.f32.gmra.mxu0 %vm6487_vm6, %v6476_v31  ;;  %9008 = vmatmul.msk.f32.gmra.mxu1 %vm6487_vm6, %v6476_v31 }
 0xc7c   :  { %v6535_v3 = vpop.f32.mrf.mxu0  ;;  %v6593_v25 = vpop.f32.mrf.mxu1 }
 0xc7d   :  { %v15353_v12 = vmax.f32 %v6535_v3, %v6593_v25  ;;  %v6634_v25 = vld [vmem:[%s16009_s11 + $0x8] sm:$0xff] }
 0xc7f   :  { %9009 = vmatmul.msk.f32.vlgmr.msrb.gmra.mxu2 %vm3590_vm1, %v15353_v12  ;;  %9039 = vmatmul.msk.f32.vlgmr.msrb.gmra.mxu3 %vm3590_vm1, %v15353_v12 }
 0xc80   :  { %7237 = vmatpush.msrb.mxu2 %v9143_v40  ;;  %v6642_v40 = vld [vmem:[%s16009_s11 + $0x48] sm:$0xff] }
 0xc82   :  { %7238 = vmatpush.msrb.mxu2 %v9142_v8  ;;  %v9028_v8 = vld [vmem:[%s16009_s11 + $0xc0] sm:$0xff] }
 0xc84   :  { %v6538_v13 = vpop.f32.mrf.mxu0  ;;  %v6596_v20 = vpop.f32.mrf.mxu1  ;;  %7239 = vmatpush.msrb.mxu2 %v9141_v60 }
 0xc85   :  { %v15359_v61 = vmax.f32 %v6538_v13, %v6596_v20  ;;  %v9020_v13 = vld [vmem:[%s16009_s11 + $0x80] sm:$0xff] }
 0xc86   :  { %7240 = vmatpush.msrb.mxu2 %v9140_v33  ;;  %v9188_v33 = vld [vmem:[%s16008_s12 + $0xc0] sm:$0xff] }
 0xc87   :  { %9010 = vmatmul.msk.f32.gmra.mxu2 %vm3590_vm1, %v15359_v61  ;;  %9040 = vmatmul.msk.f32.gmra.mxu3 %vm3590_vm1, %v15359_v61 }
 0xc88   :  { %7241 = vmatpush.msrb.mxu2 %v9139_v36  ;;  %v6643_v36 = vld [vmem:[%s16009_s11 + $0x50] sm:$0xff] }
 0xc8c   :  { %v6541_v58 = vpop.f32.mrf.mxu0  ;;  %v6599_v21 = vpop.f32.mrf.mxu1 }
 0xc8d   :  { %v15365_v27 = vmax.f32 %v6541_v58, %v6599_v21  ;;  %v6635_v58 = vld [vmem:[%s16009_s11 + $0x10] sm:$0xff]  ;;  %v9021_v21 = vld [vmem:[%s16009_s11 + $0x88] sm:$0xff] }
 0xc8f   :  { %9011 = vmatmul.msk.f32.gmra.mxu2 %vm3590_vm1, %v15365_v27  ;;  %9041 = vmatmul.msk.f32.gmra.mxu3 %vm3590_vm1, %v15365_v27 }
 0xc94   :  { %v6544_v26 = vpop.f32.mrf.mxu0  ;;  %v6602_v49 = vpop.f32.mrf.mxu1 }
 0xc95   :  { %v15371_v7 = vmax.f32 %v6544_v26, %v6602_v49  ;;  %v6636_v49 = vld [vmem:[%s16009_s11 + $0x18] sm:$0xff] }
 0xc97   :  { %9012 = vmatmul.msk.f32.gmra.mxu2 %vm3590_vm1, %v15371_v7  ;;  %9042 = vmatmul.msk.f32.gmra.mxu3 %vm3590_vm1, %v15371_v7 }
 0xc9c   :  { %v6547_v4 = vpop.f32.mrf.mxu0  ;;  %v6605_v43 = vpop.f32.mrf.mxu1 }
 0xc9d   :  { %v15377_v37 = vmax.f32 %v6547_v4, %v6605_v43  ;;  %v9022_v4 = vld [vmem:[%s16009_s11 + $0x90] sm:$0xff] }
 0xc9f   :  { %9013 = vmatmul.msk.f32.gmra.mxu2 %vm3590_vm1, %v15377_v37  ;;  %9043 = vmatmul.msk.f32.gmra.mxu3 %vm3590_vm1, %v15377_v37 }
 0xca4   :  { %v6550_v39 = vpop.f32.mrf.mxu0  ;;  %v6608_v45 = vpop.f32.mrf.mxu1 }
 0xca5   :  { %v15383_v35 = vmax.f32 %v6550_v39, %v6608_v45  ;;  %v6637_v39 = vld [vmem:[%s16009_s11 + $0x20] sm:$0xff]  ;;  %v9023_v45 = vld [vmem:[%s16009_s11 + $0x98] sm:$0xff] }
 0xca7   :  { %9014 = vmatmul.msk.f32.gmra.mxu2 %vm3590_vm1, %v15383_v35  ;;  %9044 = vmatmul.msk.f32.gmra.mxu3 %vm3590_vm1, %v15383_v35 }
 0xcac   :  { %v6553_v18 = vpop.f32.mrf.mxu0  ;;  %v6611_v55 = vpop.f32.mrf.mxu1 }
 0xcad   :  { %v15404_v23 = vmax.f32 %v6553_v18, %v6611_v55  ;;  %v9025_v18 = vld [vmem:[%s16009_s11 + $0xa8] sm:$0xff] }
 0xcaf   :  { %9015 = vmatmul.msk.f32.gmra.mxu2 %vm3590_vm1, %v15404_v23  ;;  %9045 = vmatmul.msk.f32.gmra.mxu3 %vm3590_vm1, %v15404_v23 }
 0xcb4   :  { %v6556_v52 = vpop.f32.mrf.mxu0  ;;  %v6614_v16 = vpop.f32.mrf.mxu1 }
 0xcb5   :  { %v15410_v34 = vmax.f32 %v6556_v52, %v6614_v16  ;;  %v6640_v52 = vld [vmem:[%s16009_s11 + $0x38] sm:$0xff]  ;;  %v9026_v16 = vld [vmem:[%s16009_s11 + $0xb0] sm:$0xff] }
 0xcb7   :  { %9016 = vmatmul.msk.f32.gmra.mxu2 %vm3590_vm1, %v15410_v34  ;;  %9046 = vmatmul.msk.f32.gmra.mxu3 %vm3590_vm1, %v15410_v34 }
 0xcbc   :  { %v6559_v6 = vpop.f32.mrf.mxu0  ;;  %v6617_v9 = vpop.f32.mrf.mxu1 }
 0xcbd   :  { %v15416_v1 = vmax.f32 %v6559_v6, %v6617_v9  ;;  %v6641_v9 = vld [vmem:[%s16009_s11 + $0x40] sm:$0xff] }
 0xcbf   :  { %9017 = vmatmul.msk.f32.gmra.mxu2 %vm3590_vm1, %v15416_v1  ;;  %9047 = vmatmul.msk.f32.gmra.mxu3 %vm3590_vm1, %v15416_v1 }
 0xcc4   :  { %v6562_v57 = vpop.f32.mrf.mxu0  ;;  %v6620_v46 = vpop.f32.mrf.mxu1 }
 0xcc5   :  { %v15422_v2 = vmax.f32 %v6562_v57, %v6620_v46  ;;  %v9027_v57 = vld [vmem:[%s16009_s11 + $0xb8] sm:$0xff] }
 0xcc7   :  { %9018 = vmatmul.msk.f32.gmra.mxu2 %vm3590_vm1, %v15422_v2  ;;  %9048 = vmatmul.msk.f32.gmra.mxu3 %vm3590_vm1, %v15422_v2 }
 0xccf   :  { %9099 = vmatmul.msk.f32.vlgmr.msra.gmra.mxu2 %vm3590_vm1, %v15353_v12 }
 0xcd7   :  { %9100 = vmatmul.msk.f32.gmra.mxu2 %vm3590_vm1, %v15359_v61 }
 0xcdf   :  { %9101 = vmatmul.msk.f32.gmra.mxu2 %vm3590_vm1, %v15365_v27 }
 0xce7   :  { %9102 = vmatmul.msk.f32.gmra.mxu2 %vm3590_vm1, %v15371_v7 }
 0xcef   :  { %9103 = vmatmul.msk.f32.gmra.mxu2 %vm3590_vm1, %v15377_v37 }
 0xcf7   :  { %9104 = vmatmul.msk.f32.gmra.mxu2 %vm3590_vm1, %v15383_v35 }
 0xcff   :  { %9105 = vmatmul.msk.f32.gmra.mxu2 %vm3590_vm1, %v15404_v23 }
 0xd02   :  { %v6700_v24 = vpop.f32.mrf.mxu2  ;;  %v6769_v47 = vpop.f32.mrf.mxu3 }
 0xd07   :  { %9106 = vmatmul.msk.f32.gmra.mxu2 %vm3590_vm1, %v15410_v34 }
 0xd0a   :  { %v6703_v44 = vpop.f32.mrf.mxu2  ;;  %v6772_v42 = vpop.f32.mrf.mxu3 }
 0xd0f   :  { %9107 = vmatmul.msk.f32.gmra.mxu2 %vm3590_vm1, %v15416_v1 }
 0xd12   :  { %v6706_v19 = vpop.f32.mrf.mxu2  ;;  %v6775_v51 = vpop.f32.mrf.mxu3 }
 0xd17   :  { %9108 = vmatmul.msk.f32.gmra.mxu2 %vm3590_vm1, %v15422_v2 }
 0xd1a   :  { %v6709_v28 = vpop.f32.mrf.mxu2  ;;  %v6778_v10 = vpop.f32.mrf.mxu3 }
 0xd1f   :  { %9144 = vmatmul.msk.f32.vlgmr.msrb.gmra.mxu2 %vm3590_vm1, %v15353_v12 }
 0xd22   :  { %v6712_v53 = vpop.f32.mrf.mxu2  ;;  %v6781_v62 = vpop.f32.mrf.mxu3 }
 0xd27   :  { %9145 = vmatmul.msk.f32.gmra.mxu2 %vm3590_vm1, %v15359_v61 }
 0xd2a   :  { %v6715_v63 = vpop.f32.mrf.mxu2  ;;  %v6784_v38 = vpop.f32.mrf.mxu3 }
 0xd2f   :  { %9146 = vmatmul.msk.f32.gmra.mxu2 %vm3590_vm1, %v15365_v27 }
 0xd32   :  { %v6718_v48 = vpop.f32.mrf.mxu2  ;;  %v6787_v30 = vpop.f32.mrf.mxu3 }
 0xd37   :  { %9147 = vmatmul.msk.f32.gmra.mxu2 %vm3590_vm1, %v15371_v7 }
 0xd3a   :  { %v6721_v15 = vpop.f32.mrf.mxu2  ;;  %v6790_v56 = vpop.f32.mrf.mxu3 }
 0xd3f   :  { %9148 = vmatmul.msk.f32.gmra.mxu2 %vm3590_vm1, %v15377_v37 }
 0xd42   :  { %v6724_v5 = vpop.f32.mrf.mxu2  ;;  %v6793_v29 = vpop.f32.mrf.mxu3 }
 0xd47   :  { %9149 = vmatmul.msk.f32.gmra.mxu2 %vm3590_vm1, %v15383_v35 }
 0xd4a   :  { %v6727_v32 = vpop.f32.mrf.mxu2  ;;  %v6796_v31 = vpop.f32.mrf.mxu3 }
 0xd4b   :  { %6850 = vmatpush.msra.mxu0 %v6796_v31  ;;  %6957 = vmatpush.msrb.mxu1 %v6727_v32  ;;  %v6647_v31 = vld [vmem:[%s16009_s11 + $0x70] sm:$0xff] }
 0xd4d   :  { %6851 = vmatpush.msra.mxu0 %v6793_v29  ;;  %6958 = vmatpush.msrb.mxu1 %v6724_v5  ;;  %v9082_v5 = vld [vmem:[%s16009_s11 + $0x108] sm:$0xff]  ;;  %v9032_v29 = vld [vmem:[%s16009_s11 + $0xe0] sm:$0xff] }
 0xd4f   :  { %6852 = vmatpush.msra.mxu0 %v6790_v56  ;;  %6959 = vmatpush.msrb.mxu1 %v6721_v15  ;;  %v6646_v56 = vld [vmem:[%s16009_s11 + $0x68] sm:$0xff] }
 0xd50   :  { %9150 = vmatmul.msk.f32.gmra.mxu2 %vm3590_vm1, %v15404_v23 }
 0xd51   :  { %6853 = vmatpush.msra.mxu0 %v6787_v30  ;;  %6960 = vmatpush.msrb.mxu1 %v6718_v48  ;;  %v9081_v48 = vld [vmem:[%s16009_s11 + $0x100] sm:$0xff]  ;;  %v9031_v30 = vld [vmem:[%s16009_s11 + $0xd8] sm:$0xff] }
 0xd52   :  { %v15477_v17 = vpop.f32.mrf.mxu2 }
 0xd53   :  { %6854 = vmatpush.msra.mxu0 %v6784_v38  ;;  %6961 = vmatpush.msrb.mxu1 %v6715_v63  ;;  %v6645_v38 = vld [vmem:[%s16009_s11 + $0x60] sm:$0xff] }
 0xd55   :  { %6855 = vmatpush.msra.mxu0 %v6781_v62  ;;  %6962 = vmatpush.msrb.mxu1 %v6712_v53  ;;  %v9184_v53 = vld [vmem:[%s16008_s12 + $0xa0] sm:$0xff]  ;;  %v9030_v62 = vld [vmem:[%s16009_s11 + $0xd0] sm:$0xff] }
 0xd57   :  { %6856 = vmatpush.msra.mxu0 %v6778_v10  ;;  %6963 = vmatpush.msrb.mxu1 %v6709_v28  ;;  %v9080_v28 = vld [vmem:[%s16009_s11 + $0xf8] sm:$0xff]  ;;  %v9185_v10 = vld [vmem:[%s16008_s12 + $0xa8] sm:$0xff] }
 0xd58   :  { %9151 = vmatmul.msk.f32.gmra.mxu2 %vm3590_vm1, %v15410_v34 }
 0xd59   :  { %6857 = vmatpush.msra.mxu0 %v6775_v51  ;;  %6964 = vmatpush.msrb.mxu1 %v6706_v19  ;;  %v6644_v51 = vld [vmem:[%s16009_s11 + $0x58] sm:$0xff] }
 0xd5a   :  { %v15481_v14 = vpop.f32.mrf.mxu2 }
 0xd5b   :  { %6858 = vmatpush.msra.mxu0 %v6772_v42  ;;  %6965 = vmatpush.msrb.mxu1 %v6703_v44  ;;  %v9187_v44 = vld [vmem:[%s16008_s12 + $0xb8] sm:$0xff]  ;;  %v9186_v42 = vld [vmem:[%s16008_s12 + $0xb0] sm:$0xff] }
 0xd5d   :  { %6859 = vmatpush.msra.mxu0 %v6769_v47  ;;  %6966 = vmatpush.msrb.mxu1 %v6700_v24  ;;  %v9079_v24 = vld [vmem:[%s16009_s11 + $0xf0] sm:$0xff]  ;;  %v9029_v47 = vld [vmem:[%s16009_s11 + $0xc8] sm:$0xff] }
 0xd5e   :  { %9064 = vmatmul.msk.f32.vlgmr.msrb.gmra.mxu1 %vm6487_vm6, %v6633_v59  ;;  %9049 = vmatmul.msk.f32.vlgmr.msra.gmra.mxu0 %vm6487_vm6, %v9019_v11  ;;  %v9084_v11 = vld [vmem:[%s16009_s11 + $0x118] sm:$0xff] }
 0xd5f   :  { %7428 = vmatpush.msra.mxu1 %v9188_v33 }
 0xd60   :  { %9152 = vmatmul.msk.f32.gmra.mxu2 %vm3590_vm1, %v15416_v1 }
 0xd61   :  { %7429 = vmatpush.msra.mxu1 %v9187_v44 }
 0xd62   :  { %v7058_v3 = vpop.f32.mrf.mxu2 }
 0xd63   :  { %7430 = vmatpush.msra.mxu1 %v9186_v42 }
 0xd65   :  { %7431 = vmatpush.msra.mxu1 %v9185_v10 }
 0xd66   :  { %9065 = vmatmul.msk.f32.gmra.mxu1 %vm6487_vm6, %v6634_v25  ;;  %9050 = vmatmul.msk.f32.gmra.mxu0 %vm6487_vm6, %v9020_v13  ;;  %v9085_v13 = vld [vmem:[%s16009_s11 + $0x120] sm:$0xff] }
 0xd67   :  { %7432 = vmatpush.msra.mxu1 %v9184_v53  ;;  %v9131_v53 = vld [vmem:[%s16009_s11 + $0x1a0] sm:$0xff] }
 0xd68   :  { %9153 = vmatmul.msk.f32.gmra.mxu2 %vm3590_vm1, %v15422_v2 }
 0xd6a   :  { %v7061_v20 = vpop.f32.mrf.mxu2 }
 0xd6e   :  { %9066 = vmatmul.msk.f32.gmra.mxu1 %vm6487_vm6, %v6635_v58  ;;  %9051 = vmatmul.msk.f32.gmra.mxu0 %vm6487_vm6, %v9021_v21 }
 0xd72   :  { %v7064_v26 = vpop.f32.mrf.mxu2 }
 0xd76   :  { %9067 = vmatmul.msk.f32.gmra.mxu1 %vm6487_vm6, %v6636_v49  ;;  %9052 = vmatmul.msk.f32.gmra.mxu0 %vm6487_vm6, %v9022_v4 }
 0xd7a   :  { %v7067_v43 = vpop.f32.mrf.mxu2 }
 0xd7e   :  { %9068 = vmatmul.msk.f32.gmra.mxu1 %vm6487_vm6, %v6637_v39  ;;  %9053 = vmatmul.msk.f32.gmra.mxu0 %vm6487_vm6, %v9023_v45 }
 0xd82   :  { %v7070_v41 = vpop.f32.mrf.mxu2 }
 0xd86   :  { %9069 = vmatmul.msk.f32.gmra.mxu1 %vm6487_vm6, %v6638_v54  ;;  %9054 = vmatmul.msk.f32.gmra.mxu0 %vm6487_vm6, %v9024_v0  ;;  %v9124_v54 = vld [vmem:[%s16009_s11 + $0x168] sm:$0xff] }
 0xd8a   :  { %v7073_v50 = vpop.f32.mrf.mxu2 }
 0xd8e   :  { %9070 = vmatmul.msk.f32.gmra.mxu1 %vm6487_vm6, %v6639_v22  ;;  %9055 = vmatmul.msk.f32.gmra.mxu0 %vm6487_vm6, %v9025_v18  ;;  %v9125_v22 = vld [vmem:[%s16009_s11 + $0x170] sm:$0xff] }
 0xd92   :  { %v7076_v55 = vpop.f32.mrf.mxu2 }
 0xd96   :  { %9071 = vmatmul.msk.f32.gmra.mxu1 %vm6487_vm6, %v6640_v52  ;;  %9056 = vmatmul.msk.f32.gmra.mxu0 %vm6487_vm6, %v9026_v16  ;;  %v9126_v52 = vld [vmem:[%s16009_s11 + $0x178] sm:$0xff] }
 0xd9a   :  { %v7079_v6 = vpop.f32.mrf.mxu2 }
 0xd9b   :  { %7133 = vmatpush.msra.mxu3 %v7079_v6 }
 0xd9d   :  { %7134 = vmatpush.msra.mxu3 %v7076_v55  ;;  %v9091_v55 = vld [vmem:[%s16009_s11 + $0x150] sm:$0xff] }
 0xd9e   :  { %9072 = vmatmul.msk.f32.gmra.mxu1 %vm6487_vm6, %v6641_v9  ;;  %9057 = vmatmul.msk.f32.gmra.mxu0 %vm6487_vm6, %v9027_v57  ;;  %v9092_v9 = vld [vmem:[%s16009_s11 + $0x158] sm:$0xff]  ;;  %v9127_v57 = vld [vmem:[%s16009_s11 + $0x180] sm:$0xff] }
 0xd9f   :  { %7135 = vmatpush.msra.mxu3 %v7073_v50  ;;  %v9090_v50 = vld [vmem:[%s16009_s11 + $0x148] sm:$0xff] }
 0xda1   :  { %7136 = vmatpush.msra.mxu3 %v7070_v41  ;;  %v9089_v41 = vld [vmem:[%s16009_s11 + $0x140] sm:$0xff] }
 0xda2   :  { %v15559_v46 = vpop.f32.mrf.mxu2 }
 0xda3   :  { %7137 = vmatpush.msra.mxu3 %v7067_v43 }
 0xda5   :  { %7138 = vmatpush.msra.mxu3 %v7064_v26 }
 0xda6   :  { %9073 = vmatmul.msk.f32.gmra.mxu1 %vm6487_vm6, %v6642_v40  ;;  %9058 = vmatmul.msk.f32.gmra.mxu0 %vm6487_vm6, %v9028_v8 }
 0xda7   :  { %7139 = vmatpush.msra.mxu3 %v7061_v20 }
 0xda9   :  { %7140 = vmatpush.msra.mxu3 %v7058_v3 }
 0xdaa   :  { %v15569_v60 = vpop.f32.mrf.mxu2 }
 0xdab   :  { %7141 = vmatpush.msra.mxu3 %v15481_v14  ;;  %v9033_v14 = vld [vmem:[%s16009_s11 + $0xe8] sm:$0xff] }
 0xdad   :  { %7142 = vmatpush.msra.mxu3 %v15477_v17  ;;  %v9083_v17 = vld [vmem:[%s16009_s11 + $0x110] sm:$0xff] }
 0xdae   :  { %9074 = vmatmul.msk.f32.gmra.mxu1 %vm6487_vm6, %v6643_v36  ;;  %9109 = vmatmul.msk.f32.vlgmr.msra.gmra.mxu3 %vm6487_vm6, %v9079_v24 }
 0xdaf   :  { %9059 = vmatmul.msk.f32.gmra.mxu0 %vm6487_vm6, %v9029_v47 }
 0xdb2   :  { %v15594_v19 = vpop.f32.mrf.mxu2 }
 0xdb6   :  { %9075 = vmatmul.msk.f32.gmra.mxu1 %vm6487_vm6, %v6644_v51  ;;  %9110 = vmatmul.msk.f32.gmra.mxu3 %vm6487_vm6, %v9080_v28 }
 0xdb7   :  { %9060 = vmatmul.msk.f32.gmra.mxu0 %vm6487_vm6, %v9030_v62 }
 0xdba   :  { %v7252_v63 = vpop.f32.mrf.mxu2 }
 0xdbe   :  { %9076 = vmatmul.msk.f32.gmra.mxu1 %vm6487_vm6, %v6645_v38  ;;  %9111 = vmatmul.msk.f32.gmra.mxu3 %vm6487_vm6, %v9081_v48 }
 0xdbf   :  { %9061 = vmatmul.msk.f32.gmra.mxu0 %vm6487_vm6, %v9031_v30  ;;  %v9132_v30 = vld [vmem:[%s16009_s11 + $0x1a8] sm:$0xff] }
 0xdc2   :  { %v7255_v15 = vpop.f32.mrf.mxu2 }
 0xdc6   :  { %9077 = vmatmul.msk.f32.gmra.mxu1 %vm6487_vm6, %v6646_v56  ;;  %9112 = vmatmul.msk.f32.gmra.mxu3 %vm6487_vm6, %v9082_v5 }
 0xdc7   :  { %9062 = vmatmul.msk.f32.gmra.mxu0 %vm6487_vm6, %v9032_v29 }
 0xdca   :  { %v7258_v32 = vpop.f32.mrf.mxu2 }
 0xdce   :  { %9078 = vmatmul.msk.f32.gmra.mxu1 %vm6487_vm6, %v6647_v31  ;;  %9113 = vmatmul.msk.f32.gmra.mxu3 %vm6487_vm6, %v9083_v17 }
 0xdcf   :  { %9063 = vmatmul.msk.f32.gmra.mxu0 %vm6487_vm6, %v9033_v14 }
 0xdd3   :  { %v7261_v59 = vpop.f32.mrf.mxu2 }
 0xdd6   :  { %9114 = vmatmul.msk.f32.gmra.mxu3 %vm6487_vm6, %v9084_v11  ;;  %9189 = vmatmul.msk.f32.vlgmr.msra.gmra.mxu1 %vm3590_vm1, %v15353_v12  ;;  %v9086_v12 = vld [vmem:[%s16009_s11 + $0x128] sm:$0xff]  ;;  %v9134_v11 = vld [vmem:[%s16009_s11 + $0x1b8] sm:$0xff] }
 0xddb   :  { %v7264_v3 = vpop.f32.mrf.mxu2  ;;  %v15656_v25 = vpop.f32.mrf.mxu1 }
 0xddc   :  { %v15661_v20 = vpop.f32.mrf.mxu0 }
 0xdde   :  { %9115 = vmatmul.msk.f32.gmra.mxu3 %vm6487_vm6, %v9085_v13  ;;  %9190 = vmatmul.msk.f32.gmra.mxu1 %vm3590_vm1, %v15359_v61  ;;  %v9087_v61 = vld [vmem:[%s16009_s11 + $0x130] sm:$0xff] }
 0xde3   :  { %v7267_v58 = vpop.f32.mrf.mxu2  ;;  %v15666_v21 = vpop.f32.mrf.mxu1 }
 0xde4   :  { %v15671_v26 = vpop.f32.mrf.mxu0 }
 0xde6   :  { %9116 = vmatmul.msk.f32.gmra.mxu3 %vm6487_vm6, %v9086_v12  ;;  %9191 = vmatmul.msk.f32.gmra.mxu1 %vm3590_vm1, %v15365_v27  ;;  %v9088_v27 = vld [vmem:[%s16009_s11 + $0x138] sm:$0xff] }
 0xdeb   :  { %v7270_v49 = vpop.f32.mrf.mxu2  ;;  %v15676_v4 = vpop.f32.mrf.mxu1 }
 0xdec   :  { %7324 = vmatpush.msrb.mxu0 %v7270_v49  ;;  %v15681_v43 = vpop.f32.mrf.mxu0  ;;  %v9135_v49 = vld [vmem:[%s16009_s11 + $0x1c0] sm:$0xff] }
 0xdee   :  { %7325 = vmatpush.msrb.mxu0 %v7267_v58  ;;  %9117 = vmatmul.msk.f32.gmra.mxu3 %vm6487_vm6, %v9087_v61 }
 0xdef   :  { %9192 = vmatmul.msk.f32.gmra.mxu1 %vm3590_vm1, %v15371_v7 }
 0xdf0   :  { %7326 = vmatpush.msrb.mxu0 %v7264_v3 }
 0xdf2   :  { %7327 = vmatpush.msrb.mxu0 %v7261_v59 }
 0xdf3   :  { %v15686_v39 = vpop.f32.mrf.mxu1 }
 0xdf4   :  { %7328 = vmatpush.msrb.mxu0 %v7258_v32  ;;  %v15691_v45 = vpop.f32.mrf.mxu0  ;;  %v9133_v32 = vld [vmem:[%s16009_s11 + $0x1b0] sm:$0xff] }
 0xdf6   :  { %7329 = vmatpush.msrb.mxu0 %v7255_v15  ;;  %9118 = vmatmul.msk.f32.gmra.mxu3 %vm6487_vm6, %v9088_v27 }
 0xdf7   :  { %9193 = vmatmul.msk.f32.gmra.mxu1 %vm3590_vm1, %v15377_v37 }
 0xdf8   :  { %7330 = vmatpush.msrb.mxu0 %v7252_v63 }
 0xdfa   :  { %7331 = vmatpush.msrb.mxu0 %v15594_v19  ;;  %v9130_v19 = vld [vmem:[%s16009_s11 + $0x198] sm:$0xff] }
 0xdfb   :  { %v15697_v7 = vpop.f32.mrf.mxu1 }
 0xdfc   :  { %7332 = vmatpush.msrb.mxu0 %v15569_v60  ;;  %v15706_v0 = vpop.f32.mrf.mxu0  ;;  %v9128_v60 = vld [vmem:[%s16009_s11 + $0x188] sm:$0xff] }
 0xdfe   :  { %7333 = vmatpush.msrb.mxu0 %v15559_v46  ;;  %9119 = vmatmul.msk.f32.gmra.mxu3 %vm6487_vm6, %v9089_v41  ;;  %v9136_v41 = vld [vmem:[%s16009_s11 + $0x1c8] sm:$0xff] }
 0xdff   :  { %9154 = vmatmul.msk.f32.vlgmr.msrb.gmra.mxu0 %vm6487_vm6, %v9124_v54  ;;  %9194 = vmatmul.msk.f32.gmra.mxu1 %vm3590_vm1, %v15383_v35 }
 0xe03   :  { %v15713_v37 = vpop.f32.mrf.mxu1 }
 0xe04   :  { %v15721_v18 = vpop.f32.mrf.mxu0 }
 0xe06   :  { %9120 = vmatmul.msk.f32.gmra.mxu3 %vm6487_vm6, %v9090_v50 }
 0xe07   :  { %9155 = vmatmul.msk.f32.gmra.mxu0 %vm6487_vm6, %v9125_v22  ;;  %9195 = vmatmul.msk.f32.gmra.mxu1 %vm3590_vm1, %v15404_v23 }
 0xe0b   :  { %v6986_v35 = vpop.f32.mrf.mxu1 }
 0xe0c   :  { %v6879_v16 = vpop.f32.mrf.mxu0 }
 0xe0d   :  { %v15733_v6 = vadd.f32 %v6986_v35, %v6879_v16  ;;  %v9137_v35 = vld [vmem:[%s16009_s11 + $0x1d0] sm:$0xff] }
 0xe0e   :  { %9121 = vmatmul.msk.f32.gmra.mxu3 %vm6487_vm6, %v9091_v55 }
 0xe0f   :  { %9156 = vmatmul.msk.f32.gmra.mxu0 %vm6487_vm6, %v9126_v52  ;;  %9196 = vmatmul.msk.f32.gmra.mxu1 %vm3590_vm1, %v15410_v34  ;;  %v9093_v34 = vld [vmem:[%s16009_s11 + $0x160] sm:$0xff] }
 0xe13   :  { %v6989_v23 = vpop.f32.mrf.mxu1 }
 0xe14   :  { %v6882_v46 = vpop.f32.mrf.mxu0 }
 0xe15   :  { %v6990_v40 = vadd.f32 %v6989_v23, %v6882_v46  ;;  %v9138_v23 = vld [vmem:[%s16009_s11 + $0x1d8] sm:$0xff] }
 0xe16   :  { %9122 = vmatmul.msk.f32.gmra.mxu3 %vm6487_vm6, %v9092_v9 }
 0xe17   :  { %9157 = vmatmul.msk.f32.gmra.mxu0 %vm6487_vm6, %v9127_v57  ;;  %9197 = vmatmul.msk.f32.gmra.mxu1 %vm3590_vm1, %v15416_v1  ;;  %v9129_v1 = vld [vmem:[%s16009_s11 + $0x190] sm:$0xff] }
 0xe1b   :  { %v6992_v8 = vpop.f32.mrf.mxu1 }
 0xe1c   :  { %v6885_v33 = vpop.f32.mrf.mxu0 }
 0xe1d   :  { %v6993_v36 = vadd.f32 %v6992_v8, %v6885_v33 }
 0xe1e   :  { %9123 = vmatmul.msk.f32.gmra.mxu3 %vm6487_vm6, %v9093_v34 }
 0xe1f   :  { %9158 = vmatmul.msk.f32.gmra.mxu0 %vm6487_vm6, %v9128_v60  ;;  %9198 = vmatmul.msk.f32.gmra.mxu1 %vm3590_vm1, %v15422_v2 }
 0xe23   :  { %v6995_v24 = vpop.f32.mrf.mxu1 }
 0xe24   :  { %v6888_v47 = vpop.f32.mrf.mxu0 }
 0xe25   :  { %v6996_v44 = vadd.f32 %v6995_v24, %v6888_v47 }
 0xe27   :  { %9159 = vmatmul.msk.f32.gmra.mxu0 %vm6487_vm6, %v9129_v1 }
 0xe2b   :  { %v6998_v42 = vpop.f32.mrf.mxu1 }
 0xe2c   :  { %v6891_v51 = vpop.f32.mrf.mxu0 }
 0xe2d   :  { %v6999_v28 = vadd.f32 %v6998_v42, %v6891_v51  ;;  %v6978_v51 = vadd.f32 %v15686_v39, %v15691_v45  ;;  %v6984_v39 = vadd.f32 %v15713_v37, %v15721_v18 }
 0xe2f   :  { %9160 = vmatmul.msk.f32.gmra.mxu0 %vm6487_vm6, %v9130_v19 }
 0xe31   :  { %v15767_v10 = vpop.f32.mrf.mxu3 }
 0xe33   :  { %v7001_v2 = vpop.f32.mrf.mxu1 }
 0xe34   :  { %v6894_v62 = vpop.f32.mrf.mxu0 }
 0xe35   :  { %v7002_v63 = vadd.f32 %v7001_v2, %v6894_v62 }
 0xe37   :  { %9161 = vmatmul.msk.f32.gmra.mxu0 %vm6487_vm6, %v9131_v53 }
 0xe39   :  { %v15773_v38 = vpop.f32.mrf.mxu3 }
 0xe3b   :  { %v7004_v48 = vpop.f32.mrf.mxu1 }
 0xe3c   :  { %v6897_v15 = vpop.f32.mrf.mxu0 }
 0xe3d   :  { %v7005_v56 = vadd.f32 %v7004_v48, %v6897_v15 }
 0xe3f   :  { %9162 = vmatmul.msk.f32.gmra.mxu0 %vm6487_vm6, %v9132_v30  ;;  %v6981_v30 = vadd.f32 %v15697_v7, %v15706_v0 }
 0xe41   :  { %v15779_v5 = vpop.f32.mrf.mxu3 }
 0xe43   :  { %v7007_v29 = vpop.f32.mrf.mxu1 }
 0xe44   :  { %v6900_v31 = vpop.f32.mrf.mxu0 }
 0xe45   :  { %v7008_v17 = vadd.f32 %v7007_v29, %v6900_v31 }
 0xe47   :  { %9163 = vmatmul.msk.f32.gmra.mxu0 %vm6487_vm6, %v9133_v32 }
 0xe49   :  { %v7153_v14 = vpop.f32.mrf.mxu3 }
 0xe4a   :  { %v7192_v53 = vadd.f32 %v7153_v14, %v6978_v51 }
 0xe4b   :  { %v7010_v59 = vpop.f32.mrf.mxu1 }
 0xe4c   :  { %v6903_v3 = vpop.f32.mrf.mxu0 }
 0xe4d   :  { %v15788_v13 = vadd.f32 %v7010_v59, %v6903_v3  ;;  %v9171_v3 = vld [vmem:[%s16009_s11 + $0x1f0] sm:$0xff] }
 0xe4f   :  { %9164 = vmatmul.msk.f32.gmra.mxu0 %vm6487_vm6, %v9134_v11  ;;  %v9170_v11 = vld [vmem:[%s16009_s11 + $0x1e8] sm:$0xff] }
 0xe51   :  { %v7156_v58 = vpop.f32.mrf.mxu3 }
 0xe52   :  { %v7193_v29 = vadd.f32 %v7156_v58, %v6981_v30  ;;  %v9172_v58 = vld [vmem:[%s16009_s11 + $0x1f8] sm:$0xff] }
 0xe53   :  { %v7434_v12 = vpop.f32.mrf.mxu1 }
 0xe57   :  { %9165 = vmatmul.msk.f32.gmra.mxu0 %vm6487_vm6, %v9135_v49  ;;  %v9174_v49 = vld [vmem:[%s16009_s11 + $0x208] sm:$0xff] }
 0xe59   :  { %v7159_v61 = vpop.f32.mrf.mxu3 }
 0xe5a   :  { %v7194_v45 = vadd.f32 %v7159_v61, %v6984_v39  ;;  %v9175_v61 = vld [vmem:[%s16009_s11 + $0x210] sm:$0xff] }
 0xe5b   :  { %v7437_v27 = vpop.f32.mrf.mxu1 }
 0xe5f   :  { %9166 = vmatmul.msk.f32.gmra.mxu0 %vm6487_vm6, %v9136_v41  ;;  %v9177_v41 = vld [vmem:[%s16009_s11 + $0x220] sm:$0xff] }
 0xe61   :  { %v7162_v54 = vpop.f32.mrf.mxu3 }
 0xe62   :  { %v7195_v50 = vadd.f32 %v7162_v54, %v15733_v6  ;;  %v9178_v54 = vld [vmem:[%s16009_s11 + $0x228] sm:$0xff] }
 0xe63   :  { %v7440_v22 = vpop.f32.mrf.mxu1 }
 0xe67   :  { %9167 = vmatmul.msk.f32.gmra.mxu0 %vm6487_vm6, %v9137_v35  ;;  %v9181_v35 = vld [vmem:[%s16009_s11 + $0x240] sm:$0xff] }
 0xe69   :  { %v7165_v55 = vpop.f32.mrf.mxu3 }
 0xe6a   :  { %v7196_v52 = vadd.f32 %v7165_v55, %v6990_v40  ;;  %v9182_v55 = vld [vmem:[%s16009_s11 + $0x248] sm:$0xff] }
 0xe6c   :  { %v7443_v16 = vpop.f32.mrf.mxu1 }
 0xe6f   :  { %9168 = vmatmul.msk.f32.gmra.mxu0 %vm6487_vm6, %v9138_v23  ;;  %v6969_v23 = vadd.f32 %v15656_v25, %v15661_v20  ;;  %v6975_v25 = vadd.f32 %v15676_v4, %v15681_v43 }
 0xe71   :  { %v7168_v9 = vpop.f32.mrf.mxu3  ;;  %v7191_v20 = vadd.f32 %v15779_v5, %v6975_v25 }
 0xe72   :  { %v15808_v57 = vadd.f32 %v7168_v9, %v6993_v36  ;;  %v7189_v9 = vadd.f32 %v15767_v10, %v6969_v23 }
 0xe74   :  { %v7446_v6 = vpop.f32.mrf.mxu1 }
 0xe79   :  { %v7171_v46 = vpop.f32.mrf.mxu3 }
 0xe7a   :  { %v15810_v8 = vadd.f32 %v7171_v46, %v6996_v44 }
 0xe7c   :  { %v15812_v34 = vpop.f32.mrf.mxu0  ;;  %v7449_v60 = vpop.f32.mrf.mxu1 }
 0xe81   :  { %v7174_v33 = vpop.f32.mrf.mxu3 }
 0xe82   :  { %v15814_v24 = vadd.f32 %v7174_v33, %v6999_v28  ;;  %v6972_v33 = vadd.f32 %v15666_v21, %v15671_v26 }
 0xe84   :  { %v15816_v40 = vpop.f32.mrf.mxu0  ;;  %v7452_v1 = vpop.f32.mrf.mxu1 }
 0xe89   :  { %v7177_v47 = vpop.f32.mrf.mxu3 }
 0xe8a   :  { %v15818_v42 = vadd.f32 %v7177_v47, %v7002_v63 }
 0xe8c   :  { %v15820_v19 = vpop.f32.mrf.mxu0  ;;  %v7455_v36 = vpop.f32.mrf.mxu1 }
 0xe8d   :  { %v7382_v10 = vadd.f32 %v15820_v19, %v7191_v20 }
 0xe91   :  { %v7180_v44 = vpop.f32.mrf.mxu3 }
 0xe92   :  { %v15824_v2 = vadd.f32 %v7180_v44, %v7005_v56 }
 0xe94   :  { %v7344_v62 = vpop.f32.mrf.mxu0  ;;  %v7458_v48 = vpop.f32.mrf.mxu1 }
 0xe95   :  { %v15826_v28 = vadd.f32 %v7344_v62, %v7192_v53 }
 0xe99   :  { %v7183_v15 = vpop.f32.mrf.mxu3 }
 0xe9a   :  { %v15830_v63 = vadd.f32 %v7183_v15, %v7008_v17  ;;  %v9169_v17 = vld [vmem:[%s16009_s11 + $0x1e0] sm:$0xff] }
 0xe9c   :  { %v7347_v32 = vpop.f32.mrf.mxu0  ;;  %v7461_v31 = vpop.f32.mrf.mxu1 }
 0xe9d   :  { %v15832_v59 = vadd.f32 %v7347_v32, %v7193_v29  ;;  %7515 = vmatpush.msrb.mxu3 %v7461_v31 }
 0xe9f   :  { %7516 = vmatpush.msrb.mxu3 %v7458_v48 }
 0xea1   :  { %7517 = vmatpush.msrb.mxu3 %v7455_v36 }
 0xea3   :  { %7518 = vmatpush.msrb.mxu3 %v7452_v1  ;;  %v7190_v1 = vadd.f32 %v15773_v38, %v6972_v33 }
 0xea4   :  { %v7350_v56 = vpop.f32.mrf.mxu0 }
 0xea5   :  { %v7385_v14 = vadd.f32 %v7350_v56, %v7194_v45  ;;  %7519 = vmatpush.msrb.mxu3 %v7449_v60  ;;  %v7381_v47 = vadd.f32 %v15816_v40, %v7190_v1  ;;  %v7674_v56 = vpop.permute.xlu2 %7673 }
 0xea7   :  { %7520 = vmatpush.msrb.mxu3 %v7446_v6  ;;  %v7380_v6 = vadd.f32 %v15812_v34, %v7189_v9 }
 0xea9   :  { %7521 = vmatpush.msrb.mxu3 %v7443_v16  ;;  %v7186_v16 = vpop.f32.mrf.mxu3 }
 0xeab   :  { %7522 = vmatpush.msrb.mxu3 %v7440_v22  ;;  %v9180_v22 = vld [vmem:[%s16009_s11 + $0x238] sm:$0xff] }
 0xeac   :  { %v7353_v7 = vpop.f32.mrf.mxu0 }
 0xead   :  { %v7386_v0 = vadd.f32 %v7353_v7, %v7195_v50  ;;  %7523 = vmatpush.msrb.mxu3 %v7437_v27  ;;  %v9176_v27 = vld [vmem:[%s16009_s11 + $0x218] sm:$0xff]  ;;  %v9179_v50 = vld [vmem:[%s16009_s11 + $0x230] sm:$0xff] }
 0xeaf   :  { %7524 = vmatpush.msrb.mxu3 %v7434_v12  ;;  %v9173_v12 = vld [vmem:[%s16009_s11 + $0x200] sm:$0xff] }
 0xeb0   :  { %9199 = vmatmul.msk.f32.vlgmr.msrb.gmra.mxu3 %vm6487_vm6, %v9169_v17 }
 0xeb4   :  { %v7356_v37 = vpop.f32.mrf.mxu0 }
 0xeb5   :  { %v7387_v18 = vadd.f32 %v7356_v37, %v7196_v52  ;;  %v9183_v52 = vld [vmem:[%s16009_s11 + $0x250] sm:$0xff]  ;;  %v7664_v37 = vpop.permute.xlu1 %7663 }
 0xeb8   :  { %9200 = vmatmul.msk.f32.gmra.mxu3 %vm6487_vm6, %v9170_v11  ;;  %v7659_v11 = vpop.permute.xlu2 %7658 }
 0xebc   :  { %v7359_v48 = vpop.f32.mrf.mxu0 }
 0xec0   :  { %9201 = vmatmul.msk.f32.gmra.mxu3 %vm6487_vm6, %v9171_v3  ;;  %v7644_v9 = vpop.permute.xlu2 %7643 }
 0xec4   :  { %v7362_v19 = vpop.f32.mrf.mxu0 }
 0xec8   :  { %9202 = vmatmul.msk.f32.gmra.mxu3 %vm6487_vm6, %v9172_v58 }
 0xecc   :  { %v7365_v29 = vpop.f32.mrf.mxu0 }
 0xed0   :  { %9203 = vmatmul.msk.f32.gmra.mxu3 %vm6487_vm6, %v9173_v12  ;;  %v7649_v12 = vpop.permute.xlu1 %7648 }
 0xed4   :  { %v7368_v31 = vpop.f32.mrf.mxu0 }
 0xed8   :  { %9204 = vmatmul.msk.f32.gmra.mxu3 %vm6487_vm6, %v9174_v49 }
 0xee0   :  { %9205 = vmatmul.msk.f32.gmra.mxu3 %vm6487_vm6, %v9175_v61 }
 0xee8   :  { %9206 = vmatmul.msk.f32.gmra.mxu3 %vm6487_vm6, %v9176_v27 }
 0xef0   :  { %9207 = vmatmul.msk.f32.gmra.mxu3 %vm6487_vm6, %v9177_v41 }
 0xef8   :  { %9208 = vmatmul.msk.f32.gmra.mxu3 %vm6487_vm6, %v9178_v54  ;;  %v7391_v54 = vadd.f32 %v7368_v31, %v15818_v42  ;;  %v7634_v42 = vpop.permute.xlu1 %7633 }
 0xf00   :  { %9209 = vmatmul.msk.f32.gmra.mxu3 %vm6487_vm6, %v9179_v50 }
 0xf08   :  { %9210 = vmatmul.msk.f32.gmra.mxu3 %vm6487_vm6, %v9180_v22 }
 0xf10   :  { %9211 = vmatmul.msk.f32.gmra.mxu3 %vm6487_vm6, %v9181_v35  ;;  %v7390_v35 = vadd.f32 %v7365_v29, %v15814_v24 }
 0xf18   :  { %9212 = vmatmul.msk.f32.gmra.mxu3 %vm6487_vm6, %v9182_v55 }
 0xf20   :  { %9213 = vmatmul.msk.f32.gmra.mxu3 %vm6487_vm6, %v9183_v52 }
 0xf33   :  { %v7526_v46 = vpop.f32.mrf.mxu3 }
 0xf34   :  { %v15900_v60 = vadd.f32 %v7526_v46, %v7380_v6 }
 0xf3b   :  { %v7529_v36 = vpop.f32.mrf.mxu3 }
 0xf3c   :  { %v15906_v51 = vadd.f32 %v7529_v36, %v7381_v47 }
 0xf43   :  { %v7532_v34 = vpop.f32.mrf.mxu3 }
 0xf44   :  { %v15912_v44 = vadd.f32 %v7532_v34, %v7382_v10 }
 0xf4b   :  { %v7535_v53 = vpop.f32.mrf.mxu3 }
 0xf4c   :  { %v15915_v21 = vadd.f32 %v7535_v53, %v15826_v28  ;;  %v7371_v28 = vpop.f32.mrf.mxu0  ;;  %v7629_v53 = vpop.permute.xlu2 %7628 }
 0xf4d   :  { %v7392_v49 = vadd.f32 %v7371_v28, %v15824_v2  ;;  %v7388_v2 = vadd.f32 %v7359_v48, %v15808_v57 }
 0xf53   :  { %v7538_v26 = vpop.f32.mrf.mxu3 }
 0xf54   :  { %v15918_v38 = vadd.f32 %v7538_v26, %v15832_v59  ;;  %v7669_v59 = vpop.permute.xlu0 %7668  ;;  %v7374_v17 = vpop.f32.mrf.mxu0 }
 0xf5b   :  { %v7541_v40 = vpop.f32.mrf.mxu3 }
 0xf5c   :  { %v15920_v62 = vadd.f32 %v7541_v40, %v7385_v14  ;;  %v7654_v3 = vpop.permute.xlu0 %7653  ;;  %v7377_v58 = vpop.f32.mrf.mxu0 }
 0xf63   :  { %v7544_v4 = vpop.f32.mrf.mxu3 }
 0xf64   :  { %v7577_v43 = vadd.f32 %v7544_v4, %v7386_v0  ;;  %v7203_v0 = vadd.f32 %v7186_v16, %v15788_v13  ;;  %v7389_v13 = vadd.f32 %v7362_v19, %v15810_v8  ;;  %v7639_v46 = vpop.permute.xlu0 %7638  ;;  %v7681_v19 = vadd.f32 %v7629_v53, %v15920_v62 }
 0xf66   :  { %v7394_v61 = vadd.f32 %v7377_v58, %v7203_v0  ;;  %v7682_v48 = vadd.f32 %v7634_v42, %v7577_v43  ;;  %v7713_v58 = vld [vmem:[%s16010_s14 + $0x38] sm:$0xff]  ;;  %v7714_v0 = vld [vmem:[%s16010_s14 + $0x40] sm:$0xff] }
 0xf6b   :  { %v7547_v5 = vpop.f32.mrf.mxu3 }
 0xf6c   :  { %v7578_v30 = vadd.f32 %v7547_v5, %v7387_v18  ;;  %v7393_v18 = vadd.f32 %v7374_v17, %v15830_v63  ;;  %v7624_v57 = vpop.permute.xlu0 %7623  ;;  %v7619_v5 = vpop.permute.xlu1 %7618 }
 0xf6d   :  { %v7680_v29 = vadd.f32 %v7624_v57, %v15918_v38  ;;  %v7679_v31 = vadd.f32 %v7619_v5, %v15915_v21 }
 0xf6e   :  { %v7683_v26 = vadd.f32 %v7639_v46, %v7578_v30  ;;  %v7614_v30 = vpop.permute.xlu2 %7613 }
 0xf6f   :  { %v7678_v28 = vadd.f32 %v7614_v30, %v15912_v44  ;;  %v7706_v44 = vld [vmem:[%s16010_s14] sm:$0xff] }
 0xf71   :  { %v7693_v38 = vmax.f32 %v7678_v28, 0.0 }
 0xf73   :  { %v7550_v15 = vpop.f32.mrf.mxu3 }
 0xf74   :  { %v7579_v36 = vadd.f32 %v7550_v15, %v7388_v2  ;;  %v7698_v15 = vmax.f32 %v7683_v26, 0.0  ;;  %v7609_v43 = vpop.permute.xlu0 %7608  ;;  %v7604_v62 = vpop.permute.xlu1 %7603 }
 0xf76   :  { %v7684_v34 = vadd.f32 %v7644_v9, %v7579_v36 }
 0xf78   :  { %v7699_v4 = vmax.f32 %v7684_v34, 0.0 }
 0xf7b   :  { %v7553_v32 = vpop.f32.mrf.mxu3 }
 0xf7c   :  { %v7580_v33 = vadd.f32 %v7553_v32, %v7389_v13  ;;  %v7697_v32 = vmax.f32 %v7682_v48, 0.0  ;;  %v7771_v13 = vpop.permute.xlu1 %7770 }
 0xf7e   :  { %v7685_v20 = vadd.f32 %v7649_v12, %v7580_v33  ;;  %v7716_v12 = vld [vmem:[%s16010_s14 + $0x50] sm:$0xf] }
 0xf80   :  { %v7700_v40 = vmax.f32 %v7685_v20, 0.0 }
 0xf83   :  { %v7556_v39 = vpop.f32.mrf.mxu3 }
 0xf84   :  { %v7581_v16 = vadd.f32 %v7556_v39, %v7390_v35  ;;  %v7696_v39 = vmax.f32 %v7681_v19, 0.0 }
 0xf86   :  { %v7686_v25 = vadd.f32 %v7654_v3, %v7581_v16  ;;  %v7712_v3 = vld [vmem:[%s16010_s14 + $0x30] sm:$0xff] }
 0xf88   :  { %v7701_v8 = vmax.f32 %v7686_v25, 0.0 }
 0xf8b   :  { %v7559_v45 = vpop.f32.mrf.mxu3 }
 0xf8c   :  { %v7582_v55 = vadd.f32 %v7559_v45, %v7391_v54  ;;  %v7695_v45 = vmax.f32 %v7680_v29, 0.0 }
 0xf8e   :  { %v7687_v1 = vadd.f32 %v7659_v11, %v7582_v55  ;;  %v7711_v11 = vld [vmem:[%s16010_s14 + $0x28] sm:$0xff] }
 0xf90   :  { %v7702_v10 = vmax.f32 %v7687_v1, 0.0 }
 0xf93   :  { %v7562_v7 = vpop.f32.mrf.mxu3 }
 0xf94   :  { %v7583_v50 = vadd.f32 %v7562_v7, %v7392_v49  ;;  %v7694_v7 = vmax.f32 %v7679_v31, 0.0 }
 0xf96   :  { %v7688_v63 = vadd.f32 %v7664_v37, %v7583_v50  ;;  %v7709_v37 = vld [vmem:[%s16010_s14 + $0x18] sm:$0xff] }
 0xf98   :  { %v7703_v24 = vmax.f32 %v7688_v63, 0.0 }
 0xf9b   :  { %v7565_v14 = vpop.f32.mrf.mxu3 }
 0xf9c   :  { %v7584_v27 = vadd.f32 %v7565_v14, %v7393_v18  ;;  %v7710_v14 = vld [vmem:[%s16010_s14 + $0x20] sm:$0xff]  ;;  %v7715_v18 = vld [vmem:[%s16010_s14 + $0x48] sm:$0xff] }
 0xf9e   :  { %v7689_v52 = vadd.f32 %v7669_v59, %v7584_v27  ;;  %v7676_v59 = vadd.f32 %v7604_v62, %v15900_v60  ;;  %v7708_v60 = vld [vmem:[%s16010_s14 + $0x10] sm:$0xff] }
 0xfa0   :  { %v7704_v47 = vmax.f32 %v7689_v52, 0.0  ;;  %v7691_v21 = vmax.f32 %v7676_v59, 0.0  ;;  %v7781_v52 = vpop.permute.xlu2 %7780 }
 0xfa3   :  { %v7568_v41 = vpop.f32.mrf.mxu3 }
 0xfa4   :  { %v7585_v22 = vadd.f32 %v7568_v41, %v7394_v61 }
 0xfa6   :  { %v7690_v23 = vadd.f32 %v7674_v56, %v7585_v22  ;;  %v7677_v56 = vadd.f32 %v7609_v43, %v15906_v51  ;;  %v7707_v51 = vld [vmem:[%s16010_s14 + $0x8] sm:$0xff] }
 0xfa7   :  { %v7879_v43 = vld [vmem:[%s16011_s16 + $0x8] sm:$0x3] }
 0xfa8   :  { %v7705_v6 = vmax.f32 %v7690_v23, 0.0  ;;  %v7692_v17 = vmax.f32 %v7677_v56, 0.0  ;;  %v7776_v23 = vpop.permute.xlu0 %7775  ;;  %v7766_v16 = vpop.permute.xlu2 %7765 }
 0xfaa   :  { %7818 = vmatpush.msra.mxu2 %v7705_v6 }
 0xfac   :  { %7819 = vmatpush.msra.mxu2 %v7704_v47  ;;  %v7756_v47 = vpop.permute.xlu1 %7755 }
 0xfae   :  { %7820 = vmatpush.msra.mxu2 %v7703_v24 }
 0xfb0   :  { %7821 = vmatpush.msra.mxu2 %v7702_v10  ;;  %v7761_v63 = vpop.permute.xlu0 %7760  ;;  %v7751_v25 = vpop.permute.xlu2 %7750 }
 0xfb2   :  { %7822 = vmatpush.msra.mxu2 %v7701_v8 }
 0xfb4   :  { %7823 = vmatpush.msra.mxu2 %v7700_v40  ;;  %v7741_v48 = vpop.permute.xlu1 %7740 }
 0xfb6   :  { %7824 = vmatpush.msra.mxu2 %v7699_v4 }
 0xfb8   :  { %7825 = vmatpush.msra.mxu2 %v7698_v15  ;;  %v7746_v10 = vpop.permute.xlu0 %7745  ;;  %v7736_v19 = vpop.permute.xlu2 %7735 }
 0xfba   :  { %7826 = vmatpush.msra.mxu2 %v7697_v32 }
 0xfbc   :  { %7827 = vmatpush.msra.mxu2 %v7696_v39  ;;  %v7885_v56 = vpop.permute.xlu1 %7884 }
 0xfbe   :  { %7828 = vmatpush.msra.mxu2 %v7695_v45  ;;  %v7878_v45 = vld [vmem:[%s16011_s16] sm:$0xff] }
 0xfc0   :  { %7829 = vmatpush.msra.mxu2 %v7694_v7  ;;  %v7731_v32 = vpop.permute.xlu0 %7730  ;;  %v7890_v59 = vpop.permute.xlu2 %7889 }
 0xfc2   :  { %7830 = vmatpush.msra.mxu2 %v7693_v38 }
 0xfc4   :  { %7831 = vmatpush.msra.mxu2 %v7692_v17 }
 0xfc6   :  { %7832 = vmatpush.msra.mxu2 %v7691_v21 }
 0xfc7   :  { %9214 = vmatmul.msk.f32.vlgmr.msra.gmra.mxu2 %vm7783_vm7, %v7706_v44 }
 0xfcf   :  { %9215 = vmatmul.msk.f32.gmra.mxu2 %vm7783_vm7, %v7707_v51 }
 0xfd7   :  { %9216 = vmatmul.msk.f32.gmra.mxu2 %vm7783_vm7, %v7708_v60 }
 0xfdf   :  { %9217 = vmatmul.msk.f32.gmra.mxu2 %vm7783_vm7, %v7709_v37 }
 0xfe7   :  { %9218 = vmatmul.msk.f32.gmra.mxu2 %vm7783_vm7, %v7710_v14 }
 0xfef   :  { %9219 = vmatmul.msk.f32.gmra.mxu2 %vm7783_vm7, %v7711_v11 }
 0xff7   :  { %9220 = vmatmul.msk.f32.gmra.mxu2 %vm7783_vm7, %v7712_v3 }
 0xfff   :  { %9221 = vmatmul.msk.f32.gmra.mxu2 %vm7783_vm7, %v7713_v58 }
0x1007   :  { %9222 = vmatmul.msk.f32.gmra.mxu2 %vm7783_vm7, %v7714_v0 }
0x100f   :  { %9223 = vmatmul.msk.f32.gmra.mxu2 %vm7783_vm7, %v7715_v18 }
0x1017   :  { %9224 = vmatmul.msk.f32.gmra.mxu2 %vm7783_vm7, %v7716_v12 }
0x104a   :  { %v7834_v49 = vpop.f32.mrf.mxu2 }
0x104b   :  { %v7835_v31 = vadd.f32 %v7834_v49, %v7731_v32 }
0x104d   :  { %v7867_v28 = vmax.f32 %v7835_v31, 0.0 }
0x1052   :  { %v7837_v61 = vpop.f32.mrf.mxu2 }
0x1053   :  { %v7838_v15 = vadd.f32 %v7837_v61, %v7736_v19 }
0x1055   :  { %v7868_v30 = vmax.f32 %v7838_v15, 0.0 }
0x105a   :  { %v7840_v27 = vpop.f32.mrf.mxu2 }
0x105b   :  { %v7841_v4 = vadd.f32 %v7840_v27, %v7741_v48 }
0x105d   :  { %v7869_v39 = vmax.f32 %v7841_v4, 0.0 }
0x1062   :  { %v7843_v41 = vpop.f32.mrf.mxu2 }
0x1063   :  { %v7844_v40 = vadd.f32 %v7843_v41, %v7746_v10 }
0x1065   :  { %v7870_v29 = vmax.f32 %v7844_v40, 0.0 }
0x106a   :  { %v7846_v54 = vpop.f32.mrf.mxu2 }
0x106b   :  { %v7847_v53 = vadd.f32 %v7846_v54, %v7751_v25 }
0x106d   :  { %v7871_v5 = vmax.f32 %v7847_v53, 0.0 }
0x1072   :  { %v7849_v50 = vpop.f32.mrf.mxu2 }
0x1073   :  { %v7850_v34 = vadd.f32 %v7849_v50, %v7756_v47 }
0x1075   :  { %v7872_v57 = vmax.f32 %v7850_v34, 0.0 }
0x107a   :  { %v7852_v22 = vpop.f32.mrf.mxu2 }
0x107b   :  { %v7853_v24 = vadd.f32 %v7852_v22, %v7761_v63 }
0x107d   :  { %v7873_v26 = vmax.f32 %v7853_v24, 0.0 }
0x1082   :  { %v7855_v35 = vpop.f32.mrf.mxu2 }
0x1083   :  { %v7856_v42 = vadd.f32 %v7855_v35, %v7766_v16 }
0x1085   :  { %v7874_v8 = vmax.f32 %v7856_v42, 0.0 }
0x108a   :  { %v7858_v55 = vpop.f32.mrf.mxu2 }
0x108b   :  { %v7859_v33 = vadd.f32 %v7858_v55, %v7771_v13 }
0x108d   :  { %v7875_v20 = vmax.f32 %v7859_v33, 0.0 }
0x1092   :  { %v7861_v9 = vpop.f32.mrf.mxu2 }
0x1093   :  { %v7862_v46 = vadd.f32 %v7861_v9, %v7776_v23 }
0x1095   :  { %v7876_v36 = vmax.f32 %v7862_v46, 0.0 }
0x109a   :  { %v7864_v6 = vpop.f32.mrf.mxu2 }
0x109b   :  { %v7865_v2 = vadd.f32 %v7864_v6, %v7781_v52 }
0x109d   :  { %v7877_v1 = vmax.f32 %v7865_v2, 0.0 }
0x109f   :  { %9225 = vmatpush.msk.msrb.mxu1 %vm4484_vm2, %v7877_v1 }
0x10a1   :  { %7907 = vmatpush.msrb.mxu1 %v7876_v36 }
0x10a3   :  { %7908 = vmatpush.msrb.mxu1 %v7875_v20 }
0x10a5   :  { %7909 = vmatpush.msrb.mxu1 %v7874_v8 }
0x10a7   :  { %7910 = vmatpush.msrb.mxu1 %v7873_v26 }
0x10a9   :  { %7911 = vmatpush.msrb.mxu1 %v7872_v57 }
0x10ab   :  { %7912 = vmatpush.msrb.mxu1 %v7871_v5 }
0x10ad   :  { %7913 = vmatpush.msrb.mxu1 %v7870_v29 }
0x10af   :  { %7914 = vmatpush.msrb.mxu1 %v7869_v39 }
0x10b1   :  { %7915 = vmatpush.msrb.mxu1 %v7868_v30 }
0x10b3   :  { %7916 = vmatpush.msrb.mxu1 %v7867_v28 }
0x10b4   :  { %9226 = vmatmul.msk.f32.vlgmr.msrb.gmra.mxu1 %vm4423_vm3, %v7878_v45 }
0x10bc   :  { %9227 = vmatmul.msk.f32.gmra.mxu1 %vm4423_vm3, %v7879_v43 }
0x1131   :  { %v7918_v7 = vpop.f32.mrf.mxu1 }
0x1132   :  { %v7919_v62 = vadd.f32 %v7918_v7, %v7885_v56 }
0x1134   :  { %7925 = vst.msk [vmem:[%s16012_s18] sm:$0xff] %vm7924_vm8, %v7919_v62 }
0x1139   :  { %v7921_v38 = vpop.f32.mrf.mxu1 }
0x113a   :  { %v7922_v17 = vadd.f32 %v7921_v38, %v7890_v59 }
0x113c   :  { %7927 = vst.msk [vmem:[%s16012_s18 + $0x8] sm:$0x3] %vm7926_vm9, %v7922_v17 }

</bundles_post_ra>
